<compile_context>
chip_gen: v5e
topology: v5e:2x2
jax: 0.10.0
libtpu: 0.0.40
codegen_flags: <defaults>
</compile_context>

<pallas_src>
import functools

import jax
import jax.numpy as jnp
from jax import lax
from jax.experimental import pallas as pl
from jax.experimental.pallas import tpu as pltpu


# ----------------------------------------------------------------------------
# Fused forward kernel factory.
#   Per grid step (one batch tile of Bt sentences), all refs VMEM-resident:
#     x_ref                : [Bt, S, D_in]  bf16   embedded inputs
#     per layer l:
#       wih_ref            : [D_l, 8Hp] bf16   packed input->gate weights
#       whh_ref            : [2Hp, 8Hp] bf16   block-diag recurrent weights
#       b_ref              : [1, 8Hp]   f32    packed gate bias
#     whd_ref / bhd_ref    : [2Hp, 2Mp] bf16 / [1, 2Mp] f32  fused head|dep MLP
#     wbi_ref / wbib_ref   : [Mp, Mp] bf16 / [1, Mp] f32     biaffine W[:M], W[M]
#     tt_ref               : [Bt, S] int32   true head per modifier
#   Outputs:
#     scores_ref           : [Bt, S, SP] f32  scores_T[b, m, h]  (head axis padded)
#     loss_ref             : [Bt, 1] f32      per-sentence NLL
#   Scratch:
#     hid_sc               : [Bt, S, 2Hp] f32  per-layer BiLSTM output
# ----------------------------------------------------------------------------
def make_parser_kernel(n_layers, Bt, S, SP, Hp, Mp):
    Gp = 2 * Hp          # lane width of one combined (fwd|bwd) gate slot, %128 == 0
    Wg = 4 * Gp          # total packed gate width (i, f, g, o)

    def kernel(*refs):
        x_ref = refs[0]
        layer_refs = [(refs[1 + 3 * l], refs[2 + 3 * l], refs[3 + 3 * l])
                      for l in range(n_layers)]
        base = 1 + 3 * n_layers
        whd_ref, bhd_ref, wbi_ref, wbib_ref, tt_ref = refs[base:base + 5]
        scores_ref, loss_ref = refs[base + 5], refs[base + 6]
        hid_sc = refs[base + 7]

        # Lane mask (hoisted once): within each 2*Hp gate slot the first Hp
        # lanes belong to the forward direction, the last Hp to the backward.
        lane = lax.broadcasted_iota(jnp.int32, (Bt, Wg), 1)
        is_fwd_lane = (lane % Gp) < Hp

        xl = x_ref[...].reshape(Bt * S, -1)                   # bf16 [Bt*S, D_in]
        for l in range(n_layers):
            wih_ref, whh_ref, b_ref = layer_refs[l]
            # Hoisted input projection for BOTH directions and all gates.
            gx = (jnp.dot(xl, wih_ref[...], preferred_element_type=jnp.float32)
                  + b_ref[...])                               # f32 [Bt*S, Wg]
            gx = gx.reshape(Bt, S, Wg)

            hcat = jnp.zeros((Bt, Gp), jnp.float32)           # [h_fwd | h_bwd]
            ccat = jnp.zeros((Bt, Gp), jnp.float32)
            for t in range(S):                                # static unroll
                tb = S - 1 - t                                # backward position
                # fwd lanes read position t, bwd lanes read position S-1-t.
                gxt = jnp.where(is_fwd_lane, gx[:, t, :], gx[:, tb, :])
                # Block-diagonal Whh: one matmul updates both directions.
                gates = gxt + jnp.dot(hcat.astype(jnp.bfloat16), whh_ref[...],
                                      preferred_element_type=jnp.float32)
                # Fused, 128-lane aligned gate math for both directions.
                i_g = jax.nn.sigmoid(gates[:, 0 * Gp:1 * Gp])
                f_g = jax.nn.sigmoid(gates[:, 1 * Gp:2 * Gp])
                g_g = jnp.tanh(gates[:, 2 * Gp:3 * Gp])
                o_g = jax.nn.sigmoid(gates[:, 3 * Gp:4 * Gp])
                ccat = f_g * ccat + i_g * g_g
                hcat = o_g * jnp.tanh(ccat)
                # fwd output at position t, bwd output at position S-1-t.
                hid_sc[:, t:t + 1, 0:Hp] = hcat[:, 0:Hp].reshape(Bt, 1, Hp)
                hid_sc[:, tb:tb + 1, Hp:Gp] = hcat[:, Hp:Gp].reshape(Bt, 1, Hp)
            xl = hid_sc[...].reshape(Bt * S, Gp).astype(jnp.bfloat16)

        # Fused head/dep MLP: one [Bt*S, 2Hp] x [2Hp, 2Mp] matmul, then split
        # at a 128-aligned boundary.
        hd = jnp.tanh(jnp.dot(xl, whd_ref[...], preferred_element_type=jnp.float32)
                      + bhd_ref[...])                          # [Bt*S, 2Mp]
        heads = hd[:, 0:Mp]
        dep = hd[:, Mp:2 * Mp]

        # pad_dep @ W  ==  dep @ W[:M] + W[M]   (ones column folded into wbib)
        a = (jnp.dot(dep.astype(jnp.bfloat16), wbi_ref[...],
                     preferred_element_type=jnp.float32) + wbib_ref[...])   # [Bt*S, Mp]

        a3 = a.reshape(Bt, S, Mp).astype(jnp.bfloat16)
        heads3 = heads.reshape(Bt, S, Mp).astype(jnp.bfloat16)
        # Pad candidate-head axis to SP (multiple of 128) with zero rows so the
        # scores output is lane-dense and the softmax reduces over the lane axis.
        heads_p = jnp.concatenate(
            [heads3, jnp.zeros((Bt, SP - S, Mp), jnp.bfloat16)], axis=1)    # [Bt, SP, Mp]

        # B[b, m, h] = a[b, m] . heads[b, h]  (transposed vs the reference so the
        # log-softmax / NLL reduce over the last (lane) axis).
        B = lax.dot_general(a3, heads_p, (((2,), (2,)), ((0,), (0,))),
                            preferred_element_type=jnp.float32)             # [Bt, S, SP]

        h_ids = lax.broadcasted_iota(jnp.int32, (Bt, S, SP), 2)   # candidate head
        m_ids = lax.broadcasted_iota(jnp.int32, (Bt, S, SP), 1)   # modifier index
        B = jnp.where(h_ids < S, B, jnp.float32(-1e30))           # mask padded heads
        scores_ref[...] = B

        # log-softmax over candidate heads (lane axis).
        mx = jnp.max(B, axis=2, keepdims=True)
        lse = jnp.log(jnp.sum(jnp.exp(B - mx), axis=2, keepdims=True)) + mx
        log_sm = B - lse                                                    # [Bt, S, SP]

        tt = tt_ref[...]                                                    # [Bt, S]
        sel = (h_ids == tt[:, :, None]) & (m_ids >= 1)
        per_m = jnp.sum(jnp.where(sel, log_sm, 0.0), axis=2)                # [Bt, S]
        total = jnp.sum(per_m, axis=1, keepdims=True)                       # [Bt, 1]
        loss_ref[...] = -total / jnp.float32(S - 1)

    return kernel


def run_parser_kernel(x, layer_packs, whd, bhd, wbi, wbib, tt, *, b_tile):
    B, S, d_in = x.shape
    Hp = layer_packs[0][1].shape[0] // 2          # whh_blk is [2Hp, 8Hp]
    Mp = wbi.shape[0]
    SP = ((S + 127) // 128) * 128                 # lane-dense padded head axis
    n_layers = len(layer_packs)
    assert B % b_tile == 0 and (b_tile % 8 == 0 or b_tile == B)
    nb = B // b_tile

    weights = []
    for pack in layer_packs:
        weights.extend(pack)
    weights.extend([whd, bhd, wbi, wbib])

    in_specs = [pl.BlockSpec((b_tile, S, d_in), lambda i: (i, 0, 0))]
    # Weights: full-shape blocks with a constant index -> stay VMEM-resident.
    in_specs += [pl.BlockSpec(w.shape, lambda i: (0, 0)) for w in weights]
    in_specs += [pl.BlockSpec((b_tile, S), lambda i: (i, 0))]

    out_specs = (
        pl.BlockSpec((b_tile, S, SP), lambda i: (i, 0, 0)),
        pl.BlockSpec((b_tile, 1), lambda i: (i, 0)),
    )

    return pl.pallas_call(
        make_parser_kernel(n_layers, b_tile, S, SP, Hp, Mp),
        grid=(nb,),
        out_shape=(
            jax.ShapeDtypeStruct((B, S, SP), jnp.float32),   # scores_T[b, m, h]
            jax.ShapeDtypeStruct((B, 1), jnp.float32),       # per-sentence loss
        ),
        in_specs=in_specs,
        out_specs=out_specs,
        scratch_shapes=[pltpu.VMEM((b_tile, S, 2 * Hp), jnp.float32)],
        compiler_params=pltpu.CompilerParams(
            dimension_semantics=("parallel",),               # shard batch across TCs (v7x)
            vmem_limit_bytes=32 * 1024 * 1024,
        ),
    )(x, *weights, tt)


# ----------------------------------------------------------------------------
# Weight packing (JAX glue, fused into the jitted forward).
# ----------------------------------------------------------------------------
def _expand_hidden_rows(w, H, Hp):
    # [2H, N] -> [2Hp, N]; fwd rows -> 0:H, bwd rows -> Hp:Hp+H, rest zero.
    out = jnp.zeros((2 * Hp, w.shape[1]), w.dtype)
    out = out.at[0:H, :].set(w[0:H, :])
    out = out.at[Hp:Hp + H, :].set(w[H:2 * H, :])
    return out


def _pack_gate_cols(w_fwd, w_bwd, H, Hp):
    # [D, 4H] per direction (gate col order i, f, g, o) -> [D, 8Hp] interleaved
    # slots [i_f|i_b | f_f|f_b | g_f|g_b | o_f|o_b], each sub-slot padded H->Hp.
    D = w_fwd.shape[0]
    Gp = 2 * Hp
    out = jnp.zeros((D, 4 * Gp), jnp.float32)
    for k in range(4):
        out = out.at[:, k * Gp:k * Gp + H].set(w_fwd[:, k * H:(k + 1) * H])
        out = out.at[:, k * Gp + Hp:k * Gp + Hp + H].set(w_bwd[:, k * H:(k + 1) * H])
    return out


def _pack_bilstm_layer(fwd, bwd, H, Hp, expand_input):
    wih_f, wih_b = fwd["wih"], bwd["wih"]
    if expand_input:   # layers > 0 consume the padded [*, 2Hp] hidden layout
        wih_f = _expand_hidden_rows(wih_f, H, Hp)
        wih_b = _expand_hidden_rows(wih_b, H, Hp)
    wih = _pack_gate_cols(wih_f, wih_b, H, Hp).astype(jnp.bfloat16)

    whh_f = jnp.zeros((2 * Hp, 4 * H), jnp.float32).at[0:H, :].set(fwd["whh"])
    whh_b = jnp.zeros((2 * Hp, 4 * H), jnp.float32).at[Hp:Hp + H, :].set(bwd["whh"])
    whh = _pack_gate_cols(whh_f, whh_b, H, Hp).astype(jnp.bfloat16)   # block-diagonal

    b = _pack_gate_cols(fwd["b"], bwd["b"], H, Hp)                    # [1, 8Hp] f32
    return (wih, whh, b)


def _pack_head_dep_mlp(params, H, Hp, M, Mp):
    wh = _expand_hidden_rows(params["w_head"], H, Hp)
    wd = _expand_hidden_rows(params["w_dep"], H, Hp)
    whd = jnp.zeros((2 * Hp, 2 * Mp), jnp.float32)
    whd = whd.at[:, 0:M].set(wh).at[:, Mp:Mp + M].set(wd)
    bhd = jnp.zeros((1, 2 * Mp), jnp.float32)
    bhd = bhd.at[:, 0:M].set(params["b_head"]).at[:, Mp:Mp + M].set(params["b_dep"])
    return whd.astype(jnp.bfloat16), bhd


# ----------------------------------------------------------------------------
# Parameter construction (deterministic, synthetic) and full forward pass.
# ----------------------------------------------------------------------------
def init_params(key, *, w_vocab, w_emb, pos_vocab, pos_emb,
                n_lstm_layers, lstm_hid, mlp_hid):
    keys = iter(jax.random.split(key, 64))
    nrm = lambda shape, s=0.1: (s * jax.random.normal(next(keys), shape)).astype(jnp.float32)

    params = {
        "word_emb": nrm((w_vocab, w_emb)),
        "pos_emb": nrm((pos_vocab, pos_emb)),
        "lstm": [],
        "w_head": nrm((2 * lstm_hid, mlp_hid)),
        "b_head": nrm((1, mlp_hid)),
        "w_dep": nrm((2 * lstm_hid, mlp_hid)),
        "b_dep": nrm((1, mlp_hid)),
        "w_biaffine": nrm((mlp_hid + 1, mlp_hid)),
    }
    in_dim = w_emb + pos_emb
    for layer in range(n_lstm_layers):
        d_in = in_dim if layer == 0 else 2 * lstm_hid
        layer_params = []
        for _direction in range(2):  # forward, backward
            layer_params.append({
                "wih": nrm((d_in, 4 * lstm_hid)),   # gate column order: i, f, g, o
                "whh": nrm((lstm_hid, 4 * lstm_hid)),
                "b": nrm((1, 4 * lstm_hid)),        # b_ih + b_hh combined
            })
        params["lstm"].append(layer_params)
    return params


@functools.partial(jax.jit, static_argnames=("b_tile",))
def dependency_parser_forward(params, word_idx, pos_idx, true_trees, b_tile=8):
    # word_idx, pos_idx, true_trees: [B, S] int32  (B independent sentences)
    B, S = word_idx.shape
    H = params["lstm"][0][0]["whh"].shape[0]
    M = params["w_head"].shape[1]
    Hp = ((H + 63) // 64) * 64          # 2*Hp is a multiple of 128
    Mp = ((M + 127) // 128) * 128

    # Embedding lookups (glue: gather), cast to bf16 for the MXU.
    w_e = jnp.take(params["word_emb"], word_idx, axis=0)      # [B, S, w_emb]
    p_e = jnp.take(params["pos_emb"], pos_idx, axis=0)        # [B, S, pos_emb]
    x = jnp.concatenate([w_e, p_e], axis=-1).astype(jnp.bfloat16)

    # Pack BiLSTM / MLP / biaffine weights into the padded fused-kernel layouts.
    layer_packs = [
        _pack_bilstm_layer(lp[0], lp[1], H, Hp, expand_input=(l > 0))
        for l, lp in enumerate(params["lstm"])
    ]
    whd, bhd = _pack_head_dep_mlp(params, H, Hp, M, Mp)
    wbi = (jnp.zeros((Mp, Mp), jnp.float32)
           .at[:M, :M].set(params["w_biaffine"][:M, :]).astype(jnp.bfloat16))
    wbib = jnp.zeros((1, Mp), jnp.float32).at[:, :M].set(params["w_biaffine"][M:M + 1, :])

    tt = true_trees.astype(jnp.int32)
    scores_p, losses = run_parser_kernel(x, layer_packs, whd, bhd, wbi, wbib, tt,
                                         b_tile=b_tile)

    scores_bmh = scores_p[:, :, :S]          # drop lane padding of the head axis
    # TODO(synk): decode_mst (Chu-Liu-Edmonds MST) has no clean Pallas / vector
    # equivalent; greedy per-modifier argmax over candidate heads is the stand-in.
    pred_heads = jnp.argmax(scores_bmh, axis=2).at[:, 0].set(0)
    scores_bhm = jnp.swapaxes(scores_bmh, 1, 2)   # reference orientation scores[h, m]
    return losses[:, 0], pred_heads, scores_bhm


# ----------------------------------------------------------------------------
# Pure-JAX f32 reference (mirrors the PyTorch module) for tolerance checking.
# ----------------------------------------------------------------------------
def reference_forward(params, word_idx, pos_idx, true_trees):
    B, S = word_idx.shape
    H = params["lstm"][0][0]["whh"].shape[0]
    w_e = jnp.take(params["word_emb"], word_idx, axis=0)
    p_e = jnp.take(params["pos_emb"], pos_idx, axis=0)
    h = jnp.concatenate([w_e, p_e], axis=-1)

    def run_dir(xs, p):
        hh = jnp.zeros((B, H), jnp.float32)
        cc = jnp.zeros((B, H), jnp.float32)
        outs = []
        for t in range(S):
            g = xs[:, t, :] @ p["wih"] + hh @ p["whh"] + p["b"]
            i = jax.nn.sigmoid(g[:, 0 * H:1 * H])
            f = jax.nn.sigmoid(g[:, 1 * H:2 * H])
            gg = jnp.tanh(g[:, 2 * H:3 * H])
            o = jax.nn.sigmoid(g[:, 3 * H:4 * H])
            cc = f * cc + i * gg
            hh = o * jnp.tanh(cc)
            outs.append(hh)
        return jnp.stack(outs, axis=1)

    for lp in params["lstm"]:
        fwd = run_dir(h, lp[0])
        bwd = run_dir(h[:, ::-1, :], lp[1])[:, ::-1, :]
        h = jnp.concatenate([fwd, bwd], axis=-1)

    heads = jnp.tanh(h @ params["w_head"] + params["b_head"])
    dep = jnp.tanh(h @ params["w_dep"] + params["b_dep"])
    pad_dep = jnp.concatenate([dep, jnp.ones(dep.shape[:2] + (1,), dep.dtype)], axis=-1)
    tmp = pad_dep @ params["w_biaffine"]
    scores_bmh = jnp.einsum("bmk,bhk->bmh", tmp, heads)
    scores_bhm = jnp.swapaxes(scores_bmh, 1, 2)                    # scores[h, m]
    log_sm = jax.nn.log_softmax(scores_bhm, axis=1)
    gathered = jnp.take_along_axis(log_sm, true_trees[:, None, :], axis=1)[:, 0, :]
    losses = -jnp.sum(gathered[:, 1:], axis=1) / (S - 1)
    return losses, scores_bhm


if __name__ == "__main__":
    # Small, deterministic configuration.
    S = 8                 # n_words (incl. root at position 0)
    W_VOCAB = 50
    POS_VOCAB = 12
    W_EMB = 16
    POS_EMB = 16
    LSTM_HID = 32
    MLP_HID = 32
    N_LSTM_LAYERS = 2
    BATCH = 16            # sentences; production should use >= 128 per the review
    B_TILE = 8            # batch tile per grid step (multiple of 8)

    key = jax.random.PRNGKey(0)
    k_par, k_w, k_p, k_t = jax.random.split(key, 4)

    params = init_params(
        k_par,
        w_vocab=W_VOCAB, w_emb=W_EMB,
        pos_vocab=POS_VOCAB, pos_emb=POS_EMB,
        n_lstm_layers=N_LSTM_LAYERS, lstm_hid=LSTM_HID, mlp_hid=MLP_HID,
    )

    word_idx = jax.random.randint(k_w, (BATCH, S), 0, W_VOCAB, dtype=jnp.int32)
    pos_idx = jax.random.randint(k_p, (BATCH, S), 0, POS_VOCAB, dtype=jnp.int32)
    # true head for each modifier m>=1 (entry 0 = root, unused by the loss)
    true_trees = jax.random.randint(k_t, (BATCH, S), 0, S, dtype=jnp.int32).at[:, 0].set(0)

    losses, pred_heads, scores = dependency_parser_forward(
        params, word_idx, pos_idx, true_trees, b_tile=B_TILE
    )
    jax.block_until_ready((losses, pred_heads, scores))

    assert losses.shape == (BATCH,)
    assert pred_heads.shape == (BATCH, S)
    assert scores.shape == (BATCH, S, S)
    assert bool(jnp.all(jnp.isfinite(losses)))

    # Tolerance check against the pure-JAX f32 reference (bf16 MXU drift expected).
    ref_losses, ref_scores = jax.jit(reference_forward)(params, word_idx, pos_idx, true_trees)
    assert jnp.allclose(losses, ref_losses, rtol=0.0, atol=5e-2), \
        f"loss mismatch: {float(jnp.max(jnp.abs(losses - ref_losses)))}"
    assert jnp.allclose(scores, ref_scores, rtol=0.0, atol=5e-2), \
        f"scores mismatch: {float(jnp.max(jnp.abs(scores - ref_scores)))}"

    print("KERNEL_OK")
</pallas_src>

<mosaic_0001>
module attributes {stable_mosaic.version = 11 : i64} {
  func.func @kernel(%arg0: i32, %arg1: memref<8x8x32xbf16, #tpu.memory_space<vmem>>, %arg2: memref<32x512xbf16, #tpu.memory_space<vmem>>, %arg3: memref<128x512xbf16, #tpu.memory_space<vmem>>, %arg4: memref<1x512xf32, #tpu.memory_space<vmem>>, %arg5: memref<128x512xbf16, #tpu.memory_space<vmem>>, %arg6: memref<128x512xbf16, #tpu.memory_space<vmem>>, %arg7: memref<1x512xf32, #tpu.memory_space<vmem>>, %arg8: memref<128x256xbf16, #tpu.memory_space<vmem>>, %arg9: memref<1x256xf32, #tpu.memory_space<vmem>>, %arg10: memref<128x128xbf16, #tpu.memory_space<vmem>>, %arg11: memref<1x128xf32, #tpu.memory_space<vmem>>, %arg12: memref<8x8xi32, #tpu.memory_space<vmem>>, %arg13: memref<8x8x128xf32, #tpu.memory_space<vmem>>, %arg14: memref<8x1xf32, #tpu.memory_space<vmem>>, %arg15: memref<8x8x128xf32, #tpu.memory_space<vmem>>) attributes {dimension_semantics = [#tpu.dimension_semantics<parallel>], iteration_bounds = array<i64: 2>, scalar_prefetch = 0 : i64, scratch_operands = 1 : i64, tpu.core_type = #tpu.core_type<tc>, window_params = [{transform_indices = @transform_0, window_bounds = array<i64: 8, 8, 32>}, {pipeline_mode = #tpu.pipeline_mode<synchronous>, transform_indices = @transform_1, window_bounds = array<i64: 32, 512>}, {pipeline_mode = #tpu.pipeline_mode<synchronous>, transform_indices = @transform_2, window_bounds = array<i64: 128, 512>}, {pipeline_mode = #tpu.pipeline_mode<synchronous>, transform_indices = @transform_3, window_bounds = array<i64: 1, 512>}, {pipeline_mode = #tpu.pipeline_mode<synchronous>, transform_indices = @transform_4, window_bounds = array<i64: 128, 512>}, {pipeline_mode = #tpu.pipeline_mode<synchronous>, transform_indices = @transform_5, window_bounds = array<i64: 128, 512>}, {pipeline_mode = #tpu.pipeline_mode<synchronous>, transform_indices = @transform_6, window_bounds = array<i64: 1, 512>}, {pipeline_mode = #tpu.pipeline_mode<synchronous>, transform_indices = @transform_7, window_bounds = array<i64: 128, 256>}, {pipeline_mode = #tpu.pipeline_mode<synchronous>, transform_indices = @transform_8, window_bounds = array<i64: 1, 256>}, {pipeline_mode = #tpu.pipeline_mode<synchronous>, transform_indices = @transform_9, window_bounds = array<i64: 128, 128>}, {pipeline_mode = #tpu.pipeline_mode<synchronous>, transform_indices = @transform_10, window_bounds = array<i64: 1, 128>}, {transform_indices = @transform_11, window_bounds = array<i64: 8, 8>}, {transform_indices = @transform_12, window_bounds = array<i64: 8, 8, 128>}, {transform_indices = @transform_13, window_bounds = array<i64: 8, 1>}]} {
    %0 = tpu.iota {dimensions = array<i32: 1>} : vector<8x512xi32>
    %c128_i32 = arith.constant 128 : i32
    %c0_i32 = arith.constant 0 : i32
    %1 = arith.cmpi eq, %c128_i32, %c0_i32 : i32
    %c1_i32 = arith.constant 1 : i32
    %2 = arith.select %1, %c1_i32, %c128_i32 : i32
    %3 = vector.broadcast %2 : i32 to vector<8x512xi32>
    %4 = arith.remsi %0, %3 : vector<8x512xi32>
    %c0_i32_0 = arith.constant 0 : i32
    %5 = vector.broadcast %c0_i32_0 : i32 to vector<8x512xi32>
    %6 = arith.cmpi ne, %4, %5 : vector<8x512xi32>
    %c0_i32_1 = arith.constant 0 : i32
    %7 = vector.broadcast %c0_i32_1 : i32 to vector<8x512xi32>
    %8 = arith.cmpi slt, %4, %7 : vector<8x512xi32>
    %c0_i32_2 = arith.constant 0 : i32
    %9 = arith.cmpi slt, %2, %c0_i32_2 : i32
    %10 = vector.broadcast %9 : i1 to vector<8x512xi1>
    %11 = vector.broadcast %10 : vector<8x512xi1> to vector<8x512xi1>
    %12 = arith.xori %8, %11 : vector<8x512xi1>
    %13 = arith.andi %12, %6 : vector<8x512xi1>
    %14 = vector.broadcast %2 : i32 to vector<8x512xi32>
    %15 = arith.addi %4, %14 : vector<8x512xi32>
    %16 = arith.select %13, %15, %4 : vector<8x512xi1>, vector<8x512xi32>
    %c64_i32 = arith.constant 64 : i32
    %17 = vector.broadcast %c64_i32 : i32 to vector<8x512xi32>
    %18 = arith.cmpi slt, %16, %17 : vector<8x512xi32>
    %c0 = arith.constant 0 : index
    %c0_3 = arith.constant 0 : index
    %c0_4 = arith.constant 0 : index
    %19 = vector.load %arg1[%c0, %c0_3, %c0_4] : memref<8x8x32xbf16, #tpu.memory_space<vmem>>, vector<8x8x32xbf16>
    %20 = vector.shape_cast %19 : vector<8x8x32xbf16> to vector<64x32xbf16>
    %c0_5 = arith.constant 0 : index
    %c0_6 = arith.constant 0 : index
    %21 = vector.load %arg2[%c0_5, %c0_6] : memref<32x512xbf16, #tpu.memory_space<vmem>>, vector<32x512xbf16>
    %cst = arith.constant dense<0.000000e+00> : vector<64x512xf32>
    %22 = tpu.matmul %20, %21, %cst {dimension_numbers = #tpu.dot_dimension_numbers<[1], [0], [0], [1], [0, 0, 1, 1], [], []>} : vector<64x32xbf16>, vector<32x512xbf16>, vector<64x512xf32> -> vector<64x512xf32>
    %c0_7 = arith.constant 0 : index
    %c0_8 = arith.constant 0 : index
    %23 = vector.load %arg4[%c0_7, %c0_8] : memref<1x512xf32, #tpu.memory_space<vmem>>, vector<1x512xf32>
    %24 = vector.broadcast %23 : vector<1x512xf32> to vector<64x512xf32>
    %25 = arith.addf %22, %24 : vector<64x512xf32>
    %26 = vector.shape_cast %25 : vector<64x512xf32> to vector<8x8x512xf32>
    %cst_9 = arith.constant 0.000000e+00 : f32
    %27 = vector.broadcast %cst_9 : f32 to vector<8x128xf32>
    %cst_10 = arith.constant 0.000000e+00 : f32
    %28 = vector.broadcast %cst_10 : f32 to vector<8x128xf32>
    %29 = vector.extract_strided_slice %26 {offsets = [0, 0, 0], sizes = [8, 1, 512], strides = [1, 1, 1]} : vector<8x8x512xf32> to vector<8x1x512xf32>
    %30 = vector.shape_cast %29 : vector<8x1x512xf32> to vector<8x512xf32>
    %31 = vector.extract_strided_slice %26 {offsets = [0, 7, 0], sizes = [8, 1, 512], strides = [1, 1, 1]} : vector<8x8x512xf32> to vector<8x1x512xf32>
    %32 = vector.shape_cast %31 : vector<8x1x512xf32> to vector<8x512xf32>
    %33 = arith.select %18, %30, %32 : vector<8x512xi1>, vector<8x512xf32>
    %34 = arith.truncf %27 : vector<8x128xf32> to vector<8x128xbf16>
    %c0_11 = arith.constant 0 : index
    %c0_12 = arith.constant 0 : index
    %35 = vector.load %arg3[%c0_11, %c0_12] : memref<128x512xbf16, #tpu.memory_space<vmem>>, vector<128x512xbf16>
    %cst_13 = arith.constant dense<0.000000e+00> : vector<8x512xf32>
    %36 = tpu.matmul %34, %35, %cst_13 {dimension_numbers = #tpu.dot_dimension_numbers<[1], [0], [0], [1], [0, 0, 1, 1], [], []>} : vector<8x128xbf16>, vector<128x512xbf16>, vector<8x512xf32> -> vector<8x512xf32>
    %37 = arith.addf %33, %36 : vector<8x512xf32>
    %38 = vector.extract_strided_slice %37 {offsets = [0, 0], sizes = [8, 128], strides = [1, 1]} : vector<8x512xf32> to vector<8x128xf32>
    %39 = arith.negf %38 : vector<8x128xf32>
    %40 = math.exp %39 : vector<8x128xf32>
    %cst_14 = arith.constant 1.000000e+00 : f32
    %41 = vector.broadcast %cst_14 : f32 to vector<8x128xf32>
    %42 = arith.addf %41, %40 : vector<8x128xf32>
    %43 = arith.divf %41, %42 : vector<8x128xf32>
    %44 = vector.extract_strided_slice %37 {offsets = [0, 128], sizes = [8, 128], strides = [1, 1]} : vector<8x512xf32> to vector<8x128xf32>
    %45 = arith.negf %44 : vector<8x128xf32>
    %46 = math.exp %45 : vector<8x128xf32>
    %cst_15 = arith.constant 1.000000e+00 : f32
    %47 = vector.broadcast %cst_15 : f32 to vector<8x128xf32>
    %48 = arith.addf %47, %46 : vector<8x128xf32>
    %49 = arith.divf %47, %48 : vector<8x128xf32>
    %50 = vector.extract_strided_slice %37 {offsets = [0, 256], sizes = [8, 128], strides = [1, 1]} : vector<8x512xf32> to vector<8x128xf32>
    %51 = math.tanh %50 : vector<8x128xf32>
    %52 = vector.extract_strided_slice %37 {offsets = [0, 384], sizes = [8, 128], strides = [1, 1]} : vector<8x512xf32> to vector<8x128xf32>
    %53 = arith.negf %52 : vector<8x128xf32>
    %54 = math.exp %53 : vector<8x128xf32>
    %cst_16 = arith.constant 1.000000e+00 : f32
    %55 = vector.broadcast %cst_16 : f32 to vector<8x128xf32>
    %56 = arith.addf %55, %54 : vector<8x128xf32>
    %57 = arith.divf %55, %56 : vector<8x128xf32>
    %58 = arith.mulf %49, %28 : vector<8x128xf32>
    %59 = arith.mulf %43, %51 : vector<8x128xf32>
    %60 = arith.addf %58, %59 : vector<8x128xf32>
    %61 = math.tanh %60 : vector<8x128xf32>
    %62 = arith.mulf %57, %61 : vector<8x128xf32>
    %63 = vector.extract_strided_slice %62 {offsets = [0, 0], sizes = [8, 64], strides = [1, 1]} : vector<8x128xf32> to vector<8x64xf32>
    %64 = vector.shape_cast %63 : vector<8x64xf32> to vector<8x1x64xf32>
    %c0_17 = arith.constant 0 : index
    %c0_18 = arith.constant 0 : index
    %c0_19 = arith.constant 0 : index
    %65 = vector.load %arg15[%c0_17, %c0_18, %c0_19] : memref<8x8x128xf32, #tpu.memory_space<vmem>>, vector<8x1x64xf32>
    tpu.vector_store %arg15[%c0_17, %c0_18, %c0_19], %64 {strides = array<i32>} : memref<8x8x128xf32, #tpu.memory_space<vmem>>, vector<8x1x64xf32>,
    %66 = vector.extract_strided_slice %62 {offsets = [0, 64], sizes = [8, 64], strides = [1, 1]} : vector<8x128xf32> to vector<8x64xf32>
    %67 = vector.shape_cast %66 : vector<8x64xf32> to vector<8x1x64xf32>
    %c0_20 = arith.constant 0 : index
    %c7 = arith.constant 7 : index
    %c64 = arith.constant 64 : index
    %68 = vector.load %arg15[%c0_20, %c7, %c64] : memref<8x8x128xf32, #tpu.memory_space<vmem>>, vector<8x1x64xf32>
    tpu.vector_store %arg15[%c0_20, %c7, %c64], %67 {strides = array<i32>} : memref<8x8x128xf32, #tpu.memory_space<vmem>>, vector<8x1x64xf32>,
    %69 = vector.extract_strided_slice %26 {offsets = [0, 1, 0], sizes = [8, 1, 512], strides = [1, 1, 1]} : vector<8x8x512xf32> to vector<8x1x512xf32>
    %70 = vector.shape_cast %69 : vector<8x1x512xf32> to vector<8x512xf32>
    %71 = vector.extract_strided_slice %26 {offsets = [0, 6, 0], sizes = [8, 1, 512], strides = [1, 1, 1]} : vector<8x8x512xf32> to vector<8x1x512xf32>
    %72 = vector.shape_cast %71 : vector<8x1x512xf32> to vector<8x512xf32>
    %73 = arith.select %18, %70, %72 : vector<8x512xi1>, vector<8x512xf32>
    %74 = arith.truncf %62 : vector<8x128xf32> to vector<8x128xbf16>
    %c0_21 = arith.constant 0 : index
    %c0_22 = arith.constant 0 : index
    %75 = vector.load %arg3[%c0_21, %c0_22] : memref<128x512xbf16, #tpu.memory_space<vmem>>, vector<128x512xbf16>
    %cst_23 = arith.constant dense<0.000000e+00> : vector<8x512xf32>
    %76 = tpu.matmul %74, %75, %cst_23 {dimension_numbers = #tpu.dot_dimension_numbers<[1], [0], [0], [1], [0, 0, 1, 1], [], []>} : vector<8x128xbf16>, vector<128x512xbf16>, vector<8x512xf32> -> vector<8x512xf32>
    %77 = arith.addf %73, %76 : vector<8x512xf32>
    %78 = vector.extract_strided_slice %77 {offsets = [0, 0], sizes = [8, 128], strides = [1, 1]} : vector<8x512xf32> to vector<8x128xf32>
    %79 = arith.negf %78 : vector<8x128xf32>
    %80 = math.exp %79 : vector<8x128xf32>
    %cst_24 = arith.constant 1.000000e+00 : f32
    %81 = vector.broadcast %cst_24 : f32 to vector<8x128xf32>
    %82 = arith.addf %81, %80 : vector<8x128xf32>
    %83 = arith.divf %81, %82 : vector<8x128xf32>
    %84 = vector.extract_strided_slice %77 {offsets = [0, 128], sizes = [8, 128], strides = [1, 1]} : vector<8x512xf32> to vector<8x128xf32>
    %85 = arith.negf %84 : vector<8x128xf32>
    %86 = math.exp %85 : vector<8x128xf32>
    %cst_25 = arith.constant 1.000000e+00 : f32
    %87 = vector.broadcast %cst_25 : f32 to vector<8x128xf32>
    %88 = arith.addf %87, %86 : vector<8x128xf32>
    %89 = arith.divf %87, %88 : vector<8x128xf32>
    %90 = vector.extract_strided_slice %77 {offsets = [0, 256], sizes = [8, 128], strides = [1, 1]} : vector<8x512xf32> to vector<8x128xf32>
    %91 = math.tanh %90 : vector<8x128xf32>
    %92 = vector.extract_strided_slice %77 {offsets = [0, 384], sizes = [8, 128], strides = [1, 1]} : vector<8x512xf32> to vector<8x128xf32>
    %93 = arith.negf %92 : vector<8x128xf32>
    %94 = math.exp %93 : vector<8x128xf32>
    %cst_26 = arith.constant 1.000000e+00 : f32
    %95 = vector.broadcast %cst_26 : f32 to vector<8x128xf32>
    %96 = arith.addf %95, %94 : vector<8x128xf32>
    %97 = arith.divf %95, %96 : vector<8x128xf32>
    %98 = arith.mulf %89, %60 : vector<8x128xf32>
    %99 = arith.mulf %83, %91 : vector<8x128xf32>
    %100 = arith.addf %98, %99 : vector<8x128xf32>
    %101 = math.tanh %100 : vector<8x128xf32>
    %102 = arith.mulf %97, %101 : vector<8x128xf32>
    %103 = vector.extract_strided_slice %102 {offsets = [0, 0], sizes = [8, 64], strides = [1, 1]} : vector<8x128xf32> to vector<8x64xf32>
    %104 = vector.shape_cast %103 : vector<8x64xf32> to vector<8x1x64xf32>
    %c0_27 = arith.constant 0 : index
    %c1 = arith.constant 1 : index
    %c0_28 = arith.constant 0 : index
    %105 = vector.load %arg15[%c0_27, %c1, %c0_28] : memref<8x8x128xf32, #tpu.memory_space<vmem>>, vector<8x1x64xf32>
    tpu.vector_store %arg15[%c0_27, %c1, %c0_28], %104 {strides = array<i32>} : memref<8x8x128xf32, #tpu.memory_space<vmem>>, vector<8x1x64xf32>,
    %106 = vector.extract_strided_slice %102 {offsets = [0, 64], sizes = [8, 64], strides = [1, 1]} : vector<8x128xf32> to vector<8x64xf32>
    %107 = vector.shape_cast %106 : vector<8x64xf32> to vector<8x1x64xf32>
    %c0_29 = arith.constant 0 : index
    %c6 = arith.constant 6 : index
    %c64_30 = arith.constant 64 : index
    %108 = vector.load %arg15[%c0_29, %c6, %c64_30] : memref<8x8x128xf32, #tpu.memory_space<vmem>>, vector<8x1x64xf32>
    tpu.vector_store %arg15[%c0_29, %c6, %c64_30], %107 {strides = array<i32>} : memref<8x8x128xf32, #tpu.memory_space<vmem>>, vector<8x1x64xf32>,
    %109 = vector.extract_strided_slice %26 {offsets = [0, 2, 0], sizes = [8, 1, 512], strides = [1, 1, 1]} : vector<8x8x512xf32> to vector<8x1x512xf32>
    %110 = vector.shape_cast %109 : vector<8x1x512xf32> to vector<8x512xf32>
    %111 = vector.extract_strided_slice %26 {offsets = [0, 5, 0], sizes = [8, 1, 512], strides = [1, 1, 1]} : vector<8x8x512xf32> to vector<8x1x512xf32>
    %112 = vector.shape_cast %111 : vector<8x1x512xf32> to vector<8x512xf32>
    %113 = arith.select %18, %110, %112 : vector<8x512xi1>, vector<8x512xf32>
    %114 = arith.truncf %102 : vector<8x128xf32> to vector<8x128xbf16>
    %c0_31 = arith.constant 0 : index
    %c0_32 = arith.constant 0 : index
    %115 = vector.load %arg3[%c0_31, %c0_32] : memref<128x512xbf16, #tpu.memory_space<vmem>>, vector<128x512xbf16>
    %cst_33 = arith.constant dense<0.000000e+00> : vector<8x512xf32>
    %116 = tpu.matmul %114, %115, %cst_33 {dimension_numbers = #tpu.dot_dimension_numbers<[1], [0], [0], [1], [0, 0, 1, 1], [], []>} : vector<8x128xbf16>, vector<128x512xbf16>, vector<8x512xf32> -> vector<8x512xf32>
    %117 = arith.addf %113, %116 : vector<8x512xf32>
    %118 = vector.extract_strided_slice %117 {offsets = [0, 0], sizes = [8, 128], strides = [1, 1]} : vector<8x512xf32> to vector<8x128xf32>
    %119 = arith.negf %118 : vector<8x128xf32>
    %120 = math.exp %119 : vector<8x128xf32>
    %cst_34 = arith.constant 1.000000e+00 : f32
    %121 = vector.broadcast %cst_34 : f32 to vector<8x128xf32>
    %122 = arith.addf %121, %120 : vector<8x128xf32>
    %123 = arith.divf %121, %122 : vector<8x128xf32>
    %124 = vector.extract_strided_slice %117 {offsets = [0, 128], sizes = [8, 128], strides = [1, 1]} : vector<8x512xf32> to vector<8x128xf32>
    %125 = arith.negf %124 : vector<8x128xf32>
    %126 = math.exp %125 : vector<8x128xf32>
    %cst_35 = arith.constant 1.000000e+00 : f32
    %127 = vector.broadcast %cst_35 : f32 to vector<8x128xf32>
    %128 = arith.addf %127, %126 : vector<8x128xf32>
    %129 = arith.divf %127, %128 : vector<8x128xf32>
    %130 = vector.extract_strided_slice %117 {offsets = [0, 256], sizes = [8, 128], strides = [1, 1]} : vector<8x512xf32> to vector<8x128xf32>
    %131 = math.tanh %130 : vector<8x128xf32>
    %132 = vector.extract_strided_slice %117 {offsets = [0, 384], sizes = [8, 128], strides = [1, 1]} : vector<8x512xf32> to vector<8x128xf32>
    %133 = arith.negf %132 : vector<8x128xf32>
    %134 = math.exp %133 : vector<8x128xf32>
    %cst_36 = arith.constant 1.000000e+00 : f32
    %135 = vector.broadcast %cst_36 : f32 to vector<8x128xf32>
    %136 = arith.addf %135, %134 : vector<8x128xf32>
    %137 = arith.divf %135, %136 : vector<8x128xf32>
    %138 = arith.mulf %129, %100 : vector<8x128xf32>
    %139 = arith.mulf %123, %131 : vector<8x128xf32>
    %140 = arith.addf %138, %139 : vector<8x128xf32>
    %141 = math.tanh %140 : vector<8x128xf32>
    %142 = arith.mulf %137, %141 : vector<8x128xf32>
    %143 = vector.extract_strided_slice %142 {offsets = [0, 0], sizes = [8, 64], strides = [1, 1]} : vector<8x128xf32> to vector<8x64xf32>
    %144 = vector.shape_cast %143 : vector<8x64xf32> to vector<8x1x64xf32>
    %c0_37 = arith.constant 0 : index
    %c2 = arith.constant 2 : index
    %c0_38 = arith.constant 0 : index
    %145 = vector.load %arg15[%c0_37, %c2, %c0_38] : memref<8x8x128xf32, #tpu.memory_space<vmem>>, vector<8x1x64xf32>
    tpu.vector_store %arg15[%c0_37, %c2, %c0_38], %144 {strides = array<i32>} : memref<8x8x128xf32, #tpu.memory_space<vmem>>, vector<8x1x64xf32>,
    %146 = vector.extract_strided_slice %142 {offsets = [0, 64], sizes = [8, 64], strides = [1, 1]} : vector<8x128xf32> to vector<8x64xf32>
    %147 = vector.shape_cast %146 : vector<8x64xf32> to vector<8x1x64xf32>
    %c0_39 = arith.constant 0 : index
    %c5 = arith.constant 5 : index
    %c64_40 = arith.constant 64 : index
    %148 = vector.load %arg15[%c0_39, %c5, %c64_40] : memref<8x8x128xf32, #tpu.memory_space<vmem>>, vector<8x1x64xf32>
    tpu.vector_store %arg15[%c0_39, %c5, %c64_40], %147 {strides = array<i32>} : memref<8x8x128xf32, #tpu.memory_space<vmem>>, vector<8x1x64xf32>,
    %149 = vector.extract_strided_slice %26 {offsets = [0, 3, 0], sizes = [8, 1, 512], strides = [1, 1, 1]} : vector<8x8x512xf32> to vector<8x1x512xf32>
    %150 = vector.shape_cast %149 : vector<8x1x512xf32> to vector<8x512xf32>
    %151 = vector.extract_strided_slice %26 {offsets = [0, 4, 0], sizes = [8, 1, 512], strides = [1, 1, 1]} : vector<8x8x512xf32> to vector<8x1x512xf32>
    %152 = vector.shape_cast %151 : vector<8x1x512xf32> to vector<8x512xf32>
    %153 = arith.select %18, %150, %152 : vector<8x512xi1>, vector<8x512xf32>
    %154 = arith.truncf %142 : vector<8x128xf32> to vector<8x128xbf16>
    %c0_41 = arith.constant 0 : index
    %c0_42 = arith.constant 0 : index
    %155 = vector.load %arg3[%c0_41, %c0_42] : memref<128x512xbf16, #tpu.memory_space<vmem>>, vector<128x512xbf16>
    %cst_43 = arith.constant dense<0.000000e+00> : vector<8x512xf32>
    %156 = tpu.matmul %154, %155, %cst_43 {dimension_numbers = #tpu.dot_dimension_numbers<[1], [0], [0], [1], [0, 0, 1, 1], [], []>} : vector<8x128xbf16>, vector<128x512xbf16>, vector<8x512xf32> -> vector<8x512xf32>
    %157 = arith.addf %153, %156 : vector<8x512xf32>
    %158 = vector.extract_strided_slice %157 {offsets = [0, 0], sizes = [8, 128], strides = [1, 1]} : vector<8x512xf32> to vector<8x128xf32>
    %159 = arith.negf %158 : vector<8x128xf32>
    %160 = math.exp %159 : vector<8x128xf32>
    %cst_44 = arith.constant 1.000000e+00 : f32
    %161 = vector.broadcast %cst_44 : f32 to vector<8x128xf32>
    %162 = arith.addf %161, %160 : vector<8x128xf32>
    %163 = arith.divf %161, %162 : vector<8x128xf32>
    %164 = vector.extract_strided_slice %157 {offsets = [0, 128], sizes = [8, 128], strides = [1, 1]} : vector<8x512xf32> to vector<8x128xf32>
    %165 = arith.negf %164 : vector<8x128xf32>
    %166 = math.exp %165 : vector<8x128xf32>
    %cst_45 = arith.constant 1.000000e+00 : f32
    %167 = vector.broadcast %cst_45 : f32 to vector<8x128xf32>
    %168 = arith.addf %167, %166 : vector<8x128xf32>
    %169 = arith.divf %167, %168 : vector<8x128xf32>
    %170 = vector.extract_strided_slice %157 {offsets = [0, 256], sizes = [8, 128], strides = [1, 1]} : vector<8x512xf32> to vector<8x128xf32>
    %171 = math.tanh %170 : vector<8x128xf32>
    %172 = vector.extract_strided_slice %157 {offsets = [0, 384], sizes = [8, 128], strides = [1, 1]} : vector<8x512xf32> to vector<8x128xf32>
    %173 = arith.negf %172 : vector<8x128xf32>
    %174 = math.exp %173 : vector<8x128xf32>
    %cst_46 = arith.constant 1.000000e+00 : f32
    %175 = vector.broadcast %cst_46 : f32 to vector<8x128xf32>
    %176 = arith.addf %175, %174 : vector<8x128xf32>
    %177 = arith.divf %175, %176 : vector<8x128xf32>
    %178 = arith.mulf %169, %140 : vector<8x128xf32>
    %179 = arith.mulf %163, %171 : vector<8x128xf32>
    %180 = arith.addf %178, %179 : vector<8x128xf32>
    %181 = math.tanh %180 : vector<8x128xf32>
    %182 = arith.mulf %177, %181 : vector<8x128xf32>
    %183 = vector.extract_strided_slice %182 {offsets = [0, 0], sizes = [8, 64], strides = [1, 1]} : vector<8x128xf32> to vector<8x64xf32>
    %184 = vector.shape_cast %183 : vector<8x64xf32> to vector<8x1x64xf32>
    %c0_47 = arith.constant 0 : index
    %c3 = arith.constant 3 : index
    %c0_48 = arith.constant 0 : index
    %185 = vector.load %arg15[%c0_47, %c3, %c0_48] : memref<8x8x128xf32, #tpu.memory_space<vmem>>, vector<8x1x64xf32>
    tpu.vector_store %arg15[%c0_47, %c3, %c0_48], %184 {strides = array<i32>} : memref<8x8x128xf32, #tpu.memory_space<vmem>>, vector<8x1x64xf32>,
    %186 = vector.extract_strided_slice %182 {offsets = [0, 64], sizes = [8, 64], strides = [1, 1]} : vector<8x128xf32> to vector<8x64xf32>
    %187 = vector.shape_cast %186 : vector<8x64xf32> to vector<8x1x64xf32>
    %c0_49 = arith.constant 0 : index
    %c4 = arith.constant 4 : index
    %c64_50 = arith.constant 64 : index
    %188 = vector.load %arg15[%c0_49, %c4, %c64_50] : memref<8x8x128xf32, #tpu.memory_space<vmem>>, vector<8x1x64xf32>
    tpu.vector_store %arg15[%c0_49, %c4, %c64_50], %187 {strides = array<i32>} : memref<8x8x128xf32, #tpu.memory_space<vmem>>, vector<8x1x64xf32>,
    %189 = vector.extract_strided_slice %26 {offsets = [0, 4, 0], sizes = [8, 1, 512], strides = [1, 1, 1]} : vector<8x8x512xf32> to vector<8x1x512xf32>
    %190 = vector.shape_cast %189 : vector<8x1x512xf32> to vector<8x512xf32>
    %191 = vector.extract_strided_slice %26 {offsets = [0, 3, 0], sizes = [8, 1, 512], strides = [1, 1, 1]} : vector<8x8x512xf32> to vector<8x1x512xf32>
    %192 = vector.shape_cast %191 : vector<8x1x512xf32> to vector<8x512xf32>
    %193 = arith.select %18, %190, %192 : vector<8x512xi1>, vector<8x512xf32>
    %194 = arith.truncf %182 : vector<8x128xf32> to vector<8x128xbf16>
    %c0_51 = arith.constant 0 : index
    %c0_52 = arith.constant 0 : index
    %195 = vector.load %arg3[%c0_51, %c0_52] : memref<128x512xbf16, #tpu.memory_space<vmem>>, vector<128x512xbf16>
    %cst_53 = arith.constant dense<0.000000e+00> : vector<8x512xf32>
    %196 = tpu.matmul %194, %195, %cst_53 {dimension_numbers = #tpu.dot_dimension_numbers<[1], [0], [0], [1], [0, 0, 1, 1], [], []>} : vector<8x128xbf16>, vector<128x512xbf16>, vector<8x512xf32> -> vector<8x512xf32>
    %197 = arith.addf %193, %196 : vector<8x512xf32>
    %198 = vector.extract_strided_slice %197 {offsets = [0, 0], sizes = [8, 128], strides = [1, 1]} : vector<8x512xf32> to vector<8x128xf32>
    %199 = arith.negf %198 : vector<8x128xf32>
    %200 = math.exp %199 : vector<8x128xf32>
    %cst_54 = arith.constant 1.000000e+00 : f32
    %201 = vector.broadcast %cst_54 : f32 to vector<8x128xf32>
    %202 = arith.addf %201, %200 : vector<8x128xf32>
    %203 = arith.divf %201, %202 : vector<8x128xf32>
    %204 = vector.extract_strided_slice %197 {offsets = [0, 128], sizes = [8, 128], strides = [1, 1]} : vector<8x512xf32> to vector<8x128xf32>
    %205 = arith.negf %204 : vector<8x128xf32>
    %206 = math.exp %205 : vector<8x128xf32>
    %cst_55 = arith.constant 1.000000e+00 : f32
    %207 = vector.broadcast %cst_55 : f32 to vector<8x128xf32>
    %208 = arith.addf %207, %206 : vector<8x128xf32>
    %209 = arith.divf %207, %208 : vector<8x128xf32>
    %210 = vector.extract_strided_slice %197 {offsets = [0, 256], sizes = [8, 128], strides = [1, 1]} : vector<8x512xf32> to vector<8x128xf32>
    %211 = math.tanh %210 : vector<8x128xf32>
    %212 = vector.extract_strided_slice %197 {offsets = [0, 384], sizes = [8, 128], strides = [1, 1]} : vector<8x512xf32> to vector<8x128xf32>
    %213 = arith.negf %212 : vector<8x128xf32>
    %214 = math.exp %213 : vector<8x128xf32>
    %cst_56 = arith.constant 1.000000e+00 : f32
    %215 = vector.broadcast %cst_56 : f32 to vector<8x128xf32>
    %216 = arith.addf %215, %214 : vector<8x128xf32>
    %217 = arith.divf %215, %216 : vector<8x128xf32>
    %218 = arith.mulf %209, %180 : vector<8x128xf32>
    %219 = arith.mulf %203, %211 : vector<8x128xf32>
    %220 = arith.addf %218, %219 : vector<8x128xf32>
    %221 = math.tanh %220 : vector<8x128xf32>
    %222 = arith.mulf %217, %221 : vector<8x128xf32>
    %223 = vector.extract_strided_slice %222 {offsets = [0, 0], sizes = [8, 64], strides = [1, 1]} : vector<8x128xf32> to vector<8x64xf32>
    %224 = vector.shape_cast %223 : vector<8x64xf32> to vector<8x1x64xf32>
    %c0_57 = arith.constant 0 : index
    %c4_58 = arith.constant 4 : index
    %c0_59 = arith.constant 0 : index
    %225 = vector.load %arg15[%c0_57, %c4_58, %c0_59] : memref<8x8x128xf32, #tpu.memory_space<vmem>>, vector<8x1x64xf32>
    tpu.vector_store %arg15[%c0_57, %c4_58, %c0_59], %224 {strides = array<i32>} : memref<8x8x128xf32, #tpu.memory_space<vmem>>, vector<8x1x64xf32>,
    %226 = vector.extract_strided_slice %222 {offsets = [0, 64], sizes = [8, 64], strides = [1, 1]} : vector<8x128xf32> to vector<8x64xf32>
    %227 = vector.shape_cast %226 : vector<8x64xf32> to vector<8x1x64xf32>
    %c0_60 = arith.constant 0 : index
    %c3_61 = arith.constant 3 : index
    %c64_62 = arith.constant 64 : index
    %228 = vector.load %arg15[%c0_60, %c3_61, %c64_62] : memref<8x8x128xf32, #tpu.memory_space<vmem>>, vector<8x1x64xf32>
    tpu.vector_store %arg15[%c0_60, %c3_61, %c64_62], %227 {strides = array<i32>} : memref<8x8x128xf32, #tpu.memory_space<vmem>>, vector<8x1x64xf32>,
    %229 = vector.extract_strided_slice %26 {offsets = [0, 5, 0], sizes = [8, 1, 512], strides = [1, 1, 1]} : vector<8x8x512xf32> to vector<8x1x512xf32>
    %230 = vector.shape_cast %229 : vector<8x1x512xf32> to vector<8x512xf32>
    %231 = vector.extract_strided_slice %26 {offsets = [0, 2, 0], sizes = [8, 1, 512], strides = [1, 1, 1]} : vector<8x8x512xf32> to vector<8x1x512xf32>
    %232 = vector.shape_cast %231 : vector<8x1x512xf32> to vector<8x512xf32>
    %233 = arith.select %18, %230, %232 : vector<8x512xi1>, vector<8x512xf32>
    %234 = arith.truncf %222 : vector<8x128xf32> to vector<8x128xbf16>
    %c0_63 = arith.constant 0 : index
    %c0_64 = arith.constant 0 : index
    %235 = vector.load %arg3[%c0_63, %c0_64] : memref<128x512xbf16, #tpu.memory_space<vmem>>, vector<128x512xbf16>
    %cst_65 = arith.constant dense<0.000000e+00> : vector<8x512xf32>
    %236 = tpu.matmul %234, %235, %cst_65 {dimension_numbers = #tpu.dot_dimension_numbers<[1], [0], [0], [1], [0, 0, 1, 1], [], []>} : vector<8x128xbf16>, vector<128x512xbf16>, vector<8x512xf32> -> vector<8x512xf32>
    %237 = arith.addf %233, %236 : vector<8x512xf32>
    %238 = vector.extract_strided_slice %237 {offsets = [0, 0], sizes = [8, 128], strides = [1, 1]} : vector<8x512xf32> to vector<8x128xf32>
    %239 = arith.negf %238 : vector<8x128xf32>
    %240 = math.exp %239 : vector<8x128xf32>
    %cst_66 = arith.constant 1.000000e+00 : f32
    %241 = vector.broadcast %cst_66 : f32 to vector<8x128xf32>
    %242 = arith.addf %241, %240 : vector<8x128xf32>
    %243 = arith.divf %241, %242 : vector<8x128xf32>
    %244 = vector.extract_strided_slice %237 {offsets = [0, 128], sizes = [8, 128], strides = [1, 1]} : vector<8x512xf32> to vector<8x128xf32>
    %245 = arith.negf %244 : vector<8x128xf32>
    %246 = math.exp %245 : vector<8x128xf32>
    %cst_67 = arith.constant 1.000000e+00 : f32
    %247 = vector.broadcast %cst_67 : f32 to vector<8x128xf32>
    %248 = arith.addf %247, %246 : vector<8x128xf32>
    %249 = arith.divf %247, %248 : vector<8x128xf32>
    %250 = vector.extract_strided_slice %237 {offsets = [0, 256], sizes = [8, 128], strides = [1, 1]} : vector<8x512xf32> to vector<8x128xf32>
    %251 = math.tanh %250 : vector<8x128xf32>
    %252 = vector.extract_strided_slice %237 {offsets = [0, 384], sizes = [8, 128], strides = [1, 1]} : vector<8x512xf32> to vector<8x128xf32>
    %253 = arith.negf %252 : vector<8x128xf32>
    %254 = math.exp %253 : vector<8x128xf32>
    %cst_68 = arith.constant 1.000000e+00 : f32
    %255 = vector.broadcast %cst_68 : f32 to vector<8x128xf32>
    %256 = arith.addf %255, %254 : vector<8x128xf32>
    %257 = arith.divf %255, %256 : vector<8x128xf32>
    %258 = arith.mulf %249, %220 : vector<8x128xf32>
    %259 = arith.mulf %243, %251 : vector<8x128xf32>
    %260 = arith.addf %258, %259 : vector<8x128xf32>
    %261 = math.tanh %260 : vector<8x128xf32>
    %262 = arith.mulf %257, %261 : vector<8x128xf32>
    %263 = vector.extract_strided_slice %262 {offsets = [0, 0], sizes = [8, 64], strides = [1, 1]} : vector<8x128xf32> to vector<8x64xf32>
    %264 = vector.shape_cast %263 : vector<8x64xf32> to vector<8x1x64xf32>
    %c0_69 = arith.constant 0 : index
    %c5_70 = arith.constant 5 : index
    %c0_71 = arith.constant 0 : index
    %265 = vector.load %arg15[%c0_69, %c5_70, %c0_71] : memref<8x8x128xf32, #tpu.memory_space<vmem>>, vector<8x1x64xf32>
    tpu.vector_store %arg15[%c0_69, %c5_70, %c0_71], %264 {strides = array<i32>} : memref<8x8x128xf32, #tpu.memory_space<vmem>>, vector<8x1x64xf32>,
    %266 = vector.extract_strided_slice %262 {offsets = [0, 64], sizes = [8, 64], strides = [1, 1]} : vector<8x128xf32> to vector<8x64xf32>
    %267 = vector.shape_cast %266 : vector<8x64xf32> to vector<8x1x64xf32>
    %c0_72 = arith.constant 0 : index
    %c2_73 = arith.constant 2 : index
    %c64_74 = arith.constant 64 : index
    %268 = vector.load %arg15[%c0_72, %c2_73, %c64_74] : memref<8x8x128xf32, #tpu.memory_space<vmem>>, vector<8x1x64xf32>
    tpu.vector_store %arg15[%c0_72, %c2_73, %c64_74], %267 {strides = array<i32>} : memref<8x8x128xf32, #tpu.memory_space<vmem>>, vector<8x1x64xf32>,
    %269 = vector.extract_strided_slice %26 {offsets = [0, 6, 0], sizes = [8, 1, 512], strides = [1, 1, 1]} : vector<8x8x512xf32> to vector<8x1x512xf32>
    %270 = vector.shape_cast %269 : vector<8x1x512xf32> to vector<8x512xf32>
    %271 = vector.extract_strided_slice %26 {offsets = [0, 1, 0], sizes = [8, 1, 512], strides = [1, 1, 1]} : vector<8x8x512xf32> to vector<8x1x512xf32>
    %272 = vector.shape_cast %271 : vector<8x1x512xf32> to vector<8x512xf32>
    %273 = arith.select %18, %270, %272 : vector<8x512xi1>, vector<8x512xf32>
    %274 = arith.truncf %262 : vector<8x128xf32> to vector<8x128xbf16>
    %c0_75 = arith.constant 0 : index
    %c0_76 = arith.constant 0 : index
    %275 = vector.load %arg3[%c0_75, %c0_76] : memref<128x512xbf16, #tpu.memory_space<vmem>>, vector<128x512xbf16>
    %cst_77 = arith.constant dense<0.000000e+00> : vector<8x512xf32>
    %276 = tpu.matmul %274, %275, %cst_77 {dimension_numbers = #tpu.dot_dimension_numbers<[1], [0], [0], [1], [0, 0, 1, 1], [], []>} : vector<8x128xbf16>, vector<128x512xbf16>, vector<8x512xf32> -> vector<8x512xf32>
    %277 = arith.addf %273, %276 : vector<8x512xf32>
    %278 = vector.extract_strided_slice %277 {offsets = [0, 0], sizes = [8, 128], strides = [1, 1]} : vector<8x512xf32> to vector<8x128xf32>
    %279 = arith.negf %278 : vector<8x128xf32>
    %280 = math.exp %279 : vector<8x128xf32>
    %cst_78 = arith.constant 1.000000e+00 : f32
    %281 = vector.broadcast %cst_78 : f32 to vector<8x128xf32>
    %282 = arith.addf %281, %280 : vector<8x128xf32>
    %283 = arith.divf %281, %282 : vector<8x128xf32>
    %284 = vector.extract_strided_slice %277 {offsets = [0, 128], sizes = [8, 128], strides = [1, 1]} : vector<8x512xf32> to vector<8x128xf32>
    %285 = arith.negf %284 : vector<8x128xf32>
    %286 = math.exp %285 : vector<8x128xf32>
    %cst_79 = arith.constant 1.000000e+00 : f32
    %287 = vector.broadcast %cst_79 : f32 to vector<8x128xf32>
    %288 = arith.addf %287, %286 : vector<8x128xf32>
    %289 = arith.divf %287, %288 : vector<8x128xf32>
    %290 = vector.extract_strided_slice %277 {offsets = [0, 256], sizes = [8, 128], strides = [1, 1]} : vector<8x512xf32> to vector<8x128xf32>
    %291 = math.tanh %290 : vector<8x128xf32>
    %292 = vector.extract_strided_slice %277 {offsets = [0, 384], sizes = [8, 128], strides = [1, 1]} : vector<8x512xf32> to vector<8x128xf32>
    %293 = arith.negf %292 : vector<8x128xf32>
    %294 = math.exp %293 : vector<8x128xf32>
    %cst_80 = arith.constant 1.000000e+00 : f32
    %295 = vector.broadcast %cst_80 : f32 to vector<8x128xf32>
    %296 = arith.addf %295, %294 : vector<8x128xf32>
    %297 = arith.divf %295, %296 : vector<8x128xf32>
    %298 = arith.mulf %289, %260 : vector<8x128xf32>
    %299 = arith.mulf %283, %291 : vector<8x128xf32>
    %300 = arith.addf %298, %299 : vector<8x128xf32>
    %301 = math.tanh %300 : vector<8x128xf32>
    %302 = arith.mulf %297, %301 : vector<8x128xf32>
    %303 = vector.extract_strided_slice %302 {offsets = [0, 0], sizes = [8, 64], strides = [1, 1]} : vector<8x128xf32> to vector<8x64xf32>
    %304 = vector.shape_cast %303 : vector<8x64xf32> to vector<8x1x64xf32>
    %c0_81 = arith.constant 0 : index
    %c6_82 = arith.constant 6 : index
    %c0_83 = arith.constant 0 : index
    %305 = vector.load %arg15[%c0_81, %c6_82, %c0_83] : memref<8x8x128xf32, #tpu.memory_space<vmem>>, vector<8x1x64xf32>
    tpu.vector_store %arg15[%c0_81, %c6_82, %c0_83], %304 {strides = array<i32>} : memref<8x8x128xf32, #tpu.memory_space<vmem>>, vector<8x1x64xf32>,
    %306 = vector.extract_strided_slice %302 {offsets = [0, 64], sizes = [8, 64], strides = [1, 1]} : vector<8x128xf32> to vector<8x64xf32>
    %307 = vector.shape_cast %306 : vector<8x64xf32> to vector<8x1x64xf32>
    %c0_84 = arith.constant 0 : index
    %c1_85 = arith.constant 1 : index
    %c64_86 = arith.constant 64 : index
    %308 = vector.load %arg15[%c0_84, %c1_85, %c64_86] : memref<8x8x128xf32, #tpu.memory_space<vmem>>, vector<8x1x64xf32>
    tpu.vector_store %arg15[%c0_84, %c1_85, %c64_86], %307 {strides = array<i32>} : memref<8x8x128xf32, #tpu.memory_space<vmem>>, vector<8x1x64xf32>,
    %309 = vector.extract_strided_slice %26 {offsets = [0, 7, 0], sizes = [8, 1, 512], strides = [1, 1, 1]} : vector<8x8x512xf32> to vector<8x1x512xf32>
    %310 = vector.shape_cast %309 : vector<8x1x512xf32> to vector<8x512xf32>
    %311 = vector.extract_strided_slice %26 {offsets = [0, 0, 0], sizes = [8, 1, 512], strides = [1, 1, 1]} : vector<8x8x512xf32> to vector<8x1x512xf32>
    %312 = vector.shape_cast %311 : vector<8x1x512xf32> to vector<8x512xf32>
    %313 = arith.select %18, %310, %312 : vector<8x512xi1>, vector<8x512xf32>
    %314 = arith.truncf %302 : vector<8x128xf32> to vector<8x128xbf16>
    %c0_87 = arith.constant 0 : index
    %c0_88 = arith.constant 0 : index
    %315 = vector.load %arg3[%c0_87, %c0_88] : memref<128x512xbf16, #tpu.memory_space<vmem>>, vector<128x512xbf16>
    %cst_89 = arith.constant dense<0.000000e+00> : vector<8x512xf32>
    %316 = tpu.matmul %314, %315, %cst_89 {dimension_numbers = #tpu.dot_dimension_numbers<[1], [0], [0], [1], [0, 0, 1, 1], [], []>} : vector<8x128xbf16>, vector<128x512xbf16>, vector<8x512xf32> -> vector<8x512xf32>
    %317 = arith.addf %313, %316 : vector<8x512xf32>
    %318 = vector.extract_strided_slice %317 {offsets = [0, 0], sizes = [8, 128], strides = [1, 1]} : vector<8x512xf32> to vector<8x128xf32>
    %319 = arith.negf %318 : vector<8x128xf32>
    %320 = math.exp %319 : vector<8x128xf32>
    %cst_90 = arith.constant 1.000000e+00 : f32
    %321 = vector.broadcast %cst_90 : f32 to vector<8x128xf32>
    %322 = arith.addf %321, %320 : vector<8x128xf32>
    %323 = arith.divf %321, %322 : vector<8x128xf32>
    %324 = vector.extract_strided_slice %317 {offsets = [0, 128], sizes = [8, 128], strides = [1, 1]} : vector<8x512xf32> to vector<8x128xf32>
    %325 = arith.negf %324 : vector<8x128xf32>
    %326 = math.exp %325 : vector<8x128xf32>
    %cst_91 = arith.constant 1.000000e+00 : f32
    %327 = vector.broadcast %cst_91 : f32 to vector<8x128xf32>
    %328 = arith.addf %327, %326 : vector<8x128xf32>
    %329 = arith.divf %327, %328 : vector<8x128xf32>
    %330 = vector.extract_strided_slice %317 {offsets = [0, 256], sizes = [8, 128], strides = [1, 1]} : vector<8x512xf32> to vector<8x128xf32>
    %331 = math.tanh %330 : vector<8x128xf32>
    %332 = vector.extract_strided_slice %317 {offsets = [0, 384], sizes = [8, 128], strides = [1, 1]} : vector<8x512xf32> to vector<8x128xf32>
    %333 = arith.negf %332 : vector<8x128xf32>
    %334 = math.exp %333 : vector<8x128xf32>
    %cst_92 = arith.constant 1.000000e+00 : f32
    %335 = vector.broadcast %cst_92 : f32 to vector<8x128xf32>
    %336 = arith.addf %335, %334 : vector<8x128xf32>
    %337 = arith.divf %335, %336 : vector<8x128xf32>
    %338 = arith.mulf %329, %300 : vector<8x128xf32>
    %339 = arith.mulf %323, %331 : vector<8x128xf32>
    %340 = arith.addf %338, %339 : vector<8x128xf32>
    %341 = math.tanh %340 : vector<8x128xf32>
    %342 = arith.mulf %337, %341 : vector<8x128xf32>
    %343 = vector.extract_strided_slice %342 {offsets = [0, 0], sizes = [8, 64], strides = [1, 1]} : vector<8x128xf32> to vector<8x64xf32>
    %344 = vector.shape_cast %343 : vector<8x64xf32> to vector<8x1x64xf32>
    %c0_93 = arith.constant 0 : index
    %c7_94 = arith.constant 7 : index
    %c0_95 = arith.constant 0 : index
    %345 = vector.load %arg15[%c0_93, %c7_94, %c0_95] : memref<8x8x128xf32, #tpu.memory_space<vmem>>, vector<8x1x64xf32>
    tpu.vector_store %arg15[%c0_93, %c7_94, %c0_95], %344 {strides = array<i32>} : memref<8x8x128xf32, #tpu.memory_space<vmem>>, vector<8x1x64xf32>,
    %346 = vector.extract_strided_slice %342 {offsets = [0, 64], sizes = [8, 64], strides = [1, 1]} : vector<8x128xf32> to vector<8x64xf32>
    %347 = vector.shape_cast %346 : vector<8x64xf32> to vector<8x1x64xf32>
    %c0_96 = arith.constant 0 : index
    %c0_97 = arith.constant 0 : index
    %c64_98 = arith.constant 64 : index
    %348 = vector.load %arg15[%c0_96, %c0_97, %c64_98] : memref<8x8x128xf32, #tpu.memory_space<vmem>>, vector<8x1x64xf32>
    tpu.vector_store %arg15[%c0_96, %c0_97, %c64_98], %347 {strides = array<i32>} : memref<8x8x128xf32, #tpu.memory_space<vmem>>, vector<8x1x64xf32>,
    %c0_99 = arith.constant 0 : index
    %c0_100 = arith.constant 0 : index
    %c0_101 = arith.constant 0 : index
    %349 = vector.load %arg15[%c0_99, %c0_100, %c0_101] : memref<8x8x128xf32, #tpu.memory_space<vmem>>, vector<8x8x128xf32>
    %350 = vector.shape_cast %349 : vector<8x8x128xf32> to vector<64x128xf32>
    %351 = arith.truncf %350 : vector<64x128xf32> to vector<64x128xbf16>
    %c0_102 = arith.constant 0 : index
    %c0_103 = arith.constant 0 : index
    %352 = vector.load %arg5[%c0_102, %c0_103] : memref<128x512xbf16, #tpu.memory_space<vmem>>, vector<128x512xbf16>
    %cst_104 = arith.constant dense<0.000000e+00> : vector<64x512xf32>
    %353 = tpu.matmul %351, %352, %cst_104 {dimension_numbers = #tpu.dot_dimension_numbers<[1], [0], [0], [1], [0, 0, 1, 1], [], []>} : vector<64x128xbf16>, vector<128x512xbf16>, vector<64x512xf32> -> vector<64x512xf32>
    %c0_105 = arith.constant 0 : index
    %c0_106 = arith.constant 0 : index
    %354 = vector.load %arg7[%c0_105, %c0_106] : memref<1x512xf32, #tpu.memory_space<vmem>>, vector<1x512xf32>
    %355 = vector.broadcast %354 : vector<1x512xf32> to vector<64x512xf32>
    %356 = arith.addf %353, %355 : vector<64x512xf32>
    %357 = vector.shape_cast %356 : vector<64x512xf32> to vector<8x8x512xf32>
    %cst_107 = arith.constant 0.000000e+00 : f32
    %358 = vector.broadcast %cst_107 : f32 to vector<8x128xf32>
    %cst_108 = arith.constant 0.000000e+00 : f32
    %359 = vector.broadcast %cst_108 : f32 to vector<8x128xf32>
    %360 = vector.extract_strided_slice %357 {offsets = [0, 0, 0], sizes = [8, 1, 512], strides = [1, 1, 1]} : vector<8x8x512xf32> to vector<8x1x512xf32>
    %361 = vector.shape_cast %360 : vector<8x1x512xf32> to vector<8x512xf32>
    %362 = vector.extract_strided_slice %357 {offsets = [0, 7, 0], sizes = [8, 1, 512], strides = [1, 1, 1]} : vector<8x8x512xf32> to vector<8x1x512xf32>
    %363 = vector.shape_cast %362 : vector<8x1x512xf32> to vector<8x512xf32>
    %364 = arith.select %18, %361, %363 : vector<8x512xi1>, vector<8x512xf32>
    %365 = arith.truncf %358 : vector<8x128xf32> to vector<8x128xbf16>
    %c0_109 = arith.constant 0 : index
    %c0_110 = arith.constant 0 : index
    %366 = vector.load %arg6[%c0_109, %c0_110] : memref<128x512xbf16, #tpu.memory_space<vmem>>, vector<128x512xbf16>
    %cst_111 = arith.constant dense<0.000000e+00> : vector<8x512xf32>
    %367 = tpu.matmul %365, %366, %cst_111 {dimension_numbers = #tpu.dot_dimension_numbers<[1], [0], [0], [1], [0, 0, 1, 1], [], []>} : vector<8x128xbf16>, vector<128x512xbf16>, vector<8x512xf32> -> vector<8x512xf32>
    %368 = arith.addf %364, %367 : vector<8x512xf32>
    %369 = vector.extract_strided_slice %368 {offsets = [0, 0], sizes = [8, 128], strides = [1, 1]} : vector<8x512xf32> to vector<8x128xf32>
    %370 = arith.negf %369 : vector<8x128xf32>
    %371 = math.exp %370 : vector<8x128xf32>
    %cst_112 = arith.constant 1.000000e+00 : f32
    %372 = vector.broadcast %cst_112 : f32 to vector<8x128xf32>
    %373 = arith.addf %372, %371 : vector<8x128xf32>
    %374 = arith.divf %372, %373 : vector<8x128xf32>
    %375 = vector.extract_strided_slice %368 {offsets = [0, 128], sizes = [8, 128], strides = [1, 1]} : vector<8x512xf32> to vector<8x128xf32>
    %376 = arith.negf %375 : vector<8x128xf32>
    %377 = math.exp %376 : vector<8x128xf32>
    %cst_113 = arith.constant 1.000000e+00 : f32
    %378 = vector.broadcast %cst_113 : f32 to vector<8x128xf32>
    %379 = arith.addf %378, %377 : vector<8x128xf32>
    %380 = arith.divf %378, %379 : vector<8x128xf32>
    %381 = vector.extract_strided_slice %368 {offsets = [0, 256], sizes = [8, 128], strides = [1, 1]} : vector<8x512xf32> to vector<8x128xf32>
    %382 = math.tanh %381 : vector<8x128xf32>
    %383 = vector.extract_strided_slice %368 {offsets = [0, 384], sizes = [8, 128], strides = [1, 1]} : vector<8x512xf32> to vector<8x128xf32>
    %384 = arith.negf %383 : vector<8x128xf32>
    %385 = math.exp %384 : vector<8x128xf32>
    %cst_114 = arith.constant 1.000000e+00 : f32
    %386 = vector.broadcast %cst_114 : f32 to vector<8x128xf32>
    %387 = arith.addf %386, %385 : vector<8x128xf32>
    %388 = arith.divf %386, %387 : vector<8x128xf32>
    %389 = arith.mulf %380, %359 : vector<8x128xf32>
    %390 = arith.mulf %374, %382 : vector<8x128xf32>
    %391 = arith.addf %389, %390 : vector<8x128xf32>
    %392 = math.tanh %391 : vector<8x128xf32>
    %393 = arith.mulf %388, %392 : vector<8x128xf32>
    %394 = vector.extract_strided_slice %393 {offsets = [0, 0], sizes = [8, 64], strides = [1, 1]} : vector<8x128xf32> to vector<8x64xf32>
    %395 = vector.shape_cast %394 : vector<8x64xf32> to vector<8x1x64xf32>
    %c0_115 = arith.constant 0 : index
    %c0_116 = arith.constant 0 : index
    %c0_117 = arith.constant 0 : index
    %396 = vector.load %arg15[%c0_115, %c0_116, %c0_117] : memref<8x8x128xf32, #tpu.memory_space<vmem>>, vector<8x1x64xf32>
    tpu.vector_store %arg15[%c0_115, %c0_116, %c0_117], %395 {strides = array<i32>} : memref<8x8x128xf32, #tpu.memory_space<vmem>>, vector<8x1x64xf32>,
    %397 = vector.extract_strided_slice %393 {offsets = [0, 64], sizes = [8, 64], strides = [1, 1]} : vector<8x128xf32> to vector<8x64xf32>
    %398 = vector.shape_cast %397 : vector<8x64xf32> to vector<8x1x64xf32>
    %c0_118 = arith.constant 0 : index
    %c7_119 = arith.constant 7 : index
    %c64_120 = arith.constant 64 : index
    %399 = vector.load %arg15[%c0_118, %c7_119, %c64_120] : memref<8x8x128xf32, #tpu.memory_space<vmem>>, vector<8x1x64xf32>
    tpu.vector_store %arg15[%c0_118, %c7_119, %c64_120], %398 {strides = array<i32>} : memref<8x8x128xf32, #tpu.memory_space<vmem>>, vector<8x1x64xf32>,
    %400 = vector.extract_strided_slice %357 {offsets = [0, 1, 0], sizes = [8, 1, 512], strides = [1, 1, 1]} : vector<8x8x512xf32> to vector<8x1x512xf32>
    %401 = vector.shape_cast %400 : vector<8x1x512xf32> to vector<8x512xf32>
    %402 = vector.extract_strided_slice %357 {offsets = [0, 6, 0], sizes = [8, 1, 512], strides = [1, 1, 1]} : vector<8x8x512xf32> to vector<8x1x512xf32>
    %403 = vector.shape_cast %402 : vector<8x1x512xf32> to vector<8x512xf32>
    %404 = arith.select %18, %401, %403 : vector<8x512xi1>, vector<8x512xf32>
    %405 = arith.truncf %393 : vector<8x128xf32> to vector<8x128xbf16>
    %c0_121 = arith.constant 0 : index
    %c0_122 = arith.constant 0 : index
    %406 = vector.load %arg6[%c0_121, %c0_122] : memref<128x512xbf16, #tpu.memory_space<vmem>>, vector<128x512xbf16>
    %cst_123 = arith.constant dense<0.000000e+00> : vector<8x512xf32>
    %407 = tpu.matmul %405, %406, %cst_123 {dimension_numbers = #tpu.dot_dimension_numbers<[1], [0], [0], [1], [0, 0, 1, 1], [], []>} : vector<8x128xbf16>, vector<128x512xbf16>, vector<8x512xf32> -> vector<8x512xf32>
    %408 = arith.addf %404, %407 : vector<8x512xf32>
    %409 = vector.extract_strided_slice %408 {offsets = [0, 0], sizes = [8, 128], strides = [1, 1]} : vector<8x512xf32> to vector<8x128xf32>
    %410 = arith.negf %409 : vector<8x128xf32>
    %411 = math.exp %410 : vector<8x128xf32>
    %cst_124 = arith.constant 1.000000e+00 : f32
    %412 = vector.broadcast %cst_124 : f32 to vector<8x128xf32>
    %413 = arith.addf %412, %411 : vector<8x128xf32>
    %414 = arith.divf %412, %413 : vector<8x128xf32>
    %415 = vector.extract_strided_slice %408 {offsets = [0, 128], sizes = [8, 128], strides = [1, 1]} : vector<8x512xf32> to vector<8x128xf32>
    %416 = arith.negf %415 : vector<8x128xf32>
    %417 = math.exp %416 : vector<8x128xf32>
    %cst_125 = arith.constant 1.000000e+00 : f32
    %418 = vector.broadcast %cst_125 : f32 to vector<8x128xf32>
    %419 = arith.addf %418, %417 : vector<8x128xf32>
    %420 = arith.divf %418, %419 : vector<8x128xf32>
    %421 = vector.extract_strided_slice %408 {offsets = [0, 256], sizes = [8, 128], strides = [1, 1]} : vector<8x512xf32> to vector<8x128xf32>
    %422 = math.tanh %421 : vector<8x128xf32>
    %423 = vector.extract_strided_slice %408 {offsets = [0, 384], sizes = [8, 128], strides = [1, 1]} : vector<8x512xf32> to vector<8x128xf32>
    %424 = arith.negf %423 : vector<8x128xf32>
    %425 = math.exp %424 : vector<8x128xf32>
    %cst_126 = arith.constant 1.000000e+00 : f32
    %426 = vector.broadcast %cst_126 : f32 to vector<8x128xf32>
    %427 = arith.addf %426, %425 : vector<8x128xf32>
    %428 = arith.divf %426, %427 : vector<8x128xf32>
    %429 = arith.mulf %420, %391 : vector<8x128xf32>
    %430 = arith.mulf %414, %422 : vector<8x128xf32>
    %431 = arith.addf %429, %430 : vector<8x128xf32>
    %432 = math.tanh %431 : vector<8x128xf32>
    %433 = arith.mulf %428, %432 : vector<8x128xf32>
    %434 = vector.extract_strided_slice %433 {offsets = [0, 0], sizes = [8, 64], strides = [1, 1]} : vector<8x128xf32> to vector<8x64xf32>
    %435 = vector.shape_cast %434 : vector<8x64xf32> to vector<8x1x64xf32>
    %c0_127 = arith.constant 0 : index
    %c1_128 = arith.constant 1 : index
    %c0_129 = arith.constant 0 : index
    %436 = vector.load %arg15[%c0_127, %c1_128, %c0_129] : memref<8x8x128xf32, #tpu.memory_space<vmem>>, vector<8x1x64xf32>
    tpu.vector_store %arg15[%c0_127, %c1_128, %c0_129], %435 {strides = array<i32>} : memref<8x8x128xf32, #tpu.memory_space<vmem>>, vector<8x1x64xf32>,
    %437 = vector.extract_strided_slice %433 {offsets = [0, 64], sizes = [8, 64], strides = [1, 1]} : vector<8x128xf32> to vector<8x64xf32>
    %438 = vector.shape_cast %437 : vector<8x64xf32> to vector<8x1x64xf32>
    %c0_130 = arith.constant 0 : index
    %c6_131 = arith.constant 6 : index
    %c64_132 = arith.constant 64 : index
    %439 = vector.load %arg15[%c0_130, %c6_131, %c64_132] : memref<8x8x128xf32, #tpu.memory_space<vmem>>, vector<8x1x64xf32>
    tpu.vector_store %arg15[%c0_130, %c6_131, %c64_132], %438 {strides = array<i32>} : memref<8x8x128xf32, #tpu.memory_space<vmem>>, vector<8x1x64xf32>,
    %440 = vector.extract_strided_slice %357 {offsets = [0, 2, 0], sizes = [8, 1, 512], strides = [1, 1, 1]} : vector<8x8x512xf32> to vector<8x1x512xf32>
    %441 = vector.shape_cast %440 : vector<8x1x512xf32> to vector<8x512xf32>
    %442 = vector.extract_strided_slice %357 {offsets = [0, 5, 0], sizes = [8, 1, 512], strides = [1, 1, 1]} : vector<8x8x512xf32> to vector<8x1x512xf32>
    %443 = vector.shape_cast %442 : vector<8x1x512xf32> to vector<8x512xf32>
    %444 = arith.select %18, %441, %443 : vector<8x512xi1>, vector<8x512xf32>
    %445 = arith.truncf %433 : vector<8x128xf32> to vector<8x128xbf16>
    %c0_133 = arith.constant 0 : index
    %c0_134 = arith.constant 0 : index
    %446 = vector.load %arg6[%c0_133, %c0_134] : memref<128x512xbf16, #tpu.memory_space<vmem>>, vector<128x512xbf16>
    %cst_135 = arith.constant dense<0.000000e+00> : vector<8x512xf32>
    %447 = tpu.matmul %445, %446, %cst_135 {dimension_numbers = #tpu.dot_dimension_numbers<[1], [0], [0], [1], [0, 0, 1, 1], [], []>} : vector<8x128xbf16>, vector<128x512xbf16>, vector<8x512xf32> -> vector<8x512xf32>
    %448 = arith.addf %444, %447 : vector<8x512xf32>
    %449 = vector.extract_strided_slice %448 {offsets = [0, 0], sizes = [8, 128], strides = [1, 1]} : vector<8x512xf32> to vector<8x128xf32>
    %450 = arith.negf %449 : vector<8x128xf32>
    %451 = math.exp %450 : vector<8x128xf32>
    %cst_136 = arith.constant 1.000000e+00 : f32
    %452 = vector.broadcast %cst_136 : f32 to vector<8x128xf32>
    %453 = arith.addf %452, %451 : vector<8x128xf32>
    %454 = arith.divf %452, %453 : vector<8x128xf32>
    %455 = vector.extract_strided_slice %448 {offsets = [0, 128], sizes = [8, 128], strides = [1, 1]} : vector<8x512xf32> to vector<8x128xf32>
    %456 = arith.negf %455 : vector<8x128xf32>
    %457 = math.exp %456 : vector<8x128xf32>
    %cst_137 = arith.constant 1.000000e+00 : f32
    %458 = vector.broadcast %cst_137 : f32 to vector<8x128xf32>
    %459 = arith.addf %458, %457 : vector<8x128xf32>
    %460 = arith.divf %458, %459 : vector<8x128xf32>
    %461 = vector.extract_strided_slice %448 {offsets = [0, 256], sizes = [8, 128], strides = [1, 1]} : vector<8x512xf32> to vector<8x128xf32>
    %462 = math.tanh %461 : vector<8x128xf32>
    %463 = vector.extract_strided_slice %448 {offsets = [0, 384], sizes = [8, 128], strides = [1, 1]} : vector<8x512xf32> to vector<8x128xf32>
    %464 = arith.negf %463 : vector<8x128xf32>
    %465 = math.exp %464 : vector<8x128xf32>
    %cst_138 = arith.constant 1.000000e+00 : f32
    %466 = vector.broadcast %cst_138 : f32 to vector<8x128xf32>
    %467 = arith.addf %466, %465 : vector<8x128xf32>
    %468 = arith.divf %466, %467 : vector<8x128xf32>
    %469 = arith.mulf %460, %431 : vector<8x128xf32>
    %470 = arith.mulf %454, %462 : vector<8x128xf32>
    %471 = arith.addf %469, %470 : vector<8x128xf32>
    %472 = math.tanh %471 : vector<8x128xf32>
    %473 = arith.mulf %468, %472 : vector<8x128xf32>
    %474 = vector.extract_strided_slice %473 {offsets = [0, 0], sizes = [8, 64], strides = [1, 1]} : vector<8x128xf32> to vector<8x64xf32>
    %475 = vector.shape_cast %474 : vector<8x64xf32> to vector<8x1x64xf32>
    %c0_139 = arith.constant 0 : index
    %c2_140 = arith.constant 2 : index
    %c0_141 = arith.constant 0 : index
    %476 = vector.load %arg15[%c0_139, %c2_140, %c0_141] : memref<8x8x128xf32, #tpu.memory_space<vmem>>, vector<8x1x64xf32>
    tpu.vector_store %arg15[%c0_139, %c2_140, %c0_141], %475 {strides = array<i32>} : memref<8x8x128xf32, #tpu.memory_space<vmem>>, vector<8x1x64xf32>,
    %477 = vector.extract_strided_slice %473 {offsets = [0, 64], sizes = [8, 64], strides = [1, 1]} : vector<8x128xf32> to vector<8x64xf32>
    %478 = vector.shape_cast %477 : vector<8x64xf32> to vector<8x1x64xf32>
    %c0_142 = arith.constant 0 : index
    %c5_143 = arith.constant 5 : index
    %c64_144 = arith.constant 64 : index
    %479 = vector.load %arg15[%c0_142, %c5_143, %c64_144] : memref<8x8x128xf32, #tpu.memory_space<vmem>>, vector<8x1x64xf32>
    tpu.vector_store %arg15[%c0_142, %c5_143, %c64_144], %478 {strides = array<i32>} : memref<8x8x128xf32, #tpu.memory_space<vmem>>, vector<8x1x64xf32>,
    %480 = vector.extract_strided_slice %357 {offsets = [0, 3, 0], sizes = [8, 1, 512], strides = [1, 1, 1]} : vector<8x8x512xf32> to vector<8x1x512xf32>
    %481 = vector.shape_cast %480 : vector<8x1x512xf32> to vector<8x512xf32>
    %482 = vector.extract_strided_slice %357 {offsets = [0, 4, 0], sizes = [8, 1, 512], strides = [1, 1, 1]} : vector<8x8x512xf32> to vector<8x1x512xf32>
    %483 = vector.shape_cast %482 : vector<8x1x512xf32> to vector<8x512xf32>
    %484 = arith.select %18, %481, %483 : vector<8x512xi1>, vector<8x512xf32>
    %485 = arith.truncf %473 : vector<8x128xf32> to vector<8x128xbf16>
    %c0_145 = arith.constant 0 : index
    %c0_146 = arith.constant 0 : index
    %486 = vector.load %arg6[%c0_145, %c0_146] : memref<128x512xbf16, #tpu.memory_space<vmem>>, vector<128x512xbf16>
    %cst_147 = arith.constant dense<0.000000e+00> : vector<8x512xf32>
    %487 = tpu.matmul %485, %486, %cst_147 {dimension_numbers = #tpu.dot_dimension_numbers<[1], [0], [0], [1], [0, 0, 1, 1], [], []>} : vector<8x128xbf16>, vector<128x512xbf16>, vector<8x512xf32> -> vector<8x512xf32>
    %488 = arith.addf %484, %487 : vector<8x512xf32>
    %489 = vector.extract_strided_slice %488 {offsets = [0, 0], sizes = [8, 128], strides = [1, 1]} : vector<8x512xf32> to vector<8x128xf32>
    %490 = arith.negf %489 : vector<8x128xf32>
    %491 = math.exp %490 : vector<8x128xf32>
    %cst_148 = arith.constant 1.000000e+00 : f32
    %492 = vector.broadcast %cst_148 : f32 to vector<8x128xf32>
    %493 = arith.addf %492, %491 : vector<8x128xf32>
    %494 = arith.divf %492, %493 : vector<8x128xf32>
    %495 = vector.extract_strided_slice %488 {offsets = [0, 128], sizes = [8, 128], strides = [1, 1]} : vector<8x512xf32> to vector<8x128xf32>
    %496 = arith.negf %495 : vector<8x128xf32>
    %497 = math.exp %496 : vector<8x128xf32>
    %cst_149 = arith.constant 1.000000e+00 : f32
    %498 = vector.broadcast %cst_149 : f32 to vector<8x128xf32>
    %499 = arith.addf %498, %497 : vector<8x128xf32>
    %500 = arith.divf %498, %499 : vector<8x128xf32>
    %501 = vector.extract_strided_slice %488 {offsets = [0, 256], sizes = [8, 128], strides = [1, 1]} : vector<8x512xf32> to vector<8x128xf32>
    %502 = math.tanh %501 : vector<8x128xf32>
    %503 = vector.extract_strided_slice %488 {offsets = [0, 384], sizes = [8, 128], strides = [1, 1]} : vector<8x512xf32> to vector<8x128xf32>
    %504 = arith.negf %503 : vector<8x128xf32>
    %505 = math.exp %504 : vector<8x128xf32>
    %cst_150 = arith.constant 1.000000e+00 : f32
    %506 = vector.broadcast %cst_150 : f32 to vector<8x128xf32>
    %507 = arith.addf %506, %505 : vector<8x128xf32>
    %508 = arith.divf %506, %507 : vector<8x128xf32>
    %509 = arith.mulf %500, %471 : vector<8x128xf32>
    %510 = arith.mulf %494, %502 : vector<8x128xf32>
    %511 = arith.addf %509, %510 : vector<8x128xf32>
    %512 = math.tanh %511 : vector<8x128xf32>
    %513 = arith.mulf %508, %512 : vector<8x128xf32>
    %514 = vector.extract_strided_slice %513 {offsets = [0, 0], sizes = [8, 64], strides = [1, 1]} : vector<8x128xf32> to vector<8x64xf32>
    %515 = vector.shape_cast %514 : vector<8x64xf32> to vector<8x1x64xf32>
    %c0_151 = arith.constant 0 : index
    %c3_152 = arith.constant 3 : index
    %c0_153 = arith.constant 0 : index
    %516 = vector.load %arg15[%c0_151, %c3_152, %c0_153] : memref<8x8x128xf32, #tpu.memory_space<vmem>>, vector<8x1x64xf32>
    tpu.vector_store %arg15[%c0_151, %c3_152, %c0_153], %515 {strides = array<i32>} : memref<8x8x128xf32, #tpu.memory_space<vmem>>, vector<8x1x64xf32>,
    %517 = vector.extract_strided_slice %513 {offsets = [0, 64], sizes = [8, 64], strides = [1, 1]} : vector<8x128xf32> to vector<8x64xf32>
    %518 = vector.shape_cast %517 : vector<8x64xf32> to vector<8x1x64xf32>
    %c0_154 = arith.constant 0 : index
    %c4_155 = arith.constant 4 : index
    %c64_156 = arith.constant 64 : index
    %519 = vector.load %arg15[%c0_154, %c4_155, %c64_156] : memref<8x8x128xf32, #tpu.memory_space<vmem>>, vector<8x1x64xf32>
    tpu.vector_store %arg15[%c0_154, %c4_155, %c64_156], %518 {strides = array<i32>} : memref<8x8x128xf32, #tpu.memory_space<vmem>>, vector<8x1x64xf32>,
    %520 = vector.extract_strided_slice %357 {offsets = [0, 4, 0], sizes = [8, 1, 512], strides = [1, 1, 1]} : vector<8x8x512xf32> to vector<8x1x512xf32>
    %521 = vector.shape_cast %520 : vector<8x1x512xf32> to vector<8x512xf32>
    %522 = vector.extract_strided_slice %357 {offsets = [0, 3, 0], sizes = [8, 1, 512], strides = [1, 1, 1]} : vector<8x8x512xf32> to vector<8x1x512xf32>
    %523 = vector.shape_cast %522 : vector<8x1x512xf32> to vector<8x512xf32>
    %524 = arith.select %18, %521, %523 : vector<8x512xi1>, vector<8x512xf32>
    %525 = arith.truncf %513 : vector<8x128xf32> to vector<8x128xbf16>
    %c0_157 = arith.constant 0 : index
    %c0_158 = arith.constant 0 : index
    %526 = vector.load %arg6[%c0_157, %c0_158] : memref<128x512xbf16, #tpu.memory_space<vmem>>, vector<128x512xbf16>
    %cst_159 = arith.constant dense<0.000000e+00> : vector<8x512xf32>
    %527 = tpu.matmul %525, %526, %cst_159 {dimension_numbers = #tpu.dot_dimension_numbers<[1], [0], [0], [1], [0, 0, 1, 1], [], []>} : vector<8x128xbf16>, vector<128x512xbf16>, vector<8x512xf32> -> vector<8x512xf32>
    %528 = arith.addf %524, %527 : vector<8x512xf32>
    %529 = vector.extract_strided_slice %528 {offsets = [0, 0], sizes = [8, 128], strides = [1, 1]} : vector<8x512xf32> to vector<8x128xf32>
    %530 = arith.negf %529 : vector<8x128xf32>
    %531 = math.exp %530 : vector<8x128xf32>
    %cst_160 = arith.constant 1.000000e+00 : f32
    %532 = vector.broadcast %cst_160 : f32 to vector<8x128xf32>
    %533 = arith.addf %532, %531 : vector<8x128xf32>
    %534 = arith.divf %532, %533 : vector<8x128xf32>
    %535 = vector.extract_strided_slice %528 {offsets = [0, 128], sizes = [8, 128], strides = [1, 1]} : vector<8x512xf32> to vector<8x128xf32>
    %536 = arith.negf %535 : vector<8x128xf32>
    %537 = math.exp %536 : vector<8x128xf32>
    %cst_161 = arith.constant 1.000000e+00 : f32
    %538 = vector.broadcast %cst_161 : f32 to vector<8x128xf32>
    %539 = arith.addf %538, %537 : vector<8x128xf32>
    %540 = arith.divf %538, %539 : vector<8x128xf32>
    %541 = vector.extract_strided_slice %528 {offsets = [0, 256], sizes = [8, 128], strides = [1, 1]} : vector<8x512xf32> to vector<8x128xf32>
    %542 = math.tanh %541 : vector<8x128xf32>
    %543 = vector.extract_strided_slice %528 {offsets = [0, 384], sizes = [8, 128], strides = [1, 1]} : vector<8x512xf32> to vector<8x128xf32>
    %544 = arith.negf %543 : vector<8x128xf32>
    %545 = math.exp %544 : vector<8x128xf32>
    %cst_162 = arith.constant 1.000000e+00 : f32
    %546 = vector.broadcast %cst_162 : f32 to vector<8x128xf32>
    %547 = arith.addf %546, %545 : vector<8x128xf32>
    %548 = arith.divf %546, %547 : vector<8x128xf32>
    %549 = arith.mulf %540, %511 : vector<8x128xf32>
    %550 = arith.mulf %534, %542 : vector<8x128xf32>
    %551 = arith.addf %549, %550 : vector<8x128xf32>
    %552 = math.tanh %551 : vector<8x128xf32>
    %553 = arith.mulf %548, %552 : vector<8x128xf32>
    %554 = vector.extract_strided_slice %553 {offsets = [0, 0], sizes = [8, 64], strides = [1, 1]} : vector<8x128xf32> to vector<8x64xf32>
    %555 = vector.shape_cast %554 : vector<8x64xf32> to vector<8x1x64xf32>
    %c0_163 = arith.constant 0 : index
    %c4_164 = arith.constant 4 : index
    %c0_165 = arith.constant 0 : index
    %556 = vector.load %arg15[%c0_163, %c4_164, %c0_165] : memref<8x8x128xf32, #tpu.memory_space<vmem>>, vector<8x1x64xf32>
    tpu.vector_store %arg15[%c0_163, %c4_164, %c0_165], %555 {strides = array<i32>} : memref<8x8x128xf32, #tpu.memory_space<vmem>>, vector<8x1x64xf32>,
    %557 = vector.extract_strided_slice %553 {offsets = [0, 64], sizes = [8, 64], strides = [1, 1]} : vector<8x128xf32> to vector<8x64xf32>
    %558 = vector.shape_cast %557 : vector<8x64xf32> to vector<8x1x64xf32>
    %c0_166 = arith.constant 0 : index
    %c3_167 = arith.constant 3 : index
    %c64_168 = arith.constant 64 : index
    %559 = vector.load %arg15[%c0_166, %c3_167, %c64_168] : memref<8x8x128xf32, #tpu.memory_space<vmem>>, vector<8x1x64xf32>
    tpu.vector_store %arg15[%c0_166, %c3_167, %c64_168], %558 {strides = array<i32>} : memref<8x8x128xf32, #tpu.memory_space<vmem>>, vector<8x1x64xf32>,
    %560 = vector.extract_strided_slice %357 {offsets = [0, 5, 0], sizes = [8, 1, 512], strides = [1, 1, 1]} : vector<8x8x512xf32> to vector<8x1x512xf32>
    %561 = vector.shape_cast %560 : vector<8x1x512xf32> to vector<8x512xf32>
    %562 = vector.extract_strided_slice %357 {offsets = [0, 2, 0], sizes = [8, 1, 512], strides = [1, 1, 1]} : vector<8x8x512xf32> to vector<8x1x512xf32>
    %563 = vector.shape_cast %562 : vector<8x1x512xf32> to vector<8x512xf32>
    %564 = arith.select %18, %561, %563 : vector<8x512xi1>, vector<8x512xf32>
    %565 = arith.truncf %553 : vector<8x128xf32> to vector<8x128xbf16>
    %c0_169 = arith.constant 0 : index
    %c0_170 = arith.constant 0 : index
    %566 = vector.load %arg6[%c0_169, %c0_170] : memref<128x512xbf16, #tpu.memory_space<vmem>>, vector<128x512xbf16>
    %cst_171 = arith.constant dense<0.000000e+00> : vector<8x512xf32>
    %567 = tpu.matmul %565, %566, %cst_171 {dimension_numbers = #tpu.dot_dimension_numbers<[1], [0], [0], [1], [0, 0, 1, 1], [], []>} : vector<8x128xbf16>, vector<128x512xbf16>, vector<8x512xf32> -> vector<8x512xf32>
    %568 = arith.addf %564, %567 : vector<8x512xf32>
    %569 = vector.extract_strided_slice %568 {offsets = [0, 0], sizes = [8, 128], strides = [1, 1]} : vector<8x512xf32> to vector<8x128xf32>
    %570 = arith.negf %569 : vector<8x128xf32>
    %571 = math.exp %570 : vector<8x128xf32>
    %cst_172 = arith.constant 1.000000e+00 : f32
    %572 = vector.broadcast %cst_172 : f32 to vector<8x128xf32>
    %573 = arith.addf %572, %571 : vector<8x128xf32>
    %574 = arith.divf %572, %573 : vector<8x128xf32>
    %575 = vector.extract_strided_slice %568 {offsets = [0, 128], sizes = [8, 128], strides = [1, 1]} : vector<8x512xf32> to vector<8x128xf32>
    %576 = arith.negf %575 : vector<8x128xf32>
    %577 = math.exp %576 : vector<8x128xf32>
    %cst_173 = arith.constant 1.000000e+00 : f32
    %578 = vector.broadcast %cst_173 : f32 to vector<8x128xf32>
    %579 = arith.addf %578, %577 : vector<8x128xf32>
    %580 = arith.divf %578, %579 : vector<8x128xf32>
    %581 = vector.extract_strided_slice %568 {offsets = [0, 256], sizes = [8, 128], strides = [1, 1]} : vector<8x512xf32> to vector<8x128xf32>
    %582 = math.tanh %581 : vector<8x128xf32>
    %583 = vector.extract_strided_slice %568 {offsets = [0, 384], sizes = [8, 128], strides = [1, 1]} : vector<8x512xf32> to vector<8x128xf32>
    %584 = arith.negf %583 : vector<8x128xf32>
    %585 = math.exp %584 : vector<8x128xf32>
    %cst_174 = arith.constant 1.000000e+00 : f32
    %586 = vector.broadcast %cst_174 : f32 to vector<8x128xf32>
    %587 = arith.addf %586, %585 : vector<8x128xf32>
    %588 = arith.divf %586, %587 : vector<8x128xf32>
    %589 = arith.mulf %580, %551 : vector<8x128xf32>
    %590 = arith.mulf %574, %582 : vector<8x128xf32>
    %591 = arith.addf %589, %590 : vector<8x128xf32>
    %592 = math.tanh %591 : vector<8x128xf32>
    %593 = arith.mulf %588, %592 : vector<8x128xf32>
    %594 = vector.extract_strided_slice %593 {offsets = [0, 0], sizes = [8, 64], strides = [1, 1]} : vector<8x128xf32> to vector<8x64xf32>
    %595 = vector.shape_cast %594 : vector<8x64xf32> to vector<8x1x64xf32>
    %c0_175 = arith.constant 0 : index
    %c5_176 = arith.constant 5 : index
    %c0_177 = arith.constant 0 : index
    %596 = vector.load %arg15[%c0_175, %c5_176, %c0_177] : memref<8x8x128xf32, #tpu.memory_space<vmem>>, vector<8x1x64xf32>
    tpu.vector_store %arg15[%c0_175, %c5_176, %c0_177], %595 {strides = array<i32>} : memref<8x8x128xf32, #tpu.memory_space<vmem>>, vector<8x1x64xf32>,
    %597 = vector.extract_strided_slice %593 {offsets = [0, 64], sizes = [8, 64], strides = [1, 1]} : vector<8x128xf32> to vector<8x64xf32>
    %598 = vector.shape_cast %597 : vector<8x64xf32> to vector<8x1x64xf32>
    %c0_178 = arith.constant 0 : index
    %c2_179 = arith.constant 2 : index
    %c64_180 = arith.constant 64 : index
    %599 = vector.load %arg15[%c0_178, %c2_179, %c64_180] : memref<8x8x128xf32, #tpu.memory_space<vmem>>, vector<8x1x64xf32>
    tpu.vector_store %arg15[%c0_178, %c2_179, %c64_180], %598 {strides = array<i32>} : memref<8x8x128xf32, #tpu.memory_space<vmem>>, vector<8x1x64xf32>,
    %600 = vector.extract_strided_slice %357 {offsets = [0, 6, 0], sizes = [8, 1, 512], strides = [1, 1, 1]} : vector<8x8x512xf32> to vector<8x1x512xf32>
    %601 = vector.shape_cast %600 : vector<8x1x512xf32> to vector<8x512xf32>
    %602 = vector.extract_strided_slice %357 {offsets = [0, 1, 0], sizes = [8, 1, 512], strides = [1, 1, 1]} : vector<8x8x512xf32> to vector<8x1x512xf32>
    %603 = vector.shape_cast %602 : vector<8x1x512xf32> to vector<8x512xf32>
    %604 = arith.select %18, %601, %603 : vector<8x512xi1>, vector<8x512xf32>
    %605 = arith.truncf %593 : vector<8x128xf32> to vector<8x128xbf16>
    %c0_181 = arith.constant 0 : index
    %c0_182 = arith.constant 0 : index
    %606 = vector.load %arg6[%c0_181, %c0_182] : memref<128x512xbf16, #tpu.memory_space<vmem>>, vector<128x512xbf16>
    %cst_183 = arith.constant dense<0.000000e+00> : vector<8x512xf32>
    %607 = tpu.matmul %605, %606, %cst_183 {dimension_numbers = #tpu.dot_dimension_numbers<[1], [0], [0], [1], [0, 0, 1, 1], [], []>} : vector<8x128xbf16>, vector<128x512xbf16>, vector<8x512xf32> -> vector<8x512xf32>
    %608 = arith.addf %604, %607 : vector<8x512xf32>
    %609 = vector.extract_strided_slice %608 {offsets = [0, 0], sizes = [8, 128], strides = [1, 1]} : vector<8x512xf32> to vector<8x128xf32>
    %610 = arith.negf %609 : vector<8x128xf32>
    %611 = math.exp %610 : vector<8x128xf32>
    %cst_184 = arith.constant 1.000000e+00 : f32
    %612 = vector.broadcast %cst_184 : f32 to vector<8x128xf32>
    %613 = arith.addf %612, %611 : vector<8x128xf32>
    %614 = arith.divf %612, %613 : vector<8x128xf32>
    %615 = vector.extract_strided_slice %608 {offsets = [0, 128], sizes = [8, 128], strides = [1, 1]} : vector<8x512xf32> to vector<8x128xf32>
    %616 = arith.negf %615 : vector<8x128xf32>
    %617 = math.exp %616 : vector<8x128xf32>
    %cst_185 = arith.constant 1.000000e+00 : f32
    %618 = vector.broadcast %cst_185 : f32 to vector<8x128xf32>
    %619 = arith.addf %618, %617 : vector<8x128xf32>
    %620 = arith.divf %618, %619 : vector<8x128xf32>
    %621 = vector.extract_strided_slice %608 {offsets = [0, 256], sizes = [8, 128], strides = [1, 1]} : vector<8x512xf32> to vector<8x128xf32>
    %622 = math.tanh %621 : vector<8x128xf32>
    %623 = vector.extract_strided_slice %608 {offsets = [0, 384], sizes = [8, 128], strides = [1, 1]} : vector<8x512xf32> to vector<8x128xf32>
    %624 = arith.negf %623 : vector<8x128xf32>
    %625 = math.exp %624 : vector<8x128xf32>
    %cst_186 = arith.constant 1.000000e+00 : f32
    %626 = vector.broadcast %cst_186 : f32 to vector<8x128xf32>
    %627 = arith.addf %626, %625 : vector<8x128xf32>
    %628 = arith.divf %626, %627 : vector<8x128xf32>
    %629 = arith.mulf %620, %591 : vector<8x128xf32>
    %630 = arith.mulf %614, %622 : vector<8x128xf32>
    %631 = arith.addf %629, %630 : vector<8x128xf32>
    %632 = math.tanh %631 : vector<8x128xf32>
    %633 = arith.mulf %628, %632 : vector<8x128xf32>
    %634 = vector.extract_strided_slice %633 {offsets = [0, 0], sizes = [8, 64], strides = [1, 1]} : vector<8x128xf32> to vector<8x64xf32>
    %635 = vector.shape_cast %634 : vector<8x64xf32> to vector<8x1x64xf32>
    %c0_187 = arith.constant 0 : index
    %c6_188 = arith.constant 6 : index
    %c0_189 = arith.constant 0 : index
    %636 = vector.load %arg15[%c0_187, %c6_188, %c0_189] : memref<8x8x128xf32, #tpu.memory_space<vmem>>, vector<8x1x64xf32>
    tpu.vector_store %arg15[%c0_187, %c6_188, %c0_189], %635 {strides = array<i32>} : memref<8x8x128xf32, #tpu.memory_space<vmem>>, vector<8x1x64xf32>,
    %637 = vector.extract_strided_slice %633 {offsets = [0, 64], sizes = [8, 64], strides = [1, 1]} : vector<8x128xf32> to vector<8x64xf32>
    %638 = vector.shape_cast %637 : vector<8x64xf32> to vector<8x1x64xf32>
    %c0_190 = arith.constant 0 : index
    %c1_191 = arith.constant 1 : index
    %c64_192 = arith.constant 64 : index
    %639 = vector.load %arg15[%c0_190, %c1_191, %c64_192] : memref<8x8x128xf32, #tpu.memory_space<vmem>>, vector<8x1x64xf32>
    tpu.vector_store %arg15[%c0_190, %c1_191, %c64_192], %638 {strides = array<i32>} : memref<8x8x128xf32, #tpu.memory_space<vmem>>, vector<8x1x64xf32>,
    %640 = vector.extract_strided_slice %357 {offsets = [0, 7, 0], sizes = [8, 1, 512], strides = [1, 1, 1]} : vector<8x8x512xf32> to vector<8x1x512xf32>
    %641 = vector.shape_cast %640 : vector<8x1x512xf32> to vector<8x512xf32>
    %642 = vector.extract_strided_slice %357 {offsets = [0, 0, 0], sizes = [8, 1, 512], strides = [1, 1, 1]} : vector<8x8x512xf32> to vector<8x1x512xf32>
    %643 = vector.shape_cast %642 : vector<8x1x512xf32> to vector<8x512xf32>
    %644 = arith.select %18, %641, %643 : vector<8x512xi1>, vector<8x512xf32>
    %645 = arith.truncf %633 : vector<8x128xf32> to vector<8x128xbf16>
    %c0_193 = arith.constant 0 : index
    %c0_194 = arith.constant 0 : index
    %646 = vector.load %arg6[%c0_193, %c0_194] : memref<128x512xbf16, #tpu.memory_space<vmem>>, vector<128x512xbf16>
    %cst_195 = arith.constant dense<0.000000e+00> : vector<8x512xf32>
    %647 = tpu.matmul %645, %646, %cst_195 {dimension_numbers = #tpu.dot_dimension_numbers<[1], [0], [0], [1], [0, 0, 1, 1], [], []>} : vector<8x128xbf16>, vector<128x512xbf16>, vector<8x512xf32> -> vector<8x512xf32>
    %648 = arith.addf %644, %647 : vector<8x512xf32>
    %649 = vector.extract_strided_slice %648 {offsets = [0, 0], sizes = [8, 128], strides = [1, 1]} : vector<8x512xf32> to vector<8x128xf32>
    %650 = arith.negf %649 : vector<8x128xf32>
    %651 = math.exp %650 : vector<8x128xf32>
    %cst_196 = arith.constant 1.000000e+00 : f32
    %652 = vector.broadcast %cst_196 : f32 to vector<8x128xf32>
    %653 = arith.addf %652, %651 : vector<8x128xf32>
    %654 = arith.divf %652, %653 : vector<8x128xf32>
    %655 = vector.extract_strided_slice %648 {offsets = [0, 128], sizes = [8, 128], strides = [1, 1]} : vector<8x512xf32> to vector<8x128xf32>
    %656 = arith.negf %655 : vector<8x128xf32>
    %657 = math.exp %656 : vector<8x128xf32>
    %cst_197 = arith.constant 1.000000e+00 : f32
    %658 = vector.broadcast %cst_197 : f32 to vector<8x128xf32>
    %659 = arith.addf %658, %657 : vector<8x128xf32>
    %660 = arith.divf %658, %659 : vector<8x128xf32>
    %661 = vector.extract_strided_slice %648 {offsets = [0, 256], sizes = [8, 128], strides = [1, 1]} : vector<8x512xf32> to vector<8x128xf32>
    %662 = math.tanh %661 : vector<8x128xf32>
    %663 = vector.extract_strided_slice %648 {offsets = [0, 384], sizes = [8, 128], strides = [1, 1]} : vector<8x512xf32> to vector<8x128xf32>
    %664 = arith.negf %663 : vector<8x128xf32>
    %665 = math.exp %664 : vector<8x128xf32>
    %cst_198 = arith.constant 1.000000e+00 : f32
    %666 = vector.broadcast %cst_198 : f32 to vector<8x128xf32>
    %667 = arith.addf %666, %665 : vector<8x128xf32>
    %668 = arith.divf %666, %667 : vector<8x128xf32>
    %669 = arith.mulf %660, %631 : vector<8x128xf32>
    %670 = arith.mulf %654, %662 : vector<8x128xf32>
    %671 = arith.addf %669, %670 : vector<8x128xf32>
    %672 = math.tanh %671 : vector<8x128xf32>
    %673 = arith.mulf %668, %672 : vector<8x128xf32>
    %674 = vector.extract_strided_slice %673 {offsets = [0, 0], sizes = [8, 64], strides = [1, 1]} : vector<8x128xf32> to vector<8x64xf32>
    %675 = vector.shape_cast %674 : vector<8x64xf32> to vector<8x1x64xf32>
    %c0_199 = arith.constant 0 : index
    %c7_200 = arith.constant 7 : index
    %c0_201 = arith.constant 0 : index
    %676 = vector.load %arg15[%c0_199, %c7_200, %c0_201] : memref<8x8x128xf32, #tpu.memory_space<vmem>>, vector<8x1x64xf32>
    tpu.vector_store %arg15[%c0_199, %c7_200, %c0_201], %675 {strides = array<i32>} : memref<8x8x128xf32, #tpu.memory_space<vmem>>, vector<8x1x64xf32>,
    %677 = vector.extract_strided_slice %673 {offsets = [0, 64], sizes = [8, 64], strides = [1, 1]} : vector<8x128xf32> to vector<8x64xf32>
    %678 = vector.shape_cast %677 : vector<8x64xf32> to vector<8x1x64xf32>
    %c0_202 = arith.constant 0 : index
    %c0_203 = arith.constant 0 : index
    %c64_204 = arith.constant 64 : index
    %679 = vector.load %arg15[%c0_202, %c0_203, %c64_204] : memref<8x8x128xf32, #tpu.memory_space<vmem>>, vector<8x1x64xf32>
    tpu.vector_store %arg15[%c0_202, %c0_203, %c64_204], %678 {strides = array<i32>} : memref<8x8x128xf32, #tpu.memory_space<vmem>>, vector<8x1x64xf32>,
    %c0_205 = arith.constant 0 : index
    %c0_206 = arith.constant 0 : index
    %c0_207 = arith.constant 0 : index
    %680 = vector.load %arg15[%c0_205, %c0_206, %c0_207] : memref<8x8x128xf32, #tpu.memory_space<vmem>>, vector<8x8x128xf32>
    %681 = vector.shape_cast %680 : vector<8x8x128xf32> to vector<64x128xf32>
    %682 = arith.truncf %681 : vector<64x128xf32> to vector<64x128xbf16>
    %c0_208 = arith.constant 0 : index
    %c0_209 = arith.constant 0 : index
    %683 = vector.load %arg8[%c0_208, %c0_209] : memref<128x256xbf16, #tpu.memory_space<vmem>>, vector<128x256xbf16>
    %cst_210 = arith.constant dense<0.000000e+00> : vector<64x256xf32>
    %684 = tpu.matmul %682, %683, %cst_210 {dimension_numbers = #tpu.dot_dimension_numbers<[1], [0], [0], [1], [0, 0, 1, 1], [], []>} : vector<64x128xbf16>, vector<128x256xbf16>, vector<64x256xf32> -> vector<64x256xf32>
    %c0_211 = arith.constant 0 : index
    %c0_212 = arith.constant 0 : index
    %685 = vector.load %arg9[%c0_211, %c0_212] : memref<1x256xf32, #tpu.memory_space<vmem>>, vector<1x256xf32>
    %686 = vector.broadcast %685 : vector<1x256xf32> to vector<64x256xf32>
    %687 = arith.addf %684, %686 : vector<64x256xf32>
    %688 = math.tanh %687 : vector<64x256xf32>
    %689 = vector.extract_strided_slice %688 {offsets = [0, 0], sizes = [64, 128], strides = [1, 1]} : vector<64x256xf32> to vector<64x128xf32>
    %690 = vector.extract_strided_slice %688 {offsets = [0, 128], sizes = [64, 128], strides = [1, 1]} : vector<64x256xf32> to vector<64x128xf32>
    %691 = arith.truncf %690 : vector<64x128xf32> to vector<64x128xbf16>
    %c0_213 = arith.constant 0 : index
    %c0_214 = arith.constant 0 : index
    %692 = vector.load %arg10[%c0_213, %c0_214] : memref<128x128xbf16, #tpu.memory_space<vmem>>, vector<128x128xbf16>
    %cst_215 = arith.constant dense<0.000000e+00> : vector<64x128xf32>
    %693 = tpu.matmul %691, %692, %cst_215 {dimension_numbers = #tpu.dot_dimension_numbers<[1], [0], [0], [1], [0, 0, 1, 1], [], []>} : vector<64x128xbf16>, vector<128x128xbf16>, vector<64x128xf32> -> vector<64x128xf32>
    %c0_216 = arith.constant 0 : index
    %c0_217 = arith.constant 0 : index
    %694 = vector.load %arg11[%c0_216, %c0_217] : memref<1x128xf32, #tpu.memory_space<vmem>>, vector<1x128xf32>
    %695 = vector.broadcast %694 : vector<1x128xf32> to vector<64x128xf32>
    %696 = arith.addf %693, %695 : vector<64x128xf32>
    %697 = vector.shape_cast %696 : vector<64x128xf32> to vector<8x8x128xf32>
    %698 = arith.truncf %697 : vector<8x8x128xf32> to vector<8x8x128xbf16>
    %699 = vector.shape_cast %689 : vector<64x128xf32> to vector<8x8x128xf32>
    %700 = arith.truncf %699 : vector<8x8x128xf32> to vector<8x8x128xbf16>
    %cst_218 = arith.constant 0.000000e+00 : bf16
    %701 = vector.broadcast %cst_218 : bf16 to vector<8x120x128xbf16>
    %702 = tpu.concatenate %700, %701 in 1 : vector<8x8x128xbf16>, vector<8x120x128xbf16> -> vector<8x128x128xbf16>
    %cst_219 = arith.constant dense<0.000000e+00> : vector<8x8x128xf32>
    %703 = tpu.matmul %698, %702, %cst_219 {dimension_numbers = #tpu.dot_dimension_numbers<[2], [2], [1], [1], [0, 0, 0, 1, 1, 1], [0], [0]>} : vector<8x8x128xbf16>, vector<8x128x128xbf16>, vector<8x8x128xf32> -> vector<8x8x128xf32>
    %704 = tpu.iota {dimensions = array<i32: 2>} : vector<8x8x128xi32>
    %705 = tpu.iota {dimensions = array<i32: 1>} : vector<8x8x128xi32>
    %c8_i32 = arith.constant 8 : i32
    %706 = vector.broadcast %c8_i32 : i32 to vector<8x8x128xi32>
    %707 = arith.cmpi slt, %704, %706 : vector<8x8x128xi32>
    %cst_220 = arith.constant -1.000000e+30 : f32
    %708 = vector.broadcast %cst_220 : f32 to vector<8x8x128xf32>
    %709 = arith.select %707, %703, %708 : vector<8x8x128xi1>, vector<8x8x128xf32>
    %c0_221 = arith.constant 0 : index
    %c0_222 = arith.constant 0 : index
    %c0_223 = arith.constant 0 : index
    %710 = vector.load %arg13[%c0_221, %c0_222, %c0_223] : memref<8x8x128xf32, #tpu.memory_space<vmem>>, vector<8x8x128xf32>
    tpu.vector_store %arg13[%c0_221, %c0_222, %c0_223], %709 {strides = array<i32>} : memref<8x8x128xf32, #tpu.memory_space<vmem>>, vector<8x8x128xf32>,
    %cst_224 = arith.constant dense<0xFF800000> : vector<8x8xf32>
    %711 = vector.multi_reduction <maximumf>, %709, %cst_224 [2] : vector<8x8x128xf32> to vector<8x8xf32>
    %712 = vector.shape_cast %711 : vector<8x8xf32> to vector<8x8x1xf32>
    %713 = vector.broadcast %712 : vector<8x8x1xf32> to vector<8x8x128xf32>
    %714 = arith.subf %709, %713 : vector<8x8x128xf32>
    %715 = math.exp %714 : vector<8x8x128xf32>
    %cst_225 = arith.constant dense<0.000000e+00> : vector<8x8xf32>
    %716 = vector.multi_reduction <add>, %715, %cst_225 [2] : vector<8x8x128xf32> to vector<8x8xf32>
    %717 = vector.shape_cast %716 : vector<8x8xf32> to vector<8x8x1xf32>
    %718 = math.log %717 : vector<8x8x1xf32>
    %719 = arith.addf %718, %712 : vector<8x8x1xf32>
    %720 = vector.broadcast %719 : vector<8x8x1xf32> to vector<8x8x128xf32>
    %721 = arith.subf %709, %720 : vector<8x8x128xf32>
    %c0_226 = arith.constant 0 : index
    %c0_227 = arith.constant 0 : index
    %722 = vector.load %arg12[%c0_226, %c0_227] : memref<8x8xi32, #tpu.memory_space<vmem>>, vector<8x8xi32>
    %723 = vector.shape_cast %722 : vector<8x8xi32> to vector<8x8x1xi32>
    %724 = vector.broadcast %723 : vector<8x8x1xi32> to vector<8x8x128xi32>
    %725 = arith.cmpi eq, %704, %724 : vector<8x8x128xi32>
    %c1_i32_228 = arith.constant 1 : i32
    %726 = vector.broadcast %c1_i32_228 : i32 to vector<8x8x128xi32>
    %727 = arith.cmpi sge, %705, %726 : vector<8x8x128xi32>
    %728 = arith.andi %725, %727 : vector<8x8x128xi1>
    %cst_229 = arith.constant 0.000000e+00 : f32
    %729 = vector.broadcast %cst_229 : f32 to vector<8x8x128xf32>
    %730 = arith.select %728, %721, %729 : vector<8x8x128xi1>, vector<8x8x128xf32>
    %cst_230 = arith.constant dense<0.000000e+00> : vector<8x8xf32>
    %731 = vector.multi_reduction <add>, %730, %cst_230 [2] : vector<8x8x128xf32> to vector<8x8xf32>
    %cst_231 = arith.constant dense<0.000000e+00> : vector<8xf32>
    %732 = vector.multi_reduction <add>, %731, %cst_231 [1] : vector<8x8xf32> to vector<8xf32>
    %733 = vector.shape_cast %732 : vector<8xf32> to vector<8x1xf32>
    %cst_232 = arith.constant 0.000000e+00 : f32
    %734 = vector.broadcast %cst_232 : f32 to vector<8x1xf32>
    %735 = arith.subf %734, %733 : vector<8x1xf32>
    %cst_233 = arith.constant 7.000000e+00 : f32
    %736 = vector.broadcast %cst_233 : f32 to vector<8x1xf32>
    %737 = arith.divf %735, %736 : vector<8x1xf32>
    %c0_234 = arith.constant 0 : index
    %c0_235 = arith.constant 0 : index
    %738 = vector.load %arg14[%c0_234, %c0_235] : memref<8x1xf32, #tpu.memory_space<vmem>>, vector<8x1xf32>
    tpu.vector_store %arg14[%c0_234, %c0_235], %737 {strides = array<i32>} : memref<8x1xf32, #tpu.memory_space<vmem>>, vector<8x1xf32>,
    return
  }
  func.func @transform_0(%arg0: i32) -> (i32, i32, i32) {
    %c0_i32 = arith.constant 0 : i32
    %c0_i32_0 = arith.constant 0 : i32
    %c0_i32_1 = arith.constant 0 : i32
    return %arg0, %c0_i32, %c0_i32_0 : i32, i32, i32
  }
  func.func @transform_1(%arg0: i32) -> (i32, i32) {
    %c0_i32 = arith.constant 0 : i32
    %c0_i32_0 = arith.constant 0 : i32
    %c0_i32_1 = arith.constant 0 : i32
    return %c0_i32, %c0_i32_0 : i32, i32
  }
  func.func @transform_2(%arg0: i32) -> (i32, i32) {
    %c0_i32 = arith.constant 0 : i32
    %c0_i32_0 = arith.constant 0 : i32
    %c0_i32_1 = arith.constant 0 : i32
    return %c0_i32, %c0_i32_0 : i32, i32
  }
  func.func @transform_3(%arg0: i32) -> (i32, i32) {
    %c0_i32 = arith.constant 0 : i32
    %c0_i32_0 = arith.constant 0 : i32
    %c0_i32_1 = arith.constant 0 : i32
    return %c0_i32, %c0_i32_0 : i32, i32
  }
  func.func @transform_4(%arg0: i32) -> (i32, i32) {
    %c0_i32 = arith.constant 0 : i32
    %c0_i32_0 = arith.constant 0 : i32
    %c0_i32_1 = arith.constant 0 : i32
    return %c0_i32, %c0_i32_0 : i32, i32
  }
  func.func @transform_5(%arg0: i32) -> (i32, i32) {
    %c0_i32 = arith.constant 0 : i32
    %c0_i32_0 = arith.constant 0 : i32
    %c0_i32_1 = arith.constant 0 : i32
    return %c0_i32, %c0_i32_0 : i32, i32
  }
  func.func @transform_6(%arg0: i32) -> (i32, i32) {
    %c0_i32 = arith.constant 0 : i32
    %c0_i32_0 = arith.constant 0 : i32
    %c0_i32_1 = arith.constant 0 : i32
    return %c0_i32, %c0_i32_0 : i32, i32
  }
  func.func @transform_7(%arg0: i32) -> (i32, i32) {
    %c0_i32 = arith.constant 0 : i32
    %c0_i32_0 = arith.constant 0 : i32
    %c0_i32_1 = arith.constant 0 : i32
    return %c0_i32, %c0_i32_0 : i32, i32
  }
  func.func @transform_8(%arg0: i32) -> (i32, i32) {
    %c0_i32 = arith.constant 0 : i32
    %c0_i32_0 = arith.constant 0 : i32
    %c0_i32_1 = arith.constant 0 : i32
    return %c0_i32, %c0_i32_0 : i32, i32
  }
  func.func @transform_9(%arg0: i32) -> (i32, i32) {
    %c0_i32 = arith.constant 0 : i32
    %c0_i32_0 = arith.constant 0 : i32
    %c0_i32_1 = arith.constant 0 : i32
    return %c0_i32, %c0_i32_0 : i32, i32
  }
  func.func @transform_10(%arg0: i32) -> (i32, i32) {
    %c0_i32 = arith.constant 0 : i32
    %c0_i32_0 = arith.constant 0 : i32
    %c0_i32_1 = arith.constant 0 : i32
    return %c0_i32, %c0_i32_0 : i32, i32
  }
  func.func @transform_11(%arg0: i32) -> (i32, i32) {
    %c0_i32 = arith.constant 0 : i32
    %c0_i32_0 = arith.constant 0 : i32
    return %arg0, %c0_i32 : i32, i32
  }
  func.func @transform_12(%arg0: i32) -> (i32, i32, i32) {
    %c0_i32 = arith.constant 0 : i32
    %c0_i32_0 = arith.constant 0 : i32
    %c0_i32_1 = arith.constant 0 : i32
    return %arg0, %c0_i32, %c0_i32_0 : i32, i32, i32
  }
  func.func @transform_13(%arg0: i32) -> (i32, i32) {
    %c0_i32 = arith.constant 0 : i32
    %c0_i32_0 = arith.constant 0 : i32
    return %arg0, %c0_i32 : i32, i32
  }
}

</mosaic_0001>

<bundles_post_ra>
// kernel: dependency_parser_forward.1
= control target key start
LH: loop header
LB: loop body
LE: loop exit
PB: predicated region body
PF: predicated region fallthrough
CT: control target
= control target key end

     0   :  { %s11829_s25 = smov 0   ;;  %s18717_s0 = inlined_call_operand.vmem [shape: bf16[16,8,32], index: 0, kind: input, shape index: {}]   ;;  %s18718_s1 = inlined_call_operand.vmem [shape: bf16[32,512], index: 1, kind: input, shape index: {}]   ;;  %s18719_s2 = inlined_call_operand.vmem [shape: bf16[128,512], index: 2, kind: input, shape index: {}]   ;;  %s18720_s3 = inlined_call_operand.vmem [shape: f32[1,512], index: 3, kind: input, shape index: {}]   ;;  %s18721_s4 = inlined_call_operand.vmem [shape: bf16[128,512], index: 4, kind: input, shape index: {}]   ;;  %s18722_s5 = inlined_call_operand.vmem [shape: bf16[128,512], index: 5, kind: input, shape index: {}]   ;;  %s18723_s6 = inlined_call_operand.vmem [shape: f32[1,512], index: 6, kind: input, shape index: {}]   ;;  %s18724_s7 = inlined_call_operand.vmem [shape: bf16[128,256], index: 7, kind: input, shape index: {}]   ;;  %s18725_s8 = inlined_call_operand.vmem [shape: f32[1,256], index: 8, kind: input, shape index: {}]   ;;  %s18726_s9 = inlined_call_operand.vmem [shape: bf16[128,128], index: 9, kind: input, shape index: {}]   ;;  %s18727_s10 = inlined_call_operand.vmem [shape: f32[1,128], index: 10, kind: input, shape index: {}]   ;;  %s18728_s11 = inlined_call_operand.vmem [shape: s32[16,8], index: 11, kind: input, shape index: {}]   ;;  %s18729_s12 = inlined_call_operand.vmem [shape: f32[16,8,128], index: 12, kind: output, shape index: {0}]   ;;  %s18730_s13 = inlined_call_operand.vmem [shape: f32[16,1], index: 13, kind: output, shape index: {1}]  }
   0x1 LB: > { %s11835_s26 = sadd.s32 4294967295, %s11755_s25   ;;  %p8440_p0 = scmp.ge.s32.totalorder %s11755_s25, 1  ;;  %s11755_s25 = sphi %s11829_s25, %s24_s25  }
   0x2   : > { %p400_p1 = scmp.lt.s32.totalorder %s11755_s25, 3 }
   0x4   : > { %p401_p2 = pnand %p8440_p0, %p400_p1 }
   0x6   : > { %404 = sbr.rel (%p401_p2) target bundleno = 4011 (0xfab), region = 68 }
   0xb   : > { %v8481_v0 = vld [vmem:[%s18718_s1 + $0x20] sm:$0xf]  ;;  %v10843_v1 = vld [vmem:[%s18718_s1 + $0x2c] sm:$0xf0]  ;;  %v10841_v2 = vld [vmem:[%s18718_s1 + $0x24] sm:$0xf] }
   0xc   : > { %v8482_v3 = vor.u32 %v10843_v1, %v8481_v0  ;;  %v8483_v4 = vld [vmem:[%s18718_s1 + $0x30] sm:$0xf0]  ;;  %v8489_v5 = vld [vmem:[%s18718_s1 + $0x28] sm:$0xf]  ;;  %v10844_v6 = vld [vmem:[%s18718_s1 + $0x34] sm:$0xf0] }
   0xd   : > { %v8486_v7 = vor.u32 %v10841_v2, %v8483_v4  ;;  %v8490_v8 = vor.u32 %v10844_v6, %v8489_v5  ;;  %v10842_v9 = vld [vmem:[%s18718_s1 + $0x2c] sm:$0xf]  ;;  %v8491_v10 = vld [vmem:[%s18718_s1 + $0x38] sm:$0xf0]  ;;  %v8465_v11 = vld [vmem:[%s18718_s1] sm:$0xf] }
   0xe   : > { %635 = vmatpush.bf16.msra.mxu0 %v8482_v3  ;;  %v8494_v12 = vor.u32 %v10842_v9, %v8491_v10  ;;  %v10839_v13 = vld [vmem:[%s18718_s1 + $0xc] sm:$0xf0]  ;;  %v10837_v14 = vld [vmem:[%s18718_s1 + $0x4] sm:$0xf]  ;;  %v8467_v15 = vld [vmem:[%s18718_s1 + $0x10] sm:$0xf0] }
   0xf   : > { %664 = vmatpush.bf16.msra.mxu1 %v8486_v7  ;;  %693 = vmatpush.bf16.msra.mxu2 %v8490_v8  ;;  %v8466_v16 = vor.u32 %v10839_v13, %v8465_v11  ;;  %v8470_v17 = vor.u32 %v10837_v14, %v8467_v15  ;;  %v8473_v18 = vld [vmem:[%s18718_s1 + $0x8] sm:$0xf]  ;;  %v10840_v19 = vld [vmem:[%s18718_s1 + $0x14] sm:$0xf0]  ;;  %v10838_v20 = vld [vmem:[%s18718_s1 + $0xc] sm:$0xf] }
  0x10   : > { %722 = vmatpush.bf16.msra.mxu3 %v8494_v12  ;;  %v8474_v21 = vor.u32 %v10840_v19, %v8473_v18  ;;  %v8475_v22 = vld [vmem:[%s18718_s1 + $0x18] sm:$0xf0]  ;;  %s8441_s29 = sshll.u32 %s11835_s26, 3  ;;  %v8625_v23 = vld [vmem:[%s18719_s2 + $0xe0] sm:$0xf]  ;;  %vm616_vm0 = vcmask 261120  }
  0x11   : > { %v8478_v24 = vor.u32 %v10838_v20, %v8475_v22  ;;  %p453_p3 = scmp.lt.s32.totalorder %s8441_s29, 15  ;;  %v10875_v25 = vld [vmem:[%s18719_s2 + $0xec] sm:$0xf0]  ;;  %v10873_v26 = vld [vmem:[%s18719_s2 + $0xe4] sm:$0xf]  ;;  %vm778_vm1 = vcmask 1041409  }
  0x12   : > { %636 = vmatpush.bf16.msra.mxu0 %v8466_v16  ;;  %v8626_v27 = vor.u32 %v10875_v25, %v8625_v23  ;;  %v8627_v28 = vld [vmem:[%s18719_s2 + $0xf0] sm:$0xf0]  ;;  %v10874_v29 = vld [vmem:[%s18719_s2 + $0xec] sm:$0xf]  ;;  %v8635_v30 = vld [vmem:[%s18719_s2 + $0xf8] sm:$0xf0] }
  0x13   : > { %665 = vmatpush.bf16.msra.mxu1 %v8470_v17  ;;  %694 = vmatpush.bf16.msra.mxu2 %v8474_v21  ;;  %s19410_s29 = smov (!%p453_p3, %s8441_s29), 15  ;;  %v8630_v31 = vor.u32 %v10873_v26, %v8627_v28  ;;  %v8638_v32 = vor.u32 %v10874_v29, %v8635_v30  ;;  %v8609_v33 = vld [vmem:[%s18719_s2 + $0xc0] sm:$0xf]  ;;  %v10871_v34 = vld [vmem:[%s18719_s2 + $0xcc] sm:$0xf0]  ;;  %vm781_vm2 = vcmask 1042434  }
  0x14   : > { %723 = vmatpush.bf16.msra.mxu3 %v8478_v24  ;;  %v8610_v35 = vor.u32 %v10871_v34, %v8609_v33  ;;  %v10869_v36 = vld [vmem:[%s18719_s2 + $0xc4] sm:$0xf]  ;;  %v8611_v37 = vld [vmem:[%s18719_s2 + $0xd0] sm:$0xf0]  ;;  %v10870_v38 = vld [vmem:[%s18719_s2 + $0xcc] sm:$0xf] }
  0x15   : > { %s8442_s21 = sshll.u32 %s19410_s29, 2  ;;  %v8619_v39 = vld [vmem:[%s18719_s2 + $0xd8] sm:$0xf0]  ;;  %v8633_v40 = vld [vmem:[%s18719_s2 + $0xe8] sm:$0xf]  ;;  %v8614_v45 = vor.u32 %v10869_v36, %v8611_v37  ;;  %vm784_vm3 = vcmask 1043459  }
  0x16   : > { %1100 = vmatpush.bf16.msrb.mxu0 %v8626_v27  ;;  %s11933_s14 = scalar_lea.vmem %s18717_s0, %s8442_s21  ;;  %v10876_v41 = vld [vmem:[%s18719_s2 + $0xf4] sm:$0xf0]  ;;  %v8593_v42 = vld [vmem:[%s18719_s2 + $0xa0] sm:$0xf]  ;;  %v10867_v43 = vld [vmem:[%s18719_s2 + $0xac] sm:$0xf0]  ;;  %v8622_v46 = vor.u32 %v10870_v38, %v8619_v39 }
  0x17   : > { %1113 = vmatpush.bf16.msrb.mxu1 %v8630_v31  ;;  %v10833_v44 = vld [vmem:[%s11933_s14] sm:$0xff]  ;;  %v8634_v48 = vor.u32 %v10876_v41, %v8633_v40  ;;  %v8594_v49 = vor.u32 %v10867_v43, %v8593_v42  ;;  %v8595_v50 = vld [vmem:[%s18719_s2 + $0xb0] sm:$0xf0]  ;;  %v10866_v51 = vld [vmem:[%s18719_s2 + $0xac] sm:$0xf]  ;;  %vm18793_vm4 = vcmask 1044484  }
  0x18   : > { %1139 = vmatpush.bf16.msrb.mxu3 %v8638_v32  ;;  %v10865_v47 = vld [vmem:[%s18719_s2 + $0xa4] sm:$0xf]  ;;  %v8603_v52 = vld [vmem:[%s18719_s2 + $0xb8] sm:$0xf0]  ;;  %8495 = vmatmul.msk.bf16.vlgmr.msra.gmra.mxu0 %vm616_vm0, %v10833_v44  ;;  %v8617_v53 = vld [vmem:[%s18719_s2 + $0xc8] sm:$0xf] }
  0x19   : > { %8499 = vmatmul.msk.bf16.vlgmr.msra.gmra.mxu1 %vm616_vm0, %v10833_v44  ;;  %v10872_v54 = vld [vmem:[%s18719_s2 + $0xd4] sm:$0xf0]  ;;  %v8577_v55 = vld [vmem:[%s18719_s2 + $0x80] sm:$0xf]  ;;  %8503 = vmatmul.msk.bf16.vlgmr.msra.gmra.mxu2 %vm616_vm0, %v10833_v44  ;;  %v10863_v56 = vld [vmem:[%s18719_s2 + $0x8c] sm:$0xf0]  ;;  %v8598_v57 = vor.u32 %v10865_v47, %v8595_v50  ;;  %v8606_v58 = vor.u32 %v10866_v51, %v8603_v52 }
  0x1a   : > { %1101 = vmatpush.bf16.msrb.mxu0 %v8610_v35  ;;  %8507 = vmatmul.msk.bf16.vlgmr.msra.gmra.mxu3 %vm616_vm0, %v10833_v44  ;;  %v10861_v59 = vld [vmem:[%s18719_s2 + $0x84] sm:$0xf]  ;;  %v8579_v60 = vld [vmem:[%s18719_s2 + $0x90] sm:$0xf0]  ;;  %v8618_v61 = vor.u32 %v10872_v54, %v8617_v53  ;;  %v8578_v62 = vor.u32 %v10863_v56, %v8577_v55  ;;  %v10862_v63 = vld [vmem:[%s18719_s2 + $0x8c] sm:$0xf] }
  0x1b   : > { %1114 = vmatpush.bf16.msrb.mxu1 %v8614_v45  ;;  %1126 = vmatpush.bf16.msrb.mxu2 %v8634_v48  ;;  %v8587_v0 = vld [vmem:[%s18719_s2 + $0x98] sm:$0xf0]  ;;  %v8601_v1 = vld [vmem:[%s18719_s2 + $0xa8] sm:$0xf]  ;;  %v10868_v2 = vld [vmem:[%s18719_s2 + $0xb4] sm:$0xf0]  ;;  %v8582_v5 = vor.u32 %v10861_v59, %v8579_v60 }
  0x1c   : > { %1140 = vmatpush.bf16.msrb.mxu3 %v8622_v46  ;;  %v8561_v3 = vld [vmem:[%s18719_s2 + $0x60] sm:$0xf]  ;;  %v10859_v4 = vld [vmem:[%s18719_s2 + $0x6c] sm:$0xf0]  ;;  %v8590_v6 = vor.u32 %v10862_v63, %v8587_v0  ;;  %v10857_v7 = vld [vmem:[%s18719_s2 + $0x64] sm:$0xf]  ;;  %v8602_v9 = vor.u32 %v10868_v2, %v8601_v1 }
  0x1d   : > { %v8563_v8 = vld [vmem:[%s18719_s2 + $0x70] sm:$0xf0]  ;;  %v8562_v10 = vor.u32 %v10859_v4, %v8561_v3  ;;  %v10858_v11 = vld [vmem:[%s18719_s2 + $0x6c] sm:$0xf]  ;;  %v8571_v12 = vld [vmem:[%s18719_s2 + $0x78] sm:$0xf0] }
  0x1e   : > { %1102 = vmatpush.bf16.msrb.mxu0 %v8594_v49  ;;  %v8585_v13 = vld [vmem:[%s18719_s2 + $0x88] sm:$0xf]  ;;  %v10864_v14 = vld [vmem:[%s18719_s2 + $0x94] sm:$0xf0]  ;;  %v8545_v15 = vld [vmem:[%s18719_s2 + $0x40] sm:$0xf]  ;;  %v8566_v17 = vor.u32 %v10857_v7, %v8563_v8  ;;  %v8574_v18 = vor.u32 %v10858_v11, %v8571_v12 }
  0x1f   : > { %1115 = vmatpush.bf16.msrb.mxu1 %v8598_v57  ;;  %1127 = vmatpush.bf16.msrb.mxu2 %v8618_v61  ;;  %v10855_v16 = vld [vmem:[%s18719_s2 + $0x4c] sm:$0xf0]  ;;  %v10853_v19 = vld [vmem:[%s18719_s2 + $0x44] sm:$0xf]  ;;  %v8586_v20 = vor.u32 %v10864_v14, %v8585_v13  ;;  %v8547_v22 = vld [vmem:[%s18719_s2 + $0x50] sm:$0xf0] }
  0x20   : > { %1141 = vmatpush.bf16.msrb.mxu3 %v8606_v58  ;;  %v8546_v21 = vor.u32 %v10855_v16, %v8545_v15  ;;  %v10854_v23 = vld [vmem:[%s18719_s2 + $0x4c] sm:$0xf]  ;;  %v8555_v24 = vld [vmem:[%s18719_s2 + $0x58] sm:$0xf0]  ;;  %v8569_v26 = vld [vmem:[%s18719_s2 + $0x68] sm:$0xf]  ;;  %v8550_v28 = vor.u32 %v10853_v19, %v8547_v22 }
  0x21   : > { %v10834_v25 = vld [vmem:[%s11933_s14 + $0x8] sm:$0xff]  ;;  %v10860_v27 = vld [vmem:[%s18719_s2 + $0x74] sm:$0xf0]  ;;  %v8558_v29 = vor.u32 %v10854_v23, %v8555_v24  ;;  %v8529_v31 = vld [vmem:[%s18719_s2 + $0x20] sm:$0xf]  ;;  %v18732_v60 = vmov 0  }
  0x22   : > { %1103 = vmatpush.bf16.msrb.mxu0 %v8578_v62  ;;  %v8570_v30 = vor.u32 %v10860_v27, %v8569_v26  ;;  %v10851_v32 = vld [vmem:[%s18719_s2 + $0x2c] sm:$0xf0]  ;;  %v10849_v33 = vld [vmem:[%s18719_s2 + $0x24] sm:$0xf]  ;;  %v8531_v35 = vld [vmem:[%s18719_s2 + $0x30] sm:$0xf0] }
  0x23   : > { %1116 = vmatpush.bf16.msrb.mxu1 %v8582_v5  ;;  %1128 = vmatpush.bf16.msrb.mxu2 %v8602_v9  ;;  %v8530_v34 = vor.u32 %v10851_v32, %v8529_v31  ;;  %v8553_v36 = vld [vmem:[%s18719_s2 + $0x48] sm:$0xf]  ;;  %v10856_v37 = vld [vmem:[%s18719_s2 + $0x54] sm:$0xf0]  ;;  %v8534_v38 = vor.u32 %v10849_v33, %v8531_v35  ;;  %v10850_v40 = vld [vmem:[%s18719_s2 + $0x2c] sm:$0xf] }
  0x24   : > { %1142 = vmatpush.bf16.msrb.mxu3 %v8590_v6  ;;  %v8554_v39 = vor.u32 %v10856_v37, %v8553_v36  ;;  %v8539_v41 = vld [vmem:[%s18719_s2 + $0x38] sm:$0xf0]  ;;  %v8513_v42 = vld [vmem:[%s18719_s2] sm:$0xf]  ;;  %v10847_v44 = vld [vmem:[%s18719_s2 + $0xc] sm:$0xf0] }
  0x25   : > { %v8542_v43 = vor.u32 %v10850_v40, %v8539_v41  ;;  %v10845_v45 = vld [vmem:[%s18719_s2 + $0x4] sm:$0xf]  ;;  %v8515_v46 = vld [vmem:[%s18719_s2 + $0x10] sm:$0xf0]  ;;  %v8514_v47 = vor.u32 %v10847_v44, %v8513_v42  ;;  %v8537_v48 = vld [vmem:[%s18719_s2 + $0x28] sm:$0xf] }
  0x26   : > { %1104 = vmatpush.bf16.msrb.mxu0 %v8562_v10  ;;  %v10852_v49 = vld [vmem:[%s18719_s2 + $0x34] sm:$0xf0]  ;;  %v8518_v50 = vor.u32 %v10845_v45, %v8515_v46  ;;  %v10846_v51 = vld [vmem:[%s18719_s2 + $0xc] sm:$0xf]  ;;  %v8523_v52 = vld [vmem:[%s18719_s2 + $0x18] sm:$0xf0] }
  0x27   : > { %1117 = vmatpush.bf16.msrb.mxu1 %v8566_v17  ;;  %1129 = vmatpush.bf16.msrb.mxu2 %v8586_v20  ;;  %v8538_v53 = vor.u32 %v10852_v49, %v8537_v48  ;;  %v8526_v54 = vor.u32 %v10846_v51, %v8523_v52  ;;  %v8521_v55 = vld [vmem:[%s18719_s2 + $0x8] sm:$0xf]  ;;  %v10848_v56 = vld [vmem:[%s18719_s2 + $0x14] sm:$0xf0]  ;;  %v10835_v58 = vld [vmem:[%s11933_s14 + $0x10] sm:$0xff]  ;;  %vm18792_vm5 = vcmask 1045509  }
  0x28   : > { %1143 = vmatpush.bf16.msrb.mxu3 %v8574_v18  ;;  %8496 = vmatmul.msk.bf16.gmra.mxu0 %vm616_vm0, %v10834_v25  ;;  %v8522_v57 = vor.u32 %v10848_v56, %v8521_v55  ;;  %v10836_v59 = vld [vmem:[%s11933_s14 + $0x18] sm:$0xff]  ;;  %v546_v7 = vld [vmem:[%s18720_s3] sm:$0xf]  ;;  %vm18741_vm6 = vcmask 1046534   ;;  %vm18740_vm7 = vcmask 1047559   ;;  %p458_p4 = scmp.lt.s32.totalorder %s11835_s26, 1 }
  0x29   : > { %8500 = vmatmul.msk.bf16.gmra.mxu1 %vm616_vm0, %v10834_v25  ;;  %8504 = vmatmul.msk.bf16.gmra.mxu2 %vm616_vm0, %v10834_v25  ;;  %v12115_v12 = vperm.slane %v546_v7, 0  ;;  %v12117_v13 = vperm.slane %v546_v7, 1  ;;  %v12119_v14 = vperm.slane %v546_v7, 3  ;;  %v12124_v16 = vperm.slane %v546_v7, 2  ;;  %s8445_s24 = sshll.u32 %s19410_s29, 3 }
  0x2a   : > { %1105 = vmatpush.bf16.msrb.mxu0 %v8546_v21  ;;  %8508 = vmatmul.msk.bf16.gmra.mxu3 %vm616_vm0, %v10834_v25  ;;  %s19412_s26 = smov (!%p458_p4, %s11835_s26), 1  ;;  %s18554_s28 = scalar_lea.vmem %s18729_s12, %s8445_s24 }
  0x2b   : > { %1118 = vmatpush.bf16.msrb.mxu1 %v8550_v28  ;;  %1130 = vmatpush.bf16.msrb.mxu2 %v8570_v30  ;;  %v18731_v28 = vlaneseq  ;;  %s8443_s20 = sshll.u32 %s19412_s26, 3 }
  0x2c   : > { %1144 = vmatpush.bf16.msrb.mxu3 %v8558_v29  ;;  %s461_s21 = scalar_lea.vmem %s18728_s11, %s8443_s20  ;;  %s471_s15 = scalar_lea.vmem %s18730_s13, %s8443_s20 }
  0x2d   : > { %v12164_v40 = vand.u32 127, %v18731_v28 }
  0x2e   : > { %1106 = vmatpush.bf16.msrb.mxu0 %v8530_v34 }
  0x2f   : > { %1119 = vmatpush.bf16.msrb.mxu1 %v8534_v38  ;;  %1131 = vmatpush.bf16.msrb.mxu2 %v8554_v39  ;;  %v12216_v7 = vadd.s32 384, %v12164_v40  ;;  %vm18739_vm8 = vcmp.lt.s32.totalorder %v12164_v40, 64 }
  0x30   : > { %1145 = vmatpush.bf16.msrb.mxu3 %v8542_v43 }
  0x32   : > { %1107 = vmatpush.bf16.msrb.mxu0 %v8514_v47 }
  0x33   : > { %1120 = vmatpush.bf16.msrb.mxu1 %v8518_v50  ;;  %1132 = vmatpush.bf16.msrb.mxu2 %v8538_v53  ;;  %v8756_v50 = vld [vmem:[%s18719_s2 + $0xe0] sm:$0xf] }
  0x34   : > { %1146 = vmatpush.bf16.msrb.mxu3 %v8526_v54 }
  0x37   : > { %1133 = vmatpush.bf16.msrb.mxu2 %v8522_v57 }
  0x38   : > { %8497 = vmatmul.msk.bf16.gmra.mxu0 %vm616_vm0, %v10835_v58 }
  0x39   : > { %8501 = vmatmul.msk.bf16.gmra.mxu1 %vm616_vm0, %v10835_v58  ;;  %8505 = vmatmul.msk.bf16.gmra.mxu2 %vm616_vm0, %v10835_v58 }
  0x3a   : > { %8509 = vmatmul.msk.bf16.gmra.mxu3 %vm616_vm0, %v10835_v58 }
  0x48   : > { %8498 = vmatmul.msk.bf16.gmra.mxu0 %vm616_vm0, %v10836_v59 }
  0x49   : > { %8502 = vmatmul.msk.bf16.gmra.mxu1 %vm616_vm0, %v10836_v59  ;;  %8506 = vmatmul.msk.bf16.gmra.mxu2 %vm616_vm0, %v10836_v59 }
  0x4a   : > { %8510 = vmatmul.msk.bf16.gmra.mxu3 %vm616_vm0, %v10836_v59 }
  0x58   : > { %1108 = vmatmul.bf16.vlgmr.msrb.gmra.mxu0 %v18732_v60 }
  0x59   : > { %1121 = vmatmul.bf16.vlgmr.msrb.gmra.mxu1 %v18732_v60  ;;  %1134 = vmatmul.bf16.vlgmr.msrb.gmra.mxu2 %v18732_v60 }
  0x5a   : > { %1147 = vmatmul.bf16.vlgmr.msrb.gmra.mxu3 %v18732_v60 }
  0x95   : > { %v638_v61 = vpop.f32.mrf.mxu0 }
  0x96   : > { %v667_v62 = vpop.f32.mrf.mxu1  ;;  %v12130_v18 = vadd.f32 %v638_v61, %v12115_v12 }
  0x97   : > { %v12133_v19 = vadd.f32 %v667_v62, %v12117_v13 }
  0x98   : > { %18795 = vst [vmem:[#allocation4_spill] sm:$0xff] %v12130_v18  ;;  %v844_v34 = vrot.slane %v12130_v18, 7 }
  0x99   : > { %v858_v35 = vrot.slane %v12133_v19, 7 }
  0x9c   : > { %v696_v63 = vpop.f32.mrf.mxu2 }
  0x9d   : > { %v725_v0 = vpop.f32.mrf.mxu3  ;;  %v640_v1 = vpop.f32.mrf.mxu0  ;;  %v12146_v29 = vadd.f32 %v696_v63, %v12124_v16  ;;  %v12197_v63 = vadd.s32 128, %v12164_v40 }
  0x9e   : > { %v669_v2 = vpop.f32.mrf.mxu1  ;;  %v12122_v15 = vadd.f32 %v640_v1, %v12115_v12  ;;  %v12136_v20 = vadd.f32 %v725_v0, %v12119_v14 }
  0x9f   : > { %v12127_v17 = vadd.f32 %v669_v2, %v12117_v13  ;;  %18796 = vst [vmem:[#allocation5_spill] sm:$0xff] %v12146_v29  ;;  %v12207_v2 = vadd.s32 256, %v12164_v40 }
  0xa0   : > { %18794 = vst [vmem:[#allocation3_spill] sm:$0xff] %v12122_v15  ;;  %v777_v23 = vrot.slane %v12122_v15, 7  ;;  %v845_v30 = vrot.slane %v12122_v15, 6  ;;  %v886_v39 = vrot.slane %v12136_v20, 7 }
  0xa1   : > { %v798_v31 = vrot.slane %v12127_v17, 7  ;;  %v859_v32 = vrot.slane %v12127_v17, 6 }
  0xa2   : > { %v779_v37 = vsel %vm778_vm1, %v777_v23, %v12130_v18  ;;  %v846_v45 = vsel %vm778_vm1, %v845_v30, %v844_v34  ;;  %v489_v30 = vand.u32 127, %v12197_v63 }
  0xa3   : > { %v12175_v46 = vsel %vm778_vm1, %v798_v31, %v12133_v19  ;;  %v12178_v47 = vsel %vm778_vm1, %v859_v32, %v858_v35 }
  0xa4   : > { %v698_v3 = vpop.f32.mrf.mxu2  ;;  %vm12301_vm9 = vcmp.lt.s32.totalorder %v489_v30, 64  ;;  %v10906_v30 = vld [vmem:[%s18719_s2 + $0xec] sm:$0xf] }
  0xa5   : > { %v727_v4 = vpop.f32.mrf.mxu3  ;;  %v643_v5 = vpop.f32.mrf.mxu0  ;;  %v12152_v33 = vadd.f32 %v698_v3, %v12124_v16 }
  0xa6   : > { %v672_v6 = vpop.f32.mrf.mxu1  ;;  %v12140_v24 = vadd.f32 %v727_v4, %v12119_v14  ;;  %v12143_v25 = vadd.f32 %v643_v5, %v12115_v12  ;;  %v8766_v4 = vld [vmem:[%s18719_s2 + $0xf8] sm:$0xf0] }
  0xa7   : > { %18797 = vst [vmem:[#allocation6_spill] sm:$0xff] %v12152_v33  ;;  %v12157_v36 = vadd.f32 %v672_v6, %v12117_v13 }
  0xa8   : > { %v780_v41 = vrot.slane %v12143_v25, 6  ;;  %v847_v42 = vrot.slane %v12143_v25, 5  ;;  %v826_v43 = vrot.slane %v12140_v24, 7  ;;  %v887_v57 = vrot.slane %v12140_v24, 6 }
  0xa9   : > { %v800_v55 = vrot.slane %v12157_v36, 6  ;;  %v861_v56 = vrot.slane %v12157_v36, 5 }
  0xaa   : > { %v782_v61 = vsel %vm781_vm2, %v780_v41, %v779_v37  ;;  %v848_v62 = vsel %vm781_vm2, %v847_v42, %v846_v45  ;;  %v12201_v0 = vsel %vm778_vm1, %v826_v43, %v12136_v20  ;;  %v888_v3 = vsel %vm778_vm1, %v887_v57, %v886_v39  ;;  %v10907_v42 = vld [vmem:[%s18719_s2 + $0xec] sm:$0xf0]  ;;  %v8764_v57 = vld [vmem:[%s18719_s2 + $0xe8] sm:$0xf] }
  0xab   : > { %v801_v41 = vsel %vm781_vm2, %v800_v55, %v12175_v46  ;;  %v862_v39 = vsel %vm781_vm2, %v861_v56, %v12178_v47  ;;  %v10905_v55 = vld [vmem:[%s18719_s2 + $0xe4] sm:$0xf] }
  0xac   : > { %v701_v8 = vpop.f32.mrf.mxu2 }
  0xad   : > { %v730_v9 = vpop.f32.mrf.mxu3  ;;  %v645_v10 = vpop.f32.mrf.mxu0  ;;  %v12170_v44 = vadd.f32 %v701_v8, %v12124_v16 }
  0xae   : > { %v674_v11 = vpop.f32.mrf.mxu1  ;;  %v12181_v48 = vadd.f32 %v730_v9, %v12119_v14  ;;  %v12184_v49 = vadd.f32 %v645_v10, %v12115_v12 }
  0xaf   : > { %v12189_v52 = vadd.f32 %v674_v11, %v12117_v13 }
  0xb0   : > { %v783_v6 = vrot.slane %v12184_v49, 5  ;;  %v828_v8 = vrot.slane %v12181_v48, 6  ;;  %v849_v11 = vrot.slane %v12184_v49, 4  ;;  %v889_v34 = vrot.slane %v12181_v48, 5 }
  0xb1   : > { %v863_v31 = vrot.slane %v12189_v52, 4 }
  0xb2   : > { %v850_v46 = vsel %vm784_vm3, %v849_v11, %v848_v62  ;;  %v829_v56 = vsel %vm781_vm2, %v828_v8, %v12201_v0  ;;  %v10908_v11 = vld [vmem:[%s18719_s2 + $0xf4] sm:$0xf0]  ;;  %v8740_v0 = vld [vmem:[%s18719_s2 + $0xc0] sm:$0xf]  ;;  %v10901_v8 = vld [vmem:[%s18719_s2 + $0xc4] sm:$0xf] }
  0xb3   : > { %v864_v47 = vsel %vm784_vm3, %v863_v31, %v862_v39  ;;  %v8765_v31 = vor.u32 %v10908_v11, %v8764_v57  ;;  %v8769_v39 = vor.u32 %v10906_v30, %v8766_v4  ;;  %v8748_v57 = vld [vmem:[%s18719_s2 + $0xc8] sm:$0xf]  ;;  %v10904_v11 = vld [vmem:[%s18719_s2 + $0xd4] sm:$0xf0] }
  0xb4   : > { %v703_v21 = vpop.f32.mrf.mxu2 }
  0xb5   : > { %v732_v22 = vpop.f32.mrf.mxu3  ;;  %v648_v26 = vpop.f32.mrf.mxu0  ;;  %v12204_v1 = vadd.f32 %v703_v21, %v12124_v16  ;;  %v802_v21 = vrot.slane %v12189_v52, 5  ;;  %1595 = vmatpush.bf16.msra.mxu2 %v8765_v31  ;;  %1608 = vmatpush.bf16.msra.mxu3 %v8769_v39  ;;  %v10902_v31 = vld [vmem:[%s18719_s2 + $0xcc] sm:$0xf] }
  0xb6   : > { %v677_v27 = vpop.f32.mrf.mxu1  ;;  %v12212_v5 = vadd.f32 %v648_v26, %v12115_v12  ;;  %v12220_v9 = vadd.f32 %v732_v22, %v12119_v14 }
  0xb7   : > { %v12223_v10 = vadd.f32 %v677_v27, %v12117_v13  ;;  %v803_v62 = vsel %vm784_vm3, %v802_v21, %v801_v41  ;;  %v8757_v21 = vor.u32 %v10907_v42, %v8756_v50 }
  0xb8   : > { %v786_v37 = vrot.slane %v12212_v5, 4  ;;  %v830_v63 = vrot.slane %v12220_v9, 5 }
  0xb9   : > { %1569 = vmatpush.bf16.msra.mxu0 %v8757_v21 }
  0xbc   : > { %v706_v53 = vpop.f32.mrf.mxu2 }
  0xbd   : > { %v735_v54 = vpop.f32.mrf.mxu3  ;;  %v650_v58 = vpop.f32.mrf.mxu0  ;;  %v12228_v23 = vadd.f32 %v706_v53, %v12124_v16  ;;  %v851_v53 = vrot.slane %v12212_v5, 3 }
  0xbe   : > { %v679_v59 = vpop.f32.mrf.mxu1  ;;  %v12231_v26 = vadd.f32 %v735_v54, %v12119_v14  ;;  %v12236_v22 = vadd.f32 %v650_v58, %v12115_v12  ;;  %v804_v54 = vrot.slane %v12223_v10, 4  ;;  %v865_v58 = vrot.slane %v12223_v10, 3 }
  0xbf   : > { %v12242_v35 = vadd.f32 %v679_v59, %v12117_v13  ;;  %v852_v42 = vsel %vm18793_vm4, %v851_v53, %v850_v46 }
  0xc0   : > { %18798 = vst [vmem:[#allocation7_spill] sm:$0xff] %v12236_v22  ;;  %v789_v51 = vrot.slane %v12236_v22, 3  ;;  %v805_v4 = vsel %vm18793_vm4, %v804_v54, %v803_v62  ;;  %v866_v21 = vsel %vm18793_vm4, %v865_v58, %v864_v47  ;;  %v8724_v58 = vld [vmem:[%s18719_s2 + $0xa0] sm:$0xf]  ;;  %v18804_v39 = vrot.slane %v12236_v22, 2 }
  0xc4   : > { %v12247_v43 = vpop.f32.mrf.mxu2 }
  0xc5   : > { %v737_v45 = vpop.f32.mrf.mxu3  ;;  %v653_v28 = vpop.f32.mrf.mxu0 }
  0xc6   : > { %v12254_v59 = vadd.f32 %v737_v45, %v12119_v14  ;;  %v682_v60 = vpop.f32.mrf.mxu1  ;;  %v12260_v32 = vadd.f32 %v653_v28, %v12115_v12  ;;  %v785_v28 = vsel %vm784_vm3, %v783_v6, %v782_v61  ;;  %v890_v6 = vsel %vm781_vm2, %v889_v34, %v888_v3  ;;  %v10903_v3 = vld [vmem:[%s18719_s2 + $0xcc] sm:$0xf0] }
  0xc7   : > { %v12283_v27 = vadd.f32 %v682_v60, %v12117_v13  ;;  %v8758_v60 = vld [vmem:[%s18719_s2 + $0xf0] sm:$0xf0]  ;;  %v788_v50 = vsel %vm18793_vm4, %v786_v37, %v785_v28 }
  0xc8   : > { %18799 = vst [vmem:[#allocation8_spill] sm:$0xff] %v12260_v32  ;;  %v8761_v41 = vor.u32 %v10905_v55, %v8758_v60  ;;  %v831_v55 = vsel %vm784_vm3, %v830_v63, %v829_v56  ;;  %v8742_v60 = vld [vmem:[%s18719_s2 + $0xd0] sm:$0xf0]  ;;  %v8741_v63 = vor.u32 %v10903_v3, %v8740_v0  ;;  %v791_v38 = vsel %vm18792_vm5, %v789_v51, %v788_v50  ;;  %v8750_v51 = vld [vmem:[%s18719_s2 + $0xd8] sm:$0xf0] }
  0xc9   : > { %v808_v54 = vrot.slane %v12283_v27, 2  ;;  %v8745_v46 = vor.u32 %v10901_v8, %v8742_v60  ;;  %v869_v30 = vrot.slane %v12283_v27, 1  ;;  %v854_v3 = vsel %vm18792_vm5, %v18804_v39, %v852_v42  ;;  %v10897_v60 = vld [vmem:[%s18719_s2 + $0xa4] sm:$0xf] }
  0xca   : > { %1582 = vmatpush.bf16.msra.mxu1 %v8761_v41  ;;  %v18802_v41 = vrot.slane %v12231_v26, 4  ;;  %v18807_v42 = vrot.slane %v12260_v32, 1  ;;  %v18810_v39 = vmov 0  ;;  %1570 = vmatpush.bf16.msra.mxu0 %v8741_v63 }
  0xcc   : > { %v12328_v34 = vpop.f32.mrf.mxu2 }
  0xcd   : > { %v740_v45 = vpop.f32.mrf.mxu3  ;;  %v655_v53 = vpop.f32.mrf.mxu0 }
  0xce   : > { %v12344_v37 = vadd.f32 %v740_v45, %v12119_v14  ;;  %v684_v28 = vpop.f32.mrf.mxu1  ;;  %v12348_v62 = vadd.f32 %v655_v53, %v12115_v12  ;;  %v8749_v45 = vor.u32 %v10904_v11, %v8748_v57  ;;  %v833_v12 = vsel %vm18793_vm4, %v18802_v41, %v831_v55  ;;  %v10899_v55 = vld [vmem:[%s18719_s2 + $0xac] sm:$0xf0]  ;;  %1583 = vmatpush.bf16.msra.mxu1 %v8745_v46  ;;  %v8708_v46 = vld [vmem:[%s18719_s2 + $0x80] sm:$0xf] }
  0xcf   : > { %v12351_v56 = vadd.f32 %v684_v28, %v12117_v13  ;;  %v18803_v13 = vrot.slane %v12220_v9, 4  ;;  %v18806_v57 = vrot.slane %v12260_v32, 2  ;;  %v856_v53 = vsel %vm18741_vm6, %v18807_v42, %v854_v3  ;;  %v8732_v3 = vld [vmem:[%s18719_s2 + $0xa8] sm:$0xf] }
  0xd0   : > { %v795_v47 = vrot.slane %v12348_v62, 1  ;;  %v18808_v28 = vrot.slane %v12242_v35, 2  ;;  %v836_v63 = vrot.slane %v12344_v37, 2  ;;  %1596 = vmatpush.bf16.msra.mxu2 %v8749_v45  ;;  %v10895_v45 = vld [vmem:[%s18719_s2 + $0x8c] sm:$0xf0] }
  0xd1   : > { %v12366_v0 = vsel %vm784_vm3, %v18803_v13, %v890_v6  ;;  %v18805_v6 = vrot.slane %v12242_v35, 3  ;;  %v810_v50 = vrot.slane %v12351_v56, 1  ;;  %v794_v11 = vsel %vm18741_vm6, %v18806_v57, %v791_v38  ;;  %v8726_v38 = vld [vmem:[%s18719_s2 + $0xb0] sm:$0xf0]  ;;  %v8734_v57 = vld [vmem:[%s18719_s2 + $0xb8] sm:$0xf0] }
  0xd2   : > { %v868_v41 = vsel %vm18792_vm5, %v18808_v28, %v866_v21  ;;  %v18809_v13 = vand.u32 127, %v12216_v7  ;;  %v12417_v21 = vsel %vm18740_vm7, %v795_v47, %v794_v11  ;;  %v12431_v47 = vsel %vm18740_vm7, %v12348_v62, %v856_v53  ;;  %v8716_v28 = vld [vmem:[%s18719_s2 + $0x88] sm:$0xf] }
  0xd3   : > { %v807_v8 = vsel %vm18792_vm5, %v18805_v6, %v805_v4  ;;  %18813 = vst [vmem:[#allocation10_spill] sm:$0xff] %v12417_v21  ;;  %v8753_v6 = vor.u32 %v10902_v31, %v8750_v51  ;;  %v8725_v11 = vor.u32 %v10899_v55, %v8724_v58  ;;  %v8729_v42 = vor.u32 %v10897_v60, %v8726_v38  ;;  %v10893_v31 = vld [vmem:[%s18719_s2 + $0x84] sm:$0xf] }
  0xd4   : > { %v809_v4 = vsel %vm18741_vm6, %v808_v54, %v807_v8  ;;  %vm12403_vm10 = vcmp.lt.s32.totalorder %v18809_v13, 64  ;;  %v10900_v54 = vld [vmem:[%s18719_s2 + $0xb4] sm:$0xf0]  ;;  %v10898_v8 = vld [vmem:[%s18719_s2 + $0xac] sm:$0xf]  ;;  %18815 = vst [vmem:[#allocation12_spill] sm:$0xff] %v12431_v47  ;;  %v12443_v51 = vpop.f32.mrf.mxu2 }
  0xd5   : > { %v18811_v39 = vsel %vm12403_vm10, 4294967295, %v18810_v39  ;;  %v12420_v7 = vsel %vm18740_vm7, %v810_v50, %v809_v4  ;;  %v870_v50 = vsel %vm18741_vm6, %v869_v30, %v868_v41  ;;  %v742_v53 = vpop.f32.mrf.mxu3  ;;  %v904_v30 = vsel %vm18739_vm8, %v12417_v21, %v12431_v47  ;;  %1609 = vmatpush.bf16.msra.mxu3 %v8753_v6  ;;  %v8710_v4 = vld [vmem:[%s18719_s2 + $0x90] sm:$0xf0]  ;;  %v10896_v41 = vld [vmem:[%s18719_s2 + $0x94] sm:$0xf0]  ;;  %v1109_v38 = vpop.f32.mrf.mxu0  ;;  %1571 = vmatpush.bf16.msra.mxu0 %v8725_v11 }
  0xd6   : > { %18812 = vst [vmem:[#allocation9_spill] sm:$0xff] %v18811_v39  ;;  %v12451_v58 = vsel %vm18740_vm7, %v12351_v56, %v870_v50  ;;  %v8733_v55 = vor.u32 %v10900_v54, %v8732_v3  ;;  %v8737_v60 = vor.u32 %v10898_v8, %v8734_v57  ;;  %v12463_v13 = vadd.f32 %v742_v53, %v12119_v14  ;;  %v1122_v54 = vpop.f32.mrf.mxu1  ;;  %v10894_v57 = vld [vmem:[%s18719_s2 + $0x8c] sm:$0xf]  ;;  %v8718_v50 = vld [vmem:[%s18719_s2 + $0x98] sm:$0xf0] }
  0xd7   : > { %18814 = vst [vmem:[#allocation11_spill] sm:$0xff] %v12420_v7  ;;  %v905_v3 = vsel %vm12301_vm9, %v12420_v7, %v12451_v58  ;;  %v8709_v6 = vor.u32 %v10895_v45, %v8708_v46  ;;  %v8713_v8 = vor.u32 %v10893_v31, %v8710_v4  ;;  %v1152_v14 = vadd.f32 %v1109_v38, %v904_v30  ;;  %v8692_v30 = vld [vmem:[%s18719_s2 + $0x60] sm:$0xf]  ;;  %v10889_v38 = vld [vmem:[%s18719_s2 + $0x64] sm:$0xf] }
  0xd8   : > { %18816 = vst [vmem:[#allocation13_spill] sm:$0xff] %v12451_v58  ;;  %v1153_v53 = vadd.f32 %v1122_v54, %v905_v3  ;;  %v897_v47 = vrot.slane %v12344_v37, 1  ;;  %1584 = vmatpush.bf16.msra.mxu1 %v8729_v42  ;;  %1597 = vmatpush.bf16.msra.mxu2 %v8733_v55  ;;  %v8717_v21 = vor.u32 %v10896_v41, %v8716_v28  ;;  %v18817_v11 = vrot.slane %v12254_v59, 3  ;;  %v10891_v42 = vld [vmem:[%s18719_s2 + $0x6c] sm:$0xf0] }
  0xd9   : > { %v838_v45 = vrot.slane %v12463_v13, 1  ;;  %v18818_v31 = vrot.slane %v12231_v26, 3  ;;  %v8639_v55 = vmul.f32 -1.442695, %v1152_v14  ;;  %1610 = vmatpush.bf16.msra.mxu3 %v8737_v60  ;;  %v18820_v54 = vrot.slane %v12254_v59, 2  ;;  %1572 = vmatpush.bf16.msra.mxu0 %v8709_v6 }
  0xda   : > { %v835_v46 = vsel %vm18792_vm5, %v18817_v11, %v833_v12  ;;  %v8640_v28 = vmul.f32 -1.442695, %v1153_v53  ;;  %v8721_v12 = vor.u32 %v10894_v57, %v8718_v50  ;;  %v8693_v53 = vor.u32 %v10891_v42, %v8692_v30  ;;  %v8700_v60 = vld [vmem:[%s18719_s2 + $0x68] sm:$0xf]  ;;  %v10890_v11 = vld [vmem:[%s18719_s2 + $0x6c] sm:$0xf] }
  0xdb   : > { %v894_v4 = vsel %vm18793_vm4, %v18818_v31, %v12366_v0  ;;  %v837_v41 = vsel %vm18741_vm6, %v836_v63, %v835_v46  ;;  %v12497_v0 = vadd.f32 %v12247_v43, %v12124_v16  ;;  %v8694_v63 = vld [vmem:[%s18719_s2 + $0x70] sm:$0xf0]  ;;  %v10892_v43 = vld [vmem:[%s18719_s2 + $0x74] sm:$0xf0]  ;;  %v12516_v57 = vadd.f32 %v12328_v34, %v12124_v16  ;;  %v8702_v46 = vld [vmem:[%s18719_s2 + $0x78] sm:$0xf0] }
  0xdc   : > { %v12500_v3 = vsel %vm18740_vm7, %v838_v45, %v837_v41  ;;  %v896_v14 = vsel %vm18792_vm5, %v18820_v54, %v894_v4  ;;  %11427 = vpow2.f32 %v8639_v55  ;;  %1585 = vmatpush.bf16.msra.mxu1 %v8713_v8  ;;  %1598 = vmatpush.bf16.msra.mxu2 %v8717_v21  ;;  %v8697_v50 = vor.u32 %v10889_v38, %v8694_v63  ;;  %v8676_v8 = vld [vmem:[%s18719_s2 + $0x40] sm:$0xf]  ;;  %v10887_v31 = vld [vmem:[%s18719_s2 + $0x4c] sm:$0xf0]  ;;  %v10885_v4 = vld [vmem:[%s18719_s2 + $0x44] sm:$0xf]  ;;  %v12550_v38 = vpop.f32.mrf.mxu2 }
  0xdd   : > { %18819 = vst [vmem:[#allocation14_spill] sm:$0xff] %v12500_v3  ;;  %v898_v6 = vsel %vm18741_vm6, %v897_v47, %v896_v14  ;;  %11429 = vpow2.f32 %v8640_v28  ;;  %v18821_v45 = vrot.slane %v12152_v33, 7  ;;  %v8701_v21 = vor.u32 %v10892_v43, %v8700_v60  ;;  %v1148_v14 = vpop.f32.mrf.mxu3  ;;  %1611 = vmatpush.bf16.msra.mxu3 %v8721_v12  ;;  %v8678_v60 = vld [vmem:[%s18719_s2 + $0x50] sm:$0xf0]  ;;  %v8684_v43 = vld [vmem:[%s18719_s2 + $0x48] sm:$0xf]  ;;  %1573 = vmatpush.bf16.msra.mxu0 %v8693_v53 }
  0xde   : > { %v12531_v47 = vsel %vm18740_vm7, %v12463_v13, %v898_v6  ;;  %v18823_v30 = vrot.slane %v12170_v44, 6  ;;  %v18824_v55 = vrot.slane %v12146_v29, 7  ;;  %v18825_v28 = vrot.slane %v12152_v33, 6  ;;  %v10888_v6 = vld [vmem:[%s18719_s2 + $0x54] sm:$0xf0] }
  0xdf   : > { %v813_v34 = vsel %vm778_vm1, %v18821_v45, %v12146_v29  ;;  %18822 = vst [vmem:[#allocation15_spill] sm:$0xff] %v12531_v47  ;;  %v907_v54 = vsel %vm12403_vm10, %v12500_v3, %v12531_v47  ;;  %v8705_v63 = vor.u32 %v10890_v11, %v8702_v46  ;;  %v12567_v45 = vadd.f32 %v12443_v51, %v12124_v16  ;;  %v1111_v11 = vpop.f32.mrf.mxu0  ;;  %v1124_v46 = vpop.f32.mrf.mxu1 }
  0xe0   : > { %v815_v42 = vsel %vm781_vm2, %v18823_v30, %v813_v34  ;;  %v874_v41 = vsel %vm778_vm1, %v18825_v28, %v18824_v55  ;;  %v820_v34 = vrot.slane %v12497_v0, 3  ;;  %v1155_v12 = vadd.f32 %v1148_v14, %v907_v54  ;;  %v10886_v55 = vld [vmem:[%s18719_s2 + $0x4c] sm:$0xf]  ;;  %v8686_v28 = vld [vmem:[%s18719_s2 + $0x58] sm:$0xf0]  ;;  %1586 = vmatpush.bf16.msra.mxu1 %v8697_v50  ;;  %1599 = vmatpush.bf16.msra.mxu2 %v8701_v21 }
  0xe1   : > { %v8677_v30 = vor.u32 %v10887_v31, %v8676_v8  ;;  %v822_v58 = vrot.slane %v12516_v57, 2  ;;  %v881_v16 = vrot.slane %v12497_v0, 2  ;;  %v8681_v51 = vor.u32 %v10885_v4, %v8678_v60  ;;  %v8660_v31 = vld [vmem:[%s18719_s2 + $0x20] sm:$0xf]  ;;  %v10883_v11 = vld [vmem:[%s18719_s2 + $0x2c] sm:$0xf0]  ;;  %1612 = vmatpush.bf16.msra.mxu3 %v8705_v63 }
  0xe2   : > { %v8685_v54 = vor.u32 %v10888_v6, %v8684_v43  ;;  %v18826_v14 = vrot.slane %v12204_v1, 5  ;;  %v8641_v8 = vmul.f32 -1.442695, %v1155_v12  ;;  %v11428_v46 = vpop.eup %11427  ;;  %v18827_v47 = vrot.slane %v12228_v23, 4  ;;  %v10881_v60 = vld [vmem:[%s18719_s2 + $0x24] sm:$0xf] }
  0xe3   : > { %v18828_v21 = vrot.slane %v12170_v44, 5  ;;  %v8662_v43 = vld [vmem:[%s18719_s2 + $0x30] sm:$0xf0]  ;;  %v8668_v6 = vld [vmem:[%s18719_s2 + $0x28] sm:$0xf]  ;;  %v11430_v12 = vpop.eup %11429  ;;  %1574 = vmatpush.bf16.msra.mxu0 %v8677_v30 }
  0xe4   : > { %v817_v53 = vsel %vm784_vm3, %v18826_v14, %v815_v42  ;;  %v8689_v42 = vor.u32 %v10886_v55, %v8686_v28  ;;  %v824_v14 = vrot.slane %v12567_v45, 1  ;;  %11431 = vpow2.f32 %v8641_v8  ;;  %v10884_v63 = vld [vmem:[%s18719_s2 + $0x34] sm:$0xf0]  ;;  %v10882_v55 = vld [vmem:[%s18719_s2 + $0x2c] sm:$0xf]  ;;  %1587 = vmatpush.bf16.msra.mxu1 %v8681_v51  ;;  %1600 = vmatpush.bf16.msra.mxu2 %v8685_v54 }
  0xe5   : > { %v819_v50 = vsel %vm18793_vm4, %v18827_v47, %v817_v53  ;;  %v876_v4 = vsel %vm781_vm2, %v18828_v21, %v874_v41  ;;  %v12602_v47 = vadd.f32 1.0, %v11428_v46  ;;  %v8661_v41 = vor.u32 %v10883_v11, %v8660_v31  ;;  %v8670_v30 = vld [vmem:[%s18719_s2 + $0x38] sm:$0xf0]  ;;  %v8644_v8 = vld [vmem:[%s18719_s2] sm:$0xf] }
  0xe6   : > { %v12611_v28 = vadd.f32 1.0, %v11430_v12  ;;  %v883_v53 = vrot.slane %v12516_v57, 1  ;;  %v8665_v46 = vor.u32 %v10881_v60, %v8662_v43  ;;  %v8669_v21 = vor.u32 %v10884_v63, %v8668_v6  ;;  %v10879_v51 = vld [vmem:[%s18719_s2 + $0xc] sm:$0xf0]  ;;  %v1150_v6 = vpop.f32.mrf.mxu3  ;;  %1613 = vmatpush.bf16.msra.mxu3 %v8689_v42  ;;  %v10877_v63 = vld [vmem:[%s18719_s2 + $0x4] sm:$0xf] }
  0xe7   : > { %11433 = vrcp.f32 %v12602_v47  ;;  %v821_v31 = vsel %vm18792_vm5, %v820_v34, %v819_v50  ;;  %v18829_v11 = vrot.slane %v12204_v1, 4  ;;  %v18830_v54 = vand.u32 127, %v12207_v2  ;;  %1575 = vmatpush.bf16.msra.mxu0 %v8661_v41  ;;  %v8652_v42 = vld [vmem:[%s18719_s2 + $0x8] sm:$0xf] }
  0xe8   : > { %11435 = vrcp.f32 %v12611_v28  ;;  %v18831_v60 = vmov 0  ;;  %v823_v43 = vsel %vm18741_vm6, %v822_v58, %v821_v31  ;;  %v18834_v34 = vrot.slane %v12228_v23, 3  ;;  %v8646_v58 = vld [vmem:[%s18719_s2 + $0x10] sm:$0xf0]  ;;  %1588 = vmatpush.bf16.msra.mxu1 %v8665_v46  ;;  %1601 = vmatpush.bf16.msra.mxu2 %v8669_v21 }
  0xe9   : > { %v878_v12 = vsel %vm784_vm3, %v18829_v11, %v876_v4  ;;  %vm12631_vm11 = vcmp.lt.s32.totalorder %v18830_v54, 64  ;;  %v1137_v4 = vpop.f32.mrf.mxu2  ;;  %v12643_v11 = vsel %vm18740_vm7, %v824_v14, %v823_v43  ;;  %v8673_v54 = vor.u32 %v10882_v55, %v8670_v30  ;;  %v10878_v14 = vld [vmem:[%s18719_s2 + $0xc] sm:$0xf] }
  0xea   : > { %v18832_v60 = vsel %vm12631_vm11, 4294967295, %v18831_v60  ;;  %v880_v50 = vsel %vm18793_vm4, %v18834_v34, %v878_v12  ;;  %18835 = vst [vmem:[#allocation17_spill] sm:$0xff] %v12643_v11  ;;  %v8645_v3 = vor.u32 %v10879_v51, %v8644_v8  ;;  %v8649_v12 = vor.u32 %v10877_v63, %v8646_v58  ;;  %v11432_v41 = vpop.eup %11431 }
  0xeb   : > { %18833 = vst [vmem:[#allocation16_spill] sm:$0xff] %v18832_v60  ;;  %v882_v2 = vsel %vm18792_vm5, %v881_v16, %v880_v50  ;;  %v10880_v16 = vld [vmem:[%s18719_s2 + $0x14] sm:$0xf0]  ;;  %v1198_v21 = vadd.f32 1.0, %v11432_v41  ;;  %1614 = vmatpush.bf16.msra.mxu3 %v8673_v54  ;;  %v1190_v54 = vand.u32 2147483648, %v12611_v28  ;;  %vm1165_vm14 = vweird.f32 %v12602_v47 }
  0xec   : > { %v884_v31 = vsel %vm18741_vm6, %v883_v53, %v882_v2  ;;  %v8653_v30 = vor.u32 %v10880_v16, %v8652_v42  ;;  %v8654_v53 = vld [vmem:[%s18719_s2 + $0x18] sm:$0xf0]  ;;  %1576 = vmatpush.bf16.msra.mxu0 %v8645_v3  ;;  %1589 = vmatpush.bf16.msra.mxu1 %v8649_v12  ;;  %v1171_v2 = vand.u32 2147483648, %v12602_v47  ;;  %v1169_v3 = vand.u32 2147483647, %v12602_v47 }
  0xed   : > { %v12661_v55 = vsel %vm18740_vm7, %v12567_v45, %v884_v31  ;;  %v8657_v8 = vor.u32 %v10878_v14, %v8654_v53  ;;  %v11434_v51 = vpop.eup %11433  ;;  %11437 = vrcp.f32 %v1198_v21  ;;  %v1188_v42 = vand.u32 2147483647, %v12611_v28 }
  0xee   : > { %18836 = vst [vmem:[#allocation18_spill] sm:$0xff] %v12661_v55  ;;  %v906_v46 = vsel %vm12631_vm11, %v12643_v11, %v12661_v55  ;;  %v11436_v34 = vpop.eup %11435  ;;  %v1161_v50 = vmul.f32 %v11434_v51, %v12602_v47  ;;  %1602 = vmatpush.bf16.msra.mxu2 %v8653_v30  ;;  %vm1166_vm12 = vweird.f32 %v11434_v51  ;;  %vm1184_vm15 = vweird.f32 %v12611_v28 }
  0xef   : > { %v1154_v43 = vadd.f32 %v12550_v38, %v906_v46  ;;  %v1180_v6 = vmul.f32 %v11436_v34, %v12611_v28  ;;  %1615 = vmatpush.bf16.msra.mxu3 %v8657_v8  ;;  %vm1185_vm13 = vweird.f32 %v11436_v34  ;;  %vm1167_vm0 = vmor %vm1165_vm14, %vm1166_vm12  ;;  %v1172_v16 = vor.u32 1.1754944e-38, %v1171_v2 }
  0xf0   : > { %v1162_v4 = vsub.f32 1.0, %v1161_v50  ;;  %v1191_v30 = vor.u32 1.1754944e-38, %v1190_v54  ;;  %vm1170_vm8 = vcmp.eq.f32.partialorder %v1169_v3, 8.507059e+37  ;;  %vm1186_vm7 = vmor %vm1184_vm15, %vm1185_vm13  ;;  %vm1189_vm6 = vcmp.eq.f32.partialorder %v1188_v42, 8.507059e+37 }
  0xf1   : > { %v1181_v63 = vsub.f32 1.0, %v1180_v6  ;;  %11439 = vtanh.f32 %v1154_v43  ;;  %v1210_v2 = vand.u32 2147483648, %v1198_v21  ;;  %vm1204_vm14 = vweird.f32 %v1198_v21 }
  0xf2   : > { %v1163_v58 = vmul.f32 %v11434_v51, %v1162_v4  ;;  %v1294_v54 = vrot.slane %v12136_v20, 1  ;;  %v1355_v42 = vrot.slane %v12140_v24, 5  ;;  %v1800_v55 = vrot.slane %v12223_v10, 1 }
  0xf3   : > { %v1182_v38 = vmul.f32 %v11436_v34, %v1181_v63  ;;  %v11438_v31 = vpop.eup %11437  ;;  %vm18840_vm13 = vcmask 1047559  }
  0xf4   : > { %v1164_v12 = vadd.f32 %v11434_v51, %v1163_v58  ;;  %v1200_v41 = vmul.f32 %v11438_v31, %v1198_v21  ;;  %vm1205_vm12 = vweird.f32 %v11438_v31 }
  0xf5   : > { %v1183_v14 = vadd.f32 %v11436_v34, %v1182_v38  ;;  %v1211_v38 = vor.u32 1.1754944e-38, %v1210_v2  ;;  %v1719_v2 = vrot.slane %v12130_v18, 2 }
  0xf6   : > { %v1168_v53 = vsel %vm1167_vm0, %v11434_v51, %v1164_v12  ;;  %v1201_v50 = vsub.f32 1.0, %v1200_v41  ;;  %v1208_v51 = vand.u32 2147483647, %v1198_v21  ;;  %vm1206_vm0 = vmor %vm1204_vm14, %vm1205_vm12  ;;  %v1298_v12 = vrot.slane %v12220_v9, 6 }
  0xf7   : > { %v11440_v46 = vpop.eup %11439  ;;  %v1173_v8 = vsel %vm1170_vm8, %v1172_v16, %v1168_v53  ;;  %v1187_v43 = vsel %vm1186_vm7, %v11436_v34, %v1183_v14  ;;  %v1296_v34 = vrot.slane %v12181_v48, 7  ;;  %v1300_v16 = vrot.slane %v12231_v26, 5 }
  0xf8   : > { %v1192_v6 = vsel %vm1189_vm6, %v1191_v30, %v1187_v43  ;;  %v1215_v4 = vmul.f32 %v11440_v46, %v1173_v8  ;;  %v1202_v58 = vmul.f32 %v11438_v31, %v1201_v50  ;;  %vm1209_vm6 = vcmp.eq.f32.partialorder %v1208_v51, 8.507059e+37 }
  0xf9   : > { %v1214_v63 = vmul.f32 0.0, %v1192_v6  ;;  %v1295_v30 = vsel %vm778_vm1, %v12140_v24, %v1294_v54  ;;  %v1354_v21 = vrot.slane %v12136_v20, 6  ;;  %v1357_v53 = vrot.slane %v12181_v48, 4 }
  0xfa   : > { %v1203_v28 = vadd.f32 %v11438_v31, %v1202_v58  ;;  %v1297_v46 = vsel %vm781_vm2, %v1296_v34, %v1295_v30  ;;  %v1359_v8 = vrot.slane %v12220_v9, 3  ;;  %v1720_v43 = vrot.slane %v12122_v15, 1 }
  0xfb   : > { %v12679_v47 = vadd.f32 %v1215_v4, %v1214_v63  ;;  %v1302_v50 = vrot.slane %v12254_v59, 4  ;;  %v1356_v6 = vsel %vm778_vm1, %v1355_v42, %v1354_v21  ;;  %v1361_v4 = vrot.slane %v12231_v26, 2 }
  0xfc   : > { %v1207_v3 = vsel %vm1206_vm0, %v11438_v31, %v1203_v28  ;;  %v1363_v63 = vrot.slane %v12254_v59, 1  ;;  %v1304_v28 = vrot.slane %v12344_v37, 3  ;;  %v1723_v51 = vrot.slane %v12184_v49, 7 }
  0xfd   : > { %18837 = vst [vmem:[#allocation19_spill] sm:$0xff] %v12679_v47  ;;  %11441 = vtanh.f32 %v12679_v47  ;;  %v1212_v41 = vsel %vm1209_vm6, %v1211_v38, %v1207_v3  ;;  %v1299_v54 = vsel %vm784_vm3, %v1298_v12, %v1297_v46  ;;  %v1358_v3 = vsel %vm781_vm2, %v1357_v53, %v1356_v6  ;;  %vm18846_vm6 = vmmov %vm18840_vm13 }
  0xfe   : > { %v1725_v34 = vrot.slane %v12212_v5, 6  ;;  %v1301_v38 = vsel %vm18793_vm4, %v1300_v16, %v1299_v54  ;;  %v1360_v42 = vsel %vm784_vm3, %v1359_v8, %v1358_v3  ;;  %v1782_v53 = vrot.slane %v12143_v25, 3 }
  0xff   : > { %v1303_v30 = vsel %vm18792_vm5, %v1302_v50, %v1301_v38  ;;  %v1362_v12 = vsel %vm18793_vm4, %v1361_v4, %v1360_v42  ;;  %vm18838_vm7 = vcmask 1046534   ;;  %v1784_v4 = vrot.slane %v12184_v49, 2 }
 0x100   : > { %v1305_v46 = vsel %vm18838_vm7, %v1304_v28, %v1303_v30  ;;  %v1364_v16 = vsel %vm18792_vm5, %v1363_v63, %v1362_v12  ;;  %vm18839_vm8 = vmmov %vm18838_vm7  ;;  %v1786_v28 = vrot.slane %v12212_v5, 1  ;;  %v1733_v63 = vrot.slane %v12133_v19, 2 }
 0x101   : > { %v12723_v6 = vsel %vm18839_vm8, %v12344_v37, %v1364_v16  ;;  %v1727_v54 = vrot.slane %v12236_v22, 5  ;;  %v1737_v38 = vrot.slane %v12189_v52, 7  ;;  %v1793_v42 = vrot.slane %v12133_v19, 5  ;;  %vm18842_vm15 = vmmov %vm18838_vm7 }
 0x102   : > { %v1748_v30 = vrot.slane %v12152_v33, 1  ;;  %v1306_v12 = vrot.slane %v12463_v13, 2  ;;  %v1807_v47 = vrot.slane %v12146_v29, 5  ;;  %vm18843_vm12 = vmmov %vm18838_vm7  ;;  %vm18763_vm8 = vcmask 1040896  }
 0x103   : > { %v11442_v14 = vpop.eup %11441  ;;  %vm18844_vm14 = vmmov %vm18838_vm7 }
 0x104   : > { %v12691_v31 = vmul.f32 %v11442_v14, %v1212_v41  ;;  %v1721_v14 = vsel %vm778_vm1, %v1720_v43, %v1719_v2  ;;  %v1780_v41 = vrot.slane %v12122_v15, 4  ;;  %v1779_v43 = vrot.slane %v12130_v18, 5  ;;  %vm18845_vm0 = vmmov %vm18838_vm7 }
 0x105   : > { %v1722_v21 = vsel %vm781_vm2, %v12143_v25, %v1721_v14  ;;  %v1796_v14 = vrot.slane %v12157_v36, 3  ;;  %vm18764_vm7 = vcmask 516096  }
 0x106   : > { %v1376_v58 = vpack.c.bf16 %v12691_v31, %v12691_v31  ;;  %v1724_v8 = vsel %vm784_vm3, %v1723_v51, %v1722_v21  ;;  %v1781_v2 = vsel %vm778_vm1, %v1780_v41, %v1779_v43  ;;  %v1794_v51 = vrot.slane %v12127_v17, 4  ;;  %1235 = vst.msk [vmem:[#allocation2] sm:$0x1] %vm18764_vm7, %v12691_v31 }
 0x107   : > { %v1726_v50 = vsel %vm18793_vm4, %v1725_v34, %v1724_v8  ;;  %v1783_v3 = vsel %vm781_vm2, %v1782_v53, %v1781_v2  ;;  %v1739_v34 = vrot.slane %v12223_v10, 6  ;;  %v1747_v41 = vrot.slane %v12146_v29, 2  ;;  %1244 = vst.msk [vmem:[#allocation2 + $0x7] sm:$0x1] %vm18763_vm8, %v12691_v31 }
 0x108   : > { %1577 = vmatmul.bf16.vlgmr.msra.gmra.mxu0 %v1376_v58  ;;  %1590 = vmatmul.bf16.vlgmr.msra.gmra.mxu1 %v1376_v58  ;;  %v1785_v21 = vsel %vm784_vm3, %v1784_v4, %v1783_v3  ;;  %v1798_v53 = vrot.slane %v12189_v52, 2  ;;  %v1795_v2 = vsel %vm778_vm1, %v1794_v51, %v1793_v42  ;;  %v1728_v11 = vsel %vm18792_vm5, %v1727_v54, %v1726_v50 }
 0x109   : > { %1603 = vmatmul.bf16.vlgmr.msra.gmra.mxu2 %v1376_v58  ;;  %1616 = vmatmul.bf16.vlgmr.msra.gmra.mxu3 %v1376_v58  ;;  %v1734_v58 = vrot.slane %v12127_v17, 1  ;;  %v1787_v8 = vsel %vm18793_vm4, %v1786_v28, %v1785_v21  ;;  %v1808_v4 = vrot.slane %v12152_v33, 4  ;;  %v1749_v28 = vsel %vm778_vm1, %v1748_v30, %v1747_v41 }
 0x10a   : > { %v1751_v3 = vrot.slane %v12204_v1, 7  ;;  %v12758_v51 = vsel %vm18840_vm13, %v1306_v12, %v1305_v46  ;;  %v1729_v42 = vrot.slane %v12260_v32, 4  ;;  %v1753_v54 = vrot.slane %v12228_v23, 6  ;;  %vm18847_vm13 = vmmov %vm18846_vm6 }
 0x10b   : > { %v1735_v16 = vsel %vm778_vm1, %v1734_v58, %v1733_v63  ;;  %v1741_v58 = vrot.slane %v12242_v35, 5  ;;  %v1797_v63 = vsel %vm781_vm2, %v1796_v14, %v1795_v2  ;;  %18841 = vst [vmem:[#allocation20_spill] sm:$0xff] %v12758_v51  ;;  %v1810_v41 = vrot.slane %v12170_v44, 3 }
 0x10c   : > { %v1736_v43 = vsel %vm781_vm2, %v12157_v36, %v1735_v16  ;;  %v1799_v50 = vsel %vm784_vm3, %v1798_v53, %v1797_v63  ;;  %v1750_v12 = vsel %vm781_vm2, %v12170_v44, %v1749_v28  ;;  %v1809_v16 = vsel %vm778_vm1, %v1808_v4, %v1807_v47 }
 0x10d   : > { %v1738_v7 = vsel %vm784_vm3, %v1737_v38, %v1736_v43  ;;  %v1788_v38 = vsel %vm18792_vm5, %v12236_v22, %v1787_v8  ;;  %v1801_v14 = vsel %vm18793_vm4, %v1800_v55, %v1799_v50  ;;  %v1752_v8 = vsel %vm784_vm3, %v1751_v3, %v1750_v12 }
 0x10e   : > { %v1740_v21 = vsel %vm18793_vm4, %v1739_v34, %v1738_v7  ;;  %v1802_v46 = vsel %vm18792_vm5, %v12242_v35, %v1801_v14  ;;  %v1812_v7 = vrot.slane %v12204_v1, 2  ;;  %v1762_v55 = vrot.slane %v12140_v24, 1 }
 0x10f   : > { %v1742_v53 = vsel %vm18792_vm5, %v1741_v58, %v1740_v21  ;;  %v1730_v34 = vsel %vm18842_vm15, %v1729_v42, %v1728_v11  ;;  %v1754_v43 = vsel %vm18793_vm4, %v1753_v54, %v1752_v8  ;;  %v1814_v2 = vrot.slane %v12228_v23, 1  ;;  %vm18848_vm15 = vmmov %vm18846_vm6 }
 0x110   : > { %v1761_v63 = vrot.slane %v12136_v20, 2  ;;  %v1789_v28 = vrot.slane %v12260_v32, 7  ;;  %v1811_v47 = vsel %vm781_vm2, %v1810_v41, %v1809_v16  ;;  %v1765_v4 = vrot.slane %v12220_v9, 7 }
 0x111   : > { %v1767_v58 = vrot.slane %v12231_v26, 6  ;;  %v1743_v3 = vrot.slane %v12283_v27, 4  ;;  %v1755_v50 = vrot.slane %v12497_v0, 5  ;;  %v1821_v11 = vrot.slane %v12136_v20, 5 }
 0x112   : > { %v1822_v42 = vrot.slane %v12140_v24, 4  ;;  %v1803_v54 = vrot.slane %v12283_v27, 7  ;;  %v1813_v21 = vsel %vm784_vm3, %v1812_v7, %v1811_v47  ;;  %v1763_v14 = vsel %vm778_vm1, %v1762_v55, %v1761_v63 }
 0x113   : > { %v1769_v41 = vrot.slane %v12254_v59, 5  ;;  %v1731_v12 = vrot.slane %v12348_v62, 3  ;;  %v1815_v16 = vsel %vm18793_vm4, %v1814_v2, %v1813_v21  ;;  %v1764_v8 = vsel %vm781_vm2, %v12181_v48, %v1763_v14 }
 0x114   : > { %v1824_v30 = vrot.slane %v12181_v48, 3  ;;  %v1790_v51 = vsel %vm18843_vm12, %v1789_v28, %v1788_v38  ;;  %v1816_v39 = vsel %vm18792_vm5, %v12497_v0, %v1815_v16  ;;  %v1766_v7 = vsel %vm784_vm3, %v1765_v4, %v1764_v8  ;;  %vm18849_vm12 = vmmov %vm18845_vm0 }
 0x115   : > { %v1826_v55 = vrot.slane %v12220_v9, 2  ;;  %v1744_v63 = vsel %vm18844_vm14, %v1743_v3, %v1742_v53  ;;  %v1756_v47 = vsel %vm18792_vm5, %v1755_v50, %v1754_v43  ;;  %v1768_v2 = vsel %vm18793_vm4, %v1767_v58, %v1766_v7  ;;  %vm18850_vm14 = vmmov %vm18845_vm0 }
 0x116   : > { %v1823_v21 = vsel %vm778_vm1, %v1822_v42, %v1821_v11  ;;  %v1804_v14 = vsel %vm18845_vm0, %v1803_v54, %v1802_v46  ;;  %v1770_v60 = vsel %vm18792_vm5, %v1769_v41, %v1768_v2  ;;  %v1828_v38 = vrot.slane %v12231_v26, 1 }
 0x117   : > { %v2186_v28 = vrot.slane %v12130_v18, 3  ;;  %v12813_v4 = vsel %vm18846_vm6, %v1731_v12, %v1730_v34  ;;  %v1825_v16 = vsel %vm781_vm2, %v1824_v30, %v1823_v21  ;;  %v2187_v53 = vrot.slane %v12122_v15, 2  ;;  %vm18851_vm6 = vmmov %vm18845_vm0 }
 0x118   : > { %v2189_v43 = vrot.slane %v12143_v25, 1  ;;  %v1791_v58 = vrot.slane %v12348_v62, 6  ;;  %v1827_v3 = vsel %vm784_vm3, %v1826_v55, %v1825_v16  ;;  %v2192_v46 = vrot.slane %v12212_v5, 7 }
 0x119   : > { %v2246_v50 = vrot.slane %v12130_v18, 4  ;;  %v1745_v11 = vrot.slane %v12351_v56, 3  ;;  %v1757_v42 = vrot.slane %v12516_v57, 4  ;;  %v1817_v34 = vrot.slane %v12516_v57, 7 }
 0x11a   : > { %v2247_v30 = vrot.slane %v12122_v15, 3  ;;  %v1771_v54 = vrot.slane %v12344_v37, 4  ;;  %v1831_v41 = vrot.slane %v12344_v37, 7  ;;  %v1805_v12 = vrot.slane %v12351_v56, 6 }
 0x11b   : > { %v1829_v8 = vsel %vm18793_vm4, %v1828_v38, %v1827_v3  ;;  %v2188_v7 = vsel %vm778_vm1, %v2187_v53, %v2186_v28  ;;  %v2249_v55 = vrot.slane %v12143_v25, 2  ;;  %v12837_v2 = vsel %vm18847_vm13, %v1791_v58, %v1790_v51 }
 0x11c   : > { %v1830_v21 = vsel %vm18792_vm5, %v12254_v59, %v1829_v8  ;;  %v2190_v16 = vsel %vm781_vm2, %v2189_v43, %v2188_v7  ;;  %v2194_v15 = vrot.slane %v12236_v22, 6  ;;  %v12844_v18 = vsel %vm18848_vm15, %v1745_v11, %v1744_v63  ;;  %vm18852_vm15 = vmmov %vm18847_vm13 }
 0x11d   : > { %v1758_v38 = vsel %vm18849_vm12, %v1757_v42, %v1756_v47  ;;  %v1818_v28 = vsel %vm18850_vm14, %v1817_v34, %v1816_v39  ;;  %v2251_v53 = vrot.slane %v12184_v49, 1  ;;  %v12850_v3 = vsel %vm18845_vm0, %v1771_v54, %v1770_v60  ;;  %vm18853_vm12 = vmmov %vm18847_vm13 }
 0x11e   : > { %v12853_v51 = vsel %vm18851_vm6, %v1831_v41, %v1830_v21  ;;  %v2191_v43 = vsel %vm784_vm3, %v12184_v49, %v2190_v16  ;;  %v2248_v58 = vsel %vm778_vm1, %v2247_v30, %v2246_v50  ;;  %v12859_v63 = vsel %vm18847_vm13, %v1805_v12, %v1804_v14  ;;  %vm18854_vm14 = vmmov %vm18845_vm0 }
 0x11f   : > { %v2193_v47 = vsel %vm18793_vm4, %v2192_v46, %v2191_v43  ;;  %v2250_v39 = vsel %vm781_vm2, %v2249_v55, %v2248_v58  ;;  %v2254_v11 = vrot.slane %v12236_v22, 7  ;;  %v1759_v60 = vrot.slane %v12567_v45, 3  ;;  %vm18855_vm6 = vmmov %vm18853_vm12 }
 0x120   : > { %v1819_v42 = vrot.slane %v12567_v45, 6  ;;  %v2195_v34 = vsel %vm18792_vm5, %v2194_v15, %v2193_v47  ;;  %v2200_v54 = vrot.slane %v12133_v19, 3  ;;  %v2252_v41 = vsel %vm784_vm3, %v2251_v53, %v2250_v39  ;;  %vm18856_vm13 = vmmov %vm18845_vm0 }
 0x121   : > { %v2201_v50 = vrot.slane %v12127_v17, 2  ;;  %v2203_v14 = vrot.slane %v12157_v36, 1  ;;  %v2206_v46 = vrot.slane %v12223_v10, 7  ;;  %v2253_v12 = vsel %vm18793_vm4, %v12212_v5, %v2252_v41 }
 0x122   : > { %v2260_v8 = vrot.slane %v12133_v19, 4  ;;  %v2261_v7 = vrot.slane %v12127_v17, 3  ;;  %v2255_v55 = vsel %vm18792_vm5, %v2254_v11, %v2253_v12  ;;  %v2214_v21 = vrot.slane %v12146_v29, 3 }
 0x123   : > { %v2215_v16 = vrot.slane %v12152_v33, 2  ;;  %v12882_v53 = vsel %vm18852_vm15, %v1759_v60, %v1758_v38  ;;  %v12885_v43 = vsel %vm18853_vm12, %v1819_v42, %v1818_v28  ;;  %v2196_v58 = vrot.slane %v12260_v32, 5  ;;  %vm18857_vm15 = vmmov %vm18855_vm6 }
 0x124   : > { %v2263_v47 = vrot.slane %v12157_v36, 2  ;;  %v2256_v39 = vrot.slane %v12260_v32, 6  ;;  %v2202_v41 = vsel %vm778_vm1, %v2201_v50, %v2200_v54  ;;  %v2208_v11 = vrot.slane %v12242_v35, 6  ;;  %vm18858_vm12 = vmmov %vm18845_vm0 }
 0x125   : > { %v2265_v12 = vrot.slane %v12189_v52, 1  ;;  %v2204_v15 = vsel %vm781_vm2, %v2203_v14, %v2202_v41  ;;  %v2217_v38 = vrot.slane %v12170_v44, 1  ;;  %v2274_v60 = vrot.slane %v12146_v29, 4 }
 0x126   : > { %v2275_v28 = vrot.slane %v12152_v33, 3  ;;  %v2205_v42 = vsel %vm784_vm3, %v12189_v52, %v2204_v15  ;;  %v2262_v30 = vsel %vm778_vm1, %v2261_v7, %v2260_v8  ;;  %v2268_v32 = vrot.slane %v12242_v35, 7 }
 0x127   : > { %v2216_v54 = vsel %vm778_vm1, %v2215_v16, %v2214_v21  ;;  %v2197_v50 = vsel %vm18854_vm14, %v2196_v58, %v2195_v34  ;;  %v2207_v22 = vsel %vm18793_vm4, %v2206_v46, %v2205_v42  ;;  %v2264_v14 = vsel %vm781_vm2, %v2263_v47, %v2262_v30  ;;  %vm18859_vm14 = vmmov %vm18855_vm6 }
 0x128   : > { %v2220_v41 = vrot.slane %v12228_v23, 7  ;;  %v2257_v29 = vsel %vm18845_vm0, %v2256_v39, %v2255_v55  ;;  %v2209_v33 = vsel %vm18792_vm5, %v2208_v11, %v2207_v22  ;;  %v2266_v15 = vsel %vm784_vm3, %v2265_v12, %v2264_v14  ;;  %vm18860_vm0 = vmmov %vm18855_vm6 }
 0x129   : > { %v2277_v8 = vrot.slane %v12170_v44, 2  ;;  %v2267_v7 = vsel %vm18793_vm4, %v12223_v10, %v2266_v15  ;;  %v2218_v21 = vsel %vm781_vm2, %v2217_v38, %v2216_v54  ;;  %v2276_v34 = vsel %vm778_vm1, %v2275_v28, %v2274_v60 }
 0x12a   : > { %v2279_v46 = vrot.slane %v12204_v1, 1  ;;  %v2198_v30 = vrot.slane %v12348_v62, 4  ;;  %v2269_v16 = vsel %vm18792_vm5, %v2268_v32, %v2267_v7  ;;  %v2219_v22 = vsel %vm784_vm3, %v12204_v1, %v2218_v21 }
 0x12b   : > { %v2228_v55 = vrot.slane %v12136_v20, 3  ;;  %v2210_v58 = vrot.slane %v12283_v27, 5  ;;  %v2221_v47 = vsel %vm18793_vm4, %v2220_v41, %v2219_v22  ;;  %v2229_v39 = vrot.slane %v12140_v24, 2 }
 0x12c   : > { %v2231_v11 = vrot.slane %v12181_v48, 1  ;;  %v2222_v12 = vrot.slane %v12497_v0, 6  ;;  %v2278_v38 = vsel %vm781_vm2, %v2277_v8, %v2276_v34  ;;  %v2234_v60 = vrot.slane %v12231_v26, 7 }
 0x12d   : > { %v2288_v32 = vrot.slane %v12136_v20, 4  ;;  %v2258_v28 = vrot.slane %v12348_v62, 5  ;;  %v2270_v42 = vrot.slane %v12283_v27, 6  ;;  %v2280_v54 = vsel %vm784_vm3, %v2279_v46, %v2278_v38 }
 0x12e   : > { %v2289_v14 = vrot.slane %v12140_v24, 3  ;;  %v12933_v41 = vsel %vm18855_vm6, %v2198_v30, %v2197_v50  ;;  %v2281_v15 = vsel %vm18793_vm4, %v12228_v23, %v2280_v54  ;;  %v2282_v8 = vrot.slane %v12497_v0, 7 }
 0x12f   : > { %v2291_v7 = vrot.slane %v12181_v48, 2  ;;  %v2211_v20 = vsel %vm18856_vm13, %v2210_v58, %v2209_v33  ;;  %v2212_v21 = vrot.slane %v12351_v56, 4  ;;  %v2272_v34 = vrot.slane %v12351_v56, 5 }
 0x130   : > { %v2230_v46 = vsel %vm778_vm1, %v2229_v39, %v2228_v55  ;;  %v2223_v24 = vsel %vm18792_vm5, %v2222_v12, %v2221_v47  ;;  %v2236_v30 = vrot.slane %v12254_v59, 6  ;;  %v2293_v22 = vrot.slane %v12220_v9, 1 }
 0x131   : > { %v2232_v50 = vsel %vm781_vm2, %v2231_v11, %v2230_v46  ;;  %v12948_v38 = vsel %vm18857_vm15, %v2258_v28, %v2257_v29  ;;  %v2271_v48 = vsel %vm18858_vm12, %v2270_v42, %v2269_v16  ;;  %v2290_v58 = vsel %vm778_vm1, %v2289_v14, %v2288_v32  ;;  %vm18863_vm15 = vmmov %vm18858_vm12 }
 0x132   : > { %v2233_v33 = vsel %vm784_vm3, %v12220_v9, %v2232_v50  ;;  %v2224_v55 = vrot.slane %v12516_v57, 5  ;;  %v2292_v39 = vsel %vm781_vm2, %v2291_v7, %v2290_v58  ;;  %v2296_v11 = vrot.slane %v12254_v59, 7 }
 0x133   : > { %v2235_v47 = vsel %vm18793_vm4, %v2234_v60, %v2233_v33  ;;  %v12959_v12 = vsel %vm18859_vm14, %v2212_v21, %v2211_v20  ;;  %v12962_v29 = vsel %vm18860_vm0, %v2272_v34, %v2271_v48  ;;  %v2284_v16 = vrot.slane %v12516_v57, 6  ;;  %vm18864_vm14 = vmmov %vm18858_vm12 }
 0x134   : > { %v2238_v9 = vrot.slane %v12344_v37, 5  ;;  %v2283_v32 = vsel %vm18792_vm5, %v2282_v8, %v2281_v15  ;;  %v2237_v28 = vsel %vm18792_vm5, %v2236_v30, %v2235_v47  ;;  %v2294_v60 = vsel %vm784_vm3, %v2293_v22, %v2292_v39 }
 0x135   : > { %v2298_v42 = vrot.slane %v12344_v37, 6  ;;  %v2226_v59 = vrot.slane %v12567_v45, 4  ;;  %v2286_v54 = vrot.slane %v12567_v45, 5  ;;  %v2240_v14 = vrot.slane %v12463_v13, 4 }
 0x136   : > { %vm18861_vm6 = vcmp.lt.s32.totalorder %v12164_v40, 64  ;;  %v2295_v15 = vsel %vm18793_vm4, %v12231_v26, %v2294_v60  ;;  %v2225_v21 = vsel %vm18863_vm15, %v2224_v55, %v2223_v24  ;;  %v2285_v26 = vsel %vm18858_vm12, %v2284_v16, %v2283_v32  ;;  %vm18868_vm15 = vmmov %vm18860_vm0 }
 0x137   : > { %v12977_v7 = vsel %vm18861_vm6, %v12948_v38, %v12933_v41  ;;  %vm18862_vm13 = vmmov %vm18861_vm6  ;;  %v2239_v34 = vsel %vm18864_vm14, %v2238_v9, %v2237_v28  ;;  %v2297_v46 = vsel %vm18792_vm5, %v2296_v11, %v2295_v15  ;;  %v13000_v50 = vsel %vm18860_vm0, %v2226_v59, %v2225_v21  ;;  %v18876_v28 = vld [vmem:[#allocation20_spill] sm:$0xff] }
 0x138   : > { %v12989_v8 = vsel %vm18862_vm13, %v12837_v2, %v12813_v4  ;;  %vm18865_vm6 = vmmov %vm18860_vm0  ;;  %v2300_v48 = vrot.slane %v12463_v13, 5  ;;  %v18867_v24 = vrot.slane %v12463_v13, 7  ;;  %v18869_v58 = vrot.slane %v12463_v13, 3 }
 0x139   : > { %v13003_v30 = vsel %vm18865_vm6, %v2286_v54, %v2285_v26  ;;  %vm18866_vm13 = vmmov %vm18860_vm0  ;;  %v18871_v47 = vrot.slane %v12463_v13, 6  ;;  %v1221_v59 = vrot.slane %v12691_v31, 2  ;;  %v1222_v54 = vrot.slane %v12691_v31, 3 }
 0x13a   : > { %v13006_v22 = vsel %vm18866_vm13, %v2240_v14, %v2239_v34  ;;  %v13013_v33 = vsel %vm18868_vm15, %v18867_v24, %v12723_v6  ;;  %vm18870_vm12 = vmmov %vm18860_vm0  ;;  %v1223_v14 = vrot.slane %v12691_v31, 4  ;;  %v1224_v15 = vrot.slane %v12691_v31, 5  ;;  %v18877_v34 = vld [vmem:[#allocation4_spill] sm:$0xff]  ;;  %v10779_v6 = vld [vmem:[%s18724_s7 + $0x58] sm:$0xf0] }
 0x13b   : > { %v13019_v55 = vsel %vm18870_vm12, %v18869_v58, %v12850_v3  ;;  %vm18872_vm14 = vmmov %vm18860_vm0  ;;  %vm18873_vm0 = vcmask 1046534   ;;  %v1225_v21 = vrot.slane %v12691_v31, 6  ;;  %1237 = vst.msk [vmem:[#allocation2 + $0x10] sm:$0x1] %vm18764_vm7, %v1221_v59  ;;  %v1226_v26 = vrot.slane %v12691_v31, 7 }
 0x13c   : > { %v13025_v39 = vsel %vm18872_vm14, %v18871_v47, %v12853_v51  ;;  %v2299_v11 = vsel %vm18873_vm0, %v2298_v42, %v2297_v46  ;;  %v1220_v42 = vrot.slane %v12691_v31, 1  ;;  %1238 = vst.msk [vmem:[#allocation2 + $0x18] sm:$0x1] %vm18764_vm7, %v1222_v54  ;;  %v1252_v46 = vrot.slane %v18877_v34, 1  ;;  %vm18881_vm13 = vmmov %vm18873_vm0  ;;  %v11404_v3 = vld [vmem:[%s18724_s7 + $0x74] sm:$0xf0] }
 0x13d   : > { %v13029_v16 = vsel %vm18865_vm6, %v2300_v48, %v2299_v11  ;;  %1239 = vst.msk [vmem:[#allocation2 + $0x20] sm:$0x1] %vm18764_vm7, %v1223_v14  ;;  %v18878_v48 = vld [vmem:[#allocation3_spill] sm:$0xff]  ;;  %v1327_v58 = vrot.slane %v12127_v17, 5  ;;  %v1254_v47 = vrot.slane %v12143_v25, 7  ;;  %v1312_v31 = vrot.slane %v18877_v34, 6  ;;  %vm18882_vm15 = vmmov %vm18873_vm0 }
 0x13e   : > { %1236 = vst.msk [vmem:[#allocation2 + $0x8] sm:$0x1] %vm18764_vm7, %v1220_v42  ;;  %v1313_v24 = vrot.slane %v18878_v48, 5  ;;  %v1315_v11 = vrot.slane %v12143_v25, 4  ;;  %v1266_v60 = vrot.slane %v12133_v19, 1  ;;  %v1256_v13 = vrot.slane %v12184_v49, 6  ;;  %vm18883_vm12 = vmmov %vm18873_vm0 }
 0x13f   : > { %1240 = vst.msk [vmem:[#allocation2 + $0x28] sm:$0x1] %vm18764_vm7, %v1224_v15  ;;  %v1268_v51 = vrot.slane %v12157_v36, 7  ;;  %v1326_v20 = vrot.slane %v12133_v19, 6  ;;  %v1329_v9 = vrot.slane %v12157_v36, 4  ;;  %v1317_v32 = vrot.slane %v12184_v49, 3  ;;  %vm18884_vm14 = vmmov %vm18873_vm0 }
 0x140   : > { %1241 = vst.msk [vmem:[#allocation2 + $0x30] sm:$0x1] %vm18764_vm7, %v1225_v21  ;;  %v1253_v25 = vsel %vm778_vm1, %v18878_v48, %v1252_v46  ;;  %v1314_v34 = vsel %vm778_vm1, %v1313_v24, %v1312_v31  ;;  %v1270_v49 = vrot.slane %v12189_v52, 6  ;;  %v1258_v46 = vrot.slane %v12212_v5, 5  ;;  %vm18885_vm0 = vmmov %vm18865_vm6 }
 0x141   : > { %1242 = vst.msk [vmem:[#allocation2 + $0x38] sm:$0x1] %vm18764_vm7, %v1226_v26  ;;  %v1328_v37 = vsel %vm778_vm1, %v1327_v58, %v1326_v20  ;;  %v1255_v19 = vsel %vm781_vm2, %v1254_v47, %v1253_v25  ;;  %v1316_v36 = vsel %vm781_vm2, %v1315_v11, %v1314_v34  ;;  %v1272_v48 = vrot.slane %v12223_v10, 5  ;;  %vm18886_vm6 = vmmov %vm18885_vm0 }
 0x142   : > { %1245 = vst.msk [vmem:[#allocation2 + $0xf] sm:$0x1] %vm18763_vm8, %v1220_v42  ;;  %v1267_v42 = vsel %vm778_vm1, %v12127_v17, %v1266_v60  ;;  %v1330_v20 = vsel %vm781_vm2, %v1329_v9, %v1328_v37  ;;  %v1318_v60 = vsel %vm784_vm3, %v1317_v32, %v1316_v36  ;;  %v1335_v37 = vrot.slane %v12242_v35, 1  ;;  %v18880_v9 = vld [vmem:[#allocation8_spill] sm:$0xff]  ;;  %vm18888_vm7 = vmmov %vm18885_vm0 }
 0x143   : > { %1246 = vst.msk [vmem:[#allocation2 + $0x17] sm:$0x1] %vm18763_vm8, %v1221_v59  ;;  %v1331_v59 = vrot.slane %v12189_v52, 3  ;;  %v1269_v17 = vsel %vm781_vm2, %v1268_v51, %v1267_v42  ;;  %v1333_v52 = vrot.slane %v12223_v10, 2  ;;  %v1274_v51 = vrot.slane %v12242_v35, 4 }
 0x144   : > { %1247 = vst.msk [vmem:[#allocation2 + $0x1f] sm:$0x1] %vm18763_vm8, %v1222_v54  ;;  %v1257_v54 = vsel %vm784_vm3, %v1256_v13, %v1255_v19  ;;  %v1271_v32 = vsel %vm784_vm3, %v1270_v49, %v1269_v17  ;;  %v1264_v10 = vrot.slane %v12348_v62, 2  ;;  %v1278_v47 = vrot.slane %v12351_v56, 2 }
 0x145   : > { %1248 = vst.msk [vmem:[#allocation2 + $0x27] sm:$0x1] %vm18763_vm8, %v1223_v14  ;;  %v1319_v14 = vrot.slane %v12212_v5, 2  ;;  %v1276_v5 = vrot.slane %v12283_v27, 3  ;;  %v1332_v58 = vsel %vm784_vm3, %v1331_v59, %v1330_v20  ;;  %v1338_v31 = vrot.slane %v12351_v56, 7 }
 0x146   : > { %1249 = vst.msk [vmem:[#allocation2 + $0x2f] sm:$0x1] %vm18763_vm8, %v1224_v15  ;;  %v18879_v15 = vld [vmem:[#allocation7_spill] sm:$0xff]  ;;  %v1259_v11 = vsel %vm18793_vm4, %v1258_v46, %v1257_v54  ;;  %v1273_v25 = vsel %vm18793_vm4, %v1272_v48, %v1271_v32  ;;  %v1334_v34 = vsel %vm18793_vm4, %v1333_v52, %v1332_v58  ;;  %v1282_v58 = vrot.slane %v12170_v44, 7 }
 0x147   : > { %1250 = vst.msk [vmem:[#allocation2 + $0x37] sm:$0x1] %vm18763_vm8, %v1225_v21  ;;  %v1260_v13 = vrot.slane %v18879_v15, 4  ;;  %v1321_v24 = vrot.slane %v18879_v15, 1  ;;  %v1262_v21 = vrot.slane %v18880_v9, 3  ;;  %v1320_v35 = vsel %vm18793_vm4, %v1319_v14, %v1318_v60 }
 0x148   : > { %1251 = vst.msk [vmem:[#allocation2 + $0x3f] sm:$0x1] %vm18763_vm8, %v1226_v26  ;;  %v1324_v26 = vrot.slane %v12348_v62, 7  ;;  %v1275_v36 = vsel %vm18792_vm5, %v1274_v51, %v1273_v25  ;;  %v1336_v62 = vsel %vm18792_vm5, %v1335_v37, %v1334_v34  ;;  %vm18887_vm8 = vmmov %vm18885_vm0  ;;  %v18890_v37 = vld [vmem:[#allocation5_spill] sm:$0xff]  ;;  %v1345_v25 = vrot.slane %v12204_v1, 3 }
 0x149   : > { %v1261_v42 = vsel %vm18792_vm5, %v1260_v13, %v1259_v11  ;;  %v1322_v19 = vsel %vm18792_vm5, %v1321_v24, %v1320_v35  ;;  %v1277_v59 = vsel %vm18883_vm12, %v1276_v5, %v1275_v36  ;;  %v1337_v54 = vsel %vm18884_vm14, %v12283_v27, %v1336_v62 }
 0x14a   : > { %v1263_v49 = vsel %vm18881_vm13, %v1262_v21, %v1261_v42  ;;  %v1323_v56 = vsel %vm18882_vm15, %v18880_v9, %v1322_v19  ;;  %v13135_v20 = vsel %vm18887_vm8, %v1278_v47, %v1277_v59  ;;  %v13138_v60 = vsel %vm18888_vm7, %v1338_v31, %v1337_v54  ;;  %v18891_v21 = vld [vmem:[#allocation6_spill] sm:$0xff]  ;;  %vm18892_vm7 = vmmov %vm18883_vm12 }
 0x14b   : > { %v13129_v46 = vsel %vm18885_vm0, %v1264_v10, %v1263_v49  ;;  %v13132_v17 = vsel %vm18886_vm6, %v1324_v26, %v1323_v56  ;;  %vm18889_vm13 = vcmp.lt.s32.totalorder %v12164_v40, 64  ;;  %v1373_v27 = vsel %vm12301_vm9, %v13135_v20, %v13138_v60  ;;  %vm18893_vm8 = vmmov %vm18892_vm7 }
 0x14c   : > { %v1372_v14 = vsel %vm18889_vm13, %v13129_v46, %v13132_v17  ;;  %v1340_v9 = vrot.slane %v18890_v37, 6  ;;  %v1341_v32 = vrot.slane %v18891_v21, 5  ;;  %v1280_v5 = vrot.slane %v18890_v37, 1  ;;  %vm18894_vm15 = vmmov %vm18885_vm0 }
 0x14d   : > { %v1284_v10 = vrot.slane %v12204_v1, 6  ;;  %v1343_v26 = vrot.slane %v12170_v44, 4  ;;  %v1375_v31 = vsel %vm12403_vm10, %v18876_v28, %v13013_v33  ;;  %v1286_v62 = vrot.slane %v12228_v23, 5  ;;  %vm18895_vm12 = vmmov %vm18885_vm0 }
 0x14e   : > { %v1342_v35 = vsel %vm778_vm1, %v1341_v32, %v1340_v9  ;;  %v1281_v36 = vsel %vm778_vm1, %v18891_v21, %v1280_v5  ;;  %v1347_v44 = vrot.slane %v12228_v23, 2  ;;  %v1288_v56 = vrot.slane %v12497_v0, 4 }
 0x14f   : > { %v1283_v49 = vsel %vm781_vm2, %v1282_v58, %v1281_v36  ;;  %v1349_v59 = vrot.slane %v12497_v0, 1 }
 0x150   : > { %v1285_v1 = vsel %vm784_vm3, %v1284_v10, %v1283_v49 }
 0x151   : > { %v1287_v0 = vsel %vm18793_vm4, %v1286_v62, %v1285_v1 }
 0x152   : > { %v1289_v9 = vsel %vm18792_vm5, %v1288_v56, %v1287_v0  ;;  %v8887_v0 = vld [vmem:[%s18719_s2 + $0xe0] sm:$0xf] }
 0x185   : > { %v1578_v48 = vpop.f32.mrf.mxu0  ;;  %v1591_v52 = vpop.f32.mrf.mxu1 }
 0x186   : > { %v1621_v15 = vadd.f32 %v1578_v48, %v1372_v14  ;;  %v1622_v13 = vadd.f32 %v1591_v52, %v1373_v27  ;;  %v1290_v48 = vrot.slane %v12516_v57, 3  ;;  %v1292_v27 = vrot.slane %v12567_v45, 2 }
 0x187   : > { %v1344_v52 = vsel %vm781_vm2, %v1343_v26, %v1342_v35 }
 0x188   : > { %v8770_v24 = vmul.f32 -1.442695, %v1621_v15  ;;  %v8771_v51 = vmul.f32 -1.442695, %v1622_v13  ;;  %v1346_v23 = vsel %vm784_vm3, %v1345_v25, %v1344_v52  ;;  %v1291_v32 = vsel %vm18892_vm7, %v1290_v48, %v1289_v9  ;;  %v10937_v9 = vld [vmem:[%s18719_s2 + $0xe4] sm:$0xf] }
 0x189   : > { %v1348_v37 = vsel %vm18793_vm4, %v1347_v44, %v1346_v23  ;;  %v8873_v52 = vld [vmem:[%s18719_s2 + $0xd0] sm:$0xf0] }
 0x18a   : > { %11443 = vpow2.f32 %v8770_v24  ;;  %v1352_v24 = vrot.slane %v12567_v45, 7  ;;  %v1350_v21 = vsel %vm18792_vm5, %v1349_v59, %v1348_v37  ;;  %v13181_v45 = vsel %vm18894_vm15, %v1292_v27, %v1291_v32  ;;  %v10939_v37 = vld [vmem:[%s18719_s2 + $0xec] sm:$0xf0] }
 0x18b   : > { %11445 = vpow2.f32 %v8771_v51  ;;  %v1351_v5 = vsel %vm18893_vm8, %v12516_v57, %v1350_v21  ;;  %v8888_v32 = vor.u32 %v10939_v37, %v8887_v0  ;;  %v10934_v0 = vld [vmem:[%s18719_s2 + $0xcc] sm:$0xf]  ;;  %v8881_v37 = vld [vmem:[%s18719_s2 + $0xd8] sm:$0xf0] }
 0x18c   : > { %v1604_v47 = vpop.f32.mrf.mxu2  ;;  %v1617_v11 = vpop.f32.mrf.mxu3  ;;  %v13184_v26 = vsel %vm18895_vm12, %v1352_v24, %v1351_v5  ;;  %v8889_v5 = vld [vmem:[%s18719_s2 + $0xf0] sm:$0xf0] }
 0x18d   : > { %v1624_v34 = vadd.f32 %v1617_v11, %v1375_v31  ;;  %v1580_v42 = vpop.f32.mrf.mxu0  ;;  %v1593_v19 = vpop.f32.mrf.mxu1  ;;  %v1374_v11 = vsel %vm12631_vm11, %v13181_v45, %v13184_v26  ;;  %2036 = vmatpush.bf16.msrb.mxu0 %v8888_v32  ;;  %v8884_v32 = vor.u32 %v10934_v0, %v8881_v37  ;;  %v10923_v37 = vld [vmem:[%s18719_s2 + $0x6c] sm:$0xf0] }
 0x18f   : > { %v8772_v54 = vmul.f32 -1.442695, %v1624_v34  ;;  %v1623_v34 = vadd.f32 %v1604_v47, %v1374_v11 }
 0x190   : > { %v11444_v14 = vpop.eup %11443 }
 0x191   : > { %v11446_v15 = vpop.eup %11445  ;;  %v1628_v13 = vadd.f32 1.0, %v11444_v14  ;;  %11447 = vpow2.f32 %v8772_v54 }
 0x192   : > { %v1647_v51 = vadd.f32 1.0, %v11446_v15 }
 0x193   : > { %11449 = vrcp.f32 %v1628_v13  ;;  %v1638_v36 = vand.u32 2147483647, %v1628_v13  ;;  %v1640_v49 = vand.u32 2147483648, %v1628_v13  ;;  %vm1634_vm6 = vweird.f32 %v1628_v13 }
 0x194   : > { %11451 = vrcp.f32 %v1647_v51  ;;  %v1606_v58 = vpop.f32.mrf.mxu2  ;;  %v1619_v10 = vpop.f32.mrf.mxu3  ;;  %v1659_v44 = vand.u32 2147483648, %v1647_v51  ;;  %v1657_v54 = vand.u32 2147483647, %v1647_v51  ;;  %vm1653_vm8 = vweird.f32 %v1647_v51 }
 0x195   : > { %vm13193_vm13 = vcmp.eq.f32.partialorder %v1638_v36, 8.507059e+37  ;;  %v1641_v15 = vor.u32 1.1754944e-38, %v1640_v49  ;;  %v8895_v58 = vld [vmem:[%s18719_s2 + $0xe8] sm:$0xf]  ;;  %v8897_v49 = vld [vmem:[%s18719_s2 + $0xf8] sm:$0xf0] }
 0x196   : > { %v1660_v48 = vor.u32 1.1754944e-38, %v1659_v44  ;;  %vm1658_vm12 = vcmp.eq.f32.partialorder %v1657_v54, 8.507059e+37 }
 0x197   : > { %v11448_v31 = vpop.eup %11447 }
 0x198   : > { %v13190_v35 = vadd.f32 1.0, %v11448_v31 }
 0x199   : > { %v11450_v25 = vpop.eup %11449 }
 0x19a   : > { %v11452_v42 = vpop.eup %11451  ;;  %v1630_v57 = vmul.f32 %v11450_v25, %v1628_v13  ;;  %11453 = vrcp.f32 %v13190_v35  ;;  %vm1635_vm14 = vweird.f32 %v11450_v25  ;;  %v1677_v23 = vand.u32 2147483647, %v13190_v35 }
 0x19b   : > { %v1649_v19 = vmul.f32 %v11452_v42, %v1647_v51  ;;  %11455 = vtanh.f32 %v1623_v34  ;;  %vm1654_vm0 = vweird.f32 %v11452_v42  ;;  %vm13199_vm7 = vmor %vm1634_vm6, %vm1635_vm14  ;;  %v1679_v21 = vand.u32 2147483648, %v13190_v35 }
 0x19c   : > { %v1631_v62 = vsub.f32 1.0, %v1630_v57  ;;  %vm1655_vm15 = vmor %vm1653_vm8, %vm1654_vm0  ;;  %v8892_v57 = vor.u32 %v10937_v9, %v8889_v5  ;;  %v8855_v5 = vld [vmem:[%s18719_s2 + $0xa0] sm:$0xf]  ;;  %vm1673_vm0 = vweird.f32 %v13190_v35  ;;  %vm18904_vm8 = vcmask 1040896  }
 0x19d   : > { %v1650_v56 = vsub.f32 1.0, %v1649_v19  ;;  %v10938_v19 = vld [vmem:[%s18719_s2 + $0xec] sm:$0xf] }
 0x19e   : > { %v1632_v59 = vmul.f32 %v11450_v25, %v1631_v62  ;;  %2049 = vmatpush.bf16.msrb.mxu1 %v8892_v57  ;;  %v8900_v1 = vor.u32 %v10938_v19, %v8897_v49  ;;  %v8863_v57 = vld [vmem:[%s18719_s2 + $0xa8] sm:$0xf] }
 0x19f   : > { %v1651_v14 = vmul.f32 %v11452_v42, %v1650_v56  ;;  %v10935_v56 = vld [vmem:[%s18719_s2 + $0xcc] sm:$0xf0] }
 0x1a0   : > { %v13197_v47 = vpop.eup %11453  ;;  %v1633_v27 = vadd.f32 %v11450_v25, %v1632_v59  ;;  %v18900_v59 = vld [vmem:[#allocation19_spill] sm:$0xff]  ;;  %2075 = vmatpush.bf16.msrb.mxu3 %v8900_v1  ;;  %v8847_v1 = vld [vmem:[%s18719_s2 + $0x88] sm:$0xf] }
 0x1a1   : > { %v1652_v24 = vadd.f32 %v11452_v42, %v1651_v14  ;;  %v1669_v13 = vmul.f32 %v13197_v47, %v13190_v35  ;;  %v11456_v10 = vpop.eup %11455  ;;  %vm1674_vm14 = vweird.f32 %v13197_v47  ;;  %v8825_v35 = vld [vmem:[%s18719_s2 + $0x70] sm:$0xf0] }
 0x1a2   : > { %v1637_v51 = vsel %vm13199_vm7, %v11450_v25, %v1633_v27  ;;  %v10940_v25 = vld [vmem:[%s18719_s2 + $0xf4] sm:$0xf0]  ;;  %v10933_v27 = vld [vmem:[%s18719_s2 + $0xc4] sm:$0xf]  ;;  %vm13306_vm6 = vmor %vm1673_vm0, %vm1674_vm14  ;;  %vm18903_vm7 = vcmask 516096  }
 0x1a3   : > { %v1642_v31 = vsel %vm13193_vm13, %v1641_v15, %v1637_v51  ;;  %v1656_v11 = vsel %vm1655_vm15, %v11452_v42, %v1652_v24  ;;  %v1670_v34 = vsub.f32 1.0, %v1669_v13  ;;  %v8896_v44 = vor.u32 %v10940_v25, %v8895_v58  ;;  %v8871_v42 = vld [vmem:[%s18719_s2 + $0xc0] sm:$0xf]  ;;  %v8879_v15 = vld [vmem:[%s18719_s2 + $0xc8] sm:$0xf]  ;;  %vm18905_vm15 = vmmov %vm18903_vm7 }
 0x1a4   : > { %v1661_v36 = vsel %vm1658_vm12, %v1660_v48, %v1656_v11  ;;  %v1684_v62 = vmul.f32 %v11456_v10, %v1642_v31  ;;  %v8872_v48 = vor.u32 %v10935_v56, %v8871_v42  ;;  %v8876_v24 = vor.u32 %v10933_v27, %v8873_v52  ;;  %v10936_v13 = vld [vmem:[%s18719_s2 + $0xd4] sm:$0xf0]  ;;  %v10931_v58 = vld [vmem:[%s18719_s2 + $0xac] sm:$0xf0]  ;;  %v10929_v10 = vld [vmem:[%s18719_s2 + $0xa4] sm:$0xf]  ;;  %2076 = vmatpush.bf16.msrb.mxu3 %v8884_v32 }
 0x1a5   : > { %v1683_v54 = vmul.f32 %v1661_v36, %v18900_v59  ;;  %v1671_v14 = vmul.f32 %v13197_v47, %v1670_v34  ;;  %2062 = vmatpush.bf16.msrb.mxu2 %v8896_v44  ;;  %v8880_v51 = vor.u32 %v10936_v13, %v8879_v15  ;;  %v8856_v11 = vor.u32 %v10931_v58, %v8855_v5  ;;  %v8857_v34 = vld [vmem:[%s18719_s2 + $0xb0] sm:$0xf0]  ;;  %v10932_v25 = vld [vmem:[%s18719_s2 + $0xb4] sm:$0xf0]  ;;  %v10930_v36 = vld [vmem:[%s18719_s2 + $0xac] sm:$0xf] }
 0x1a6   : > { %2037 = vmatpush.bf16.msrb.mxu0 %v8872_v48  ;;  %2050 = vmatpush.bf16.msrb.mxu1 %v8876_v24  ;;  %v8860_v19 = vor.u32 %v10929_v10, %v8857_v34  ;;  %v8839_v44 = vld [vmem:[%s18719_s2 + $0x80] sm:$0xf]  ;;  %v8864_v49 = vor.u32 %v10932_v25, %v8863_v57  ;;  %v10927_v42 = vld [vmem:[%s18719_s2 + $0x8c] sm:$0xf0]  ;;  %v10925_v56 = vld [vmem:[%s18719_s2 + $0x84] sm:$0xf] }
 0x1a7   : > { %v13262_v9 = vadd.f32 %v1684_v62, %v1683_v54  ;;  %v1672_v31 = vadd.f32 %v13197_v47, %v1671_v14  ;;  %v8865_v62 = vld [vmem:[%s18719_s2 + $0xb8] sm:$0xf0]  ;;  %v8841_v59 = vld [vmem:[%s18719_s2 + $0x90] sm:$0xf0]  ;;  %v10928_v48 = vld [vmem:[%s18719_s2 + $0x94] sm:$0xf0]  ;;  %v8840_v52 = vor.u32 %v10927_v42, %v8839_v44 }
 0x1a8   : > { %v8868_v14 = vor.u32 %v10930_v36, %v8865_v62  ;;  %v10926_v15 = vld [vmem:[%s18719_s2 + $0x8c] sm:$0xf]  ;;  %v8849_v24 = vld [vmem:[%s18719_s2 + $0x98] sm:$0xf0]  ;;  %vm1678_vm13 = vcmp.eq.f32.partialorder %v1677_v23, 8.507059e+37  ;;  %v1680_v13 = vor.u32 1.1754944e-38, %v1679_v21  ;;  %v8844_v0 = vor.u32 %v10925_v56, %v8841_v59  ;;  %vm18906_vm12 = vmmov %vm18903_vm7 }
 0x1a9   : > { %11457 = vtanh.f32 %v13262_v9  ;;  %2063 = vmatpush.bf16.msrb.mxu2 %v8880_v51  ;;  %v1676_v27 = vsel %vm13306_vm6, %v13197_v47, %v1672_v31  ;;  %v8823_v47 = vld [vmem:[%s18719_s2 + $0x60] sm:$0xf]  ;;  %v8848_v51 = vor.u32 %v10928_v48, %v8847_v1  ;;  %v10921_v32 = vld [vmem:[%s18719_s2 + $0x64] sm:$0xf]  ;;  %v8831_v23 = vld [vmem:[%s18719_s2 + $0x68] sm:$0xf]  ;;  %v8852_v58 = vor.u32 %v10926_v15, %v8849_v24 }
 0x1aa   : > { %2038 = vmatpush.bf16.msrb.mxu0 %v8856_v11  ;;  %2051 = vmatpush.bf16.msrb.mxu1 %v8860_v19  ;;  %v1681_v5 = vsel %vm1678_vm13, %v1680_v13, %v1676_v27  ;;  %v10924_v10 = vld [vmem:[%s18719_s2 + $0x74] sm:$0xf0]  ;;  %v10922_v31 = vld [vmem:[%s18719_s2 + $0x6c] sm:$0xf]  ;;  %v8833_v11 = vld [vmem:[%s18719_s2 + $0x78] sm:$0xf0]  ;;  %v8824_v57 = vor.u32 %v10923_v37, %v8823_v47  ;;  %v8828_v62 = vor.u32 %v10921_v32, %v8825_v35 }
 0x1ab   : > { %2077 = vmatpush.bf16.msrb.mxu3 %v8868_v14  ;;  %v8807_v25 = vld [vmem:[%s18719_s2 + $0x40] sm:$0xf]  ;;  %v10919_v19 = vld [vmem:[%s18719_s2 + $0x4c] sm:$0xf0]  ;;  %v10917_v36 = vld [vmem:[%s18719_s2 + $0x44] sm:$0xf]  ;;  %v8832_v14 = vor.u32 %v10924_v10, %v8831_v23  ;;  %v8836_v27 = vor.u32 %v10922_v31, %v8833_v11 }
 0x1ac   : > { %v8809_v44 = vld [vmem:[%s18719_s2 + $0x50] sm:$0xf0]  ;;  %v10920_v42 = vld [vmem:[%s18719_s2 + $0x54] sm:$0xf0]  ;;  %v10918_v1 = vld [vmem:[%s18719_s2 + $0x4c] sm:$0xf]  ;;  %v8808_v24 = vor.u32 %v10919_v19, %v8807_v25 }
 0x1ad   : > { %2064 = vmatpush.bf16.msrb.mxu2 %v8864_v49  ;;  %v8815_v49 = vld [vmem:[%s18719_s2 + $0x48] sm:$0xf]  ;;  %v8791_v13 = vld [vmem:[%s18719_s2 + $0x20] sm:$0xf]  ;;  %v8812_v37 = vor.u32 %v10917_v36, %v8809_v44  ;;  %vm18907_vm14 = vmmov %vm18903_vm7 }
 0x1ae   : > { %2039 = vmatpush.bf16.msrb.mxu0 %v8840_v52  ;;  %2052 = vmatpush.bf16.msrb.mxu1 %v8844_v0  ;;  %v8817_v52 = vld [vmem:[%s18719_s2 + $0x58] sm:$0xf0]  ;;  %v8816_v32 = vor.u32 %v10920_v42, %v8815_v49  ;;  %v10913_v35 = vld [vmem:[%s18719_s2 + $0x24] sm:$0xf]  ;;  %v8793_v23 = vld [vmem:[%s18719_s2 + $0x30] sm:$0xf0] }
 0x1af   : > { %v11458_v21 = vpop.eup %11457  ;;  %2078 = vmatpush.bf16.msrb.mxu3 %v8852_v58  ;;  %vm18908_vm0 = vmmov %vm18903_vm7  ;;  %v10916_v58 = vld [vmem:[%s18719_s2 + $0x34] sm:$0xf0]  ;;  %v10914_v31 = vld [vmem:[%s18719_s2 + $0x2c] sm:$0xf] }
 0x1b0   : > { %v13353_v34 = vmul.f32 %v11458_v21, %v1681_v5  ;;  %v8820_v21 = vor.u32 %v10918_v1, %v8817_v52  ;;  %v8799_v5 = vld [vmem:[%s18719_s2 + $0x28] sm:$0xf]  ;;  %vm18909_vm6 = vmmov %vm18908_vm0  ;;  %v8801_v11 = vld [vmem:[%s18719_s2 + $0x38] sm:$0xf0] }
 0x1b1   : > { %2065 = vmatpush.bf16.msrb.mxu2 %v8848_v51  ;;  %v10915_v51 = vld [vmem:[%s18719_s2 + $0x2c] sm:$0xf0]  ;;  %vm18910_vm13 = vmmov %vm18908_vm0  ;;  %v8775_v25 = vld [vmem:[%s18719_s2] sm:$0xf]  ;;  %v8800_v36 = vor.u32 %v10916_v58, %v8799_v5  ;;  %v8804_v49 = vor.u32 %v10914_v31, %v8801_v11 }
 0x1b2   : > { %v1689_v56 = vrot.slane %v13353_v34, 1  ;;  %v1690_v59 = vrot.slane %v13353_v34, 2  ;;  %v1691_v54 = vrot.slane %v13353_v34, 3  ;;  %1703 = vst.msk [vmem:[#allocation2 + $0x1] sm:$0x1] %vm18903_vm7, %v13353_v34  ;;  %v1692_v48 = vrot.slane %v13353_v34, 4  ;;  %2040 = vmatpush.bf16.msrb.mxu0 %v8824_v57  ;;  %2053 = vmatpush.bf16.msrb.mxu1 %v8828_v62  ;;  %vm18911_vm7 = vmmov %vm18908_vm0 }
 0x1b3   : > { %1711 = vst.msk [vmem:[#allocation2 + $0x6] sm:$0x1] %vm18904_vm8, %v13353_v34  ;;  %v1693_v15 = vrot.slane %v13353_v34, 5  ;;  %v1694_v0 = vrot.slane %v13353_v34, 6  ;;  %v1695_v47 = vrot.slane %v13353_v34, 7  ;;  %2079 = vmatpush.bf16.msrb.mxu3 %v8836_v27  ;;  %v8792_v10 = vor.u32 %v10915_v51, %v8791_v13 }
 0x1b4   : > { %1704 = vst.msk [vmem:[#allocation2 + $0x9] sm:$0x1] %vm18905_vm15, %v1689_v56  ;;  %v8796_v57 = vor.u32 %v10913_v35, %v8793_v23  ;;  %v10911_v19 = vld [vmem:[%s18719_s2 + $0xc] sm:$0xf0]  ;;  %v10909_v62 = vld [vmem:[%s18719_s2 + $0x4] sm:$0xf]  ;;  %vm18912_vm15 = vmmov %vm18904_vm8  ;;  %v1843_v13 = vpack.c.bf16 %v13353_v34, %v13353_v34  ;;  %v1840_v34 = vsel %vm12301_vm9, %v12844_v18, %v12859_v63 }
 0x1b5   : > { %1705 = vst.msk [vmem:[#allocation2 + $0x11] sm:$0x1] %vm18906_vm12, %v1690_v59  ;;  %2066 = vmatpush.bf16.msrb.mxu2 %v8832_v14  ;;  %v8777_v44 = vld [vmem:[%s18719_s2 + $0x10] sm:$0xf0]  ;;  %v8783_v42 = vld [vmem:[%s18719_s2 + $0x8] sm:$0xf]  ;;  %v8776_v1 = vor.u32 %v10911_v19, %v8775_v25  ;;  %vm18913_vm12 = vmmov %vm18904_vm8  ;;  %v1841_v25 = vsel %vm12631_vm11, %v12882_v53, %v12885_v43 }
 0x1b6   : > { %1706 = vst.msk [vmem:[#allocation2 + $0x19] sm:$0x1] %vm18907_vm14, %v1691_v54  ;;  %2041 = vmatpush.bf16.msrb.mxu0 %v8808_v24  ;;  %2054 = vmatpush.bf16.msrb.mxu1 %v8812_v37  ;;  %v10912_v14 = vld [vmem:[%s18719_s2 + $0x14] sm:$0xf0]  ;;  %v10910_v27 = vld [vmem:[%s18719_s2 + $0xc] sm:$0xf]  ;;  %v8780_v52 = vor.u32 %v10909_v62, %v8777_v44  ;;  %vm18914_vm14 = vmmov %vm18904_vm8 }
 0x1b7   : > { %1707 = vst.msk [vmem:[#allocation2 + $0x21] sm:$0x1] %vm18908_vm0, %v1692_v48  ;;  %2080 = vmatpush.bf16.msrb.mxu3 %v8820_v21  ;;  %v8784_v24 = vor.u32 %v10912_v14, %v8783_v42  ;;  %vm18915_vm0 = vmmov %vm18904_vm8 }
 0x1b8   : > { %1708 = vst.msk [vmem:[#allocation2 + $0x29] sm:$0x1] %vm18909_vm6, %v1693_v15  ;;  %vm18916_vm6 = vmmov %vm18915_vm0 }
 0x1b9   : > { %1709 = vst.msk [vmem:[#allocation2 + $0x31] sm:$0x1] %vm18910_vm13, %v1694_v0  ;;  %2067 = vmatpush.bf16.msrb.mxu2 %v8816_v32  ;;  %vm18917_vm13 = vmmov %vm18915_vm0 }
 0x1ba   : > { %1710 = vst.msk [vmem:[#allocation2 + $0x39] sm:$0x1] %vm18911_vm7, %v1695_v47  ;;  %2042 = vmatpush.bf16.msrb.mxu0 %v8792_v10  ;;  %2055 = vmatpush.bf16.msrb.mxu1 %v8796_v57  ;;  %vm18918_vm7 = vcmp.lt.s32.totalorder %v12164_v40, 64 }
 0x1bb   : > { %1712 = vst.msk [vmem:[#allocation2 + $0xe] sm:$0x1] %vm18904_vm8, %v1689_v56  ;;  %v8785_v56 = vld [vmem:[%s18719_s2 + $0x18] sm:$0xf0]  ;;  %2081 = vmatpush.bf16.msrb.mxu3 %v8804_v49 }
 0x1bc   : > { %1713 = vst.msk [vmem:[#allocation2 + $0x16] sm:$0x1] %vm18912_vm15, %v1690_v59  ;;  %v8788_v59 = vor.u32 %v10910_v27, %v8785_v56 }
 0x1bd   : > { %1714 = vst.msk [vmem:[#allocation2 + $0x1e] sm:$0x1] %vm18913_vm12, %v1691_v54  ;;  %2068 = vmatpush.bf16.msrb.mxu2 %v8800_v36  ;;  %v1839_v54 = vsel %vm18918_vm7, %v12813_v4, %v12837_v2  ;;  %v1842_v4 = vsel %vm12403_vm10, %v13019_v55, %v13025_v39 }
 0x1be   : > { %1715 = vst.msk [vmem:[#allocation2 + $0x26] sm:$0x1] %vm18914_vm14, %v1692_v48  ;;  %2043 = vmatpush.bf16.msrb.mxu0 %v8776_v1  ;;  %2056 = vmatpush.bf16.msrb.mxu1 %v8780_v52 }
 0x1bf   : > { %1716 = vst.msk [vmem:[#allocation2 + $0x2e] sm:$0x1] %vm18915_vm0, %v1693_v15  ;;  %2082 = vmatpush.bf16.msrb.mxu3 %v8788_v59 }
 0x1c0   : > { %1717 = vst.msk [vmem:[#allocation2 + $0x36] sm:$0x1] %vm18916_vm6, %v1694_v0 }
 0x1c1   : > { %1718 = vst.msk [vmem:[#allocation2 + $0x3e] sm:$0x1] %vm18917_vm13, %v1695_v47  ;;  %2069 = vmatpush.bf16.msrb.mxu2 %v8784_v24  ;;  %2044 = vmatmul.bf16.vlgmr.msrb.gmra.mxu0 %v1843_v13 }
 0x1c2   : > { %2057 = vmatmul.bf16.vlgmr.msrb.gmra.mxu1 %v1843_v13  ;;  %2083 = vmatmul.bf16.vlgmr.msrb.gmra.mxu3 %v1843_v13 }
 0x1c4   : > { %2070 = vmatmul.bf16.vlgmr.msrb.gmra.mxu2 %v1843_v13 }
 0x23e   : > { %v2045_v48 = vpop.f32.mrf.mxu0 }
 0x23f   : > { %v2088_v15 = vadd.f32 %v2045_v48, %v1839_v54  ;;  %v2058_v0 = vpop.f32.mrf.mxu1 }
 0x240   : > { %v2089_v47 = vadd.f32 %v2058_v0, %v1840_v34 }
 0x241   : > { %v8901_v37 = vmul.f32 -1.442695, %v2088_v15 }
 0x242   : > { %v8902_v51 = vmul.f32 -1.442695, %v2089_v47 }
 0x243   : > { %11459 = vpow2.f32 %v8901_v37 }
 0x244   : > { %11461 = vpow2.f32 %v8902_v51 }
 0x245   : > { %v2084_v2 = vpop.f32.mrf.mxu3 }
 0x246   : > { %v2047_v35 = vpop.f32.mrf.mxu0  ;;  %v2091_v21 = vadd.f32 %v2084_v2, %v1842_v4  ;;  %v10971_v4 = vld [vmem:[%s18719_s2 + $0xec] sm:$0xf0] }
 0x247   : > { %v2071_v32 = vpop.f32.mrf.mxu2  ;;  %v2060_v23 = vpop.f32.mrf.mxu1  ;;  %v9018_v35 = vld [vmem:[%s18719_s2 + $0xe0] sm:$0xf] }
 0x248   : > { %v8903_v31 = vmul.f32 -1.442695, %v2091_v21  ;;  %v2090_v36 = vadd.f32 %v2071_v32, %v1841_v25  ;;  %v9019_v23 = vor.u32 %v10971_v4, %v9018_v35  ;;  %v10969_v21 = vld [vmem:[%s18719_s2 + $0xe4] sm:$0xf]  ;;  %v10970_v25 = vld [vmem:[%s18719_s2 + $0xec] sm:$0xf] }
 0x249   : > { %v11460_v5 = vpop.eup %11459  ;;  %v8986_v4 = vld [vmem:[%s18719_s2 + $0xa0] sm:$0xf] }
 0x24a   : > { %v11462_v58 = vpop.eup %11461  ;;  %v2095_v10 = vadd.f32 1.0, %v11460_v5  ;;  %v9020_v5 = vld [vmem:[%s18719_s2 + $0xf0] sm:$0xf0]  ;;  %2503 = vmatpush.bf16.msra.mxu0 %v9019_v23 }
 0x24b   : > { %v2114_v11 = vadd.f32 1.0, %v11462_v58  ;;  %v9026_v58 = vld [vmem:[%s18719_s2 + $0xe8] sm:$0xf] }
 0x24c   : > { %11463 = vrcp.f32 %v2095_v10  ;;  %v2105_v27 = vand.u32 2147483647, %v2095_v10  ;;  %v2107_v56 = vand.u32 2147483648, %v2095_v10  ;;  %vm2101_vm12 = vweird.f32 %v2095_v10 }
 0x24d   : > { %11465 = vrcp.f32 %v2114_v11  ;;  %v2086_v19 = vpop.f32.mrf.mxu3  ;;  %v2126_v59 = vand.u32 2147483648, %v2114_v11  ;;  %v2124_v13 = vand.u32 2147483647, %v2114_v11  ;;  %vm2120_vm14 = vweird.f32 %v2114_v11 }
 0x24e   : > { %11467 = vpow2.f32 %v8903_v31  ;;  %vm2106_vm6 = vcmp.eq.f32.partialorder %v2105_v27, 8.507059e+37  ;;  %v2108_v0 = vor.u32 1.1754944e-38, %v2107_v56  ;;  %v9028_v19 = vld [vmem:[%s18719_s2 + $0xf8] sm:$0xf0]  ;;  %v10965_v27 = vld [vmem:[%s18719_s2 + $0xc4] sm:$0xf] }
 0x24f   : > { %v2073_v57 = vpop.f32.mrf.mxu2  ;;  %11469 = vtanh.f32 %v2090_v36  ;;  %v2127_v51 = vor.u32 1.1754944e-38, %v2126_v59  ;;  %vm2125_vm7 = vcmp.eq.f32.partialorder %v2124_v13, 8.507059e+37  ;;  %v9004_v13 = vld [vmem:[%s18719_s2 + $0xd0] sm:$0xf0] }
 0x250   : > { %v10972_v57 = vld [vmem:[%s18719_s2 + $0xf4] sm:$0xf0] }
 0x252   : > { %v11464_v62 = vpop.eup %11463 }
 0x253   : > { %v11466_v44 = vpop.eup %11465  ;;  %v2097_v49 = vmul.f32 %v11464_v62, %v2095_v10  ;;  %vm2102_vm8 = vweird.f32 %v11464_v62 }
 0x254   : > { %v11468_v42 = vpop.eup %11467  ;;  %v2116_v14 = vmul.f32 %v11466_v44, %v2114_v11  ;;  %vm2121_vm15 = vweird.f32 %v11466_v44  ;;  %vm13473_vm0 = vmor %vm2101_vm12, %vm2102_vm8  ;;  %v9023_v11 = vor.u32 %v10969_v21, %v9020_v5  ;;  %v10961_v21 = vld [vmem:[%s18719_s2 + $0xa4] sm:$0xf]  ;;  %v8988_v5 = vld [vmem:[%s18719_s2 + $0xb0] sm:$0xf0] }
 0x255   : > { %v2098_v1 = vsub.f32 1.0, %v2097_v49  ;;  %v13470_v52 = vadd.f32 1.0, %v11468_v42  ;;  %v11470_v47 = vpop.eup %11469  ;;  %vm13477_vm13 = vmor %vm2120_vm14, %vm2121_vm15  ;;  %v9027_v42 = vor.u32 %v10972_v57, %v9026_v58  ;;  %v8994_v58 = vld [vmem:[%s18719_s2 + $0xa8] sm:$0xf]  ;;  %v10962_v57 = vld [vmem:[%s18719_s2 + $0xac] sm:$0xf] }
 0x256   : > { %v2117_v24 = vsub.f32 1.0, %v2116_v14  ;;  %v9002_v14 = vld [vmem:[%s18719_s2 + $0xc0] sm:$0xf]  ;;  %2516 = vmatpush.bf16.msra.mxu1 %v9023_v11  ;;  %v10964_v11 = vld [vmem:[%s18719_s2 + $0xb4] sm:$0xf0] }
 0x257   : > { %v2099_v54 = vmul.f32 %v11464_v62, %v2098_v1  ;;  %11471 = vrcp.f32 %v13470_v52  ;;  %v10967_v1 = vld [vmem:[%s18719_s2 + $0xcc] sm:$0xf0]  ;;  %2529 = vmatpush.bf16.msra.mxu2 %v9027_v42  ;;  %vm2140_vm15 = vweird.f32 %v13470_v52 }
 0x258   : > { %v2118_v48 = vmul.f32 %v11466_v44, %v2117_v24  ;;  %v9003_v59 = vor.u32 %v10967_v1, %v9002_v14  ;;  %v10959_v42 = vld [vmem:[%s18719_s2 + $0x8c] sm:$0xf0]  ;;  %v8972_v1 = vld [vmem:[%s18719_s2 + $0x90] sm:$0xf0] }
 0x259   : > { %v2100_v15 = vadd.f32 %v11464_v62, %v2099_v54  ;;  %v9010_v54 = vld [vmem:[%s18719_s2 + $0xc8] sm:$0xf] }
 0x25a   : > { %v2119_v32 = vadd.f32 %v11466_v44, %v2118_v48  ;;  %v10968_v48 = vld [vmem:[%s18719_s2 + $0xd4] sm:$0xf0]  ;;  %2504 = vmatpush.bf16.msra.mxu0 %v9003_v59 }
 0x25b   : > { %v2104_v2 = vsel %vm13473_vm0, %v11464_v62, %v2100_v15  ;;  %v2144_v15 = vand.u32 2147483647, %v13470_v52  ;;  %v9011_v34 = vor.u32 %v10968_v48, %v9010_v54  ;;  %v10958_v54 = vld [vmem:[%s18719_s2 + $0x8c] sm:$0xf]  ;;  %v8980_v48 = vld [vmem:[%s18719_s2 + $0x98] sm:$0xf0] }
 0x25c   : > { %v2109_v10 = vsel %vm2106_vm6, %v2108_v0, %v2104_v2  ;;  %v2123_v31 = vsel %vm13477_vm13, %v11466_v44, %v2119_v32  ;;  %v9031_v44 = vor.u32 %v10970_v25, %v9028_v19  ;;  %v10966_v0 = vld [vmem:[%s18719_s2 + $0xcc] sm:$0xf]  ;;  %v2146_v32 = vand.u32 2147483648, %v13470_v52  ;;  %v10963_v2 = vld [vmem:[%s18719_s2 + $0xac] sm:$0xf0] }
 0x25d   : > { %v13509_v36 = vpop.eup %11471  ;;  %v2128_v62 = vsel %vm2125_vm7, %v2127_v51, %v2123_v31  ;;  %v2151_v49 = vmul.f32 %v11470_v47, %v2109_v10  ;;  %v9012_v47 = vld [vmem:[%s18719_s2 + $0xd8] sm:$0xf0]  ;;  %v8987_v23 = vor.u32 %v10963_v2, %v8986_v4  ;;  %v8991_v31 = vor.u32 %v10961_v21, %v8988_v5  ;;  %2530 = vmatpush.bf16.msra.mxu2 %v9011_v34  ;;  %v8954_v34 = vld [vmem:[%s18719_s2 + $0x60] sm:$0xf]  ;;  %v10956_v4 = vld [vmem:[%s18719_s2 + $0x74] sm:$0xf0] }
 0x25e   : > { %v2150_v56 = vmul.f32 %v2128_v62, %v13262_v9  ;;  %v2136_v24 = vmul.f32 %v13509_v36, %v13470_v52  ;;  %2542 = vmatpush.bf16.msra.mxu3 %v9031_v44  ;;  %v9007_v9 = vor.u32 %v10965_v27, %v9004_v13  ;;  %v9015_v35 = vor.u32 %v10966_v0, %v9012_v47  ;;  %v8996_v25 = vld [vmem:[%s18719_s2 + $0xb8] sm:$0xf0]  ;;  %v10957_v44 = vld [vmem:[%s18719_s2 + $0x84] sm:$0xf]  ;;  %v8978_v27 = vld [vmem:[%s18719_s2 + $0x88] sm:$0xf] }
 0x25f   : > { %vm2141_vm8 = vweird.f32 %v13509_v36  ;;  %v8995_v19 = vor.u32 %v10964_v11, %v8994_v58  ;;  %v8999_v62 = vor.u32 %v10962_v57, %v8996_v25  ;;  %vm13595_vm14 = vcmp.eq.f32.partialorder %v2144_v15, 8.507059e+37  ;;  %2505 = vmatpush.bf16.msra.mxu0 %v8987_v23  ;;  %v10955_v0 = vld [vmem:[%s18719_s2 + $0x6c] sm:$0xf0]  ;;  %v10953_v47 = vld [vmem:[%s18719_s2 + $0x64] sm:$0xf] }
 0x260   : > { %v13539_v37 = vadd.f32 %v2151_v49, %v2150_v56  ;;  %v2137_v51 = vsub.f32 1.0, %v2136_v24  ;;  %2517 = vmatpush.bf16.msra.mxu1 %v9007_v9  ;;  %v8970_v49 = vld [vmem:[%s18719_s2 + $0x80] sm:$0xf]  ;;  %v10960_v56 = vld [vmem:[%s18719_s2 + $0x94] sm:$0xf0]  ;;  %vm13591_vm12 = vmor %vm2140_vm15, %vm2141_vm8  ;;  %v2147_v59 = vor.u32 1.1754944e-38, %v2146_v32  ;;  %v8975_v15 = vor.u32 %v10957_v44, %v8972_v1 }
 0x261   : > { %v8971_v13 = vor.u32 %v10959_v42, %v8970_v49  ;;  %2531 = vmatpush.bf16.msra.mxu2 %v8995_v19  ;;  %v8983_v32 = vor.u32 %v10958_v54, %v8980_v48  ;;  %v10954_v21 = vld [vmem:[%s18719_s2 + $0x6c] sm:$0xf]  ;;  %v8964_v5 = vld [vmem:[%s18719_s2 + $0x78] sm:$0xf0]  ;;  %v8938_v58 = vld [vmem:[%s18719_s2 + $0x40] sm:$0xf] }
 0x262   : > { %11473 = vtanh.f32 %v13539_v37  ;;  %v2138_v10 = vmul.f32 %v13509_v36, %v2137_v51  ;;  %2543 = vmatpush.bf16.msra.mxu3 %v9015_v35  ;;  %v8979_v51 = vor.u32 %v10960_v56, %v8978_v27  ;;  %v8962_v35 = vld [vmem:[%s18719_s2 + $0x68] sm:$0xf]  ;;  %v10951_v11 = vld [vmem:[%s18719_s2 + $0x4c] sm:$0xf0]  ;;  %v10949_v57 = vld [vmem:[%s18719_s2 + $0x44] sm:$0xf]  ;;  %v8967_v24 = vor.u32 %v10954_v21, %v8964_v5 }
 0x263   : > { %2506 = vmatpush.bf16.msra.mxu0 %v8971_v13  ;;  %v8940_v25 = vld [vmem:[%s18719_s2 + $0x50] sm:$0xf0]  ;;  %v8946_v49 = vld [vmem:[%s18719_s2 + $0x48] sm:$0xf]  ;;  %v10952_v42 = vld [vmem:[%s18719_s2 + $0x54] sm:$0xf0]  ;;  %v8939_v48 = vor.u32 %v10951_v11, %v8938_v58 }
 0x264   : > { %v2139_v14 = vadd.f32 %v13509_v36, %v2138_v10  ;;  %2518 = vmatpush.bf16.msra.mxu1 %v8991_v31  ;;  %v8955_v31 = vor.u32 %v10955_v0, %v8954_v34  ;;  %v10950_v44 = vld [vmem:[%s18719_s2 + $0x4c] sm:$0xf]  ;;  %vm18927_vm0 = vcmask 516096   ;;  %vm18928_vm6 = vcmask 1040896   ;;  %v10945_v0 = vld [vmem:[%s18719_s2 + $0x24] sm:$0xf] }
 0x265   : > { %2532 = vmatpush.bf16.msra.mxu2 %v8979_v51  ;;  %vm18929_vm13 = vmmov %vm18927_vm0  ;;  %v8943_v34 = vor.u32 %v10949_v57, %v8940_v25  ;;  %v8947_v51 = vor.u32 %v10952_v42, %v8946_v49  ;;  %v8906_v21 = vld [vmem:[%s18719_s2] sm:$0xf]  ;;  %v10943_v5 = vld [vmem:[%s18719_s2 + $0xc] sm:$0xf0] }
 0x266   : > { %v2143_v9 = vsel %vm13591_vm12, %v13509_v36, %v2139_v14  ;;  %2544 = vmatpush.bf16.msra.mxu3 %v8999_v62  ;;  %v8956_v36 = vld [vmem:[%s18719_s2 + $0x70] sm:$0xf0]  ;;  %v8963_v62 = vor.u32 %v10956_v4, %v8962_v35  ;;  %v8948_v14 = vld [vmem:[%s18719_s2 + $0x58] sm:$0xf0]  ;;  %vm18930_vm7 = vmmov %vm18927_vm0 }
 0x267   : > { %v2148_v23 = vsel %vm13595_vm14, %v2147_v59, %v2143_v9  ;;  %v8959_v19 = vor.u32 %v10953_v47, %v8956_v36  ;;  %2507 = vmatpush.bf16.msra.mxu0 %v8955_v31  ;;  %v8922_v9 = vld [vmem:[%s18719_s2 + $0x20] sm:$0xf]  ;;  %v8924_v47 = vld [vmem:[%s18719_s2 + $0x30] sm:$0xf0]  ;;  %vm18931_vm8 = vmmov %vm18927_vm0 }
 0x268   : > { %v11474_v2 = vpop.eup %11473  ;;  %2519 = vmatpush.bf16.msra.mxu1 %v8975_v15  ;;  %v10947_v15 = vld [vmem:[%s18719_s2 + $0x2c] sm:$0xf0]  ;;  %v8930_v36 = vld [vmem:[%s18719_s2 + $0x28] sm:$0xf]  ;;  %v10948_v35 = vld [vmem:[%s18719_s2 + $0x34] sm:$0xf0]  ;;  %v8927_v58 = vor.u32 %v10945_v0, %v8924_v47 }
 0x269   : > { %v13637_v10 = vmul.f32 %v11474_v2, %v2148_v23  ;;  %2533 = vmatpush.bf16.msra.mxu2 %v8963_v62  ;;  %vm18932_vm15 = vmmov %vm18927_vm0  ;;  %v10946_v4 = vld [vmem:[%s18719_s2 + $0x2c] sm:$0xf]  ;;  %v8932_v2 = vld [vmem:[%s18719_s2 + $0x38] sm:$0xf0]  ;;  %v8923_v23 = vor.u32 %v10947_v15, %v8922_v9  ;;  %v8931_v57 = vor.u32 %v10948_v35, %v8930_v36 }
 0x26a   : > { %2545 = vmatpush.bf16.msra.mxu3 %v8983_v32  ;;  %v8951_v32 = vor.u32 %v10950_v44, %v8948_v14  ;;  %vm18933_vm12 = vmmov %vm18927_vm0  ;;  %v10941_v31 = vld [vmem:[%s18719_s2 + $0x4] sm:$0xf]  ;;  %v8908_v11 = vld [vmem:[%s18719_s2 + $0x10] sm:$0xf0]  ;;  %v8935_v25 = vor.u32 %v10946_v4, %v8932_v2  ;;  %v8907_v44 = vor.u32 %v10943_v5, %v8906_v21  ;;  %v2308_v5 = vsel %vm12631_vm11, %v13000_v50, %v13003_v30 }
 0x26b   : > { %v2156_v1 = vrot.slane %v13637_v10, 1  ;;  %v2157_v27 = vrot.slane %v13637_v10, 2  ;;  %v2158_v56 = vrot.slane %v13637_v10, 3  ;;  %2170 = vst.msk [vmem:[#allocation2 + $0x2] sm:$0x1] %vm18927_vm0, %v13637_v10  ;;  %v2159_v52 = vrot.slane %v13637_v10, 4  ;;  %2508 = vmatpush.bf16.msra.mxu0 %v8939_v48  ;;  %vm18934_vm14 = vmmov %vm18927_vm0 }
 0x26c   : > { %v2160_v59 = vrot.slane %v13637_v10, 5  ;;  %v2161_v13 = vrot.slane %v13637_v10, 6  ;;  %v2162_v54 = vrot.slane %v13637_v10, 7  ;;  %2178 = vst.msk [vmem:[#allocation2 + $0x5] sm:$0x1] %vm18928_vm6, %v13637_v10  ;;  %2520 = vmatpush.bf16.msra.mxu1 %v8959_v19  ;;  %v8911_v14 = vor.u32 %v10941_v31, %v8908_v11 }
 0x26d   : > { %2171 = vst.msk [vmem:[#allocation2 + $0xa] sm:$0x1] %vm18929_vm13, %v2156_v1  ;;  %2534 = vmatpush.bf16.msra.mxu2 %v8947_v51  ;;  %v8914_v19 = vld [vmem:[%s18719_s2 + $0x8] sm:$0xf]  ;;  %v10944_v62 = vld [vmem:[%s18719_s2 + $0x14] sm:$0xf0]  ;;  %vm18935_vm13 = vmmov %vm18928_vm6  ;;  %v2310_v48 = vpack.c.bf16 %v13637_v10, %v13637_v10  ;;  %v2307_v10 = vsel %vm12301_vm9, %v12959_v12, %v12962_v29 }
 0x26e   : > { %2172 = vst.msk [vmem:[#allocation2 + $0x12] sm:$0x1] %vm18930_vm7, %v2157_v27  ;;  %2546 = vmatpush.bf16.msra.mxu3 %v8967_v24  ;;  %v10942_v49 = vld [vmem:[%s18719_s2 + $0xc] sm:$0xf]  ;;  %v8916_v42 = vld [vmem:[%s18719_s2 + $0x18] sm:$0xf0]  ;;  %vm18936_vm7 = vmmov %vm18928_vm6 }
 0x26f   : > { %2173 = vst.msk [vmem:[#allocation2 + $0x1a] sm:$0x1] %vm18931_vm8, %v2158_v56  ;;  %2509 = vmatpush.bf16.msra.mxu0 %v8923_v23  ;;  %vm18937_vm8 = vmmov %vm18928_vm6  ;;  %v8919_v24 = vor.u32 %v10942_v49, %v8916_v42 }
 0x270   : > { %2174 = vst.msk [vmem:[#allocation2 + $0x22] sm:$0x1] %vm18932_vm15, %v2159_v52  ;;  %2521 = vmatpush.bf16.msra.mxu1 %v8943_v34  ;;  %vm18938_vm15 = vmmov %vm18928_vm6  ;;  %v2309_v34 = vsel %vm12403_vm10, %v13006_v22, %v13029_v16 }
 0x271   : > { %2175 = vst.msk [vmem:[#allocation2 + $0x2a] sm:$0x1] %vm18933_vm12, %v2160_v59  ;;  %2535 = vmatpush.bf16.msra.mxu2 %v8931_v57  ;;  %vm18939_vm12 = vmmov %vm18928_vm6 }
 0x272   : > { %2176 = vst.msk [vmem:[#allocation2 + $0x32] sm:$0x1] %vm18934_vm14, %v2161_v13  ;;  %2547 = vmatpush.bf16.msra.mxu3 %v8951_v32  ;;  %vm18940_vm14 = vmmov %vm18928_vm6 }
 0x273   : > { %2177 = vst.msk [vmem:[#allocation2 + $0x3a] sm:$0x1] %vm18927_vm0, %v2162_v54  ;;  %2510 = vmatpush.bf16.msra.mxu0 %v8907_v44  ;;  %vm18941_vm0 = vcmp.lt.s32.totalorder %v12164_v40, 64 }
 0x274   : > { %2179 = vst.msk [vmem:[#allocation2 + $0xd] sm:$0x1] %vm18928_vm6, %v2156_v1  ;;  %2522 = vmatpush.bf16.msra.mxu1 %v8927_v58  ;;  %v8915_v1 = vor.u32 %v10944_v62, %v8914_v19 }
 0x275   : > { %2180 = vst.msk [vmem:[#allocation2 + $0x15] sm:$0x1] %vm18935_vm13, %v2157_v27  ;;  %v2306_v27 = vsel %vm18941_vm0, %v12933_v41, %v12948_v38 }
 0x276   : > { %2181 = vst.msk [vmem:[#allocation2 + $0x1d] sm:$0x1] %vm18936_vm7, %v2158_v56  ;;  %2548 = vmatpush.bf16.msra.mxu3 %v8935_v25  ;;  %2536 = vmatpush.bf16.msra.mxu2 %v8915_v1 }
 0x277   : > { %2182 = vst.msk [vmem:[#allocation2 + $0x25] sm:$0x1] %vm18937_vm8, %v2159_v52  ;;  %2511 = vmatmul.bf16.vlgmr.msra.gmra.mxu0 %v2310_v48 }
 0x278   : > { %2183 = vst.msk [vmem:[#allocation2 + $0x2d] sm:$0x1] %vm18938_vm15, %v2160_v59  ;;  %2523 = vmatpush.bf16.msra.mxu1 %v8911_v14 }
 0x279   : > { %2184 = vst.msk [vmem:[#allocation2 + $0x35] sm:$0x1] %vm18939_vm12, %v2161_v13  ;;  %2537 = vmatmul.bf16.vlgmr.msra.gmra.mxu2 %v2310_v48 }
 0x27a   : > { %2185 = vst.msk [vmem:[#allocation2 + $0x3d] sm:$0x1] %vm18940_vm14, %v2162_v54  ;;  %2549 = vmatpush.bf16.msra.mxu3 %v8919_v24 }
 0x27b   : > { %2524 = vmatmul.bf16.vlgmr.msra.gmra.mxu1 %v2310_v48 }
 0x27d   : > { %2550 = vmatmul.bf16.vlgmr.msra.gmra.mxu3 %v2310_v48 }
 0x2f4   : > { %v2512_v56 = vpop.f32.mrf.mxu0 }
 0x2f5   : > { %v2555_v52 = vadd.f32 %v2512_v56, %v2306_v27  ;;  %v9135_v56 = vld [vmem:[%s18719_s2 + $0xd0] sm:$0xf0] }
 0x2f7   : > { %v9032_v54 = vmul.f32 -1.442695, %v2555_v52  ;;  %v9141_v52 = vld [vmem:[%s18719_s2 + $0xc8] sm:$0xf] }
 0x2f8   : > { %v2525_v59 = vpop.f32.mrf.mxu1 }
 0x2f9   : > { %v2556_v13 = vadd.f32 %v2525_v59, %v2307_v10  ;;  %11475 = vpow2.f32 %v9032_v54  ;;  %v9143_v54 = vld [vmem:[%s18719_s2 + $0xd8] sm:$0xf0] }
 0x2fb   : > { %v9033_v9 = vmul.f32 -1.442695, %v2556_v13 }
 0x2fc   : > { %v2538_v15 = vpop.f32.mrf.mxu2  ;;  %v2514_v0 = vpop.f32.mrf.mxu0 }
 0x2fd   : > { %11477 = vpow2.f32 %v9033_v9  ;;  %v2557_v31 = vadd.f32 %v2538_v15, %v2308_v5  ;;  %v11003_v0 = vld [vmem:[%s18719_s2 + $0xec] sm:$0xf0] }
 0x2ff   : > { %v11476_v51 = vpop.eup %11475 }
 0x300   : > { %v2551_v41 = vpop.f32.mrf.mxu3  ;;  %v2527_v47 = vpop.f32.mrf.mxu1  ;;  %v2562_v35 = vadd.f32 1.0, %v11476_v51 }
 0x301   : > { %v2558_v38 = vadd.f32 %v2551_v41, %v2309_v34  ;;  %v11001_v47 = vld [vmem:[%s18719_s2 + $0xe4] sm:$0xf] }
 0x302   : > { %v2572_v19 = vand.u32 2147483647, %v2562_v35  ;;  %v2574_v42 = vand.u32 2147483648, %v2562_v35  ;;  %vm2568_vm8 = vweird.f32 %v2562_v35 }
 0x303   : > { %v9034_v32 = vmul.f32 -1.442695, %v2558_v38  ;;  %v11478_v36 = vpop.eup %11477  ;;  %v9149_v38 = vld [vmem:[%s18719_s2 + $0xe0] sm:$0xf] }
 0x304   : > { %v2581_v4 = vadd.f32 1.0, %v11478_v36  ;;  %v2540_v2 = vpop.f32.mrf.mxu2  ;;  %vm13758_vm12 = vcmp.eq.f32.partialorder %v2572_v19, 8.507059e+37  ;;  %v2575_v10 = vor.u32 1.1754944e-38, %v2574_v42  ;;  %v9150_v36 = vor.u32 %v11003_v0, %v9149_v38  ;;  %v9159_v19 = vld [vmem:[%s18719_s2 + $0xf8] sm:$0xf0] }
 0x305   : > { %11479 = vpow2.f32 %v9034_v32  ;;  %v11004_v2 = vld [vmem:[%s18719_s2 + $0xf4] sm:$0xf0] }
 0x306   : > { %11481 = vrcp.f32 %v2562_v35  ;;  %v2593_v49 = vand.u32 2147483648, %v2581_v4  ;;  %v2591_v14 = vand.u32 2147483647, %v2581_v4  ;;  %vm2587_vm7 = vweird.f32 %v2581_v4  ;;  %2850 = vmatpush.bf16.msrb.mxu0 %v9150_v36 }
 0x307   : > { %11483 = vrcp.f32 %v2581_v4 }
 0x308   : > { %v2553_v23 = vpop.f32.mrf.mxu3  ;;  %v2594_v27 = vor.u32 1.1754944e-38, %v2593_v49  ;;  %vm13766_vm0 = vcmp.eq.f32.partialorder %v2591_v14, 8.507059e+37  ;;  %v9133_v14 = vld [vmem:[%s18719_s2 + $0xc0] sm:$0xf] }
 0x30b   : > { %v11480_v21 = vpop.eup %11479 }
 0x30c   : > { %v11482_v58 = vpop.eup %11481  ;;  %v13751_v11 = vadd.f32 1.0, %v11480_v21 }
 0x30d   : > { %v11484_v57 = vpop.eup %11483  ;;  %v2564_v25 = vmul.f32 %v11482_v58, %v2562_v35  ;;  %vm2569_vm6 = vweird.f32 %v11482_v58  ;;  %v9151_v35 = vld [vmem:[%s18719_s2 + $0xf0] sm:$0xf0] }
 0x30e   : > { %v2583_v62 = vmul.f32 %v11484_v57, %v2581_v4  ;;  %11485 = vrcp.f32 %v13751_v11  ;;  %vm2588_vm13 = vweird.f32 %v11484_v57  ;;  %vm13754_vm15 = vmor %vm2568_vm8, %vm2569_vm6  ;;  %v2611_v9 = vand.u32 2147483647, %v13751_v11  ;;  %v9157_v4 = vld [vmem:[%s18719_s2 + $0xe8] sm:$0xf] }
 0x30f   : > { %v2565_v44 = vsub.f32 1.0, %v2564_v25  ;;  %11487 = vtanh.f32 %v2557_v31  ;;  %vm13762_vm14 = vmor %vm2587_vm7, %vm2588_vm13  ;;  %v2613_v15 = vand.u32 2147483648, %v13751_v11  ;;  %vm2607_vm6 = vweird.f32 %v13751_v11  ;;  %v11002_v25 = vld [vmem:[%s18719_s2 + $0xec] sm:$0xf] }
 0x310   : > { %v2584_v1 = vsub.f32 1.0, %v2583_v62  ;;  %v9158_v31 = vor.u32 %v11004_v2, %v9157_v4  ;;  %v9119_v4 = vld [vmem:[%s18719_s2 + $0xb0] sm:$0xf0]  ;;  %v9125_v2 = vld [vmem:[%s18719_s2 + $0xa8] sm:$0xf]  ;;  %vm13898_vm8 = vcmp.eq.f32.partialorder %v2611_v9, 8.507059e+37 }
 0x311   : > { %v2566_v24 = vmul.f32 %v11482_v58, %v2565_v44  ;;  %v9162_v44 = vor.u32 %v11002_v25, %v9159_v19  ;;  %v9101_v25 = vld [vmem:[%s18719_s2 + $0x80] sm:$0xf] }
 0x312   : > { %v2585_v48 = vmul.f32 %v11484_v57, %v2584_v1  ;;  %v10999_v1 = vld [vmem:[%s18719_s2 + $0xcc] sm:$0xf0]  ;;  %2876 = vmatpush.bf16.msrb.mxu2 %v9158_v31  ;;  %v9127_v31 = vld [vmem:[%s18719_s2 + $0xb8] sm:$0xf0] }
 0x313   : > { %v2567_v13 = vadd.f32 %v11482_v58, %v2566_v24  ;;  %2889 = vmatpush.bf16.msrb.mxu3 %v9162_v44  ;;  %v9109_v44 = vld [vmem:[%s18719_s2 + $0x88] sm:$0xf] }
 0x314   : > { %v13772_v34 = vpop.eup %11485  ;;  %v2586_v41 = vadd.f32 %v11484_v57, %v2585_v48  ;;  %v9134_v48 = vor.u32 %v10999_v1, %v9133_v14  ;;  %v10992_v14 = vld [vmem:[%s18719_s2 + $0x94] sm:$0xf0]  ;;  %v10990_v1 = vld [vmem:[%s18719_s2 + $0x8c] sm:$0xf] }
 0x315   : > { %v2571_v51 = vsel %vm13754_vm15, %v11482_v58, %v2567_v13  ;;  %v2603_v32 = vmul.f32 %v13772_v34, %v13751_v11  ;;  %vm2608_vm13 = vweird.f32 %v13772_v34  ;;  %v11488_v23 = vpop.eup %11487  ;;  %v9154_v58 = vor.u32 %v11001_v47, %v9151_v35  ;;  %v10998_v13 = vld [vmem:[%s18719_s2 + $0xcc] sm:$0xf]  ;;  %v9117_v47 = vld [vmem:[%s18719_s2 + $0xa0] sm:$0xf]  ;;  %v10985_v11 = vld [vmem:[%s18719_s2 + $0x64] sm:$0xf] }
 0x316   : > { %v2576_v21 = vsel %vm13758_vm12, %v2575_v10, %v2571_v51  ;;  %v2590_v5 = vsel %vm13762_vm14, %v11484_v57, %v2586_v41  ;;  %vm13814_vm7 = vmor %vm2607_vm6, %vm2608_vm13  ;;  %v9146_v0 = vor.u32 %v10998_v13, %v9143_v54  ;;  %v10995_v51 = vld [vmem:[%s18719_s2 + $0xac] sm:$0xf0]  ;;  %2851 = vmatpush.bf16.msrb.mxu0 %v9134_v48  ;;  %v9085_v57 = vld [vmem:[%s18719_s2 + $0x60] sm:$0xf]  ;;  %v9110_v9 = vor.u32 %v10992_v14, %v9109_v44 }
 0x317   : > { %v2595_v62 = vsel %vm13766_vm0, %v2594_v27, %v2590_v5  ;;  %v2618_v49 = vmul.f32 %v11488_v23, %v2576_v21  ;;  %v2604_v42 = vsub.f32 1.0, %v2603_v32  ;;  %2863 = vmatpush.bf16.msrb.mxu1 %v9154_v58  ;;  %v10997_v27 = vld [vmem:[%s18719_s2 + $0xc4] sm:$0xf]  ;;  %v9118_v35 = vor.u32 %v10995_v51, %v9117_v47  ;;  %v10996_v23 = vld [vmem:[%s18719_s2 + $0xb4] sm:$0xf0] }
 0x318   : > { %v2617_v24 = vmul.f32 %v2595_v62, %v13539_v37  ;;  %v9138_v59 = vor.u32 %v10997_v27, %v9135_v56  ;;  %v11000_v37 = vld [vmem:[%s18719_s2 + $0xd4] sm:$0xf0]  ;;  %v10993_v32 = vld [vmem:[%s18719_s2 + $0xa4] sm:$0xf]  ;;  %v9126_v5 = vor.u32 %v10996_v23, %v9125_v2  ;;  %v10994_v58 = vld [vmem:[%s18719_s2 + $0xac] sm:$0xf]  ;;  %2890 = vmatpush.bf16.msrb.mxu3 %v9146_v0 }
 0x319   : > { %v2605_v10 = vmul.f32 %v13772_v34, %v2604_v42  ;;  %v9142_v38 = vor.u32 %v11000_v37, %v9141_v52  ;;  %v9122_v21 = vor.u32 %v10993_v32, %v9119_v4  ;;  %v9130_v19 = vor.u32 %v10994_v58, %v9127_v31  ;;  %v10991_v62 = vld [vmem:[%s18719_s2 + $0x8c] sm:$0xf0]  ;;  %v9103_v42 = vld [vmem:[%s18719_s2 + $0x90] sm:$0xf0]  ;;  %v9111_v52 = vld [vmem:[%s18719_s2 + $0x98] sm:$0xf0] }
 0x31a   : > { %v13844_v41 = vadd.f32 %v2618_v49, %v2617_v24  ;;  %v10989_v49 = vld [vmem:[%s18719_s2 + $0x84] sm:$0xf]  ;;  %v2614_v27 = vor.u32 1.1754944e-38, %v2613_v15  ;;  %2852 = vmatpush.bf16.msrb.mxu0 %v9118_v35  ;;  %v9102_v56 = vor.u32 %v10991_v62, %v9101_v25  ;;  %v9087_v15 = vld [vmem:[%s18719_s2 + $0x70] sm:$0xf0]  ;;  %vm18954_vm15 = vcmask 516096  }
 0x31b   : > { %v2606_v36 = vadd.f32 %v13772_v34, %v2605_v10  ;;  %2864 = vmatpush.bf16.msrb.mxu1 %v9138_v59  ;;  %2877 = vmatpush.bf16.msrb.mxu2 %v9142_v38  ;;  %v10987_v10 = vld [vmem:[%s18719_s2 + $0x6c] sm:$0xf0]  ;;  %v9114_v59 = vor.u32 %v10990_v1, %v9111_v52  ;;  %v9093_v37 = vld [vmem:[%s18719_s2 + $0x68] sm:$0xf]  ;;  %v10988_v13 = vld [vmem:[%s18719_s2 + $0x74] sm:$0xf0] }
 0x31c   : > { %11489 = vtanh.f32 %v13844_v41  ;;  %2891 = vmatpush.bf16.msrb.mxu3 %v9130_v19  ;;  %v10986_v54 = vld [vmem:[%s18719_s2 + $0x6c] sm:$0xf]  ;;  %v9095_v47 = vld [vmem:[%s18719_s2 + $0x78] sm:$0xf0]  ;;  %v9069_v51 = vld [vmem:[%s18719_s2 + $0x40] sm:$0xf]  ;;  %v9086_v35 = vor.u32 %v10987_v10, %v9085_v57 }
 0x31d   : > { %v2610_v24 = vsel %vm13814_vm7, %v13772_v34, %v2606_v36  ;;  %v9106_v34 = vor.u32 %v10989_v49, %v9103_v42  ;;  %v10983_v32 = vld [vmem:[%s18719_s2 + $0x4c] sm:$0xf0]  ;;  %v10981_v4 = vld [vmem:[%s18719_s2 + $0x44] sm:$0xf]  ;;  %v9071_v2 = vld [vmem:[%s18719_s2 + $0x50] sm:$0xf0]  ;;  %v9098_v42 = vor.u32 %v10986_v54, %v9095_v47 }
 0x31e   : > { %v2615_v0 = vsel %vm13898_vm8, %v2614_v27, %v2610_v24  ;;  %2853 = vmatpush.bf16.msrb.mxu0 %v9102_v56  ;;  %v9077_v23 = vld [vmem:[%s18719_s2 + $0x48] sm:$0xf]  ;;  %v10984_v58 = vld [vmem:[%s18719_s2 + $0x54] sm:$0xf0]  ;;  %v10982_v31 = vld [vmem:[%s18719_s2 + $0x4c] sm:$0xf]  ;;  %v9070_v27 = vor.u32 %v10983_v32, %v9069_v51  ;;  %v9074_v52 = vor.u32 %v10981_v4, %v9071_v2 }
 0x31f   : > { %2865 = vmatpush.bf16.msrb.mxu1 %v9122_v21  ;;  %2878 = vmatpush.bf16.msrb.mxu2 %v9126_v5  ;;  %v9090_v21 = vor.u32 %v10985_v11, %v9087_v15  ;;  %v9094_v5 = vor.u32 %v10988_v13, %v9093_v37  ;;  %v9079_v25 = vld [vmem:[%s18719_s2 + $0x58] sm:$0xf0]  ;;  %vm18955_vm12 = vcmask 1040896   ;;  %v9053_v1 = vld [vmem:[%s18719_s2 + $0x20] sm:$0xf]  ;;  %vm18956_vm14 = vmmov %vm18954_vm15  ;;  %v9078_v57 = vor.u32 %v10984_v58, %v9077_v23 }
 0x320   : > { %2892 = vmatpush.bf16.msrb.mxu3 %v9114_v59  ;;  %v10979_v56 = vld [vmem:[%s18719_s2 + $0x2c] sm:$0xf0]  ;;  %vm18957_vm0 = vmmov %vm18956_vm14  ;;  %v9082_v10 = vor.u32 %v10982_v31, %v9079_v25  ;;  %v9061_v11 = vld [vmem:[%s18719_s2 + $0x28] sm:$0xf] }
 0x321   : > { %vm18958_vm6 = vmmov %vm18957_vm0  ;;  %v10980_v15 = vld [vmem:[%s18719_s2 + $0x34] sm:$0xf0]  ;;  %v10978_v59 = vld [vmem:[%s18719_s2 + $0x2c] sm:$0xf]  ;;  %v9054_v13 = vor.u32 %v10979_v56, %v9053_v1  ;;  %v18970_v56 = vsel %vm12403_vm10, %v13029_v16, %v13006_v22 }
 0x322   : > { %v11490_v38 = vpop.eup %11489  ;;  %2854 = vmatpush.bf16.msrb.mxu0 %v9086_v35  ;;  %vm18959_vm13 = vmmov %vm18957_vm0  ;;  %v9063_v37 = vld [vmem:[%s18719_s2 + $0x38] sm:$0xf0]  ;;  %v9037_v54 = vld [vmem:[%s18719_s2] sm:$0xf]  ;;  %v9062_v47 = vor.u32 %v10980_v15, %v9061_v11 }
 0x323   : > { %v13939_v36 = vmul.f32 %v11490_v38, %v2615_v0  ;;  %2866 = vmatpush.bf16.msrb.mxu1 %v9106_v34  ;;  %2879 = vmatpush.bf16.msrb.mxu2 %v9110_v9  ;;  %v10977_v34 = vld [vmem:[%s18719_s2 + $0x24] sm:$0xf]  ;;  %v9055_v9 = vld [vmem:[%s18719_s2 + $0x30] sm:$0xf0]  ;;  %vm18960_vm7 = vmmov %vm18957_vm0  ;;  %v9066_v35 = vor.u32 %v10978_v59, %v9063_v37  ;;  %v18971_v37 = vsel %vm12631_vm11, %v13003_v30, %v13000_v50 }
 0x324   : > { %2893 = vmatpush.bf16.msrb.mxu3 %v9098_v42  ;;  %v10975_v38 = vld [vmem:[%s18719_s2 + $0xc] sm:$0xf0]  ;;  %vm18961_vm8 = vmmov %vm18957_vm0  ;;  %v9058_v0 = vor.u32 %v10977_v34, %v9055_v9  ;;  %v10973_v51 = vld [vmem:[%s18719_s2 + $0x4] sm:$0xf] }
 0x325   : > { %v2623_v19 = vrot.slane %v13939_v36, 1  ;;  %v2624_v62 = vrot.slane %v13939_v36, 2  ;;  %v2625_v49 = vrot.slane %v13939_v36, 3  ;;  %2637 = vst.msk [vmem:[#allocation2 + $0x3] sm:$0x1] %vm18954_vm15, %v13939_v36  ;;  %v2626_v44 = vrot.slane %v13939_v36, 4  ;;  %vm18962_vm15 = vmmov %vm18957_vm0 }
 0x326   : > { %v2627_v14 = vrot.slane %v13939_v36, 5  ;;  %2645 = vst.msk [vmem:[#allocation2 + $0x4] sm:$0x1] %vm18955_vm12, %v13939_v36  ;;  %v2628_v24 = vrot.slane %v13939_v36, 6  ;;  %v2629_v48 = vrot.slane %v13939_v36, 7  ;;  %2855 = vmatpush.bf16.msrb.mxu0 %v9070_v27 }
 0x327   : > { %2638 = vst.msk [vmem:[#allocation2 + $0xb] sm:$0x1] %vm18956_vm14, %v2623_v19  ;;  %2867 = vmatpush.bf16.msrb.mxu1 %v9090_v21  ;;  %2880 = vmatpush.bf16.msrb.mxu2 %v9094_v5  ;;  %v9039_v32 = vld [vmem:[%s18719_s2 + $0x10] sm:$0xf0]  ;;  %v9045_v4 = vld [vmem:[%s18719_s2 + $0x8] sm:$0xf]  ;;  %vm18963_vm14 = vmmov %vm18955_vm12  ;;  %v9038_v5 = vor.u32 %v10975_v38, %v9037_v54 }
 0x328   : > { %2639 = vst.msk [vmem:[#allocation2 + $0x13] sm:$0x1] %vm18957_vm0, %v2624_v62  ;;  %2894 = vmatpush.bf16.msrb.mxu3 %v9082_v10  ;;  %v10976_v2 = vld [vmem:[%s18719_s2 + $0x14] sm:$0xf0]  ;;  %v10974_v23 = vld [vmem:[%s18719_s2 + $0xc] sm:$0xf]  ;;  %vm18964_vm0 = vmmov %vm18955_vm12  ;;  %v9042_v58 = vor.u32 %v10973_v51, %v9039_v32 }
 0x329   : > { %2640 = vst.msk [vmem:[#allocation2 + $0x1b] sm:$0x1] %vm18958_vm6, %v2625_v49  ;;  %v9047_v21 = vld [vmem:[%s18719_s2 + $0x18] sm:$0xf0]  ;;  %v9046_v31 = vor.u32 %v10976_v2, %v9045_v4  ;;  %vm18965_vm6 = vmmov %vm18964_vm0 }
 0x32a   : > { %2641 = vst.msk [vmem:[#allocation2 + $0x23] sm:$0x1] %vm18959_vm13, %v2626_v44  ;;  %2856 = vmatpush.bf16.msrb.mxu0 %v9054_v13  ;;  %v9050_v25 = vor.u32 %v10974_v23, %v9047_v21  ;;  %vm18966_vm13 = vmmov %vm18964_vm0 }
 0x32b   : > { %2642 = vst.msk [vmem:[#allocation2 + $0x2b] sm:$0x1] %vm18960_vm7, %v2627_v14  ;;  %2868 = vmatpush.bf16.msrb.mxu1 %v9074_v52  ;;  %2881 = vmatpush.bf16.msrb.mxu2 %v9078_v57  ;;  %vm18967_vm7 = vmmov %vm18964_vm0 }
 0x32c   : > { %2643 = vst.msk [vmem:[#allocation2 + $0x33] sm:$0x1] %vm18961_vm8, %v2628_v24  ;;  %2895 = vmatpush.bf16.msrb.mxu3 %v9066_v35  ;;  %vm18968_vm8 = vmmov %vm18964_vm0 }
 0x32d   : > { %2644 = vst.msk [vmem:[#allocation2 + $0x3b] sm:$0x1] %vm18962_vm15, %v2629_v48 }
 0x32e   : > { %2646 = vst.msk [vmem:[#allocation2 + $0xc] sm:$0x1] %vm18955_vm12, %v2623_v19  ;;  %v2657_v19 = vpack.c.bf16 %v13939_v36, %v13939_v36  ;;  %2857 = vmatpush.bf16.msrb.mxu0 %v9038_v5  ;;  %v18969_v36 = vsel %vm12301_vm9, %v12962_v29, %v12959_v12 }
 0x32f   : > { %2647 = vst.msk [vmem:[#allocation2 + $0x14] sm:$0x1] %vm18963_vm14, %v2624_v62  ;;  %2869 = vmatpush.bf16.msrb.mxu1 %v9058_v0  ;;  %2882 = vmatpush.bf16.msrb.mxu2 %v9062_v47 }
 0x330   : > { %2648 = vst.msk [vmem:[#allocation2 + $0x1c] sm:$0x1] %vm18964_vm0, %v2625_v49  ;;  %2896 = vmatpush.bf16.msrb.mxu3 %v9050_v25 }
 0x331   : > { %2649 = vst.msk [vmem:[#allocation2 + $0x24] sm:$0x1] %vm18965_vm6, %v2626_v44  ;;  %2858 = vmatmul.bf16.vlgmr.msrb.gmra.mxu0 %v2657_v19 }
 0x332   : > { %2650 = vst.msk [vmem:[#allocation2 + $0x2c] sm:$0x1] %vm18966_vm13, %v2627_v14 }
 0x333   : > { %2651 = vst.msk [vmem:[#allocation2 + $0x34] sm:$0x1] %vm18967_vm7, %v2628_v24  ;;  %2870 = vmatpush.bf16.msrb.mxu1 %v9042_v58  ;;  %2883 = vmatpush.bf16.msrb.mxu2 %v9046_v31  ;;  %v11027_v58 = vld [vmem:[%s18719_s2 + $0xac] sm:$0xf0] }
 0x334   : > { %2652 = vst.msk [vmem:[#allocation2 + $0x3c] sm:$0x1] %vm18968_vm8, %v2629_v48  ;;  %2897 = vmatmul.bf16.vlgmr.msrb.gmra.mxu3 %v2657_v19 }
 0x336   : > { %2871 = vmatmul.bf16.vlgmr.msrb.gmra.mxu1 %v2657_v19  ;;  %2884 = vmatmul.bf16.vlgmr.msrb.gmra.mxu2 %v2657_v19 }
 0x3ae   : > { %v2859_v62 = vpop.f32.mrf.mxu0 }
 0x3af   : > { %v2902_v49 = vadd.f32 %v2859_v62, %v12977_v7 }
 0x3b1   : > { %v9163_v14 = vmul.f32 -1.442695, %v2902_v49 }
 0x3b3   : > { %v2872_v42 = vpop.f32.mrf.mxu1  ;;  %11491 = vpow2.f32 %v9163_v14  ;;  %v11033_v14 = vld [vmem:[%s18719_s2 + $0xe4] sm:$0xf] }
 0x3b4   : > { %v2903_v44 = vadd.f32 %v2872_v42, %v18969_v36  ;;  %v9280_v36 = vld [vmem:[%s18719_s2 + $0xe0] sm:$0xf] }
 0x3b6   : > { %v9164_v1 = vmul.f32 -1.442695, %v2903_v44  ;;  %v2861_v27 = vpop.f32.mrf.mxu0  ;;  %v11035_v44 = vld [vmem:[%s18719_s2 + $0xec] sm:$0xf0] }
 0x3b7   : > { %v2898_v48 = vpop.f32.mrf.mxu3  ;;  %v9282_v27 = vld [vmem:[%s18719_s2 + $0xf0] sm:$0xf0] }
 0x3b8   : > { %11493 = vpow2.f32 %v9164_v1  ;;  %v2905_v7 = vadd.f32 %v2898_v48, %v18970_v56  ;;  %v9281_v48 = vor.u32 %v11035_v44, %v9280_v36  ;;  %v9288_v56 = vld [vmem:[%s18719_s2 + $0xe8] sm:$0xf]  ;;  %v9250_v36 = vld [vmem:[%s18719_s2 + $0xb0] sm:$0xf0] }
 0x3b9   : > { %v2885_v24 = vpop.f32.mrf.mxu2  ;;  %v11492_v57 = vpop.eup %11491  ;;  %v9256_v44 = vld [vmem:[%s18719_s2 + $0xa8] sm:$0xf] }
 0x3ba   : > { %v9165_v34 = vmul.f32 -1.442695, %v2905_v7  ;;  %v2909_v10 = vadd.f32 1.0, %v11492_v57  ;;  %v2904_v22 = vadd.f32 %v2885_v24, %v18971_v37  ;;  %v11036_v7 = vld [vmem:[%s18719_s2 + $0xf4] sm:$0xf0]  ;;  %3197 = vmatpush.bf16.msra.mxu0 %v9281_v48 }
 0x3bb   : > { %v2874_v52 = vpop.f32.mrf.mxu1  ;;  %v11026_v48 = vld [vmem:[%s18719_s2 + $0xac] sm:$0xf]  ;;  %v9216_v37 = vld [vmem:[%s18719_s2 + $0x60] sm:$0xf] }
 0x3bc   : > { %11495 = vpow2.f32 %v9165_v34  ;;  %v2919_v38 = vand.u32 2147483647, %v2909_v10  ;;  %v2921_v51 = vand.u32 2147483648, %v2909_v10  ;;  %vm2915_vm0 = vweird.f32 %v2909_v10 }
 0x3bd   : > { %11497 = vrcp.f32 %v2909_v10 }
 0x3be   : > { %v11494_v9 = vpop.eup %11493  ;;  %vm14057_vm13 = vcmp.eq.f32.partialorder %v2919_v38, 8.507059e+37  ;;  %v2922_v5 = vor.u32 1.1754944e-38, %v2921_v51  ;;  %v9266_v51 = vld [vmem:[%s18719_s2 + $0xd0] sm:$0xf0] }
 0x3bf   : > { %v2928_v12 = vadd.f32 1.0, %v11494_v9  ;;  %v2900_v11 = vpop.f32.mrf.mxu3  ;;  %v9285_v9 = vor.u32 %v11033_v14, %v9282_v27  ;;  %v11028_v14 = vld [vmem:[%s18719_s2 + $0xb4] sm:$0xf0]  ;;  %v9258_v27 = vld [vmem:[%s18719_s2 + $0xb8] sm:$0xf0] }
 0x3c1   : > { %11499 = vrcp.f32 %v2928_v12  ;;  %v2887_v29 = vpop.f32.mrf.mxu2  ;;  %v2940_v47 = vand.u32 2147483648, %v2928_v12  ;;  %v2938_v35 = vand.u32 2147483647, %v2928_v12  ;;  %vm2934_vm14 = vweird.f32 %v2928_v12  ;;  %3210 = vmatpush.bf16.msra.mxu1 %v9285_v9  ;;  %v9240_v9 = vld [vmem:[%s18719_s2 + $0x88] sm:$0xf] }
 0x3c2   : > { %v11496_v15 = vpop.eup %11495  ;;  %v9290_v29 = vld [vmem:[%s18719_s2 + $0xf8] sm:$0xf0] }
 0x3c3   : > { %v11498_v59 = vpop.eup %11497  ;;  %v14050_v16 = vadd.f32 1.0, %v11496_v15  ;;  %v2941_v30 = vor.u32 1.1754944e-38, %v2940_v47  ;;  %vm14065_vm8 = vcmp.eq.f32.partialorder %v2938_v35, 8.507059e+37  ;;  %v11029_v47 = vld [vmem:[%s18719_s2 + $0xc4] sm:$0xf] }
 0x3c4   : > { %v2911_v54 = vmul.f32 %v11498_v59, %v2909_v10  ;;  %vm2916_vm15 = vweird.f32 %v11498_v59  ;;  %v9289_v10 = vor.u32 %v11036_v7, %v9288_v56  ;;  %v9232_v56 = vld [vmem:[%s18719_s2 + $0x80] sm:$0xf]  ;;  %v9261_v7 = vor.u32 %v11026_v48, %v9258_v27 }
 0x3c5   : > { %11501 = vrcp.f32 %v14050_v16  ;;  %vm14053_vm6 = vmor %vm2915_vm0, %vm2916_vm15  ;;  %v2958_v19 = vand.u32 2147483647, %v14050_v16  ;;  %v2960_v62 = vand.u32 2147483648, %v14050_v16  ;;  %vm2954_vm15 = vweird.f32 %v14050_v16 }
 0x3c6   : > { %v2912_v32 = vsub.f32 1.0, %v2911_v54  ;;  %11503 = vtanh.f32 %v2904_v22  ;;  %v11031_v54 = vld [vmem:[%s18719_s2 + $0xcc] sm:$0xf0]  ;;  %3223 = vmatpush.bf16.msra.mxu2 %v9289_v10  ;;  %v11024_v10 = vld [vmem:[%s18719_s2 + $0x94] sm:$0xf0] }
 0x3c7   : > { %v11500_v13 = vpop.eup %11499  ;;  %vm14197_vm0 = vcmp.eq.f32.partialorder %v2958_v19, 8.507059e+37  ;;  %v9241_v19 = vor.u32 %v11024_v10, %v9240_v9 }
 0x3c8   : > { %v2930_v0 = vmul.f32 %v11500_v13, %v2928_v12  ;;  %vm2935_vm12 = vweird.f32 %v11500_v13  ;;  %v2913_v2 = vmul.f32 %v11498_v59, %v2912_v32  ;;  %v11034_v12 = vld [vmem:[%s18719_s2 + $0xec] sm:$0xf]  ;;  %v9272_v32 = vld [vmem:[%s18719_s2 + $0xc8] sm:$0xf] }
 0x3c9   : > { %vm14061_vm7 = vmor %vm2934_vm14, %vm2935_vm12  ;;  %v9293_v22 = vor.u32 %v11034_v12, %v9290_v29  ;;  %v11022_v12 = vld [vmem:[%s18719_s2 + $0x8c] sm:$0xf] }
 0x3ca   : > { %v2931_v4 = vsub.f32 1.0, %v2930_v0  ;;  %v2914_v31 = vadd.f32 %v11498_v59, %v2913_v2  ;;  %v11030_v2 = vld [vmem:[%s18719_s2 + $0xcc] sm:$0xf] }
 0x3cb   : > { %v14071_v49 = vpop.eup %11501  ;;  %3236 = vmatpush.bf16.msra.mxu3 %v9293_v22  ;;  %v9242_v22 = vld [vmem:[%s18719_s2 + $0x98] sm:$0xf0] }
 0x3cc   : > { %v2932_v50 = vmul.f32 %v11500_v13, %v2931_v4  ;;  %v2918_v1 = vsel %vm14053_vm6, %v11498_v59, %v2914_v31  ;;  %v2950_v24 = vmul.f32 %v14071_v49, %v14050_v16  ;;  %vm2955_vm12 = vweird.f32 %v14071_v49  ;;  %v11504_v52 = vpop.eup %11503  ;;  %v11025_v31 = vld [vmem:[%s18719_s2 + $0xa4] sm:$0xf] }
 0x3cd   : > { %v2923_v57 = vsel %vm14057_vm13, %v2922_v5, %v2918_v1  ;;  %vm14113_vm14 = vmor %vm2954_vm15, %vm2955_vm12  ;;  %v9269_v4 = vor.u32 %v11029_v47, %v9266_v51  ;;  %v9248_v5 = vld [vmem:[%s18719_s2 + $0xa0] sm:$0xf]  ;;  %v9253_v1 = vor.u32 %v11025_v31, %v9250_v36  ;;  %v11017_v16 = vld [vmem:[%s18719_s2 + $0x64] sm:$0xf]  ;;  %vm18984_vm6 = vcmask 516096  }
 0x3ce   : > { %v2933_v42 = vadd.f32 %v11500_v13, %v2932_v50  ;;  %v2965_v15 = vmul.f32 %v11504_v52, %v2923_v57  ;;  %v2951_v59 = vsub.f32 1.0, %v2950_v24  ;;  %v9274_v50 = vld [vmem:[%s18719_s2 + $0xd8] sm:$0xf0]  ;;  %v9257_v24 = vor.u32 %v11028_v14, %v9256_v44  ;;  %v11023_v52 = vld [vmem:[%s18719_s2 + $0x8c] sm:$0xf0]  ;;  %vm18988_vm15 = vmmov %vm18984_vm6 }
 0x3cf   : > { %v9277_v21 = vor.u32 %v11030_v2, %v9274_v50  ;;  %3211 = vmatpush.bf16.msra.mxu1 %v9269_v4  ;;  %v11021_v57 = vld [vmem:[%s18719_s2 + $0x84] sm:$0xf]  ;;  %v11018_v47 = vld [vmem:[%s18719_s2 + $0x6c] sm:$0xf]  ;;  %v9200_v4 = vld [vmem:[%s18719_s2 + $0x40] sm:$0xf] }
 0x3d0   : > { %v2937_v34 = vsel %vm14061_vm7, %v11500_v13, %v2933_v42  ;;  %v9264_v13 = vld [vmem:[%s18719_s2 + $0xc0] sm:$0xf]  ;;  %v2952_v35 = vmul.f32 %v14071_v49, %v2951_v59  ;;  %v9249_v42 = vor.u32 %v11027_v58, %v9248_v5  ;;  %v9233_v59 = vor.u32 %v11023_v52, %v9232_v56  ;;  %v9208_v5 = vld [vmem:[%s18719_s2 + $0x48] sm:$0xf]  ;;  %v9210_v36 = vld [vmem:[%s18719_s2 + $0x58] sm:$0xf0] }
 0x3d1   : > { %v2942_v11 = vsel %vm14065_vm8, %v2941_v30, %v2937_v34  ;;  %v9265_v0 = vor.u32 %v11031_v54, %v9264_v13  ;;  %3237 = vmatpush.bf16.msra.mxu3 %v9277_v21  ;;  %v9234_v34 = vld [vmem:[%s18719_s2 + $0x90] sm:$0xf0]  ;;  %v11019_v13 = vld [vmem:[%s18719_s2 + $0x6c] sm:$0xf0]  ;;  %v9245_v54 = vor.u32 %v11022_v12, %v9242_v22  ;;  %vm18985_vm13 = vcmask 1040896   ;;  %vm18986_vm7 = vmmov %vm18984_vm6 }
 0x3d2   : > { %v2964_v38 = vmul.f32 %v2942_v11, %v13844_v41  ;;  %v11032_v41 = vld [vmem:[%s18719_s2 + $0xd4] sm:$0xf0]  ;;  %v2953_v25 = vadd.f32 %v14071_v49, %v2952_v35  ;;  %v9226_v35 = vld [vmem:[%s18719_s2 + $0x78] sm:$0xf0]  ;;  %v9217_v50 = vor.u32 %v11019_v13, %v9216_v37  ;;  %v9202_v21 = vld [vmem:[%s18719_s2 + $0x50] sm:$0xf0] }
 0x3d3   : > { %v9273_v23 = vor.u32 %v11032_v41, %v9272_v32  ;;  %3198 = vmatpush.bf16.msra.mxu0 %v9265_v0  ;;  %3212 = vmatpush.bf16.msra.mxu1 %v9253_v1  ;;  %v11020_v0 = vld [vmem:[%s18719_s2 + $0x74] sm:$0xf0]  ;;  %v11015_v41 = vld [vmem:[%s18719_s2 + $0x4c] sm:$0xf0]  ;;  %v9184_v56 = vld [vmem:[%s18719_s2 + $0x20] sm:$0xf] }
 0x3d4   : > { %v14143_v30 = vadd.f32 %v2965_v15, %v2964_v38  ;;  %v2957_v29 = vsel %vm14113_vm14, %v14071_v49, %v2953_v25  ;;  %v2961_v15 = vor.u32 1.1754944e-38, %v2960_v62  ;;  %v9237_v49 = vor.u32 %v11021_v57, %v9234_v34  ;;  %v9218_v62 = vld [vmem:[%s18719_s2 + $0x70] sm:$0xf0]  ;;  %v9224_v38 = vld [vmem:[%s18719_s2 + $0x68] sm:$0xf]  ;;  %vm18987_vm8 = vmmov %vm18984_vm6 }
 0x3d5   : > { %3224 = vmatpush.bf16.msra.mxu2 %v9273_v23  ;;  %3238 = vmatpush.bf16.msra.mxu3 %v9261_v7  ;;  %v11013_v23 = vld [vmem:[%s18719_s2 + $0x44] sm:$0xf]  ;;  %v9221_v58 = vor.u32 %v11017_v16, %v9218_v62  ;;  %v9225_v31 = vor.u32 %v11020_v0, %v9224_v38  ;;  %v11016_v25 = vld [vmem:[%s18719_s2 + $0x54] sm:$0xf0]  ;;  %v9201_v57 = vor.u32 %v11015_v41, %v9200_v4  ;;  %v11011_v34 = vld [vmem:[%s18719_s2 + $0x2c] sm:$0xf0] }
 0x3d6   : > { %11505 = vtanh.f32 %v14143_v30  ;;  %v2962_v32 = vsel %vm14197_vm0, %v2961_v15, %v2957_v29  ;;  %v9205_v9 = vor.u32 %v11013_v23, %v9202_v21  ;;  %v9209_v10 = vor.u32 %v11016_v25, %v9208_v5  ;;  %v11009_v12 = vld [vmem:[%s18719_s2 + $0x24] sm:$0xf]  ;;  %v9186_v29 = vld [vmem:[%s18719_s2 + $0x30] sm:$0xf0]  ;;  %v9192_v15 = vld [vmem:[%s18719_s2 + $0x28] sm:$0xf] }
 0x3d7   : > { %3199 = vmatpush.bf16.msra.mxu0 %v9249_v42  ;;  %3213 = vmatpush.bf16.msra.mxu1 %v9237_v49  ;;  %v11014_v42 = vld [vmem:[%s18719_s2 + $0x4c] sm:$0xf]  ;;  %vm18989_vm12 = vmmov %vm18984_vm6  ;;  %v9194_v37 = vld [vmem:[%s18719_s2 + $0x38] sm:$0xf0]  ;;  %v9185_v49 = vor.u32 %v11011_v34, %v9184_v56  ;;  %v9189_v16 = vor.u32 %v11009_v12, %v9186_v29 }
 0x3d8   : > { %v9213_v11 = vor.u32 %v11014_v42, %v9210_v36  ;;  %v11010_v22 = vld [vmem:[%s18719_s2 + $0x2c] sm:$0xf]  ;;  %vm18990_vm14 = vmmov %vm18984_vm6  ;;  %v11007_v13 = vld [vmem:[%s18719_s2 + $0xc] sm:$0xf0] }
 0x3d9   : > { %3225 = vmatpush.bf16.msra.mxu2 %v9257_v24  ;;  %3239 = vmatpush.bf16.msra.mxu3 %v9245_v54  ;;  %v9229_v24 = vor.u32 %v11018_v47, %v9226_v35  ;;  %vm18991_vm0 = vmmov %vm18984_vm6  ;;  %v11005_v54 = vld [vmem:[%s18719_s2 + $0x4] sm:$0xf]  ;;  %v9170_v38 = vld [vmem:[%s18719_s2 + $0x10] sm:$0xf0]  ;;  %v9197_v0 = vor.u32 %v11010_v22, %v9194_v37 }
 0x3da   : > { %v9176_v47 = vld [vmem:[%s18719_s2 + $0x8] sm:$0xf]  ;;  %v9178_v35 = vld [vmem:[%s18719_s2 + $0x18] sm:$0xf0]  ;;  %v9173_v41 = vor.u32 %v11005_v54, %v9170_v38 }
 0x3db   : > { %3200 = vmatpush.bf16.msra.mxu0 %v9233_v59  ;;  %3214 = vmatpush.bf16.msra.mxu1 %v9221_v58  ;;  %v11012_v59 = vld [vmem:[%s18719_s2 + $0x34] sm:$0xf0] }
 0x3dc   : > { %v11506_v51 = vpop.eup %11505  ;;  %v9193_v62 = vor.u32 %v11012_v59, %v9192_v15 }
 0x3dd   : > { %v14238_v2 = vmul.f32 %v11506_v51, %v2962_v32  ;;  %3226 = vmatpush.bf16.msra.mxu2 %v9241_v19  ;;  %3240 = vmatpush.bf16.msra.mxu3 %v9229_v24  ;;  %v9168_v19 = vld [vmem:[%s18719_s2] sm:$0xf]  ;;  %v11008_v51 = vld [vmem:[%s18719_s2 + $0x14] sm:$0xf0]  ;;  %v11006_v32 = vld [vmem:[%s18719_s2 + $0xc] sm:$0xf]  ;;  %v19000_v24 = vsel %vm12403_vm10, %v13025_v39, %v13019_v55 }
 0x3de   : > { %v9169_v4 = vor.u32 %v11007_v13, %v9168_v19  ;;  %v9181_v23 = vor.u32 %v11006_v32, %v9178_v35 }
 0x3df   : > { %v2970_v44 = vrot.slane %v14238_v2, 1  ;;  %v2971_v14 = vrot.slane %v14238_v2, 2  ;;  %v2972_v1 = vrot.slane %v14238_v2, 3  ;;  %2984 = vst.msk [vmem:[#allocation2 + $0x4] sm:$0x1] %vm18984_vm6, %v14238_v2  ;;  %v2973_v48 = vrot.slane %v14238_v2, 4  ;;  %3201 = vmatpush.bf16.msra.mxu0 %v9217_v50  ;;  %3215 = vmatpush.bf16.msra.mxu1 %v9205_v9  ;;  %vm18992_vm6 = vmmov %vm18991_vm0 }
 0x3e0   : > { %v2974_v27 = vrot.slane %v14238_v2, 5  ;;  %2992 = vst.msk [vmem:[#allocation2 + $0x3] sm:$0x1] %vm18985_vm13, %v14238_v2  ;;  %v2975_v7 = vrot.slane %v14238_v2, 6  ;;  %v2976_v52 = vrot.slane %v14238_v2, 7  ;;  %v9177_v50 = vor.u32 %v11008_v51, %v9176_v47 }
 0x3e1   : > { %2985 = vst.msk [vmem:[#allocation2 + $0xc] sm:$0x1] %vm18986_vm7, %v2970_v44  ;;  %3227 = vmatpush.bf16.msra.mxu2 %v9225_v31  ;;  %3241 = vmatpush.bf16.msra.mxu3 %v9213_v11  ;;  %vm18993_vm7 = vmmov %vm18985_vm13  ;;  %v3004_v21 = vpack.c.bf16 %v14238_v2, %v14238_v2  ;;  %v18999_v2 = vsel %vm12301_vm9, %v12859_v63, %v12844_v18  ;;  %v11058_v47 = vld [vmem:[%s18719_s2 + $0xac] sm:$0xf] }
 0x3e2   : > { %2986 = vst.msk [vmem:[#allocation2 + $0x14] sm:$0x1] %vm18987_vm8, %v2971_v14  ;;  %vm18994_vm8 = vmmov %vm18993_vm7 }
 0x3e3   : > { %2987 = vst.msk [vmem:[#allocation2 + $0x1c] sm:$0x1] %vm18988_vm15, %v2972_v1  ;;  %3202 = vmatpush.bf16.msra.mxu0 %v9201_v57  ;;  %3216 = vmatpush.bf16.msra.mxu1 %v9189_v16  ;;  %vm18995_vm15 = vmmov %vm18993_vm7  ;;  %v9381_v16 = vld [vmem:[%s18719_s2 + $0xb0] sm:$0xf0] }
 0x3e4   : > { %2988 = vst.msk [vmem:[#allocation2 + $0x24] sm:$0x1] %vm18989_vm12, %v2973_v48  ;;  %vm18996_vm12 = vmmov %vm18993_vm7 }
 0x3e5   : > { %2989 = vst.msk [vmem:[#allocation2 + $0x2c] sm:$0x1] %vm18990_vm14, %v2974_v27  ;;  %3228 = vmatpush.bf16.msra.mxu2 %v9209_v10  ;;  %3242 = vmatpush.bf16.msra.mxu3 %v9197_v0  ;;  %vm18997_vm14 = vmmov %vm18993_vm7  ;;  %v19001_v10 = vsel %vm12631_vm11, %v12885_v43, %v12882_v53 }
 0x3e6   : > { %2990 = vst.msk [vmem:[#allocation2 + $0x34] sm:$0x1] %vm18991_vm0, %v2975_v7  ;;  %vm18998_vm0 = vmmov %vm18993_vm7 }
 0x3e7   : > { %2991 = vst.msk [vmem:[#allocation2 + $0x3c] sm:$0x1] %vm18992_vm6, %v2976_v52  ;;  %3203 = vmatpush.bf16.msra.mxu0 %v9185_v49  ;;  %3217 = vmatpush.bf16.msra.mxu1 %v9173_v41  ;;  %v9411_v41 = vld [vmem:[%s18719_s2 + $0xe0] sm:$0xf] }
 0x3e8   : > { %2993 = vst.msk [vmem:[#allocation2 + $0xb] sm:$0x1] %vm18985_vm13, %v2970_v44 }
 0x3e9   : > { %2994 = vst.msk [vmem:[#allocation2 + $0x13] sm:$0x1] %vm18993_vm7, %v2971_v14  ;;  %3229 = vmatpush.bf16.msra.mxu2 %v9193_v62  ;;  %3243 = vmatpush.bf16.msra.mxu3 %v9181_v23  ;;  %v11065_v23 = vld [vmem:[%s18719_s2 + $0xe4] sm:$0xf]  ;;  %v9387_v62 = vld [vmem:[%s18719_s2 + $0xa8] sm:$0xf] }
 0x3ea   : > { %2995 = vst.msk [vmem:[#allocation2 + $0x1b] sm:$0x1] %vm18994_vm8, %v2972_v1  ;;  %3218 = vmatmul.bf16.vlgmr.msra.gmra.mxu1 %v3004_v21 }
 0x3eb   : > { %2996 = vst.msk [vmem:[#allocation2 + $0x23] sm:$0x1] %vm18995_vm15, %v2973_v48  ;;  %3204 = vmatpush.bf16.msra.mxu0 %v9169_v4 }
 0x3ec   : > { %2997 = vst.msk [vmem:[#allocation2 + $0x2b] sm:$0x1] %vm18996_vm12, %v2974_v27  ;;  %3244 = vmatmul.bf16.vlgmr.msra.gmra.mxu3 %v3004_v21 }
 0x3ed   : > { %2998 = vst.msk [vmem:[#allocation2 + $0x33] sm:$0x1] %vm18997_vm14, %v2975_v7  ;;  %3230 = vmatpush.bf16.msra.mxu2 %v9177_v50  ;;  %v11067_v50 = vld [vmem:[%s18719_s2 + $0xec] sm:$0xf0] }
 0x3ee   : > { %2999 = vst.msk [vmem:[#allocation2 + $0x3b] sm:$0x1] %vm18998_vm0, %v2976_v52  ;;  %3205 = vmatmul.bf16.vlgmr.msra.gmra.mxu0 %v3004_v21 }
 0x3f0   : > { %3231 = vmatmul.bf16.vlgmr.msra.gmra.mxu2 %v3004_v21 }
 0x467   : > { %v3219_v31 = vpop.f32.mrf.mxu1 }
 0x468   : > { %v3250_v25 = vadd.f32 %v3219_v31, %v18999_v2  ;;  %v9413_v31 = vld [vmem:[%s18719_s2 + $0xf0] sm:$0xf0]  ;;  %v9419_v2 = vld [vmem:[%s18719_s2 + $0xe8] sm:$0xf] }
 0x46a   : > { %v9295_v36 = vmul.f32 -1.442695, %v3250_v25  ;;  %v11068_v25 = vld [vmem:[%s18719_s2 + $0xf4] sm:$0xf0] }
 0x46b   : > { %v3206_v5 = vpop.f32.mrf.mxu0 }
 0x46c   : > { %v3249_v58 = vadd.f32 %v3206_v5, %v12989_v8 }
 0x46e   : > { %v9294_v42 = vmul.f32 -1.442695, %v3249_v58  ;;  %v9412_v58 = vor.u32 %v11067_v50, %v9411_v41  ;;  %v9363_v41 = vld [vmem:[%s18719_s2 + $0x80] sm:$0xf] }
 0x46f   : > { %v3245_v14 = vpop.f32.mrf.mxu3  ;;  %v3221_v48 = vpop.f32.mrf.mxu1 }
 0x470   : > { %11507 = vpow2.f32 %v9294_v42  ;;  %v3252_v8 = vadd.f32 %v3245_v14, %v19000_v24  ;;  %v9416_v14 = vor.u32 %v11065_v23, %v9413_v31  ;;  %v11066_v24 = vld [vmem:[%s18719_s2 + $0xec] sm:$0xf]  ;;  %3544 = vmatpush.bf16.msrb.mxu0 %v9412_v58  ;;  %v11055_v23 = vld [vmem:[%s18719_s2 + $0x8c] sm:$0xf0]  ;;  %v9371_v58 = vld [vmem:[%s18719_s2 + $0x88] sm:$0xf] }
 0x471   : > { %11509 = vpow2.f32 %v9295_v36  ;;  %v11056_v31 = vld [vmem:[%s18719_s2 + $0x94] sm:$0xf0] }
 0x472   : > { %v9296_v56 = vmul.f32 -1.442695, %v3252_v8  ;;  %v9421_v8 = vld [vmem:[%s18719_s2 + $0xf8] sm:$0xf0]  ;;  %3557 = vmatpush.bf16.msrb.mxu1 %v9416_v14 }
 0x473   : > { %v3232_v44 = vpop.f32.mrf.mxu2  ;;  %v3208_v1 = vpop.f32.mrf.mxu0  ;;  %v9373_v14 = vld [vmem:[%s18719_s2 + $0x98] sm:$0xf0] }
 0x474   : > { %11511 = vpow2.f32 %v9296_v56  ;;  %v3251_v55 = vadd.f32 %v3232_v44, %v19001_v10  ;;  %v9420_v1 = vor.u32 %v11068_v25, %v9419_v2  ;;  %v9397_v10 = vld [vmem:[%s18719_s2 + $0xd0] sm:$0xf0]  ;;  %v11054_v2 = vld [vmem:[%s18719_s2 + $0x8c] sm:$0xf] }
 0x476   : > { %v11508_v27 = vpop.eup %11507  ;;  %3570 = vmatpush.bf16.msrb.mxu2 %v9420_v1  ;;  %v9347_v1 = vld [vmem:[%s18719_s2 + $0x60] sm:$0xf] }
 0x477   : > { %v11510_v7 = vpop.eup %11509  ;;  %v3256_v52 = vadd.f32 1.0, %v11508_v27  ;;  %v3247_v57 = vpop.f32.mrf.mxu3 }
 0x478   : > { %v3275_v18 = vadd.f32 1.0, %v11510_v7 }
 0x479   : > { %11513 = vrcp.f32 %v3256_v52  ;;  %v3266_v11 = vand.u32 2147483647, %v3256_v52  ;;  %v3268_v22 = vand.u32 2147483648, %v3256_v52  ;;  %vm3262_vm8 = vweird.f32 %v3256_v52 }
 0x47a   : > { %11515 = vrcp.f32 %v3275_v18  ;;  %v11512_v34 = vpop.eup %11511  ;;  %v3287_v59 = vand.u32 2147483648, %v3275_v18  ;;  %v3285_v49 = vand.u32 2147483647, %v3275_v18  ;;  %vm3281_vm7 = vweird.f32 %v3275_v18 }
 0x47b   : > { %v3234_v63 = vpop.f32.mrf.mxu2  ;;  %v14349_v39 = vadd.f32 1.0, %v11512_v34  ;;  %vm14356_vm12 = vcmp.eq.f32.partialorder %v3266_v11, 8.507059e+37  ;;  %v3269_v54 = vor.u32 1.1754944e-38, %v3268_v22  ;;  %v11062_v11 = vld [vmem:[%s18719_s2 + $0xcc] sm:$0xf] }
 0x47c   : > { %v3288_v43 = vor.u32 1.1754944e-38, %v3287_v59  ;;  %vm14364_vm0 = vcmp.eq.f32.partialorder %v3285_v49, 8.507059e+37  ;;  %v11063_v63 = vld [vmem:[%s18719_s2 + $0xcc] sm:$0xf0]  ;;  %v9379_v49 = vld [vmem:[%s18719_s2 + $0xa0] sm:$0xf] }
 0x47d   : > { %11517 = vrcp.f32 %v14349_v39  ;;  %v3305_v51 = vand.u32 2147483647, %v14349_v39  ;;  %v3307_v32 = vand.u32 2147483648, %v14349_v39 }
 0x47e   : > { %11519 = vtanh.f32 %v3251_v55  ;;  %v9403_v55 = vld [vmem:[%s18719_s2 + $0xc8] sm:$0xf] }
 0x47f   : > { %v11514_v9 = vpop.eup %11513 }
 0x480   : > { %v11516_v12 = vpop.eup %11515  ;;  %v3258_v29 = vmul.f32 %v11514_v9, %v3256_v52  ;;  %vm3263_vm6 = vweird.f32 %v11514_v9  ;;  %v9424_v52 = vor.u32 %v11066_v24, %v9421_v8  ;;  %v11051_v24 = vld [vmem:[%s18719_s2 + $0x6c] sm:$0xf0]  ;;  %v9376_v8 = vor.u32 %v11054_v2, %v9373_v14  ;;  %v11037_v14 = vld [vmem:[%s18719_s2 + $0x4] sm:$0xf] }
 0x481   : > { %v3277_v15 = vmul.f32 %v11516_v12, %v3275_v18  ;;  %vm3282_vm13 = vweird.f32 %v11516_v12  ;;  %vm14352_vm15 = vmor %vm3262_vm8, %vm3263_vm6  ;;  %vm3301_vm6 = vweird.f32 %v14349_v39  ;;  %v9395_v18 = vld [vmem:[%s18719_s2 + $0xc0] sm:$0xf]  ;;  %vm14496_vm8 = vcmp.eq.f32.partialorder %v3305_v51, 8.507059e+37 }
 0x482   : > { %v3259_v37 = vsub.f32 1.0, %v3258_v29  ;;  %vm14360_vm14 = vmor %vm3281_vm7, %vm3282_vm13  ;;  %v9396_v34 = vor.u32 %v11063_v63, %v9395_v18  ;;  %3583 = vmatpush.bf16.msrb.mxu3 %v9424_v52  ;;  %v9372_v51 = vor.u32 %v11056_v31, %v9371_v58  ;;  %v9357_v18 = vld [vmem:[%s18719_s2 + $0x78] sm:$0xf0]  ;;  %v9331_v63 = vld [vmem:[%s18719_s2 + $0x40] sm:$0xf] }
 0x483   : > { %v3278_v19 = vsub.f32 1.0, %v3277_v15  ;;  %v14370_v35 = vpop.eup %11517  ;;  %v9405_v15 = vld [vmem:[%s18719_s2 + $0xd8] sm:$0xf0]  ;;  %v11042_v58 = vld [vmem:[%s18719_s2 + $0x2c] sm:$0xf] }
 0x484   : > { %v3260_v13 = vmul.f32 %v11514_v9, %v3259_v37  ;;  %v3297_v5 = vmul.f32 %v14370_v35, %v14349_v39  ;;  %vm3302_vm13 = vweird.f32 %v14370_v35  ;;  %v11520_v42 = vpop.eup %11519  ;;  %v9408_v37 = vor.u32 %v11062_v11, %v9405_v15  ;;  %3545 = vmatpush.bf16.msrb.mxu0 %v9396_v34  ;;  %v11049_v39 = vld [vmem:[%s18719_s2 + $0x64] sm:$0xf]  ;;  %v11048_v11 = vld [vmem:[%s18719_s2 + $0x54] sm:$0xf0]  ;;  %v11046_v15 = vld [vmem:[%s18719_s2 + $0x4c] sm:$0xf] }
 0x485   : > { %v3279_v53 = vmul.f32 %v11516_v12, %v3278_v19  ;;  %vm14412_vm7 = vmor %vm3301_vm6, %vm3302_vm13  ;;  %v11059_v19 = vld [vmem:[%s18719_s2 + $0xac] sm:$0xf0]  ;;  %v9325_v31 = vld [vmem:[%s18719_s2 + $0x38] sm:$0xf0] }
 0x486   : > { %v3261_v0 = vadd.f32 %v11514_v9, %v3260_v13  ;;  %v3298_v56 = vsub.f32 1.0, %v3297_v5  ;;  %v11057_v13 = vld [vmem:[%s18719_s2 + $0xa4] sm:$0xf]  ;;  %3584 = vmatpush.bf16.msrb.mxu3 %v9408_v37  ;;  %v9365_v5 = vld [vmem:[%s18719_s2 + $0x90] sm:$0xf0] }
 0x487   : > { %v3280_v4 = vadd.f32 %v11516_v12, %v3279_v53  ;;  %v9384_v38 = vor.u32 %v11057_v13, %v9381_v16  ;;  %v9315_v16 = vld [vmem:[%s18719_s2 + $0x20] sm:$0xf] }
 0x488   : > { %v3265_v21 = vsel %vm14352_vm15, %v11514_v9, %v3261_v0  ;;  %v11061_v9 = vld [vmem:[%s18719_s2 + $0xc4] sm:$0xf]  ;;  %vm19014_vm15 = vcmask 516096  }
 0x489   : > { %v3270_v36 = vsel %vm14356_vm12, %v3269_v54, %v3265_v21  ;;  %v3284_v44 = vsel %vm14360_vm14, %v11516_v12, %v3280_v4  ;;  %v3299_v12 = vmul.f32 %v14370_v35, %v3298_v56  ;;  %v9400_v29 = vor.u32 %v11061_v9, %v9397_v10  ;;  %v11060_v54 = vld [vmem:[%s18719_s2 + $0xb4] sm:$0xf0]  ;;  %v9389_v4 = vld [vmem:[%s18719_s2 + $0xb8] sm:$0xf0]  ;;  %v11053_v21 = vld [vmem:[%s18719_s2 + $0x84] sm:$0xf] }
 0x48a   : > { %v3289_v48 = vsel %vm14364_vm0, %v3288_v43, %v3284_v44  ;;  %v3312_v27 = vmul.f32 %v11520_v42, %v3270_v36  ;;  %v9380_v43 = vor.u32 %v11059_v19, %v9379_v49  ;;  %v9388_v0 = vor.u32 %v11060_v54, %v9387_v62  ;;  %v11050_v56 = vld [vmem:[%s18719_s2 + $0x6c] sm:$0xf]  ;;  %v11045_v10 = vld [vmem:[%s18719_s2 + $0x44] sm:$0xf]  ;;  %vm19016_vm14 = vmmov %vm19014_vm15 }
 0x48b   : > { %v3311_v57 = vmul.f32 %v3289_v48, %v14143_v30  ;;  %v11064_v30 = vld [vmem:[%s18719_s2 + $0xd4] sm:$0xf0]  ;;  %v3300_v53 = vadd.f32 %v14370_v35, %v3299_v12  ;;  %3558 = vmatpush.bf16.msrb.mxu1 %v9400_v29  ;;  %v9392_v50 = vor.u32 %v11058_v47, %v9389_v4  ;;  %v3308_v36 = vor.u32 1.1754944e-38, %v3307_v32  ;;  %v9349_v32 = vld [vmem:[%s18719_s2 + $0x70] sm:$0xf0]  ;;  %vm19017_vm0 = vmmov %vm19016_vm14 }
 0x48c   : > { %v9404_v22 = vor.u32 %v11064_v30, %v9403_v55  ;;  %3546 = vmatpush.bf16.msrb.mxu0 %v9380_v43  ;;  %v9364_v44 = vor.u32 %v11055_v23, %v9363_v41  ;;  %v9355_v48 = vld [vmem:[%s18719_s2 + $0x68] sm:$0xf]  ;;  %v9348_v9 = vor.u32 %v11051_v24, %v9347_v1  ;;  %v9333_v55 = vld [vmem:[%s18719_s2 + $0x50] sm:$0xf0]  ;;  %v9352_v29 = vor.u32 %v11049_v39, %v9349_v32  ;;  %v11041_v41 = vld [vmem:[%s18719_s2 + $0x24] sm:$0xf] }
 0x48d   : > { %v14442_v59 = vadd.f32 %v3312_v27, %v3311_v57  ;;  %v3304_v25 = vsel %vm14412_vm7, %v14370_v35, %v3300_v53  ;;  %v9368_v35 = vor.u32 %v11053_v21, %v9365_v5  ;;  %3585 = vmatpush.bf16.msrb.mxu3 %v9392_v50  ;;  %v11052_v27 = vld [vmem:[%s18719_s2 + $0x74] sm:$0xf0]  ;;  %v11047_v57 = vld [vmem:[%s18719_s2 + $0x4c] sm:$0xf0]  ;;  %v9339_v12 = vld [vmem:[%s18719_s2 + $0x48] sm:$0xf]  ;;  %v9360_v13 = vor.u32 %v11050_v56, %v9357_v18 }
 0x48e   : > { %3571 = vmatpush.bf16.msrb.mxu2 %v9404_v22  ;;  %v3309_v52 = vsel %vm14496_vm8, %v3308_v36, %v3304_v25  ;;  %v9356_v30 = vor.u32 %v11052_v27, %v9355_v48  ;;  %v9341_v22 = vld [vmem:[%s18719_s2 + $0x58] sm:$0xf0]  ;;  %vm19015_vm12 = vcmask 1040896   ;;  %v9336_v47 = vor.u32 %v11045_v10, %v9333_v55  ;;  %v9317_v50 = vld [vmem:[%s18719_s2 + $0x30] sm:$0xf0]  ;;  %vm19018_vm6 = vmmov %vm19017_vm0 }
 0x48f   : > { %11521 = vtanh.f32 %v14442_v59  ;;  %3559 = vmatpush.bf16.msrb.mxu1 %v9384_v38  ;;  %v9332_v38 = vor.u32 %v11047_v57, %v9331_v63  ;;  %v9340_v4 = vor.u32 %v11048_v11, %v9339_v12  ;;  %v9344_v23 = vor.u32 %v11046_v15, %v9341_v22  ;;  %v9323_v21 = vld [vmem:[%s18719_s2 + $0x28] sm:$0xf]  ;;  %v11044_v5 = vld [vmem:[%s18719_s2 + $0x34] sm:$0xf0]  ;;  %vm19019_vm13 = vmmov %vm19017_vm0 }
 0x490   : > { %3547 = vmatpush.bf16.msrb.mxu0 %v9364_v44  ;;  %vm19020_vm7 = vmmov %vm19017_vm0  ;;  %v9299_v25 = vld [vmem:[%s18719_s2] sm:$0xf]  ;;  %v11039_v42 = vld [vmem:[%s18719_s2 + $0xc] sm:$0xf0]  ;;  %v9320_v36 = vor.u32 %v11041_v41, %v9317_v50  ;;  %v9324_v44 = vor.u32 %v11044_v5, %v9323_v21  ;;  %v3348_v57 = vsel %vm12301_vm9, %v13138_v60, %v13135_v20 }
 0x491   : > { %3586 = vmatpush.bf16.msrb.mxu3 %v9376_v8  ;;  %vm19021_vm8 = vmmov %vm19017_vm0  ;;  %v9301_v1 = vld [vmem:[%s18719_s2 + $0x10] sm:$0xf0]  ;;  %v11040_v24 = vld [vmem:[%s18719_s2 + $0x14] sm:$0xf0]  ;;  %v9300_v8 = vor.u32 %v11039_v42, %v9299_v25 }
 0x492   : > { %3572 = vmatpush.bf16.msrb.mxu2 %v9388_v0  ;;  %v11043_v0 = vld [vmem:[%s18719_s2 + $0x2c] sm:$0xf0]  ;;  %v11038_v39 = vld [vmem:[%s18719_s2 + $0xc] sm:$0xf]  ;;  %v9309_v32 = vld [vmem:[%s18719_s2 + $0x18] sm:$0xf0]  ;;  %v9304_v48 = vor.u32 %v11037_v14, %v9301_v1 }
 0x493   : > { %3560 = vmatpush.bf16.msrb.mxu1 %v9368_v35  ;;  %v9316_v2 = vor.u32 %v11043_v0, %v9315_v16  ;;  %v9328_v35 = vor.u32 %v11042_v58, %v9325_v31  ;;  %v9312_v56 = vor.u32 %v11038_v39, %v9309_v32  ;;  %v9542_v1 = vld [vmem:[%s18719_s2 + $0xe0] sm:$0xf]  ;;  %v11087_v5 = vld [vmem:[%s18719_s2 + $0x8c] sm:$0xf0]  ;;  %v9496_v31 = vld [vmem:[%s18719_s2 + $0x90] sm:$0xf0] }
 0x494   : > { %3548 = vmatpush.bf16.msrb.mxu0 %v9348_v9  ;;  %v11088_v25 = vld [vmem:[%s18719_s2 + $0x94] sm:$0xf0] }
 0x495   : > { %v11522_v7 = vpop.eup %11521  ;;  %3587 = vmatpush.bf16.msrb.mxu3 %v9360_v13 }
 0x496   : > { %v14537_v34 = vmul.f32 %v11522_v7, %v3309_v52  ;;  %3573 = vmatpush.bf16.msrb.mxu2 %v9372_v51  ;;  %v9307_v51 = vld [vmem:[%s18719_s2 + $0x8] sm:$0xf] }
 0x497   : > { %3561 = vmatpush.bf16.msrb.mxu1 %v9352_v29  ;;  %v9308_v27 = vor.u32 %v11040_v24, %v9307_v51  ;;  %v11097_v51 = vld [vmem:[%s18719_s2 + $0xe4] sm:$0xf] }
 0x498   : > { %v3317_v37 = vrot.slane %v14537_v34, 1  ;;  %v3318_v49 = vrot.slane %v14537_v34, 2  ;;  %v3319_v19 = vrot.slane %v14537_v34, 3  ;;  %3331 = vst.msk [vmem:[#allocation2 + $0x5] sm:$0x1] %vm19014_vm15, %v14537_v34  ;;  %v3320_v53 = vrot.slane %v14537_v34, 4  ;;  %3549 = vmatpush.bf16.msrb.mxu0 %v9332_v38  ;;  %vm19022_vm15 = vmmov %vm19017_vm0 }
 0x499   : > { %v3321_v43 = vrot.slane %v14537_v34, 5  ;;  %3339 = vst.msk [vmem:[#allocation2 + $0x2] sm:$0x1] %vm19015_vm12, %v14537_v34  ;;  %v3322_v62 = vrot.slane %v14537_v34, 6  ;;  %v3323_v54 = vrot.slane %v14537_v34, 7  ;;  %3588 = vmatpush.bf16.msrb.mxu3 %v9344_v23  ;;  %v3351_v7 = vpack.c.bf16 %v14537_v34, %v14537_v34 }
 0x49a   : > { %3332 = vst.msk [vmem:[#allocation2 + $0xd] sm:$0x1] %vm19016_vm14, %v3317_v37  ;;  %3574 = vmatpush.bf16.msrb.mxu2 %v9356_v30  ;;  %vm19023_vm14 = vmmov %vm19015_vm12 }
 0x49b   : > { %3333 = vst.msk [vmem:[#allocation2 + $0x15] sm:$0x1] %vm19017_vm0, %v3318_v49  ;;  %3562 = vmatpush.bf16.msrb.mxu1 %v9336_v47  ;;  %vm19024_vm0 = vmmov %vm19015_vm12 }
 0x49c   : > { %3334 = vst.msk [vmem:[#allocation2 + $0x1d] sm:$0x1] %vm19018_vm6, %v3319_v19  ;;  %3550 = vmatpush.bf16.msrb.mxu0 %v9316_v2  ;;  %vm19025_vm6 = vmmov %vm19024_vm0 }
 0x49d   : > { %3335 = vst.msk [vmem:[#allocation2 + $0x25] sm:$0x1] %vm19019_vm13, %v3320_v53  ;;  %3589 = vmatpush.bf16.msrb.mxu3 %v9328_v35  ;;  %vm19026_vm13 = vmmov %vm19024_vm0  ;;  %v11099_v35 = vld [vmem:[%s18719_s2 + $0xec] sm:$0xf0] }
 0x49e   : > { %3336 = vst.msk [vmem:[#allocation2 + $0x2d] sm:$0x1] %vm19020_vm7, %v3321_v43  ;;  %3575 = vmatpush.bf16.msrb.mxu2 %v9340_v4  ;;  %vm19027_vm7 = vmmov %vm19024_vm0  ;;  %v9543_v32 = vor.u32 %v11099_v35, %v9542_v1  ;;  %v11070_v35 = vld [vmem:[%s18719_s2 + $0xc] sm:$0xf] }
 0x49f   : > { %3337 = vst.msk [vmem:[#allocation2 + $0x35] sm:$0x1] %vm19021_vm8, %v3322_v62  ;;  %3563 = vmatpush.bf16.msrb.mxu1 %v9320_v36  ;;  %vm19028_vm8 = vmmov %vm19024_vm0 }
 0x4a0   : > { %3338 = vst.msk [vmem:[#allocation2 + $0x3d] sm:$0x1] %vm19022_vm15, %v3323_v54  ;;  %3551 = vmatpush.bf16.msrb.mxu0 %v9300_v8  ;;  %vm19029_vm15 = vcmp.lt.s32.totalorder %v12164_v40, 64  ;;  %v9544_v8 = vld [vmem:[%s18719_s2 + $0xf0] sm:$0xf0] }
 0x4a1   : > { %3340 = vst.msk [vmem:[#allocation2 + $0xa] sm:$0x1] %vm19015_vm12, %v3317_v37  ;;  %3590 = vmatpush.bf16.msrb.mxu3 %v9312_v56  ;;  %v3347_v52 = vsel %vm19029_vm15, %v13132_v17, %v13129_v46  ;;  %v19030_v46 = vsel %vm12403_vm10, %v13013_v33, %v18876_v28 }
 0x4a2   : > { %3341 = vst.msk [vmem:[#allocation2 + $0x12] sm:$0x1] %vm19023_vm14, %v3318_v49  ;;  %3576 = vmatpush.bf16.msrb.mxu2 %v9324_v44 }
 0x4a3   : > { %3342 = vst.msk [vmem:[#allocation2 + $0x1a] sm:$0x1] %vm19024_vm0, %v3319_v19  ;;  %3564 = vmatpush.bf16.msrb.mxu1 %v9304_v48  ;;  %3552 = vmatmul.bf16.vlgmr.msrb.gmra.mxu0 %v3351_v7  ;;  %v9550_v48 = vld [vmem:[%s18719_s2 + $0xe8] sm:$0xf] }
 0x4a4   : > { %3343 = vst.msk [vmem:[#allocation2 + $0x22] sm:$0x1] %vm19025_vm6, %v3320_v53  ;;  %3591 = vmatmul.bf16.vlgmr.msrb.gmra.mxu3 %v3351_v7  ;;  %v3349_v53 = vsel %vm12631_vm11, %v13184_v26, %v13181_v45  ;;  %3891 = vmatpush.bf16.msra.mxu0 %v9543_v32  ;;  %v9478_v32 = vld [vmem:[%s18719_s2 + $0x60] sm:$0xf] }
 0x4a5   : > { %3344 = vst.msk [vmem:[#allocation2 + $0x2a] sm:$0x1] %vm19026_vm13, %v3321_v43 }
 0x4a6   : > { %3345 = vst.msk [vmem:[#allocation2 + $0x32] sm:$0x1] %vm19027_vm7, %v3322_v62  ;;  %3577 = vmatpush.bf16.msrb.mxu2 %v9308_v27  ;;  %3565 = vmatmul.bf16.vlgmr.msrb.gmra.mxu1 %v3351_v7  ;;  %v11100_v27 = vld [vmem:[%s18719_s2 + $0xf4] sm:$0xf0] }
 0x4a7   : > { %3346 = vst.msk [vmem:[#allocation2 + $0x3a] sm:$0x1] %vm19028_vm8, %v3323_v54 }
 0x4a9   : > { %3578 = vmatmul.bf16.vlgmr.msrb.gmra.mxu2 %v3351_v7 }
 0x520   : > { %v3553_v18 = vpop.f32.mrf.mxu0 }
 0x521   : > { %v3596_v63 = vadd.f32 %v3553_v18, %v3347_v52  ;;  %v9547_v18 = vor.u32 %v11097_v51, %v9544_v8  ;;  %v11083_v8 = vld [vmem:[%s18719_s2 + $0x6c] sm:$0xf0] }
 0x523   : > { %v3566_v34 = vpop.f32.mrf.mxu1  ;;  %v9425_v10 = vmul.f32 -1.442695, %v3596_v63  ;;  %v9551_v63 = vor.u32 %v11100_v27, %v9550_v48  ;;  %3904 = vmatpush.bf16.msra.mxu1 %v9547_v18  ;;  %v9486_v27 = vld [vmem:[%s18719_s2 + $0x68] sm:$0xf] }
 0x524   : > { %v3597_v9 = vadd.f32 %v3566_v34, %v3348_v57  ;;  %v11098_v57 = vld [vmem:[%s18719_s2 + $0xec] sm:$0xf]  ;;  %v9552_v34 = vld [vmem:[%s18719_s2 + $0xf8] sm:$0xf0] }
 0x525   : > { %11523 = vpow2.f32 %v9425_v10  ;;  %3917 = vmatpush.bf16.msra.mxu2 %v9551_v63  ;;  %v9488_v63 = vld [vmem:[%s18719_s2 + $0x78] sm:$0xf0] }
 0x526   : > { %v9426_v55 = vmul.f32 -1.442695, %v3597_v9 }
 0x527   : > { %v3592_v29 = vpop.f32.mrf.mxu3 }
 0x528   : > { %11525 = vpow2.f32 %v9426_v55  ;;  %v3555_v30 = vpop.f32.mrf.mxu0  ;;  %v3599_v17 = vadd.f32 %v3592_v29, %v19030_v46  ;;  %v9555_v29 = vor.u32 %v11098_v57, %v9552_v34  ;;  %v11095_v46 = vld [vmem:[%s18719_s2 + $0xcc] sm:$0xf0]  ;;  %v9462_v57 = vld [vmem:[%s18719_s2 + $0x40] sm:$0xf] }
 0x529   : > { %v9526_v30 = vld [vmem:[%s18719_s2 + $0xc0] sm:$0xf]  ;;  %v11079_v34 = vld [vmem:[%s18719_s2 + $0x4c] sm:$0xf0] }
 0x52a   : > { %v9427_v22 = vmul.f32 -1.442695, %v3599_v17  ;;  %3930 = vmatpush.bf16.msra.mxu3 %v9555_v29  ;;  %v9470_v29 = vld [vmem:[%s18719_s2 + $0x48] sm:$0xf] }
 0x52b   : > { %v3568_v11 = vpop.f32.mrf.mxu1  ;;  %v11524_v15 = vpop.eup %11523 }
 0x52c   : > { %v3579_v12 = vpop.f32.mrf.mxu2  ;;  %v3603_v20 = vadd.f32 1.0, %v11524_v15  ;;  %11527 = vpow2.f32 %v9427_v22  ;;  %v9527_v11 = vor.u32 %v11095_v46, %v9526_v30  ;;  %v11093_v15 = vld [vmem:[%s18719_s2 + $0xc4] sm:$0xf]  ;;  %v9528_v22 = vld [vmem:[%s18719_s2 + $0xd0] sm:$0xf0] }
 0x52d   : > { %v3598_v33 = vadd.f32 %v3579_v12, %v3349_v53  ;;  %v9464_v12 = vld [vmem:[%s18719_s2 + $0x50] sm:$0xf0] }
 0x52e   : > { %v11526_v37 = vpop.eup %11525  ;;  %11529 = vrcp.f32 %v3603_v20  ;;  %v3613_v54 = vand.u32 2147483647, %v3603_v20  ;;  %v3615_v47 = vand.u32 2147483648, %v3603_v20  ;;  %vm3609_vm6 = vweird.f32 %v3603_v20  ;;  %3892 = vmatpush.bf16.msra.mxu0 %v9527_v11  ;;  %v11078_v11 = vld [vmem:[%s18719_s2 + $0x4c] sm:$0xf] }
 0x52f   : > { %v3622_v60 = vadd.f32 1.0, %v11526_v37  ;;  %v3594_v19 = vpop.f32.mrf.mxu3  ;;  %v9534_v37 = vld [vmem:[%s18719_s2 + $0xc8] sm:$0xf] }
 0x530   : > { %vm14656_vm7 = vcmp.eq.f32.partialorder %v3613_v54, 8.507059e+37  ;;  %v3616_v58 = vor.u32 1.1754944e-38, %v3615_v47  ;;  %v9536_v19 = vld [vmem:[%s18719_s2 + $0xd8] sm:$0xf0]  ;;  %v9518_v47 = vld [vmem:[%s18719_s2 + $0xa8] sm:$0xf] }
 0x531   : > { %11531 = vrcp.f32 %v3622_v60  ;;  %v3634_v0 = vand.u32 2147483648, %v3622_v60  ;;  %v3632_v41 = vand.u32 2147483647, %v3622_v60  ;;  %vm3628_vm0 = vweird.f32 %v3622_v60 }
 0x532   : > { %v11528_v13 = vpop.eup %11527 }
 0x533   : > { %v14649_v28 = vadd.f32 1.0, %v11528_v13  ;;  %v3635_v23 = vor.u32 1.1754944e-38, %v3634_v0  ;;  %vm14664_vm15 = vcmp.eq.f32.partialorder %v3632_v41, 8.507059e+37  ;;  %v9512_v0 = vld [vmem:[%s18719_s2 + $0xb0] sm:$0xf0] }
 0x534   : > { %v3581_v49 = vpop.f32.mrf.mxu2  ;;  %v11530_v43 = vpop.eup %11529 }
 0x535   : > { %v3605_v62 = vmul.f32 %v11530_v43, %v3603_v20  ;;  %11533 = vrcp.f32 %v14649_v28  ;;  %vm3610_vm12 = vweird.f32 %v11530_v43  ;;  %v3652_v42 = vand.u32 2147483647, %v14649_v28  ;;  %v11094_v49 = vld [vmem:[%s18719_s2 + $0xcc] sm:$0xf] }
 0x536   : > { %11535 = vtanh.f32 %v3598_v33  ;;  %vm14652_vm13 = vmor %vm3609_vm6, %vm3610_vm12  ;;  %v3654_v36 = vand.u32 2147483648, %v14649_v28  ;;  %vm3648_vm12 = vweird.f32 %v14649_v28  ;;  %v9510_v33 = vld [vmem:[%s18719_s2 + $0xa0] sm:$0xf] }
 0x537   : > { %v11532_v16 = vpop.eup %11531  ;;  %v3606_v4 = vsub.f32 1.0, %v3605_v62  ;;  %v11089_v62 = vld [vmem:[%s18719_s2 + $0xa4] sm:$0xf]  ;;  %vm14796_vm6 = vcmp.eq.f32.partialorder %v3652_v42, 8.507059e+37 }
 0x538   : > { %v3624_v38 = vmul.f32 %v11532_v16, %v3622_v60  ;;  %vm3629_vm14 = vweird.f32 %v11532_v16  ;;  %v9531_v60 = vor.u32 %v11093_v15, %v9528_v22  ;;  %v9515_v41 = vor.u32 %v11089_v62, %v9512_v0  ;;  %v9472_v15 = vld [vmem:[%s18719_s2 + $0x58] sm:$0xf0]  ;;  %v9448_v0 = vld [vmem:[%s18719_s2 + $0x30] sm:$0xf0] }
 0x539   : > { %v3607_v45 = vmul.f32 %v11530_v43, %v3606_v4  ;;  %vm14660_vm8 = vmor %vm3628_vm0, %vm3629_vm14  ;;  %v11092_v4 = vld [vmem:[%s18719_s2 + $0xb4] sm:$0xf0]  ;;  %v3655_v51 = vor.u32 1.1754944e-38, %v3654_v36  ;;  %v9480_v36 = vld [vmem:[%s18719_s2 + $0x70] sm:$0xf0] }
 0x53a   : > { %v3625_v50 = vsub.f32 1.0, %v3624_v38  ;;  %3905 = vmatpush.bf16.msra.mxu1 %v9531_v60 }
 0x53b   : > { %v3608_v2 = vadd.f32 %v11530_v43, %v3607_v45  ;;  %v14670_v44 = vpop.eup %11533  ;;  %v11090_v45 = vld [vmem:[%s18719_s2 + $0xac] sm:$0xf] }
 0x53c   : > { %v3626_v26 = vmul.f32 %v11532_v16, %v3625_v50  ;;  %v3644_v39 = vmul.f32 %v14670_v44, %v14649_v28  ;;  %vm3649_vm14 = vweird.f32 %v14670_v44  ;;  %v11536_v56 = vpop.eup %11535  ;;  %v9519_v50 = vor.u32 %v11092_v4, %v9518_v47  ;;  %v11081_v28 = vld [vmem:[%s18719_s2 + $0x64] sm:$0xf]  ;;  %v9454_v4 = vld [vmem:[%s18719_s2 + $0x28] sm:$0xf] }
 0x53d   : > { %v3612_v24 = vsel %vm14652_vm13, %v11530_v43, %v3608_v2  ;;  %vm14712_vm0 = vmor %vm3648_vm12, %vm3649_vm14  ;;  %v9539_v43 = vor.u32 %v11094_v49, %v9536_v19  ;;  %v9502_v2 = vld [vmem:[%s18719_s2 + $0x88] sm:$0xf]  ;;  %v9483_v30 = vor.u32 %v11081_v28, %v9480_v36  ;;  %vm19043_vm13 = vcmask 516096   ;;  %v9446_v19 = vld [vmem:[%s18719_s2 + $0x20] sm:$0xf] }
 0x53e   : > { %v3627_v14 = vadd.f32 %v11532_v16, %v3626_v26  ;;  %v3617_v7 = vsel %vm14656_vm7, %v3616_v58, %v3612_v24  ;;  %v3645_v55 = vsub.f32 1.0, %v3644_v39  ;;  %v9520_v26 = vld [vmem:[%s18719_s2 + $0xb8] sm:$0xf0]  ;;  %v11085_v58 = vld [vmem:[%s18719_s2 + $0x84] sm:$0xf]  ;;  %3906 = vmatpush.bf16.msra.mxu1 %v9515_v41  ;;  %v9503_v42 = vor.u32 %v11088_v25, %v9502_v2  ;;  %v19059_v28 = vld [vmem:[#allocation12_spill] sm:$0xff] }
 0x53f   : > { %v3659_v10 = vmul.f32 %v11536_v56, %v3617_v7  ;;  %3931 = vmatpush.bf16.msra.mxu3 %v9539_v43  ;;  %v9523_v21 = vor.u32 %v11090_v45, %v9520_v26  ;;  %v9504_v39 = vld [vmem:[%s18719_s2 + $0x98] sm:$0xf0]  ;;  %v11084_v56 = vld [vmem:[%s18719_s2 + $0x74] sm:$0xf0]  ;;  %v11082_v7 = vld [vmem:[%s18719_s2 + $0x6c] sm:$0xf]  ;;  %v9475_v47 = vor.u32 %v11078_v11, %v9472_v15 }
 0x540   : > { %v3631_v52 = vsel %vm14660_vm8, %v11532_v16, %v3627_v14  ;;  %v3646_v20 = vmul.f32 %v14670_v44, %v3645_v55  ;;  %v11091_v16 = vld [vmem:[%s18719_s2 + $0xac] sm:$0xf0]  ;;  %v11086_v14 = vld [vmem:[%s18719_s2 + $0x8c] sm:$0xf]  ;;  %v11077_v55 = vld [vmem:[%s18719_s2 + $0x44] sm:$0xf]  ;;  %v9487_v46 = vor.u32 %v11084_v56, %v9486_v27  ;;  %v9491_v60 = vor.u32 %v11082_v7, %v9488_v63 }
 0x541   : > { %v3636_v9 = vsel %vm14664_vm15, %v3635_v23, %v3631_v52  ;;  %v9511_v38 = vor.u32 %v11091_v16, %v9510_v33  ;;  %v9494_v23 = vld [vmem:[%s18719_s2 + $0x80] sm:$0xf]  ;;  %v9507_v48 = vor.u32 %v11086_v14, %v9504_v39  ;;  %vm19044_vm7 = vcmask 1040896   ;;  %vm19045_vm8 = vmmov %vm19043_vm13  ;;  %v11075_v16 = vld [vmem:[%s18719_s2 + $0x2c] sm:$0xf0] }
 0x542   : > { %v3658_v17 = vmul.f32 %v3636_v9, %v14442_v59  ;;  %v11096_v59 = vld [vmem:[%s18719_s2 + $0xd4] sm:$0xf0]  ;;  %v3647_v54 = vadd.f32 %v14670_v44, %v3646_v20  ;;  %v9495_v24 = vor.u32 %v11087_v5, %v9494_v23  ;;  %v9463_v33 = vor.u32 %v11079_v34, %v9462_v57  ;;  %vm19046_vm15 = vmmov %vm19045_vm8  ;;  %v9456_v45 = vld [vmem:[%s18719_s2 + $0x38] sm:$0xf0] }
 0x543   : > { %v9535_v53 = vor.u32 %v11096_v59, %v9534_v37  ;;  %3893 = vmatpush.bf16.msra.mxu0 %v9511_v38  ;;  %3932 = vmatpush.bf16.msra.mxu3 %v9523_v21  ;;  %v9467_v62 = vor.u32 %v11077_v55, %v9464_v12  ;;  %v11073_v38 = vld [vmem:[%s18719_s2 + $0x24] sm:$0xf]  ;;  %vm19047_vm12 = vmmov %vm19045_vm8  ;;  %v11076_v41 = vld [vmem:[%s18719_s2 + $0x34] sm:$0xf0]  ;;  %v9447_v26 = vor.u32 %v11075_v16, %v9446_v19 }
 0x544   : > { %v14742_v13 = vadd.f32 %v3659_v10, %v3658_v17  ;;  %v3651_v1 = vsel %vm14712_vm0, %v14670_v44, %v3647_v54  ;;  %v9499_v44 = vor.u32 %v11085_v58, %v9496_v31  ;;  %v9479_v10 = vor.u32 %v11083_v8, %v9478_v32  ;;  %v11080_v17 = vld [vmem:[%s18719_s2 + $0x54] sm:$0xf0]  ;;  %vm19048_vm14 = vmmov %vm19045_vm8  ;;  %v9430_v23 = vld [vmem:[%s18719_s2] sm:$0xf] }
 0x545   : > { %3918 = vmatpush.bf16.msra.mxu2 %v9535_v53  ;;  %v3656_v18 = vsel %vm14796_vm6, %v3655_v51, %v3651_v1  ;;  %v9471_v54 = vor.u32 %v11080_v17, %v9470_v29  ;;  %vm19049_vm0 = vmmov %vm19045_vm8  ;;  %v11071_v21 = vld [vmem:[%s18719_s2 + $0xc] sm:$0xf0]  ;;  %v9451_v5 = vor.u32 %v11073_v38, %v9448_v0  ;;  %v9455_v58 = vor.u32 %v11076_v41, %v9454_v4  ;;  %v11069_v31 = vld [vmem:[%s18719_s2 + $0x4] sm:$0xf] }
 0x546   : > { %11537 = vtanh.f32 %v14742_v13  ;;  %3907 = vmatpush.bf16.msra.mxu1 %v9499_v44  ;;  %vm19050_vm6 = vmmov %vm19049_vm0  ;;  %v9432_v2 = vld [vmem:[%s18719_s2 + $0x10] sm:$0xf0]  ;;  %v9438_v14 = vld [vmem:[%s18719_s2 + $0x8] sm:$0xf] }
 0x547   : > { %3894 = vmatpush.bf16.msra.mxu0 %v9495_v24  ;;  %3933 = vmatpush.bf16.msra.mxu3 %v9507_v48  ;;  %v11072_v1 = vld [vmem:[%s18719_s2 + $0x14] sm:$0xf0]  ;;  %v9440_v51 = vld [vmem:[%s18719_s2 + $0x18] sm:$0xf0]  ;;  %v9431_v24 = vor.u32 %v11071_v21, %v9430_v23  ;;  %v9435_v39 = vor.u32 %v11069_v31, %v9432_v2  ;;  %v19061_v56 = vld [vmem:[#allocation11_spill] sm:$0xff] }
 0x548   : > { %v9439_v32 = vor.u32 %v11072_v1, %v9438_v14  ;;  %v9443_v44 = vor.u32 %v11070_v35, %v9440_v51  ;;  %v19058_v8 = vld [vmem:[#allocation10_spill] sm:$0xff]  ;;  %v19062_v7 = vld [vmem:[#allocation13_spill] sm:$0xff]  ;;  %v19064_v55 = vld [vmem:[#allocation15_spill] sm:$0xff] }
 0x549   : > { %3919 = vmatpush.bf16.msra.mxu2 %v9519_v50  ;;  %v11074_v50 = vld [vmem:[%s18719_s2 + $0x2c] sm:$0xf]  ;;  %v19065_v19 = vld [vmem:[#allocation17_spill] sm:$0xff]  ;;  %v11120_v1 = vld [vmem:[%s18721_s4 + $0x94] sm:$0xf0] }
 0x54a   : > { %3908 = vmatpush.bf16.msra.mxu1 %v9483_v30  ;;  %v9459_v25 = vor.u32 %v11074_v50, %v9456_v45  ;;  %v11119_v31 = vld [vmem:[%s18721_s4 + $0x8c] sm:$0xf0] }
 0x54b   : > { %3895 = vmatpush.bf16.msra.mxu0 %v9479_v10  ;;  %3934 = vmatpush.bf16.msra.mxu3 %v9491_v60  ;;  %v19063_v10 = vld [vmem:[#allocation14_spill] sm:$0xff] }
 0x54c   : > { %v11538_v52 = vpop.eup %11537  ;;  %v3697_v12 = vsel %vm12403_vm10, %v19064_v55, %v19063_v10 }
 0x54d   : > { %v14837_v9 = vmul.f32 %v11538_v52, %v3656_v18  ;;  %3920 = vmatpush.bf16.msra.mxu2 %v9503_v42  ;;  %v3695_v52 = vsel %vm12301_vm9, %v19062_v7, %v19061_v56  ;;  %v11132_v56 = vld [vmem:[%s18721_s4 + $0xf4] sm:$0xf0] }
 0x54e   : > { %3909 = vmatpush.bf16.msra.mxu1 %v9467_v62 }
 0x54f   : > { %v3664_v22 = vrot.slane %v14837_v9, 1  ;;  %v3665_v37 = vrot.slane %v14837_v9, 2  ;;  %v3666_v20 = vrot.slane %v14837_v9, 3  ;;  %3678 = vst.msk [vmem:[#allocation2 + $0x6] sm:$0x1] %vm19043_vm13, %v14837_v9  ;;  %v3667_v59 = vrot.slane %v14837_v9, 4  ;;  %3896 = vmatpush.bf16.msra.mxu0 %v9463_v33  ;;  %vm19051_vm13 = vmmov %vm19049_vm0  ;;  %3935 = vmatpush.bf16.msra.mxu3 %v9475_v47 }
 0x550   : > { %v3668_v49 = vrot.slane %v14837_v9, 5  ;;  %3686 = vst.msk [vmem:[#allocation2 + $0x1] sm:$0x1] %vm19044_vm7, %v14837_v9  ;;  %v3669_v53 = vrot.slane %v14837_v9, 6  ;;  %v3670_v43 = vrot.slane %v14837_v9, 7  ;;  %v3698_v42 = vpack.c.bf16 %v14837_v9, %v14837_v9 }
 0x551   : > { %3679 = vst.msk [vmem:[#allocation2 + $0xe] sm:$0x1] %vm19045_vm8, %v3664_v22  ;;  %3921 = vmatpush.bf16.msra.mxu2 %v9487_v46  ;;  %vm19052_vm8 = vmmov %vm19044_vm7 }
 0x552   : > { %3680 = vst.msk [vmem:[#allocation2 + $0x16] sm:$0x1] %vm19046_vm15, %v3665_v37  ;;  %vm19053_vm15 = vmmov %vm19044_vm7  ;;  %3910 = vmatpush.bf16.msra.mxu1 %v9451_v5 }
 0x553   : > { %3681 = vst.msk [vmem:[#allocation2 + $0x1e] sm:$0x1] %vm19047_vm12, %v3666_v20  ;;  %3897 = vmatpush.bf16.msra.mxu0 %v9447_v26  ;;  %vm19054_vm12 = vmmov %vm19044_vm7  ;;  %3936 = vmatpush.bf16.msra.mxu3 %v9459_v25  ;;  %v9627_v25 = vld [vmem:[%s18721_s4 + $0x90] sm:$0xf0] }
 0x554   : > { %3682 = vst.msk [vmem:[#allocation2 + $0x26] sm:$0x1] %vm19048_vm14, %v3667_v59  ;;  %vm19055_vm14 = vmmov %vm19044_vm7 }
 0x555   : > { %3683 = vst.msk [vmem:[#allocation2 + $0x2e] sm:$0x1] %vm19049_vm0, %v3668_v49  ;;  %3922 = vmatpush.bf16.msra.mxu2 %v9471_v54  ;;  %vm19056_vm0 = vmmov %vm19044_vm7 }
 0x556   : > { %3684 = vst.msk [vmem:[#allocation2 + $0x36] sm:$0x1] %vm19050_vm6, %v3669_v53  ;;  %vm19057_vm6 = vmmov %vm19056_vm0  ;;  %3911 = vmatpush.bf16.msra.mxu1 %v9435_v39 }
 0x557   : > { %3685 = vst.msk [vmem:[#allocation2 + $0x3e] sm:$0x1] %vm19051_vm13, %v3670_v43  ;;  %3898 = vmatpush.bf16.msra.mxu0 %v9431_v24  ;;  %3937 = vmatpush.bf16.msra.mxu3 %v9443_v44  ;;  %vm19060_vm13 = vcmp.lt.s32.totalorder %v12164_v40, 64  ;;  %v11131_v44 = vld [vmem:[%s18721_s4 + $0xec] sm:$0xf0] }
 0x558   : > { %3687 = vst.msk [vmem:[#allocation2 + $0x9] sm:$0x1] %vm19044_vm7, %v3664_v22  ;;  %v3694_v36 = vsel %vm19060_vm13, %v19059_v28, %v19058_v8 }
 0x559   : > { %3688 = vst.msk [vmem:[#allocation2 + $0x11] sm:$0x1] %vm19052_vm8, %v3665_v37  ;;  %3923 = vmatpush.bf16.msra.mxu2 %v9455_v58  ;;  %3912 = vmatmul.bf16.vlgmr.msra.gmra.mxu1 %v3698_v42 }
 0x55a   : > { %3689 = vst.msk [vmem:[#allocation2 + $0x19] sm:$0x1] %vm19053_vm15, %v3666_v20  ;;  %3899 = vmatmul.bf16.vlgmr.msra.gmra.mxu0 %v3698_v42  ;;  %3938 = vmatmul.bf16.vlgmr.msra.gmra.mxu3 %v3698_v42 }
 0x55b   : > { %3690 = vst.msk [vmem:[#allocation2 + $0x21] sm:$0x1] %vm19054_vm12, %v3667_v59 }
 0x55c   : > { %3691 = vst.msk [vmem:[#allocation2 + $0x29] sm:$0x1] %vm19055_vm14, %v3668_v49 }
 0x55d   : > { %3692 = vst.msk [vmem:[#allocation2 + $0x31] sm:$0x1] %vm19056_vm0, %v3669_v53  ;;  %3924 = vmatpush.bf16.msra.mxu2 %v9439_v32  ;;  %v19066_v53 = vld [vmem:[#allocation18_spill] sm:$0xff]  ;;  %v9673_v32 = vld [vmem:[%s18721_s4 + $0xe0] sm:$0xf] }
 0x55e   : > { %3693 = vst.msk [vmem:[#allocation2 + $0x39] sm:$0x1] %vm19057_vm6, %v3670_v43  ;;  %v3696_v43 = vsel %vm12631_vm11, %v19066_v53, %v19065_v19  ;;  %v9667_v19 = vld [vmem:[%s18721_s4 + $0xd8] sm:$0xf0] }
 0x560   : > { %3925 = vmatmul.bf16.vlgmr.msra.gmra.mxu2 %v3698_v42  ;;  %v11129_v42 = vld [vmem:[%s18721_s4 + $0xe4] sm:$0xf] }
 0x5d6   : > { %v3913_v18 = vpop.f32.mrf.mxu1 }
 0x5d7   : > { %v3900_v48 = vpop.f32.mrf.mxu0  ;;  %v3944_v63 = vadd.f32 %v3913_v18, %v3695_v52 }
 0x5d8   : > { %v3943_v27 = vadd.f32 %v3900_v48, %v3694_v36  ;;  %v9674_v36 = vor.u32 %v11131_v44, %v9673_v32  ;;  %v9675_v48 = vld [vmem:[%s18721_s4 + $0xf0] sm:$0xf0]  ;;  %v9571_v44 = vld [vmem:[%s18721_s4 + $0x18] sm:$0xf0] }
 0x5d9   : > { %v9557_v34 = vmul.f32 -1.442695, %v3944_v63  ;;  %v9678_v63 = vor.u32 %v11129_v42, %v9675_v48  ;;  %v11115_v48 = vld [vmem:[%s18721_s4 + $0x6c] sm:$0xf0] }
 0x5da   : > { %v9556_v57 = vmul.f32 -1.442695, %v3943_v27  ;;  %v9681_v27 = vld [vmem:[%s18721_s4 + $0xe8] sm:$0xf]  ;;  %4255 = vmatpush.bf16.msrb.mxu0 %v9674_v36  ;;  %v9609_v36 = vld [vmem:[%s18721_s4 + $0x60] sm:$0xf] }
 0x5db   : > { %4284 = vmatpush.bf16.msrb.mxu1 %v9678_v63 }
 0x5dc   : > { %11539 = vpow2.f32 %v9556_v57  ;;  %v9682_v57 = vor.u32 %v11132_v56, %v9681_v27  ;;  %v9617_v56 = vld [vmem:[%s18721_s4 + $0x68] sm:$0xf] }
 0x5dd   : > { %11541 = vpow2.f32 %v9557_v34  ;;  %v3939_v29 = vpop.f32.mrf.mxu3  ;;  %v11130_v34 = vld [vmem:[%s18721_s4 + $0xec] sm:$0xf] }
 0x5de   : > { %v3946_v46 = vadd.f32 %v3939_v29, %v3697_v12  ;;  %v3915_v17 = vpop.f32.mrf.mxu1  ;;  %4313 = vmatpush.bf16.msrb.mxu2 %v9682_v57  ;;  %v9619_v57 = vld [vmem:[%s18721_s4 + $0x78] sm:$0xf0]  ;;  %v9595_v29 = vld [vmem:[%s18721_s4 + $0x50] sm:$0xf0] }
 0x5df   : > { %v3902_v30 = vpop.f32.mrf.mxu0  ;;  %v11127_v17 = vld [vmem:[%s18721_s4 + $0xcc] sm:$0xf0] }
 0x5e0   : > { %v9558_v15 = vmul.f32 -1.442695, %v3946_v46  ;;  %v9657_v46 = vld [vmem:[%s18721_s4 + $0xc0] sm:$0xf] }
 0x5e2   : > { %v11540_v11 = vpop.eup %11539  ;;  %11543 = vpow2.f32 %v9558_v15  ;;  %v9658_v15 = vor.u32 %v11127_v17, %v9657_v46 }
 0x5e3   : > { %v3926_v9 = vpop.f32.mrf.mxu2  ;;  %v11542_v22 = vpop.eup %11541  ;;  %v3950_v37 = vadd.f32 1.0, %v11540_v11 }
 0x5e4   : > { %v3969_v20 = vadd.f32 1.0, %v11542_v22  ;;  %v3945_v16 = vadd.f32 %v3926_v9, %v3696_v43  ;;  %v9683_v9 = vld [vmem:[%s18721_s4 + $0xf8] sm:$0xf0]  ;;  %v11125_v22 = vld [vmem:[%s18721_s4 + $0xc4] sm:$0xf]  ;;  %4256 = vmatpush.bf16.msrb.mxu0 %v9658_v15 }
 0x5e5   : > { %11545 = vrcp.f32 %v3950_v37  ;;  %v3941_v59 = vpop.f32.mrf.mxu3  ;;  %v3960_v0 = vand.u32 2147483647, %v3950_v37  ;;  %v3962_v41 = vand.u32 2147483648, %v3950_v37  ;;  %vm3956_vm12 = vweird.f32 %v3950_v37  ;;  %v11110_v15 = vld [vmem:[%s18721_s4 + $0x4c] sm:$0xf] }
 0x5e6   : > { %11547 = vrcp.f32 %v3969_v20  ;;  %v3981_v4 = vand.u32 2147483648, %v3969_v20  ;;  %v3979_v45 = vand.u32 2147483647, %v3969_v20  ;;  %vm3975_vm15 = vweird.f32 %v3969_v20 }
 0x5e7   : > { %vm14955_vm0 = vcmp.eq.f32.partialorder %v3960_v0, 8.507059e+37  ;;  %v3963_v2 = vor.u32 1.1754944e-38, %v3962_v41  ;;  %v9686_v30 = vor.u32 %v11130_v34, %v9683_v9  ;;  %v9649_v41 = vld [vmem:[%s18721_s4 + $0xa8] sm:$0xf]  ;;  %v9593_v34 = vld [vmem:[%s18721_s4 + $0x40] sm:$0xf] }
 0x5e8   : > { %v11544_v49 = vpop.eup %11543  ;;  %v3982_v5 = vor.u32 1.1754944e-38, %v3981_v4  ;;  %vm14963_vm13 = vcmp.eq.f32.partialorder %v3979_v45, 8.507059e+37  ;;  %v9643_v4 = vld [vmem:[%s18721_s4 + $0xb0] sm:$0xf0]  ;;  %v11111_v9 = vld [vmem:[%s18721_s4 + $0x4c] sm:$0xf0] }
 0x5e9   : > { %v14948_v62 = vadd.f32 1.0, %v11544_v49  ;;  %4342 = vmatpush.bf16.msrb.mxu3 %v9686_v30  ;;  %v11126_v49 = vld [vmem:[%s18721_s4 + $0xcc] sm:$0xf]  ;;  %v9601_v30 = vld [vmem:[%s18721_s4 + $0x48] sm:$0xf] }
 0x5eb   : > { %v3928_v60 = vpop.f32.mrf.mxu2  ;;  %v11546_v33 = vpop.eup %11545  ;;  %11549 = vrcp.f32 %v14948_v62  ;;  %v3999_v35 = vand.u32 2147483647, %v14948_v62  ;;  %v4001_v51 = vand.u32 2147483648, %v14948_v62 }
 0x5ec   : > { %v11548_v54 = vpop.eup %11547  ;;  %v3952_v38 = vmul.f32 %v11546_v33, %v3950_v37  ;;  %vm3957_vm7 = vweird.f32 %v11546_v33  ;;  %11551 = vtanh.f32 %v3945_v16  ;;  %v9659_v37 = vld [vmem:[%s18721_s4 + $0xd0] sm:$0xf0]  ;;  %v9641_v16 = vld [vmem:[%s18721_s4 + $0xa0] sm:$0xf] }
 0x5ed   : > { %v3971_v47 = vmul.f32 %v11548_v54, %v3969_v20  ;;  %vm3976_vm8 = vweird.f32 %v11548_v54  ;;  %vm14951_vm14 = vmor %vm3956_vm12, %vm3957_vm7  ;;  %vm3995_vm7 = vweird.f32 %v14948_v62  ;;  %v9665_v20 = vld [vmem:[%s18721_s4 + $0xc8] sm:$0xf]  ;;  %v9662_v59 = vor.u32 %v11125_v22, %v9659_v37  ;;  %v9603_v22 = vld [vmem:[%s18721_s4 + $0x58] sm:$0xf0] }
 0x5ee   : > { %v3953_v50 = vsub.f32 1.0, %v3952_v38  ;;  %vm14959_vm6 = vmor %vm3975_vm15, %vm3976_vm8  ;;  %v11121_v38 = vld [vmem:[%s18721_s4 + $0xa4] sm:$0xf]  ;;  %vm15092_vm12 = vcmp.eq.f32.partialorder %v3999_v35, 8.507059e+37  ;;  %v4002_v42 = vor.u32 1.1754944e-38, %v4001_v51 }
 0x5ef   : > { %v3972_v26 = vsub.f32 1.0, %v3971_v47  ;;  %4285 = vmatpush.bf16.msrb.mxu1 %v9662_v59  ;;  %v9646_v45 = vor.u32 %v11121_v38, %v9643_v4  ;;  %v9611_v51 = vld [vmem:[%s18721_s4 + $0x70] sm:$0xf0]  ;;  %v9606_v4 = vor.u32 %v11110_v15, %v9603_v22  ;;  %v9769_v15 = vld [vmem:[%s18722_s5 + $0xa0] sm:$0xf] }
 0x5f0   : > { %v3954_v23 = vmul.f32 %v11546_v33, %v3953_v50  ;;  %v11124_v50 = vld [vmem:[%s18721_s4 + $0xb4] sm:$0xf0] }
 0x5f1   : > { %v3973_v21 = vmul.f32 %v11548_v54, %v3972_v26  ;;  %v14969_v24 = vpop.eup %11549  ;;  %v9650_v26 = vor.u32 %v11124_v50, %v9649_v41  ;;  %v9585_v41 = vld [vmem:[%s18721_s4 + $0x28] sm:$0xf]  ;;  %v11108_v50 = vld [vmem:[%s18721_s4 + $0x34] sm:$0xf0] }
 0x5f2   : > { %v3955_v14 = vadd.f32 %v11546_v33, %v3954_v23  ;;  %v3991_v28 = vmul.f32 %v14969_v24, %v14948_v62  ;;  %vm3996_vm8 = vweird.f32 %v14969_v24  ;;  %v11552_v7 = vpop.eup %11551  ;;  %v11122_v23 = vld [vmem:[%s18721_s4 + $0xac] sm:$0xf]  ;;  %v11113_v62 = vld [vmem:[%s18721_s4 + $0x64] sm:$0xf] }
 0x5f3   : > { %v3974_v39 = vadd.f32 %v11548_v54, %v3973_v21  ;;  %vm15011_vm15 = vmor %vm3995_vm7, %vm3996_vm8  ;;  %v9651_v21 = vld [vmem:[%s18721_s4 + $0xb8] sm:$0xf0]  ;;  %4286 = vmatpush.bf16.msrb.mxu1 %v9646_v45  ;;  %v9614_v46 = vor.u32 %v11113_v62, %v9611_v51  ;;  %v11106_v45 = vld [vmem:[%s18721_s4 + $0x2c] sm:$0xf] }
 0x5f4   : > { %v3959_v8 = vsel %vm14951_vm14, %v11546_v33, %v3955_v14  ;;  %v3992_v12 = vsub.f32 1.0, %v3991_v28  ;;  %v9670_v33 = vor.u32 %v11126_v49, %v9667_v19  ;;  %v9654_v58 = vor.u32 %v11122_v23, %v9651_v21  ;;  %v9633_v14 = vld [vmem:[%s18721_s4 + $0x88] sm:$0xf]  ;;  %v9635_v28 = vld [vmem:[%s18721_s4 + $0x98] sm:$0xf0] }
 0x5f5   : > { %v3964_v52 = vsel %vm14955_vm0, %v3963_v2, %v3959_v8  ;;  %v3978_v18 = vsel %vm14959_vm6, %v11548_v54, %v3974_v39  ;;  %v11123_v54 = vld [vmem:[%s18721_s4 + $0xac] sm:$0xf0]  ;;  %v11117_v2 = vld [vmem:[%s18721_s4 + $0x84] sm:$0xf]  ;;  %v11118_v39 = vld [vmem:[%s18721_s4 + $0x8c] sm:$0xf]  ;;  %v9634_v35 = vor.u32 %v11120_v1, %v9633_v14 }
 0x5f6   : > { %v3983_v10 = vsel %vm14963_vm13, %v3982_v5, %v3978_v18  ;;  %v4006_v55 = vmul.f32 %v11552_v7, %v3964_v52  ;;  %v3993_v60 = vmul.f32 %v14969_v24, %v3992_v12  ;;  %v9642_v47 = vor.u32 %v11123_v54, %v9641_v16  ;;  %v9625_v5 = vld [vmem:[%s18721_s4 + $0x80] sm:$0xf]  ;;  %4343 = vmatpush.bf16.msrb.mxu3 %v9670_v33  ;;  %v11116_v7 = vld [vmem:[%s18721_s4 + $0x74] sm:$0xf0]  ;;  %v11114_v52 = vld [vmem:[%s18721_s4 + $0x6c] sm:$0xf] }
 0x5f7   : > { %v4005_v11 = vmul.f32 %v3983_v10, %v14742_v13  ;;  %v11128_v13 = vld [vmem:[%s18721_s4 + $0xd4] sm:$0xf0]  ;;  %v9626_v8 = vor.u32 %v11119_v31, %v9625_v5  ;;  %v9638_v27 = vor.u32 %v11118_v39, %v9635_v28  ;;  %v11109_v12 = vld [vmem:[%s18721_s4 + $0x44] sm:$0xf]  ;;  %v9618_v17 = vor.u32 %v11116_v7, %v9617_v56  ;;  %v9577_v19 = vld [vmem:[%s18721_s4 + $0x20] sm:$0xf] }
 0x5f8   : > { %v9666_v43 = vor.u32 %v11128_v13, %v9665_v20  ;;  %v3994_v0 = vadd.f32 %v14969_v24, %v3993_v60  ;;  %4257 = vmatpush.bf16.msrb.mxu0 %v9642_v47  ;;  %vm19079_vm14 = vcmask 516096   ;;  %v9622_v59 = vor.u32 %v11114_v52, %v9619_v57  ;;  %v11107_v16 = vld [vmem:[%s18721_s4 + $0x2c] sm:$0xf0]  ;;  %v9579_v47 = vld [vmem:[%s18721_s4 + $0x30] sm:$0xf0] }
 0x5f9   : > { %v4007_v53 = vadd.f32 %v4006_v55, %v4005_v11  ;;  %v9610_v55 = vor.u32 %v11115_v48, %v9609_v36  ;;  %v11112_v11 = vld [vmem:[%s18721_s4 + $0x54] sm:$0xf0]  ;;  %vm19080_vm0 = vcmask 1040896   ;;  %vm19081_vm6 = vmmov %vm19079_vm14  ;;  %v9594_v33 = vor.u32 %v11111_v9, %v9593_v34  ;;  %v9561_v21 = vld [vmem:[%s18721_s4] sm:$0xf] }
 0x5fa   : > { %4314 = vmatpush.bf16.msrb.mxu2 %v9666_v43  ;;  %v3998_v32 = vsel %vm15011_vm15, %v14969_v24, %v3994_v0  ;;  %v9630_v24 = vor.u32 %v11117_v2, %v9627_v25  ;;  %4344 = vmatpush.bf16.msrb.mxu3 %v9654_v58  ;;  %vm19082_vm13 = vmmov %vm19081_vm6  ;;  %v9598_v54 = vor.u32 %v11109_v12, %v9595_v29  ;;  %v11105_v0 = vld [vmem:[%s18721_s4 + $0x24] sm:$0xf]  ;;  %v11103_v5 = vld [vmem:[%s18721_s4 + $0xc] sm:$0xf0] }
 0x5fb   : > { %11553 = vtanh.f32 %v4007_v53  ;;  %v4003_v63 = vsel %vm15092_vm12, %v4002_v42, %v3998_v32  ;;  %v9602_v38 = vor.u32 %v11112_v11, %v9601_v30  ;;  %vm19083_vm7 = vmmov %vm19081_vm6  ;;  %v9578_v23 = vor.u32 %v11107_v16, %v9577_v19  ;;  %v11101_v2 = vld [vmem:[%s18721_s4 + $0x4] sm:$0xf]  ;;  %v9563_v25 = vld [vmem:[%s18721_s4 + $0x10] sm:$0xf0] }
 0x5fc   : > { %4258 = vmatpush.bf16.msrb.mxu0 %v9626_v8  ;;  %4287 = vmatpush.bf16.msrb.mxu1 %v9630_v24  ;;  %vm19084_vm8 = vmmov %vm19081_vm6  ;;  %v9582_v58 = vor.u32 %v11105_v0, %v9579_v47  ;;  %v9586_v31 = vor.u32 %v11108_v50, %v9585_v41  ;;  %v9569_v1 = vld [vmem:[%s18721_s4 + $0x8] sm:$0xf]  ;;  %v11104_v39 = vld [vmem:[%s18721_s4 + $0x14] sm:$0xf0]  ;;  %v9562_v42 = vor.u32 %v11103_v5, %v9561_v21 }
 0x5fd   : > { %vm19085_vm15 = vmmov %vm19081_vm6  ;;  %v11102_v32 = vld [vmem:[%s18721_s4 + $0xc] sm:$0xf]  ;;  %v9801_v8 = vld [vmem:[%s18722_s5 + $0xe0] sm:$0xf]  ;;  %v9566_v36 = vor.u32 %v11101_v2, %v9563_v25  ;;  %v9570_v24 = vor.u32 %v11104_v39, %v9569_v1 }
 0x5fe   : > { %4315 = vmatpush.bf16.msrb.mxu2 %v9650_v26  ;;  %4345 = vmatpush.bf16.msrb.mxu3 %v9638_v27  ;;  %v9587_v26 = vld [vmem:[%s18721_s4 + $0x38] sm:$0xf0]  ;;  %vm19086_vm12 = vmmov %vm19081_vm6  ;;  %v11163_v28 = vld [vmem:[%s18722_s5 + $0xec] sm:$0xf0]  ;;  %v9574_v62 = vor.u32 %v11102_v32, %v9571_v44 }
 0x5ff   : > { %v9590_v14 = vor.u32 %v11106_v45, %v9587_v26  ;;  %v9803_v48 = vld [vmem:[%s18722_s5 + $0xf0] sm:$0xf0]  ;;  %v9802_v51 = vor.u32 %v11163_v28, %v9801_v8  ;;  %v11162_v27 = vld [vmem:[%s18722_s5 + $0xec] sm:$0xf]  ;;  %v9811_v56 = vld [vmem:[%s18722_s5 + $0xf8] sm:$0xf0] }
 0x600   : > { %4259 = vmatpush.bf16.msrb.mxu0 %v9610_v55  ;;  %4288 = vmatpush.bf16.msrb.mxu1 %v9614_v46  ;;  %v9814_v52 = vor.u32 %v11162_v27, %v9811_v56  ;;  %v11157_v34 = vld [vmem:[%s18722_s5 + $0xc4] sm:$0xf]  ;;  %v9787_v9 = vld [vmem:[%s18722_s5 + $0xd0] sm:$0xf0]  ;;  %v11158_v55 = vld [vmem:[%s18722_s5 + $0xcc] sm:$0xf] }
 0x601   : > { %v11554_v18 = vpop.eup %11553  ;;  %v9795_v12 = vld [vmem:[%s18722_s5 + $0xd8] sm:$0xf0]  ;;  %v9809_v30 = vld [vmem:[%s18722_s5 + $0xe8] sm:$0xf]  ;;  %v9790_v11 = vor.u32 %v11157_v34, %v9787_v9  ;;  %v9753_v16 = vld [vmem:[%s18722_s5 + $0x80] sm:$0xf] }
 0x602   : > { %v15133_v10 = vmul.f32 %v11554_v18, %v4003_v63  ;;  %4316 = vmatpush.bf16.msrb.mxu2 %v9634_v35  ;;  %4346 = vmatpush.bf16.msrb.mxu3 %v9622_v59  ;;  %v11161_v35 = vld [vmem:[%s18722_s5 + $0xe4] sm:$0xf]  ;;  %v9785_v18 = vld [vmem:[%s18722_s5 + $0xc0] sm:$0xf]  ;;  %v11159_v63 = vld [vmem:[%s18722_s5 + $0xcc] sm:$0xf0]  ;;  %v9798_v22 = vor.u32 %v11158_v55, %v9795_v12 }
 0x603   : > { %v9806_v7 = vor.u32 %v11161_v35, %v9803_v48  ;;  %v9771_v59 = vld [vmem:[%s18722_s5 + $0xb0] sm:$0xf0]  ;;  %v9793_v19 = vld [vmem:[%s18722_s5 + $0xc8] sm:$0xf]  ;;  %v11149_v47 = vld [vmem:[%s18722_s5 + $0x84] sm:$0xf] }
 0x604   : > { %v4011_v37 = vrot.slane %v15133_v10, 1  ;;  %v4012_v20 = vrot.slane %v15133_v10, 2  ;;  %v4013_v60 = vrot.slane %v15133_v10, 3  ;;  %4025 = vst.msk [vmem:[#allocation2 + $0x7] sm:$0x1] %vm19079_vm14, %v15133_v10  ;;  %v4014_v13 = vrot.slane %v15133_v10, 4  ;;  %4260 = vmatpush.bf16.msrb.mxu0 %v9594_v33  ;;  %4289 = vmatpush.bf16.msrb.mxu1 %v9598_v54  ;;  %vm19087_vm14 = vmmov %vm19081_vm6 }
 0x605   : > { %v4015_v49 = vrot.slane %v15133_v10, 5  ;;  %4033 = vst.msk [vmem:[#allocation2] sm:$0x1] %vm19080_vm0, %v15133_v10  ;;  %v4016_v53 = vrot.slane %v15133_v10, 6  ;;  %v4017_v43 = vrot.slane %v15133_v10, 7 }
 0x606   : > { %4026 = vst.msk [vmem:[#allocation2 + $0xf] sm:$0x1] %vm19081_vm6, %v4011_v37  ;;  %4317 = vmatpush.bf16.msrb.mxu2 %v9618_v17  ;;  %4347 = vmatpush.bf16.msrb.mxu3 %v9606_v4  ;;  %vm19088_vm6 = vmmov %vm19080_vm0  ;;  %v11164_v10 = vld [vmem:[%s18722_s5 + $0xf4] sm:$0xf0]  ;;  %v9786_v17 = vor.u32 %v11159_v63, %v9785_v18  ;;  %v11151_v54 = vld [vmem:[%s18722_s5 + $0x8c] sm:$0xf0] }
 0x607   : > { %4027 = vst.msk [vmem:[#allocation2 + $0x17] sm:$0x1] %vm19082_vm13, %v4012_v20  ;;  %vm19089_vm13 = vmmov %vm19080_vm0  ;;  %v9755_v4 = vld [vmem:[%s18722_s5 + $0x90] sm:$0xf0]  ;;  %v11150_v41 = vld [vmem:[%s18722_s5 + $0x8c] sm:$0xf] }
 0x608   : > { %4028 = vst.msk [vmem:[#allocation2 + $0x1f] sm:$0x1] %vm19083_vm7, %v4013_v60  ;;  %4261 = vmatpush.bf16.msrb.mxu0 %v9578_v23  ;;  %4290 = vmatpush.bf16.msrb.mxu1 %v9582_v58  ;;  %vm19090_vm7 = vmmov %vm19080_vm0  ;;  %v9763_v50 = vld [vmem:[%s18722_s5 + $0x98] sm:$0xf0]  ;;  %v9777_v45 = vld [vmem:[%s18722_s5 + $0xa8] sm:$0xf]  ;;  %v9754_v23 = vor.u32 %v11151_v54, %v9753_v16  ;;  %v9758_v21 = vor.u32 %v11149_v47, %v9755_v4 }
 0x609   : > { %4029 = vst.msk [vmem:[#allocation2 + $0x27] sm:$0x1] %vm19084_vm8, %v4014_v13  ;;  %vm19091_vm8 = vmmov %vm19080_vm0  ;;  %v11156_v26 = vld [vmem:[%s18722_s5 + $0xb4] sm:$0xf0]  ;;  %v9737_v5 = vld [vmem:[%s18722_s5 + $0x60] sm:$0xf] }
 0x60a   : > { %4030 = vst.msk [vmem:[#allocation2 + $0x2f] sm:$0x1] %vm19085_vm15, %v4015_v49  ;;  %4318 = vmatpush.bf16.msrb.mxu2 %v9602_v38  ;;  %4348 = vmatpush.bf16.msrb.mxu3 %v9590_v14  ;;  %vm19092_vm15 = vmmov %vm19080_vm0  ;;  %v11147_v58 = vld [vmem:[%s18722_s5 + $0x6c] sm:$0xf0]  ;;  %v9778_v2 = vor.u32 %v11156_v26, %v9777_v45  ;;  %v11145_v25 = vld [vmem:[%s18722_s5 + $0x64] sm:$0xf] }
 0x60b   : > { %4031 = vst.msk [vmem:[#allocation2 + $0x37] sm:$0x1] %vm19086_vm12, %v4016_v53  ;;  %vm19093_vm12 = vmmov %vm19080_vm0  ;;  %v9739_v14 = vld [vmem:[%s18722_s5 + $0x70] sm:$0xf0]  ;;  %v11146_v1 = vld [vmem:[%s18722_s5 + $0x6c] sm:$0xf]  ;;  %v9738_v28 = vor.u32 %v11147_v58, %v9737_v5 }
 0x60c   : > { %4032 = vst.msk [vmem:[#allocation2 + $0x3f] sm:$0x1] %vm19087_vm14, %v4017_v43  ;;  %4262 = vmatpush.bf16.msrb.mxu0 %v9562_v42  ;;  %v4041_v57 = vld [vmem:[#allocation2] sm:$0xff]  ;;  %4291 = vmatpush.bf16.msrb.mxu1 %v9566_v36  ;;  %v9747_v39 = vld [vmem:[%s18722_s5 + $0x78] sm:$0xf0]  ;;  %v9742_v36 = vor.u32 %v11145_v25, %v9739_v14  ;;  %vm19104_vm14 = vcmask 1046534  }
 0x60d   : > { %4034 = vst.msk [vmem:[#allocation2 + $0x8] sm:$0x1] %vm19080_vm0, %v4011_v37  ;;  %v9810_v37 = vor.u32 %v11164_v10, %v9809_v30  ;;  %v9761_v32 = vld [vmem:[%s18722_s5 + $0x88] sm:$0xf]  ;;  %v11152_v44 = vld [vmem:[%s18722_s5 + $0x94] sm:$0xf0]  ;;  %v9750_v48 = vor.u32 %v11146_v1, %v9747_v39  ;;  %vm19105_vm0 = vmmov %vm19104_vm14 }
 0x60e   : > { %4035 = vst.msk [vmem:[#allocation2 + $0x10] sm:$0x1] %vm19088_vm6, %v4012_v20  ;;  %4319 = vmatpush.bf16.msrb.mxu2 %v9586_v31  ;;  %4349 = vmatpush.bf16.msrb.mxu3 %v9574_v62  ;;  %v11155_v20 = vld [vmem:[%s18722_s5 + $0xac] sm:$0xf0]  ;;  %v9766_v31 = vor.u32 %v11150_v41, %v9763_v50  ;;  %v9762_v62 = vor.u32 %v11152_v44, %v9761_v32  ;;  %v9723_v27 = vld [vmem:[%s18722_s5 + $0x50] sm:$0xf0] }
 0x60f   : > { %4036 = vst.msk [vmem:[#allocation2 + $0x18] sm:$0x1] %vm19089_vm13, %v4013_v60  ;;  %v11153_v60 = vld [vmem:[%s18722_s5 + $0xa4] sm:$0xf]  ;;  %v11143_v35 = vld [vmem:[%s18722_s5 + $0x4c] sm:$0xf0] }
 0x610   : > { %4037 = vst.msk [vmem:[#allocation2 + $0x20] sm:$0x1] %vm19090_vm7, %v4014_v13  ;;  %4719 = vmatpush.bf16.msra.mxu0 %v9802_v51  ;;  %4732 = vmatpush.bf16.msra.mxu1 %v9806_v7  ;;  %v11154_v13 = vld [vmem:[%s18722_s5 + $0xac] sm:$0xf]  ;;  %v9774_v33 = vor.u32 %v11153_v60, %v9771_v59  ;;  %v11141_v51 = vld [vmem:[%s18722_s5 + $0x44] sm:$0xf]  ;;  %vm19110_vm7 = vmmov %vm19105_vm0 }
 0x611   : > { %4038 = vst.msk [vmem:[#allocation2 + $0x28] sm:$0x1] %vm19091_vm8, %v4015_v49  ;;  %v9779_v49 = vld [vmem:[%s18722_s5 + $0xb8] sm:$0xf0]  ;;  %v11142_v56 = vld [vmem:[%s18722_s5 + $0x4c] sm:$0xf]  ;;  %v9726_v34 = vor.u32 %v11141_v51, %v9723_v27  ;;  %vm19111_vm8 = vmmov %vm19105_vm0 }
 0x612   : > { %4039 = vst.msk [vmem:[#allocation2 + $0x30] sm:$0x1] %vm19092_vm15, %v4016_v53  ;;  %4320 = vmatpush.bf16.msrb.mxu2 %v9570_v24  ;;  %4758 = vmatpush.bf16.msra.mxu3 %v9814_v52  ;;  %v11160_v53 = vld [vmem:[%s18722_s5 + $0xd4] sm:$0xf0]  ;;  %v9782_v38 = vor.u32 %v11154_v13, %v9779_v49  ;;  %v9721_v24 = vld [vmem:[%s18722_s5 + $0x40] sm:$0xf] }
 0x613   : > { %4040 = vst.msk [vmem:[#allocation2 + $0x38] sm:$0x1] %vm19093_vm12, %v4017_v43  ;;  %v9770_v43 = vor.u32 %v11155_v20, %v9769_v15  ;;  %v9794_v0 = vor.u32 %v11160_v53, %v9793_v19  ;;  %v9731_v7 = vld [vmem:[%s18722_s5 + $0x58] sm:$0xf0]  ;;  %v9745_v52 = vld [vmem:[%s18722_s5 + $0x68] sm:$0xf] }
 0x614   : > { %v4042_v29 = vld [vmem:[#allocation2 + $0x8] sm:$0xff]  ;;  %4720 = vmatpush.bf16.msra.mxu0 %v9786_v17  ;;  %4733 = vmatpush.bf16.msra.mxu1 %v9790_v11  ;;  %v11148_v18 = vld [vmem:[%s18722_s5 + $0x74] sm:$0xf0]  ;;  %v9734_v9 = vor.u32 %v11142_v56, %v9731_v7  ;;  %v9705_v12 = vld [vmem:[%s18722_s5 + $0x20] sm:$0xf]  ;;  %vm19106_vm6 = vcmask 1047559  }
 0x615   : > { %v4049_v46 = vpack.c.bf16 %v4042_v29, %v4041_v57  ;;  %v4043_v42 = vld [vmem:[#allocation2 + $0x10] sm:$0xff]  ;;  %v9722_v57 = vor.u32 %v11143_v35, %v9721_v24  ;;  %v9746_v55 = vor.u32 %v11148_v18, %v9745_v52  ;;  %v11137_v30 = vld [vmem:[%s18722_s5 + $0x24] sm:$0xf]  ;;  %v9729_v17 = vld [vmem:[%s18722_s5 + $0x48] sm:$0xf] }
 0x616   : > { %4759 = vmatpush.bf16.msra.mxu3 %v9798_v22  ;;  %4745 = vmatpush.bf16.msra.mxu2 %v9810_v37  ;;  %v4044_v8 = vld [vmem:[#allocation2 + $0x18] sm:$0xff]  ;;  %v11139_v29 = vld [vmem:[%s18722_s5 + $0x2c] sm:$0xf0]  ;;  %v11138_v37 = vld [vmem:[%s18722_s5 + $0x2c] sm:$0xf] }
 0x617   : > { %4263 = vmatmul.bf16.vlgmr.msrb.gmra.mxu0 %v4049_v46  ;;  %4292 = vmatmul.bf16.vlgmr.msrb.gmra.mxu1 %v4049_v46  ;;  %v4050_v63 = vpack.c.bf16 %v4044_v8, %v4043_v42  ;;  %v9706_v10 = vor.u32 %v11139_v29, %v9705_v12  ;;  %v11144_v11 = vld [vmem:[%s18722_s5 + $0x54] sm:$0xf0]  ;;  %v9715_v20 = vld [vmem:[%s18722_s5 + $0x38] sm:$0xf0]  ;;  %v9689_v60 = vld [vmem:[%s18722_s5] sm:$0xf] }
 0x618   : > { %4321 = vmatmul.bf16.vlgmr.msrb.gmra.mxu2 %v4049_v46  ;;  %4350 = vmatmul.bf16.vlgmr.msrb.gmra.mxu3 %v4049_v46  ;;  %v9707_v46 = vld [vmem:[%s18722_s5 + $0x30] sm:$0xf0]  ;;  %v9730_v22 = vor.u32 %v11144_v11, %v9729_v17  ;;  %v9718_v59 = vor.u32 %v11138_v37, %v9715_v20  ;;  %v11135_v13 = vld [vmem:[%s18722_s5 + $0xc] sm:$0xf0]  ;;  %v11133_v49 = vld [vmem:[%s18722_s5 + $0x4] sm:$0xf] }
 0x619   : > { %4721 = vmatpush.bf16.msra.mxu0 %v9770_v43  ;;  %4734 = vmatpush.bf16.msra.mxu1 %v9774_v33  ;;  %v9710_v15 = vor.u32 %v11137_v30, %v9707_v46  ;;  %v9691_v19 = vld [vmem:[%s18722_s5 + $0x10] sm:$0xf0]  ;;  %v9713_v53 = vld [vmem:[%s18722_s5 + $0x28] sm:$0xf]  ;;  %v11140_v43 = vld [vmem:[%s18722_s5 + $0x34] sm:$0xf0]  ;;  %v9690_v33 = vor.u32 %v11135_v13, %v9689_v60 }
 0x61a   : > { %4760 = vmatpush.bf16.msra.mxu3 %v9782_v38  ;;  %4746 = vmatpush.bf16.msra.mxu2 %v9794_v0  ;;  %v9694_v16 = vor.u32 %v11133_v49, %v9691_v19  ;;  %v11134_v54 = vld [vmem:[%s18722_s5 + $0xc] sm:$0xf]  ;;  %v9699_v38 = vld [vmem:[%s18722_s5 + $0x18] sm:$0xf0]  ;;  %v9714_v0 = vor.u32 %v11140_v43, %v9713_v53  ;;  %v9697_v4 = vld [vmem:[%s18722_s5 + $0x8] sm:$0xf] }
 0x61b   : > { %v9702_v47 = vor.u32 %v11134_v54, %v9699_v38  ;;  %v11136_v41 = vld [vmem:[%s18722_s5 + $0x14] sm:$0xf0]  ;;  %v4045_v50 = vld [vmem:[#allocation2 + $0x20] sm:$0xff]  ;;  %v4046_v45 = vld [vmem:[#allocation2 + $0x28] sm:$0xff] }
 0x61c   : > { %v9698_v26 = vor.u32 %v11136_v41, %v9697_v4  ;;  %v4048_v5 = vld [vmem:[#allocation2 + $0x38] sm:$0xff]  ;;  %vm19108_vm13 = vmmov %vm19106_vm6 }
 0x61d   : > { %4722 = vmatpush.bf16.msra.mxu0 %v9754_v23  ;;  %4735 = vmatpush.bf16.msra.mxu1 %v9758_v21  ;;  %v4051_v23 = vpack.c.bf16 %v4046_v45, %v4045_v50  ;;  %v4047_v21 = vld [vmem:[#allocation2 + $0x30] sm:$0xff]  ;;  %vm19112_vm15 = vmmov %vm19106_vm6 }
 0x61e   : > { %4761 = vmatpush.bf16.msra.mxu3 %v9766_v31  ;;  %4747 = vmatpush.bf16.msra.mxu2 %v9778_v2  ;;  %v4052_v58 = vpack.c.bf16 %v4048_v5, %v4047_v21  ;;  %v19094_v31 = vmov 0   ;;  %vm19114_vm12 = vmmov %vm19106_vm6 }
 0x621   : > { %4723 = vmatpush.bf16.msra.mxu0 %v9738_v28  ;;  %4736 = vmatpush.bf16.msra.mxu1 %v9742_v36 }
 0x622   : > { %4762 = vmatpush.bf16.msra.mxu3 %v9750_v48  ;;  %4748 = vmatpush.bf16.msra.mxu2 %v9762_v62  ;;  %v4085_v62 = vld [vmem:[%s18723_s6] sm:$0xf] }
 0x623   : > { %v15435_v56 = vperm.slane %v4085_v62, 0  ;;  %v15437_v7 = vperm.slane %v4085_v62, 1 }
 0x625   : > { %4724 = vmatpush.bf16.msra.mxu0 %v9722_v57  ;;  %4737 = vmatpush.bf16.msra.mxu1 %v9726_v34  ;;  %v15441_v57 = vperm.slane %v4085_v62, 3 }
 0x626   : > { %4763 = vmatpush.bf16.msra.mxu3 %v9734_v9  ;;  %4749 = vmatpush.bf16.msra.mxu2 %v9746_v55 }
 0x627   : > { %4268 = vmatmul.bf16.gmra.mxu0 %v4050_v63  ;;  %4297 = vmatmul.bf16.gmra.mxu1 %v4050_v63 }
 0x628   : > { %4326 = vmatmul.bf16.gmra.mxu2 %v4050_v63  ;;  %4355 = vmatmul.bf16.gmra.mxu3 %v4050_v63  ;;  %v15439_v63 = vperm.slane %v4085_v62, 2 }
 0x629   : > { %4725 = vmatpush.bf16.msra.mxu0 %v9706_v10  ;;  %4738 = vmatpush.bf16.msra.mxu1 %v9710_v15 }
 0x62a   : > { %4750 = vmatpush.bf16.msra.mxu2 %v9730_v22  ;;  %4764 = vmatpush.bf16.msra.mxu3 %v9718_v59 }
 0x62d   : > { %4726 = vmatpush.bf16.msra.mxu0 %v9690_v33  ;;  %4739 = vmatpush.bf16.msra.mxu1 %v9694_v16 }
 0x62e   : > { %4751 = vmatpush.bf16.msra.mxu2 %v9714_v0  ;;  %4765 = vmatpush.bf16.msra.mxu3 %v9702_v47 }
 0x632   : > { %4752 = vmatpush.bf16.msra.mxu2 %v9698_v26 }
 0x637   : > { %4273 = vmatmul.bf16.gmra.mxu0 %v4051_v23  ;;  %4302 = vmatmul.bf16.gmra.mxu1 %v4051_v23 }
 0x638   : > { %4331 = vmatmul.bf16.gmra.mxu2 %v4051_v23  ;;  %4360 = vmatmul.bf16.gmra.mxu3 %v4051_v23 }
 0x647   : > { %4278 = vmatmul.bf16.gmra.mxu0 %v4052_v58  ;;  %4307 = vmatmul.bf16.gmra.mxu1 %v4052_v58 }
 0x648   : > { %4336 = vmatmul.bf16.gmra.mxu2 %v4052_v58  ;;  %4365 = vmatmul.bf16.gmra.mxu3 %v4052_v58 }
 0x657   : > { %4727 = vmatmul.bf16.vlgmr.msra.gmra.mxu0 %v19094_v31  ;;  %4740 = vmatmul.bf16.vlgmr.msra.gmra.mxu1 %v19094_v31 }
 0x658   : > { %4753 = vmatmul.bf16.vlgmr.msra.gmra.mxu2 %v19094_v31  ;;  %4766 = vmatmul.bf16.vlgmr.msra.gmra.mxu3 %v19094_v31 }
 0x694   : > { %v4264_v2 = vpop.f32.mrf.mxu0  ;;  %v4293_v25 = vpop.f32.mrf.mxu1 }
 0x695   : > { %v15447_v9 = vadd.f32 %v4264_v2, %v15435_v56  ;;  %v15450_v55 = vadd.f32 %v4293_v25, %v15437_v7 }
 0x697   : > { %v4463_v13 = vrot.slane %v15447_v9, 7  ;;  %v4477_v19 = vrot.slane %v15450_v55, 7 }
 0x69b   : > { %v4322_v14 = vpop.f32.mrf.mxu2  ;;  %v4351_v1 = vpop.f32.mrf.mxu3 }
 0x69c   : > { %v4266_v39 = vpop.f32.mrf.mxu0  ;;  %v4295_v32 = vpop.f32.mrf.mxu1  ;;  %v15456_v29 = vadd.f32 %v4322_v14, %v15439_v63  ;;  %v15459_v30 = vadd.f32 %v4351_v1, %v15441_v57 }
 0x69d   : > { %v15444_v34 = vadd.f32 %v4266_v39, %v15435_v56  ;;  %v15453_v12 = vadd.f32 %v4295_v32, %v15437_v7 }
 0x69e   : > { %v4491_v33 = vrot.slane %v15456_v29, 7  ;;  %v4505_v54 = vrot.slane %v15459_v30, 7 }
 0x69f   : > { %v4403_v17 = vrot.slane %v15444_v34, 7  ;;  %v4464_v20 = vrot.slane %v15444_v34, 6  ;;  %v4417_v49 = vrot.slane %v15453_v12, 7  ;;  %v4478_v53 = vrot.slane %v15453_v12, 6 }
 0x6a1   : > { %v4404_v0 = vsel %vm778_vm1, %v4403_v17, %v15447_v9  ;;  %v4465_v50 = vsel %vm778_vm1, %v4464_v20, %v4463_v13  ;;  %v4418_v21 = vsel %vm778_vm1, %v4417_v49, %v15450_v55  ;;  %v4479_v5 = vsel %vm778_vm1, %v4478_v53, %v4477_v19 }
 0x6a3   : > { %v4324_v44 = vpop.f32.mrf.mxu2  ;;  %v4353_v42 = vpop.f32.mrf.mxu3 }
 0x6a4   : > { %v4269_v8 = vpop.f32.mrf.mxu0  ;;  %v4298_v28 = vpop.f32.mrf.mxu1  ;;  %v15462_v10 = vadd.f32 %v4324_v44, %v15439_v63  ;;  %v15465_v46 = vadd.f32 %v4353_v42, %v15441_v57 }
 0x6a5   : > { %v15469_v11 = vadd.f32 %v4269_v8, %v15435_v56  ;;  %v15472_v15 = vadd.f32 %v4298_v28, %v15437_v7 }
 0x6a6   : > { %19095 = vst [vmem:[#allocation16_spill] sm:$0xff] %v15465_v46  ;;  %v4431_v43 = vrot.slane %v15462_v10, 7  ;;  %v4492_v16 = vrot.slane %v15462_v10, 6  ;;  %v4445_v47 = vrot.slane %v15465_v46, 7  ;;  %v4506_v4 = vrot.slane %v15465_v46, 6 }
 0x6a7   : > { %19096 = vst [vmem:[#allocation9_spill] sm:$0xff] %v15469_v11  ;;  %v4405_v41 = vrot.slane %v15469_v11, 6  ;;  %v4466_v45 = vrot.slane %v15469_v11, 5  ;;  %v4419_v26 = vrot.slane %v15472_v15, 6  ;;  %v4480_v58 = vrot.slane %v15472_v15, 5 }
 0x6a8   : > { %v15513_v25 = vsel %vm778_vm1, %v4431_v43, %v15456_v29  ;;  %v15516_v14 = vsel %vm778_vm1, %v4492_v16, %v4491_v33  ;;  %v4446_v39 = vsel %vm778_vm1, %v4445_v47, %v15459_v30  ;;  %v4507_v44 = vsel %vm778_vm1, %v4506_v4, %v4505_v54 }
 0x6a9   : > { %v4481_v17 = vsel %vm781_vm2, %v4480_v58, %v4479_v5 }
 0x6ab   : > { %v4327_v36 = vpop.f32.mrf.mxu2  ;;  %v4356_v24 = vpop.f32.mrf.mxu3 }
 0x6ac   : > { %v4271_v35 = vpop.f32.mrf.mxu0  ;;  %v4300_v48 = vpop.f32.mrf.mxu1  ;;  %v15488_v38 = vadd.f32 %v4356_v24, %v15441_v57  ;;  %v15499_v23 = vadd.f32 %v4327_v36, %v15439_v63  ;;  %v4406_v36 = vsel %vm781_vm2, %v4405_v41, %v4404_v0  ;;  %v4467_v24 = vsel %vm781_vm2, %v4466_v45, %v4465_v50 }
 0x6ad   : > { %v15506_v31 = vadd.f32 %v4271_v35, %v15435_v56  ;;  %v15509_v2 = vadd.f32 %v4300_v48, %v15437_v7  ;;  %v4420_v35 = vsel %vm781_vm2, %v4419_v26, %v4418_v21 }
 0x6ae   : > { %19097 = vst [vmem:[#allocation20_spill] sm:$0xff] %v15499_v23  ;;  %v4447_v32 = vrot.slane %v15488_v38, 6 }
 0x6af   : > { %19098 = vst [vmem:[#allocation4_spill] sm:$0xff] %v15506_v31  ;;  %v4407_v13 = vrot.slane %v15506_v31, 5  ;;  %v4468_v49 = vrot.slane %v15506_v31, 4  ;;  %v4421_v19 = vrot.slane %v15509_v2, 5  ;;  %v4482_v53 = vrot.slane %v15509_v2, 4 }
 0x6b0   : > { %v4448_v33 = vsel %vm781_vm2, %v4447_v32, %v4446_v39 }
 0x6b1   : > { %v4408_v26 = vsel %vm784_vm3, %v4407_v13, %v4406_v36  ;;  %v4422_v21 = vsel %vm784_vm3, %v4421_v19, %v4420_v35  ;;  %v4483_v5 = vsel %vm784_vm3, %v4482_v53, %v4481_v17 }
 0x6b3   : > { %v15433_v51 = vpop.f32.mrf.mxu2  ;;  %v4358_v27 = vpop.f32.mrf.mxu3 }
 0x6b4   : > { %v4274_v52 = vpop.f32.mrf.mxu0  ;;  %v4303_v18 = vpop.f32.mrf.mxu1  ;;  %v15519_v1 = vadd.f32 %v4358_v27, %v15441_v57  ;;  %v15569_v58 = vadd.f32 %v15433_v51, %v15439_v63 }
 0x6b5   : > { %v15526_v42 = vadd.f32 %v4274_v52, %v15435_v56  ;;  %v15534_v48 = vadd.f32 %v4303_v18, %v15437_v7  ;;  %v4508_v52 = vrot.slane %v15488_v38, 5 }
 0x6b6   : > { %v4449_v16 = vrot.slane %v15519_v1, 5  ;;  %v4510_v4 = vrot.slane %v15519_v1, 4  ;;  %19101 = vst [vmem:[#allocation8_spill] sm:$0xff] %v15569_v58 }
 0x6b7   : > { %v4409_v0 = vrot.slane %v15526_v42, 4  ;;  %v4470_v47 = vrot.slane %v15526_v42, 3  ;;  %v4423_v50 = vrot.slane %v15534_v48, 4  ;;  %v4509_v45 = vsel %vm781_vm2, %v4508_v52, %v4507_v44 }
 0x6b8   : > { %v4484_v32 = vrot.slane %v15534_v48, 3  ;;  %v4511_v17 = vsel %vm784_vm3, %v4510_v4, %v4509_v45 }
 0x6b9   : > { %v4410_v36 = vsel %vm18793_vm4, %v4409_v0, %v4408_v26  ;;  %v4424_v19 = vsel %vm18793_vm4, %v4423_v50, %v4422_v21 }
 0x6bb   : > { %v15474_v22 = vpop.f32.mrf.mxu2  ;;  %v15476_v37 = vpop.f32.mrf.mxu3 }
 0x6bc   : > { %v4276_v60 = vpop.f32.mrf.mxu0  ;;  %v4305_v59 = vpop.f32.mrf.mxu1  ;;  %v15580_v51 = vadd.f32 %v15476_v37, %v15441_v57 }
 0x6bd   : > { %v15544_v43 = vadd.f32 %v4276_v60, %v15435_v56  ;;  %v15550_v54 = vadd.f32 %v4305_v59, %v15437_v7  ;;  %v4469_v59 = vsel %vm784_vm3, %v4468_v49, %v4467_v24 }
 0x6be   : > { %v4471_v24 = vsel %vm18793_vm4, %v4470_v47, %v4469_v59 }
 0x6bf   : > { %19099 = vst [vmem:[#allocation3_spill] sm:$0xff] %v15544_v43  ;;  %v4411_v39 = vrot.slane %v15544_v43, 3  ;;  %v4425_v35 = vrot.slane %v15550_v54, 3  ;;  %v4472_v0 = vrot.slane %v15544_v43, 2  ;;  %v4486_v47 = vrot.slane %v15550_v54, 2 }
 0x6c1   : > { %v4412_v4 = vsel %vm18792_vm5, %v4411_v39, %v4410_v36  ;;  %v4451_v39 = vrot.slane %v15580_v51, 4 }
 0x6c3   : > { %v15528_v8 = vpop.f32.mrf.mxu2  ;;  %v4363_v28 = vpop.f32.mrf.mxu3 }
 0x6c4   : > { %v4279_v62 = vpop.f32.mrf.mxu0  ;;  %v4308_v27 = vpop.f32.mrf.mxu1  ;;  %v15594_v37 = vadd.f32 %v4363_v28, %v15441_v57 }
 0x6c5   : > { %v15556_v41 = vadd.f32 %v4279_v62, %v15435_v56  ;;  %v15559_v60 = vadd.f32 %v4308_v27, %v15437_v7  ;;  %v4450_v62 = vsel %vm784_vm3, %v4449_v16, %v4448_v33 }
 0x6c7   : > { %19100 = vst [vmem:[#allocation7_spill] sm:$0xff] %v15559_v60  ;;  %v4413_v49 = vrot.slane %v15556_v41, 2  ;;  %v4427_v53 = vrot.slane %v15559_v60, 2  ;;  %v4474_v45 = vrot.slane %v15556_v41, 1  ;;  %v4488_v50 = vrot.slane %v15559_v60, 1 }
 0x6c9   : > { %v4414_v21 = vsel %vm19104_vm14, %v4413_v49, %v4412_v4  ;;  %vm19116_vm14 = vcmp.lt.s32.totalorder %v12164_v40, 64 }
 0x6cb   : > { %v4337_v27 = vpop.f32.mrf.mxu2  ;;  %v4366_v44 = vpop.f32.mrf.mxu3 }
 0x6cc   : > { %v4281_v52 = vpop.f32.mrf.mxu0  ;;  %v4310_v13 = vpop.f32.mrf.mxu1  ;;  %v15600_v26 = vadd.f32 %v4366_v44, %v15441_v57  ;;  %v4473_v44 = vsel %vm18792_vm5, %v4472_v0, %v4471_v24  ;;  %v15656_v18 = vadd.f32 %v4337_v27, %v15439_v63  ;;  %v4496_v27 = vrot.slane %v15569_v58, 4 }
 0x6cd   : > { %v15586_v33 = vadd.f32 %v4281_v52, %v15435_v56  ;;  %v15589_v16 = vadd.f32 %v4310_v13, %v15437_v7  ;;  %v4426_v7 = vsel %vm18792_vm5, %v4425_v35, %v4424_v19  ;;  %v4485_v52 = vsel %vm18793_vm4, %v4484_v32, %v4483_v5 }
 0x6ce   : > { %v4428_v28 = vsel %vm19105_vm0, %v4427_v53, %v4426_v7  ;;  %v4487_v35 = vsel %vm18792_vm5, %v4486_v47, %v4485_v52  ;;  %v4475_v19 = vsel %vm19110_vm7, %v4474_v45, %v4473_v44  ;;  %v4453_v53 = vrot.slane %v15594_v37, 3  ;;  %vm19119_vm7 = vmmov %vm19106_vm6 }
 0x6cf   : > { %19102 = vst [vmem:[#allocation5_spill] sm:$0xff] %v15586_v33  ;;  %v4415_v56 = vrot.slane %v15586_v33, 1  ;;  %v4429_v59 = vrot.slane %v15589_v16, 1  ;;  %v4489_v49 = vsel %vm19111_vm8, %v4488_v50, %v4487_v35  ;;  %v4512_v5 = vrot.slane %v15580_v51, 3  ;;  %vm19123_vm8 = vmmov %vm19105_vm0 }
 0x6d0   : > { %19103 = vst [vmem:[#allocation6_spill] sm:$0xff] %v15589_v16  ;;  %v15623_v32 = vadd.f32 %v15474_v22, %v15439_v63  ;;  %v15627_v24 = vsel %vm19112_vm15, %v15586_v33, %v4475_v19  ;;  %v15631_v0 = vsel %vm19114_vm12, %v15589_v16, %v4489_v49  ;;  %v4455_v47 = vrot.slane %v15600_v26, 2  ;;  %vm19124_vm15 = vmmov %vm19106_vm6 }
 0x6d1   : > { %v15610_v36 = vsel %vm19106_vm6, %v4415_v56, %v4414_v21  ;;  %v15614_v13 = vsel %vm19108_vm13, %v4429_v59, %v4428_v28  ;;  %19113 = vst [vmem:[#allocation12_spill] sm:$0xff] %v15627_v24  ;;  %v4514_v21 = vrot.slane %v15594_v37, 2  ;;  %v4452_v44 = vsel %vm18793_vm4, %v4451_v39, %v4450_v62  ;;  %vm19118_vm13 = vmmov %vm19105_vm0 }
 0x6d2   : > { %19107 = vst [vmem:[#allocation19_spill] sm:$0xff] %v15610_v36  ;;  %v4523_v22 = vsel %vm19116_vm14, %v15610_v36, %v15627_v24  ;;  %v4524_v7 = vsel %vm12301_vm9, %v15614_v13, %v15631_v0  ;;  %v15650_v35 = vadd.f32 %v15528_v8, %v15439_v63  ;;  %v4454_v19 = vsel %vm18792_vm5, %v4453_v53, %v4452_v44  ;;  %vm19126_vm12 = vmmov %vm19105_vm0 }
 0x6d3   : > { %19109 = vst [vmem:[#allocation10_spill] sm:$0xff] %v15614_v13  ;;  %v4339_v4 = vpop.f32.mrf.mxu2  ;;  %v4368_v56 = vpop.f32.mrf.mxu3  ;;  %v4435_v39 = vrot.slane %v15569_v58, 5  ;;  %vm19127_vm14 = vmmov %vm19106_vm6 }
 0x6d4   : > { %19115 = vst [vmem:[#allocation11_spill] sm:$0xff] %v15631_v0  ;;  %v15635_v45 = vadd.f32 %v4368_v56, %v15441_v57  ;;  %v4728_v50 = vpop.f32.mrf.mxu0  ;;  %v4741_v59 = vpop.f32.mrf.mxu1  ;;  %v4516_v57 = vrot.slane %v15600_v26, 1  ;;  %v4513_v56 = vsel %vm18793_vm4, %v4512_v5, %v4511_v17  ;;  %v15660_v62 = vadd.f32 %v4339_v4, %v15439_v63 }
 0x6d5   : > { %v4771_v28 = vadd.f32 %v4728_v50, %v4523_v22  ;;  %v4772_v52 = vadd.f32 %v4741_v59, %v4524_v7  ;;  %v4456_v50 = vsel %vm19105_vm0, %v4455_v47, %v4454_v19  ;;  %v4515_v53 = vsel %vm18792_vm5, %v4514_v21, %v4513_v56 }
 0x6d6   : > { %v4457_v49 = vrot.slane %v15635_v45, 1  ;;  %v4437_v17 = vrot.slane %v15623_v32, 4  ;;  %v4517_v5 = vsel %vm19118_vm13, %v4516_v57, %v4515_v53  ;;  %v4439_v47 = vrot.slane %v15650_v35, 3 }
 0x6d7   : > { %v9815_v20 = vmul.f32 -1.442695, %v4771_v28  ;;  %v9816_v22 = vmul.f32 -1.442695, %v4772_v52  ;;  %v4498_v63 = vrot.slane %v15623_v32, 3  ;;  %v15674_v4 = vsel %vm19119_vm7, %v15635_v45, %v4517_v5 }
 0x6d8   : > { %v15664_v8 = vsel %vm19106_vm6, %v4457_v49, %v4456_v50  ;;  %19120 = vst [vmem:[#allocation14_spill] sm:$0xff] %v15674_v4  ;;  %v19121_v7 = vrot.slane %v15499_v23, 6  ;;  %v4441_v59 = vrot.slane %v15656_v18, 2  ;;  %v4500_v21 = vrot.slane %v15650_v35, 2 }
 0x6d9   : > { %19117 = vst [vmem:[#allocation13_spill] sm:$0xff] %v15664_v8  ;;  %11555 = vpow2.f32 %v9815_v20  ;;  %v4526_v52 = vsel %vm12403_vm10, %v15664_v8, %v15674_v4  ;;  %v4443_v19 = vrot.slane %v15660_v62, 1  ;;  %v19122_v49 = vrot.slane %v15499_v23, 5  ;;  %v9932_v8 = vld [vmem:[%s18722_s5 + $0xe0] sm:$0xf] }
 0x6da   : > { %11557 = vpow2.f32 %v9816_v22  ;;  %v4434_v20 = vsel %vm781_vm2, %v19121_v7, %v15513_v25  ;;  %v4502_v7 = vrot.slane %v15656_v18, 1 }
 0x6db   : > { %v4754_v28 = vpop.f32.mrf.mxu2  ;;  %v4767_v44 = vpop.f32.mrf.mxu3  ;;  %v4436_v57 = vsel %vm784_vm3, %v4435_v39, %v4434_v20  ;;  %v4495_v25 = vsel %vm781_vm2, %v19122_v49, %v15516_v14  ;;  %v11195_v14 = vld [vmem:[%s18722_s5 + $0xec] sm:$0xf0] }
 0x6dc   : > { %v4774_v56 = vadd.f32 %v4767_v44, %v4526_v52  ;;  %v4730_v22 = vpop.f32.mrf.mxu0  ;;  %v4743_v50 = vpop.f32.mrf.mxu1  ;;  %v4438_v53 = vsel %vm18793_vm4, %v4437_v17, %v4436_v57  ;;  %v4497_v5 = vsel %vm784_vm3, %v4496_v27, %v4495_v25  ;;  %v9933_v44 = vor.u32 %v11195_v14, %v9932_v8  ;;  %v9940_v57 = vld [vmem:[%s18722_s5 + $0xe8] sm:$0xf] }
 0x6dd   : > { %v4440_v4 = vsel %vm18792_vm5, %v4439_v47, %v4438_v53  ;;  %v4499_v39 = vsel %vm18793_vm4, %v4498_v63, %v4497_v5  ;;  %v11193_v47 = vld [vmem:[%s18722_s5 + $0xe4] sm:$0xf]  ;;  %v9934_v63 = vld [vmem:[%s18722_s5 + $0xf0] sm:$0xf0]  ;;  %v11194_v50 = vld [vmem:[%s18722_s5 + $0xec] sm:$0xf] }
 0x6de   : > { %v9817_v20 = vmul.f32 -1.442695, %v4774_v56  ;;  %v4442_v17 = vsel %vm19123_vm8, %v4441_v59, %v4440_v4  ;;  %v4501_v27 = vsel %vm18792_vm5, %v4500_v21, %v4499_v39  ;;  %v9937_v8 = vor.u32 %v11193_v47, %v9934_v63  ;;  %v11196_v59 = vld [vmem:[%s18722_s5 + $0xf4] sm:$0xf0]  ;;  %5186 = vmatpush.bf16.msrb.mxu0 %v9933_v44  ;;  %v9916_v5 = vld [vmem:[%s18722_s5 + $0xc0] sm:$0xf] }
 0x6df   : > { %v11556_v52 = vpop.eup %11555  ;;  %v15717_v4 = vsel %vm19124_vm15, %v4443_v19, %v4442_v17  ;;  %v4503_v56 = vsel %vm19126_vm12, %v4502_v7, %v4501_v27  ;;  %v9941_v22 = vor.u32 %v11196_v59, %v9940_v57  ;;  %v9942_v19 = vld [vmem:[%s18722_s5 + $0xf8] sm:$0xf0]  ;;  %v11189_v47 = vld [vmem:[%s18722_s5 + $0xc4] sm:$0xf]  ;;  %v9918_v63 = vld [vmem:[%s18722_s5 + $0xd0] sm:$0xf0] }
 0x6e0   : > { %v11558_v49 = vpop.eup %11557  ;;  %v15714_v25 = vadd.f32 1.0, %v11556_v52  ;;  %19125 = vst [vmem:[#allocation15_spill] sm:$0xff] %v15717_v4  ;;  %11559 = vpow2.f32 %v9817_v20  ;;  %v15734_v53 = vsel %vm19127_vm14, %v15660_v62, %v4503_v56  ;;  %5199 = vmatpush.bf16.msrb.mxu1 %v9937_v8  ;;  %v11191_v20 = vld [vmem:[%s18722_s5 + $0xcc] sm:$0xf0]  ;;  %v9945_v27 = vor.u32 %v11194_v50, %v9942_v19  ;;  %v9924_v8 = vld [vmem:[%s18722_s5 + $0xc8] sm:$0xf] }
 0x6e1   : > { %v15722_v21 = vadd.f32 1.0, %v11558_v49  ;;  %19128 = vst [vmem:[#allocation17_spill] sm:$0xff] %v15734_v53  ;;  %v4525_v7 = vsel %vm12631_vm11, %v15717_v4, %v15734_v53  ;;  %5212 = vmatpush.bf16.msrb.mxu2 %v9941_v22  ;;  %v9917_v44 = vor.u32 %v11191_v20, %v9916_v5  ;;  %v9921_v49 = vor.u32 %v11189_v47, %v9918_v63  ;;  %v11190_v22 = vld [vmem:[%s18722_s5 + $0xcc] sm:$0xf]  ;;  %v9926_v50 = vld [vmem:[%s18722_s5 + $0xd8] sm:$0xf0] }
 0x6e2   : > { %11561 = vrcp.f32 %v15714_v25  ;;  %v4773_v52 = vadd.f32 %v4754_v28, %v4525_v7  ;;  %v4788_v17 = vand.u32 2147483647, %v15714_v25  ;;  %v4790_v57 = vand.u32 2147483648, %v15714_v25  ;;  %v11192_v28 = vld [vmem:[%s18722_s5 + $0xd4] sm:$0xf0]  ;;  %5225 = vmatpush.bf16.msrb.mxu3 %v9945_v27 }
 0x6e3   : > { %11563 = vrcp.f32 %v15722_v21  ;;  %v4769_v39 = vpop.f32.mrf.mxu3  ;;  %v4756_v14 = vpop.f32.mrf.mxu2  ;;  %5187 = vmatpush.bf16.msrb.mxu0 %v9917_v44  ;;  %v9925_v56 = vor.u32 %v11192_v28, %v9924_v8  ;;  %v9900_v19 = vld [vmem:[%s18722_s5 + $0xa0] sm:$0xf]  ;;  %v4809_v5 = vand.u32 2147483648, %v15722_v21  ;;  %v11187_v20 = vld [vmem:[%s18722_s5 + $0xac] sm:$0xf0]  ;;  %vm4784_vm6 = vweird.f32 %v15714_v25 }
 0x6e4   : > { %5200 = vmatpush.bf16.msrb.mxu1 %v9921_v49  ;;  %v9929_v39 = vor.u32 %v11190_v22, %v9926_v50  ;;  %v11185_v14 = vld [vmem:[%s18722_s5 + $0xa4] sm:$0xf]  ;;  %11565 = vtanh.f32 %v4773_v52  ;;  %v9901_v44 = vor.u32 %v11187_v20, %v9900_v19  ;;  %v9902_v47 = vld [vmem:[%s18722_s5 + $0xb0] sm:$0xf0]  ;;  %v9908_v63 = vld [vmem:[%s18722_s5 + $0xa8] sm:$0xf]  ;;  %vm4803_vm15 = vweird.f32 %v15722_v21 }
 0x6e5   : > { %5213 = vmatpush.bf16.msrb.mxu2 %v9925_v56  ;;  %v11188_v49 = vld [vmem:[%s18722_s5 + $0xb4] sm:$0xf0]  ;;  %v11186_v52 = vld [vmem:[%s18722_s5 + $0xac] sm:$0xf]  ;;  %v9884_v56 = vld [vmem:[%s18722_s5 + $0x80] sm:$0xf]  ;;  %v9905_v4 = vor.u32 %v11185_v14, %v9902_v47 }
 0x6e6   : > { %v11560_v59 = vpop.eup %11559  ;;  %vm15808_vm13 = vcmp.eq.f32.partialorder %v4788_v17, 8.507059e+37  ;;  %v4807_v19 = vand.u32 2147483647, %v15722_v21  ;;  %5226 = vmatpush.bf16.msrb.mxu3 %v9929_v39  ;;  %v11183_v20 = vld [vmem:[%s18722_s5 + $0x8c] sm:$0xf0]  ;;  %v9909_v0 = vor.u32 %v11188_v49, %v9908_v63  ;;  %v4810_v36 = vor.u32 1.1754944e-38, %v4809_v5 }
 0x6e7   : > { %v15771_v7 = vadd.f32 1.0, %v11560_v59  ;;  %v9910_v59 = vld [vmem:[%s18722_s5 + $0xb8] sm:$0xf0]  ;;  %5188 = vmatpush.bf16.msrb.mxu0 %v9901_v44  ;;  %v9886_v17 = vld [vmem:[%s18722_s5 + $0x90] sm:$0xf0]  ;;  %v4791_v44 = vor.u32 1.1754944e-38, %v4790_v57  ;;  %v9885_v14 = vor.u32 %v11183_v20, %v9884_v56 }
 0x6e8   : > { %v15779_v27 = vpop.eup %11561  ;;  %v9913_v13 = vor.u32 %v11186_v52, %v9910_v59  ;;  %v9892_v47 = vld [vmem:[%s18722_s5 + $0x88] sm:$0xf]  ;;  %5201 = vmatpush.bf16.msrb.mxu1 %v9905_v4  ;;  %v11184_v5 = vld [vmem:[%s18722_s5 + $0x94] sm:$0xf0]  ;;  %v9894_v57 = vld [vmem:[%s18722_s5 + $0x98] sm:$0xf0] }
 0x6e9   : > { %v15790_v8 = vpop.eup %11563  ;;  %v4780_v28 = vmul.f32 %v15779_v27, %v15714_v25  ;;  %vm4785_vm0 = vweird.f32 %v15779_v27  ;;  %11567 = vrcp.f32 %v15771_v7  ;;  %v11181_v25 = vld [vmem:[%s18722_s5 + $0x84] sm:$0xf]  ;;  %5214 = vmatpush.bf16.msrb.mxu2 %v9909_v0  ;;  %v9893_v0 = vor.u32 %v11184_v5, %v9892_v47  ;;  %v11179_v56 = vld [vmem:[%s18722_s5 + $0x6c] sm:$0xf0]  ;;  %v11176_v50 = vld [vmem:[%s18722_s5 + $0x54] sm:$0xf0] }
 0x6ea   : > { %v4799_v22 = vmul.f32 %v15790_v8, %v15722_v21  ;;  %vm15824_vm7 = vmor %vm4784_vm6, %vm4785_vm0  ;;  %v9889_v49 = vor.u32 %v11181_v25, %v9886_v17  ;;  %v11566_v52 = vpop.eup %11565  ;;  %vm4804_vm8 = vweird.f32 %v15790_v8  ;;  %5227 = vmatpush.bf16.msrb.mxu3 %v9913_v13  ;;  %v9870_v25 = vld [vmem:[%s18722_s5 + $0x70] sm:$0xf0]  ;;  %v9876_v17 = vld [vmem:[%s18722_s5 + $0x68] sm:$0xf]  ;;  %vm4808_vm14 = vcmp.eq.f32.partialorder %v4807_v19, 8.507059e+37 }
 0x6eb   : > { %v4781_v53 = vsub.f32 1.0, %v4780_v28  ;;  %v11182_v28 = vld [vmem:[%s18722_s5 + $0x8c] sm:$0xf]  ;;  %5189 = vmatpush.bf16.msrb.mxu0 %v9885_v14  ;;  %v11180_v14 = vld [vmem:[%s18722_s5 + $0x74] sm:$0xf0]  ;;  %vm15882_vm12 = vmor %vm4803_vm15, %vm4804_vm8  ;;  %vm4823_vm6 = vweird.f32 %v15771_v7  ;;  %vm19138_vm8 = vcmask 516096  }
 0x6ec   : > { %v4800_v24 = vsub.f32 1.0, %v4799_v22  ;;  %v9897_v4 = vor.u32 %v11182_v28, %v9894_v57  ;;  %v11177_v22 = vld [vmem:[%s18722_s5 + $0x64] sm:$0xf]  ;;  %v11178_v28 = vld [vmem:[%s18722_s5 + $0x6c] sm:$0xf]  ;;  %5202 = vmatpush.bf16.msrb.mxu1 %v9889_v49  ;;  %vm19139_vm15 = vcmask 1040896  }
 0x6ed   : > { %v4782_v63 = vmul.f32 %v15779_v27, %v4781_v53  ;;  %v9868_v53 = vld [vmem:[%s18722_s5 + $0x60] sm:$0xf]  ;;  %v9873_v5 = vor.u32 %v11177_v22, %v9870_v25  ;;  %v9878_v57 = vld [vmem:[%s18722_s5 + $0x78] sm:$0xf0]  ;;  %5215 = vmatpush.bf16.msrb.mxu2 %v9893_v0  ;;  %v11175_v25 = vld [vmem:[%s18722_s5 + $0x4c] sm:$0xf0] }
 0x6ee   : > { %v4801_v59 = vmul.f32 %v15790_v8, %v4800_v24  ;;  %v9869_v13 = vor.u32 %v11179_v56, %v9868_v53  ;;  %v9852_v53 = vld [vmem:[%s18722_s5 + $0x40] sm:$0xf]  ;;  %v9877_v56 = vor.u32 %v11180_v14, %v9876_v17  ;;  %v9881_v22 = vor.u32 %v11178_v28, %v9878_v57  ;;  %v11173_v39 = vld [vmem:[%s18722_s5 + $0x44] sm:$0xf]  ;;  %5228 = vmatpush.bf16.msrb.mxu3 %v9897_v4  ;;  %v9854_v0 = vld [vmem:[%s18722_s5 + $0x50] sm:$0xf0] }
 0x6ef   : > { %v15852_v20 = vpop.eup %11567  ;;  %v4783_v24 = vadd.f32 %v15779_v27, %v4782_v63  ;;  %v9853_v49 = vor.u32 %v11175_v25, %v9852_v53  ;;  %v9860_v17 = vld [vmem:[%s18722_s5 + $0x48] sm:$0xf]  ;;  %v11169_v57 = vld [vmem:[%s18722_s5 + $0x24] sm:$0xf]  ;;  %v9838_v53 = vld [vmem:[%s18722_s5 + $0x30] sm:$0xf0] }
 0x6f0   : > { %v4802_v47 = vadd.f32 %v15790_v8, %v4801_v59  ;;  %v4819_v63 = vmul.f32 %v15852_v20, %v15771_v7  ;;  %5190 = vmatpush.bf16.msrb.mxu0 %v9869_v13  ;;  %5203 = vmatpush.bf16.msrb.mxu1 %v9873_v5  ;;  %vm4824_vm0 = vweird.f32 %v15852_v20  ;;  %v9844_v5 = vld [vmem:[%s18722_s5 + $0x28] sm:$0xf] }
 0x6f1   : > { %v4787_v21 = vsel %vm15824_vm7, %v15779_v27, %v4783_v24  ;;  %5216 = vmatpush.bf16.msrb.mxu2 %v9877_v56  ;;  %v11172_v56 = vld [vmem:[%s18722_s5 + $0x34] sm:$0xf0] }
 0x6f2   : > { %v4792_v27 = vsel %vm15808_vm13, %v4791_v44, %v4787_v21  ;;  %v4806_v24 = vsel %vm15882_vm12, %v15790_v8, %v4802_v47  ;;  %v4820_v19 = vsub.f32 1.0, %v4819_v63  ;;  %v11174_v8 = vld [vmem:[%s18722_s5 + $0x4c] sm:$0xf]  ;;  %v9862_v44 = vld [vmem:[%s18722_s5 + $0x58] sm:$0xf0]  ;;  %v9857_v47 = vor.u32 %v11173_v39, %v9854_v0  ;;  %5229 = vmatpush.bf16.msrb.mxu3 %v9881_v22  ;;  %vm15952_vm13 = vmor %vm4823_vm6, %vm4824_vm0 }
 0x6f3   : > { %v4811_v14 = vsel %vm4808_vm14, %v4810_v36, %v4806_v24  ;;  %v4834_v28 = vmul.f32 %v11566_v52, %v4792_v27  ;;  %v9836_v36 = vld [vmem:[%s18722_s5 + $0x20] sm:$0xf]  ;;  %v11171_v52 = vld [vmem:[%s18722_s5 + $0x2c] sm:$0xf0]  ;;  %v9861_v63 = vor.u32 %v11176_v50, %v9860_v17  ;;  %v9865_v59 = vor.u32 %v11174_v8, %v9862_v44  ;;  %v11170_v39 = vld [vmem:[%s18722_s5 + $0x2c] sm:$0xf] }
 0x6f4   : > { %v4833_v4 = vmul.f32 0.0, %v4811_v14  ;;  %v4821_v13 = vmul.f32 %v15852_v20, %v4820_v19  ;;  %5191 = vmatpush.bf16.msrb.mxu0 %v9853_v49  ;;  %v9837_v25 = vor.u32 %v11171_v52, %v9836_v36  ;;  %v9846_v22 = vld [vmem:[%s18722_s5 + $0x38] sm:$0xf0]  ;;  %v9820_v24 = vld [vmem:[%s18722_s5] sm:$0xf]  ;;  %v4829_v49 = vand.u32 2147483648, %v15771_v7  ;;  %5204 = vmatpush.bf16.msrb.mxu1 %v9857_v47 }
 0x6f5   : > { %v11167_v19 = vld [vmem:[%s18722_s5 + $0xc] sm:$0xf0]  ;;  %v4827_v17 = vand.u32 2147483647, %v15771_v7  ;;  %5217 = vmatpush.bf16.msrb.mxu2 %v9861_v63  ;;  %v9841_v14 = vor.u32 %v11169_v57, %v9838_v53  ;;  %v11165_v50 = vld [vmem:[%s18722_s5 + $0x4] sm:$0xf]  ;;  %v9849_v8 = vor.u32 %v11170_v39, %v9846_v22 }
 0x6f6   : > { %v15925_v21 = vadd.f32 %v4834_v28, %v4833_v4  ;;  %v4822_v27 = vadd.f32 %v15852_v20, %v4821_v13  ;;  %v9845_v28 = vor.u32 %v11172_v56, %v9844_v5  ;;  %5230 = vmatpush.bf16.msrb.mxu3 %v9865_v59  ;;  %v9821_v44 = vor.u32 %v11167_v19, %v9820_v24  ;;  %v9822_v4 = vld [vmem:[%s18722_s5 + $0x10] sm:$0xf0]  ;;  %v9828_v7 = vld [vmem:[%s18722_s5 + $0x8] sm:$0xf]  ;;  %v11168_v13 = vld [vmem:[%s18722_s5 + $0x14] sm:$0xf0] }
 0x6f7   : > { %v11166_v52 = vld [vmem:[%s18722_s5 + $0xc] sm:$0xf]  ;;  %v9830_v47 = vld [vmem:[%s18722_s5 + $0x18] sm:$0xf0]  ;;  %v4830_v63 = vor.u32 1.1754944e-38, %v4829_v49  ;;  %vm4828_vm7 = vcmp.eq.f32.partialorder %v4827_v17, 8.507059e+37  ;;  %v9825_v57 = vor.u32 %v11165_v50, %v9822_v4  ;;  %v9829_v53 = vor.u32 %v11168_v13, %v9828_v7 }
 0x6f8   : > { %19135 = vst [vmem:[#allocation18_spill] sm:$0xff] %v15925_v21  ;;  %11569 = vtanh.f32 %v15925_v21  ;;  %5192 = vmatpush.bf16.msrb.mxu0 %v9837_v25  ;;  %v4826_v36 = vsel %vm15952_vm13, %v15852_v20, %v4822_v27  ;;  %5205 = vmatpush.bf16.msrb.mxu1 %v9841_v14  ;;  %v9833_v5 = vor.u32 %v11166_v52, %v9830_v47  ;;  %v5337_v39 = vrot.slane %v15444_v34, 1 }
 0x6f9   : > { %5218 = vmatpush.bf16.msrb.mxu2 %v9845_v28  ;;  %v4831_v25 = vsel %vm4828_vm7, %v4830_v63, %v4826_v36  ;;  %v5336_v27 = vrot.slane %v15447_v9, 2  ;;  %v5340_v22 = vrot.slane %v15506_v31, 7  ;;  %v5342_v24 = vrot.slane %v15526_v42, 6 }
 0x6fa   : > { %5231 = vmatpush.bf16.msrb.mxu3 %v9849_v8  ;;  %v5397_v19 = vrot.slane %v15444_v34, 4  ;;  %v5399_v0 = vrot.slane %v15469_v11, 3  ;;  %v5351_v17 = vrot.slane %v15453_v12, 1  ;;  %v5344_v28 = vrot.slane %v15544_v43, 5 }
 0x6fb   : > { %v5338_v49 = vsel %vm778_vm1, %v5337_v39, %v5336_v27  ;;  %v5396_v50 = vrot.slane %v15447_v9, 5  ;;  %v5401_v8 = vrot.slane %v15506_v31, 2  ;;  %v5403_v4 = vrot.slane %v15526_v42, 1 }
 0x6fc   : > { %5193 = vmatpush.bf16.msrb.mxu0 %v9821_v44  ;;  %5206 = vmatpush.bf16.msrb.mxu1 %v9825_v57  ;;  %v5339_v14 = vsel %vm781_vm2, %v15469_v11, %v5338_v49  ;;  %v5350_v7 = vrot.slane %v15450_v55, 2  ;;  %v5354_v13 = vrot.slane %v15509_v2, 7  ;;  %v5356_v47 = vrot.slane %v15534_v48, 6 }
 0x6fd   : > { %5219 = vmatpush.bf16.msrb.mxu2 %v9829_v53  ;;  %v5341_v44 = vsel %vm784_vm3, %v5340_v22, %v5339_v14  ;;  %v5398_v52 = vsel %vm778_vm1, %v5397_v19, %v5396_v50  ;;  %v5411_v63 = vrot.slane %v15453_v12, 4  ;;  %v5415_v27 = vrot.slane %v15509_v2, 2 }
 0x6fe   : > { %v11570_v59 = vpop.eup %11569  ;;  %5232 = vmatpush.bf16.msrb.mxu3 %v9833_v5  ;;  %v5343_v36 = vsel %vm18793_vm4, %v5342_v24, %v5341_v44  ;;  %v5400_v57 = vsel %vm781_vm2, %v5399_v0, %v5398_v52  ;;  %v5352_v53 = vsel %vm778_vm1, %v5351_v17, %v5350_v7  ;;  %v5346_v5 = vrot.slane %v15556_v41, 4 }
 0x6ff   : > { %v15978_v20 = vmul.f32 %v11570_v59, %v4831_v25  ;;  %v5410_v59 = vrot.slane %v15450_v55, 5  ;;  %v5413_v25 = vrot.slane %v15472_v15, 3  ;;  %v5353_v39 = vsel %vm781_vm2, %v15472_v15, %v5352_v53 }
 0x700   : > { %v5345_v22 = vsel %vm18792_vm5, %v5344_v28, %v5343_v36  ;;  %v5355_v19 = vsel %vm784_vm3, %v5354_v13, %v5353_v39  ;;  %v5365_v49 = vrot.slane %v15462_v10, 1  ;;  %v5417_v14 = vrot.slane %v15534_v48, 1 }
 0x701   : > { %4853 = vst.msk [vmem:[#allocation2] sm:$0x1] %vm19138_vm8, %v15978_v20  ;;  %v4993_v56 = vpack.c.bf16 %v15978_v20, %v15978_v20  ;;  %v5357_v0 = vsel %vm18793_vm4, %v5356_v47, %v5355_v19  ;;  %v5412_v17 = vsel %vm778_vm1, %v5411_v63, %v5410_v59  ;;  %v5364_v50 = vrot.slane %v15456_v29, 2 }
 0x702   : > { %4861 = vst.msk [vmem:[#allocation2 + $0x7] sm:$0x1] %vm19139_vm15, %v15978_v20  ;;  %v5414_v44 = vsel %vm781_vm2, %v5413_v25, %v5412_v17  ;;  %v5368_v28 = vrot.slane %v15569_v58, 7  ;;  %vm19140_vm12 = vcmask 1046534   ;;  %v5427_v52 = vrot.slane %v15499_v23, 3 }
 0x703   : > { %5194 = vmatmul.bf16.vlgmr.msrb.gmra.mxu0 %v4993_v56  ;;  %5207 = vmatmul.bf16.vlgmr.msrb.gmra.mxu1 %v4993_v56  ;;  %v5347_v7 = vsel %vm19140_vm12, %v5346_v5, %v5345_v22  ;;  %v5416_v36 = vsel %vm784_vm3, %v5415_v27, %v5414_v44  ;;  %v5366_v47 = vsel %vm778_vm1, %v5365_v49, %v5364_v50  ;;  %v5370_v63 = vrot.slane %v15623_v32, 6  ;;  %vm19142_vm0 = vmmov %vm19140_vm12 }
 0x704   : > { %5220 = vmatmul.bf16.vlgmr.msrb.gmra.mxu2 %v4993_v56  ;;  %5233 = vmatmul.bf16.vlgmr.msrb.gmra.mxu3 %v4993_v56  ;;  %v5402_v56 = vsel %vm784_vm3, %v5401_v8, %v5400_v57  ;;  %v5358_v8 = vrot.slane %v15550_v54, 5  ;;  %v5424_v57 = vrot.slane %v15456_v29, 5  ;;  %v5429_v53 = vrot.slane %v15569_v58, 2  ;;  %vm19143_vm6 = vmmov %vm19142_vm0 }
 0x705   : > { %v5404_v24 = vsel %vm18793_vm4, %v5403_v4, %v5402_v56  ;;  %v5425_v4 = vrot.slane %v15462_v10, 4  ;;  %v5418_v59 = vsel %vm18793_vm4, %v5417_v14, %v5416_v36  ;;  %v5367_v25 = vsel %vm781_vm2, %v15499_v23, %v5366_v47  ;;  %vm19144_vm13 = vmmov %vm19142_vm0 }
 0x706   : > { %v5405_v13 = vsel %vm18792_vm5, %v15544_v43, %v5404_v24  ;;  %v5431_v5 = vrot.slane %v15623_v32, 1  ;;  %v5379_v56 = vrot.slane %v15465_v46, 1  ;;  %v5359_v39 = vsel %vm18792_vm5, %v5358_v8, %v5357_v0  ;;  %vm19147_vm15 = vmmov %vm19142_vm0 }
 0x707   : > { %v5419_v27 = vsel %vm18792_vm5, %v15550_v54, %v5418_v59  ;;  %v5369_v22 = vsel %vm784_vm3, %v5368_v28, %v5367_v25  ;;  %v5426_v24 = vsel %vm778_vm1, %v5425_v4, %v5424_v57  ;;  %v5348_v19 = vrot.slane %v15586_v33, 3  ;;  %vm19148_vm12 = vmmov %vm19142_vm0 }
 0x708   : > { %v5428_v49 = vsel %vm781_vm2, %v5427_v52, %v5426_v24  ;;  %v5378_v17 = vrot.slane %v15459_v30, 2  ;;  %v5382_v14 = vrot.slane %v15519_v1, 7  ;;  %v5406_v50 = vrot.slane %v15556_v41, 7 }
 0x709   : > { %v5371_v44 = vsel %vm18793_vm4, %v5370_v63, %v5369_v22  ;;  %v5430_v0 = vsel %vm784_vm3, %v5429_v53, %v5428_v49  ;;  %v5439_v8 = vrot.slane %v15465_v46, 4  ;;  %v5384_v36 = vrot.slane %v15580_v51, 6 }
 0x70a   : > { %v5432_v28 = vsel %vm18793_vm4, %v5431_v5, %v5430_v0  ;;  %v5380_v4 = vsel %vm778_vm1, %v5379_v56, %v5378_v17  ;;  %v5438_v52 = vrot.slane %v15459_v30, 5  ;;  %v5360_v47 = vrot.slane %v15559_v60, 4 }
 0x70b   : > { %v5372_v57 = vrot.slane %v15650_v35, 5  ;;  %v5381_v59 = vsel %vm781_vm2, %v15488_v38, %v5380_v4  ;;  %v5441_v63 = vrot.slane %v15488_v38, 3  ;;  %vm19141_vm14 = vcmask 1047559  }
 0x70c   : > { %v16065_v53 = vsel %vm19141_vm14, %v5348_v19, %v5347_v7  ;;  %v5420_v25 = vrot.slane %v15559_v60, 7  ;;  %v5383_v5 = vsel %vm784_vm3, %v5382_v14, %v5381_v59  ;;  %v5443_v56 = vrot.slane %v15519_v1, 2  ;;  %vm19145_vm7 = vmmov %vm19141_vm14 }
 0x70d   : > { %v5407_v22 = vsel %vm19142_vm0, %v5406_v50, %v5405_v13  ;;  %v5440_v24 = vsel %vm778_vm1, %v5439_v8, %v5438_v52  ;;  %v5445_v49 = vrot.slane %v15580_v51, 1  ;;  %v5804_v17 = vrot.slane %v15444_v34, 2  ;;  %vm19146_vm8 = vmmov %vm19145_vm7 }
 0x70e   : > { %v5433_v0 = vsel %vm18792_vm5, %v15650_v35, %v5432_v28  ;;  %v5385_v7 = vsel %vm18793_vm4, %v5384_v36, %v5383_v5  ;;  %v5386_v19 = vrot.slane %v15594_v37, 5  ;;  %v5806_v4 = vrot.slane %v15469_v11, 1  ;;  %vm19149_vm14 = vmmov %vm19145_vm7 }
 0x70f   : > { %v5361_v14 = vsel %vm19143_vm6, %v5360_v47, %v5359_v39  ;;  %v5373_v59 = vsel %vm18792_vm5, %v5372_v57, %v5371_v44  ;;  %v5442_v13 = vsel %vm781_vm2, %v5441_v63, %v5440_v24  ;;  %v5803_v50 = vrot.slane %v15447_v9, 3  ;;  %vm19150_vm6 = vmmov %vm19142_vm0 }
 0x710   : > { %v5421_v8 = vsel %vm19144_vm13, %v5420_v25, %v5419_v27  ;;  %v5444_v52 = vsel %vm784_vm3, %v5443_v56, %v5442_v13  ;;  %v5809_v28 = vrot.slane %v15526_v42, 7  ;;  %v5864_v36 = vrot.slane %v15444_v34, 3  ;;  %vm19151_vm13 = vmmov %vm19145_vm7 }
 0x711   : > { %v5446_v5 = vsel %vm18793_vm4, %v5445_v49, %v5444_v52  ;;  %v5805_v21 = vsel %vm778_vm1, %v5804_v17, %v5803_v50  ;;  %v5863_v39 = vrot.slane %v15447_v9, 4  ;;  %v5866_v44 = vrot.slane %v15469_v11, 2 }
 0x712   : > { %v5408_v47 = vrot.slane %v15586_v33, 6  ;;  %v5387_v57 = vsel %vm18792_vm5, %v5386_v19, %v5385_v7  ;;  %v5807_v27 = vsel %vm781_vm2, %v5806_v4, %v5805_v21  ;;  %v5868_v63 = vrot.slane %v15506_v31, 1 }
 0x713   : > { %v5362_v25 = vrot.slane %v15589_v16, 3  ;;  %v5374_v56 = vrot.slane %v15656_v18, 4  ;;  %v5434_v24 = vrot.slane %v15656_v18, 7  ;;  %v5808_v49 = vsel %vm784_vm3, %v15506_v31, %v5807_v27 }
 0x714   : > { %v5422_v17 = vrot.slane %v15589_v16, 6  ;;  %v5447_v13 = vsel %vm18792_vm5, %v15594_v37, %v5446_v5  ;;  %v5810_v7 = vsel %vm18793_vm4, %v5809_v28, %v5808_v49  ;;  %v5865_v21 = vsel %vm778_vm1, %v5864_v36, %v5863_v39 }
 0x715   : > { %v5388_v19 = vrot.slane %v15600_v26, 4  ;;  %v5811_v4 = vrot.slane %v15544_v43, 6  ;;  %v5867_v50 = vsel %vm781_vm2, %v5866_v44, %v5865_v21  ;;  %v5818_v52 = vrot.slane %v15453_v12, 2 }
 0x716   : > { %v16110_v11 = vsel %vm19145_vm7, %v5408_v47, %v5407_v22  ;;  %v5869_v27 = vsel %vm784_vm3, %v5868_v63, %v5867_v50  ;;  %v5817_v31 = vrot.slane %v15450_v55, 3  ;;  %v5820_v5 = vrot.slane %v15472_v15, 1 }
 0x717   : > { %v16116_v28 = vsel %vm19146_vm8, %v5362_v25, %v5361_v14  ;;  %v5375_v36 = vsel %vm19147_vm15, %v5374_v56, %v5373_v59  ;;  %v5435_v39 = vsel %vm19148_vm12, %v5434_v24, %v5433_v0  ;;  %v5870_v44 = vsel %vm18793_vm4, %v15526_v42, %v5869_v27  ;;  %vm19152_vm8 = vmmov %vm19142_vm0 }
 0x718   : > { %v16123_v49 = vsel %vm19149_vm14, %v5422_v17, %v5421_v8  ;;  %v5448_v22 = vrot.slane %v15600_v26, 7  ;;  %v5871_v47 = vrot.slane %v15544_v43, 7  ;;  %v5823_v63 = vrot.slane %v15534_v48, 7  ;;  %vm19153_vm15 = vmmov %vm19142_vm0 }
 0x719   : > { %v16129_v21 = vsel %vm19142_vm0, %v5388_v19, %v5387_v57  ;;  %v5812_v14 = vsel %vm18792_vm5, %v5811_v4, %v5810_v7  ;;  %v5819_v59 = vsel %vm778_vm1, %v5818_v52, %v5817_v31  ;;  %v5878_v0 = vrot.slane %v15453_v12, 3  ;;  %vm19154_vm12 = vmmov %vm19145_vm7 }
 0x71a   : > { %v5376_v25 = vrot.slane %v15660_v62, 3  ;;  %v5436_v8 = vrot.slane %v15660_v62, 6  ;;  %v5821_v56 = vsel %vm781_vm2, %v5820_v5, %v5819_v59  ;;  %v5880_v24 = vrot.slane %v15472_v15, 2  ;;  %vm19155_vm14 = vmmov %vm19142_vm0 }
 0x71b   : > { %v5822_v17 = vsel %vm784_vm3, %v15509_v2, %v5821_v56  ;;  %v5825_v57 = vrot.slane %v15550_v54, 6  ;;  %v5877_v19 = vrot.slane %v15450_v55, 4  ;;  %v5882_v7 = vrot.slane %v15509_v2, 1  ;;  %vm19156_vm0 = vmmov %vm19145_vm7 }
 0x71c   : > { %v16144_v31 = vsel %vm19150_vm6, %v5448_v22, %v5447_v13  ;;  %v5872_v4 = vsel %vm18792_vm5, %v5871_v47, %v5870_v44  ;;  %v5824_v50 = vsel %vm18793_vm4, %v5823_v63, %v5822_v17  ;;  %v5832_v52 = vrot.slane %v15462_v10, 2 }
 0x71d   : > { %v5813_v27 = vrot.slane %v15556_v41, 5  ;;  %v5879_v5 = vsel %vm778_vm1, %v5878_v0, %v5877_v19  ;;  %v5831_v59 = vrot.slane %v15456_v29, 3  ;;  %v5834_v56 = vrot.slane %v15499_v23, 1 }
 0x71e   : > { %v16154_v43 = vsel %vm19151_vm13, %v5376_v25, %v5375_v36  ;;  %v16157_v13 = vsel %vm19145_vm7, %v5436_v8, %v5435_v39  ;;  %v5873_v44 = vrot.slane %v15556_v41, 6  ;;  %v5881_v22 = vsel %vm781_vm2, %v5880_v24, %v5879_v5  ;;  %vm19157_vm13 = vmmov %vm19156_vm0 }
 0x71f   : > { %v5826_v47 = vsel %vm18792_vm5, %v5825_v57, %v5824_v50  ;;  %v5883_v63 = vsel %vm784_vm3, %v5882_v7, %v5881_v22  ;;  %v5885_v0 = vrot.slane %v15550_v54, 7  ;;  %v5837_v17 = vrot.slane %v15623_v32, 7  ;;  %vm19158_vm7 = vmmov %vm19156_vm0 }
 0x720   : > { %v5884_v36 = vsel %vm18793_vm4, %v15534_v48, %v5883_v63  ;;  %v5833_v39 = vsel %vm778_vm1, %v5832_v52, %v5831_v59  ;;  %v5892_v25 = vrot.slane %v15462_v10, 3  ;;  %v5814_v24 = vsel %vm19152_vm8, %v5813_v27, %v5812_v14 }
 0x721   : > { %v5835_v57 = vsel %vm781_vm2, %v5834_v56, %v5833_v39  ;;  %v5894_v7 = vrot.slane %v15499_v23, 2  ;;  %v5874_v50 = vsel %vm19153_vm15, %v5873_v44, %v5872_v4  ;;  %v5891_v22 = vrot.slane %v15456_v29, 4 }
 0x722   : > { %v5836_v5 = vsel %vm784_vm3, %v15569_v58, %v5835_v57  ;;  %v5896_v63 = vrot.slane %v15569_v58, 1  ;;  %v5827_v52 = vrot.slane %v15559_v60, 5  ;;  %v5886_v59 = vsel %vm18792_vm5, %v5885_v0, %v5884_v36 }
 0x723   : > { %v5838_v8 = vsel %vm18793_vm4, %v5837_v17, %v5836_v5  ;;  %v5846_v14 = vrot.slane %v15465_v46, 2  ;;  %v5815_v27 = vrot.slane %v15586_v33, 4  ;;  %v5893_v56 = vsel %vm778_vm1, %v5892_v25, %v5891_v22 }
 0x724   : > { %v5845_v4 = vrot.slane %v15459_v30, 3  ;;  %v5848_v44 = vrot.slane %v15488_v38, 1  ;;  %v5839_v39 = vrot.slane %v15650_v35, 6  ;;  %v5895_v57 = vsel %vm781_vm2, %v5894_v7, %v5893_v56 }
 0x725   : > { %v5851_v19 = vrot.slane %v15580_v51, 7  ;;  %v5906_v0 = vrot.slane %v15465_v46, 3  ;;  %v5875_v17 = vrot.slane %v15586_v33, 5  ;;  %v5887_v36 = vrot.slane %v15559_v60, 6 }
 0x726   : > { %v5897_v5 = vsel %vm784_vm3, %v5896_v63, %v5895_v57  ;;  %v5905_v25 = vrot.slane %v15459_v30, 4  ;;  %v5829_v22 = vrot.slane %v15589_v16, 4  ;;  %v5889_v58 = vrot.slane %v15589_v16, 5 }
 0x727   : > { %v5847_v23 = vsel %vm778_vm1, %v5846_v14, %v5845_v4  ;;  %v5908_v7 = vrot.slane %v15488_v38, 2  ;;  %v16200_v56 = vsel %vm19154_vm12, %v5815_v27, %v5814_v24  ;;  %v5828_v46 = vsel %vm19155_vm14, %v5827_v52, %v5826_v47  ;;  %vm19163_vm12 = vmmov %vm19150_vm6 }
 0x728   : > { %v5898_v60 = vsel %vm18793_vm4, %v15623_v32, %v5897_v5  ;;  %v5849_v63 = vsel %vm781_vm2, %v5848_v44, %v5847_v23  ;;  %v5840_v57 = vsel %vm18792_vm5, %v5839_v39, %v5838_v8  ;;  %v5907_v16 = vsel %vm778_vm1, %v5906_v0, %v5905_v25  ;;  %vm19164_vm14 = vmmov %vm19150_vm6 }
 0x729   : > { %v5850_v33 = vsel %vm784_vm3, %v15519_v1, %v5849_v63  ;;  %v5910_v14 = vrot.slane %v15519_v1, 1  ;;  %v16212_v4 = vsel %vm19156_vm0, %v5875_v17, %v5874_v50  ;;  %v5888_v24 = vsel %vm19150_vm6, %v5887_v36, %v5886_v59  ;;  %vm19165_vm0 = vmmov %vm19150_vm6 }
 0x72a   : > { %v5899_v47 = vrot.slane %v15650_v35, 7  ;;  %v5852_v52 = vsel %vm18793_vm4, %v5851_v19, %v5850_v33  ;;  %v16218_v23 = vsel %vm19157_vm13, %v5829_v22, %v5828_v46  ;;  %v16221_v8 = vsel %vm19158_vm7, %v5889_v58, %v5888_v24  ;;  %vm19166_vm6 = vmmov %vm19158_vm7 }
 0x72b   : > { %v5853_v27 = vrot.slane %v15594_v37, 6  ;;  %v5909_v44 = vsel %vm781_vm2, %v5908_v7, %v5907_v16  ;;  %v5841_v39 = vrot.slane %v15656_v18, 5  ;;  %v5901_v50 = vrot.slane %v15656_v18, 6  ;;  %vm19167_vm13 = vmmov %vm19166_vm6 }
 0x72c   : > { %v5855_v59 = vrot.slane %v15600_v26, 5  ;;  %v5913_v0 = vrot.slane %v15594_v37, 7  ;;  %v5843_v33 = vrot.slane %v15660_v62, 4  ;;  %v5903_v46 = vrot.slane %v15660_v62, 5  ;;  %vm19168_vm7 = vmmov %vm19166_vm6 }
 0x72d   : > { %v5911_v19 = vsel %vm784_vm3, %v5910_v14, %v5909_v44  ;;  %v5915_v58 = vrot.slane %v15600_v26, 6  ;;  %vm19159_vm8 = vcmp.lt.s32.totalorder %v12164_v40, 64  ;;  %v5900_v25 = vsel %vm18792_vm5, %v5899_v47, %v5898_v60 }
 0x72e   : > { %v16237_v16 = vsel %vm19159_vm8, %v16212_v4, %v16200_v56  ;;  %vm19161_vm15 = vmmov %vm19159_vm8  ;;  %v5854_v22 = vsel %vm18792_vm5, %v5853_v27, %v5852_v52  ;;  %v5857_v7 = vrot.slane %v15635_v45, 4  ;;  %v5912_v63 = vsel %vm18793_vm4, %v15580_v51, %v5911_v19 }
 0x72f   : > { %19160 = vst [vmem:[#allocation21_spill] sm:$0xff] %v16237_v16  ;;  %v16247_v36 = vsel %vm19161_vm15, %v16110_v11, %v16065_v53  ;;  %v5842_v14 = vsel %vm19163_vm12, %v5841_v39, %v5840_v57  ;;  %v5902_v24 = vsel %vm19164_vm14, %v5901_v50, %v5900_v25  ;;  %v5856_v44 = vsel %vm19165_vm0, %v5855_v59, %v5854_v22  ;;  %vm19170_vm8 = vmmov %vm19166_vm6 }
 0x730   : > { %19162 = vst [vmem:[#allocation22_spill] sm:$0xff] %v16247_v36  ;;  %v5914_v17 = vsel %vm18792_vm5, %v5913_v0, %v5912_v63  ;;  %v16263_v36 = vsel %vm19166_vm6, %v5843_v33, %v5842_v14  ;;  %v16266_v60 = vsel %vm19167_vm13, %v5903_v46, %v5902_v24  ;;  %v16269_v47 = vsel %vm19168_vm7, %v5857_v7, %v5856_v44  ;;  %vm19172_vm15 = vmmov %vm19166_vm6  ;;  %v19177_v44 = vld [vmem:[#allocation9_spill] sm:$0xff] }
 0x731   : > { %v5917_v52 = vrot.slane %v15635_v45, 5  ;;  %v19169_v57 = vrot.slane %v15635_v45, 3  ;;  %v19171_v39 = vrot.slane %v15635_v45, 6  ;;  %vm19173_vm12 = vmmov %vm19165_vm0  ;;  %v4839_v19 = vrot.slane %v15978_v20, 1 }
 0x732   : > { %v5916_v59 = vsel %vm19173_vm12, %v5915_v58, %v5914_v17  ;;  %vm19174_vm14 = vmmov %vm19166_vm6  ;;  %v4840_v58 = vrot.slane %v15978_v20, 2  ;;  %v4841_v17 = vrot.slane %v15978_v20, 3  ;;  %v4930_v25 = vrot.slane %v15444_v34, 5 }
 0x733   : > { %v16276_v27 = vsel %vm19170_vm8, %v19169_v57, %v16129_v21  ;;  %v16282_v50 = vsel %vm19172_vm15, %v19171_v39, %v16144_v31  ;;  %v16286_v0 = vsel %vm19174_vm14, %v5917_v52, %v5916_v59  ;;  %v4944_v22 = vrot.slane %v15453_v12, 5  ;;  %v19181_v21 = vld [vmem:[#allocation4_spill] sm:$0xff]  ;;  %v19192_v39 = vld [vmem:[#allocation6_spill] sm:$0xff] }
 0x734   : > { %vm19175_vm0 = vcmask 516096   ;;  %v4869_v7 = vrot.slane %v15447_v9, 1  ;;  %v4929_v63 = vrot.slane %v15447_v9, 6  ;;  %v4883_v14 = vrot.slane %v15450_v55, 1 }
 0x735   : > { %4854 = vst.msk [vmem:[#allocation2 + $0x8] sm:$0x1] %vm19175_vm0, %v4839_v19  ;;  %v4943_v24 = vrot.slane %v15450_v55, 6  ;;  %vm19176_vm6 = vcmask 1040896   ;;  %v4871_v52 = vrot.slane %v19177_v44, 7  ;;  %v4932_v57 = vrot.slane %v19177_v44, 4  ;;  %vm19178_vm13 = vmmov %vm19175_vm0 }
 0x736   : > { %4862 = vst.msk [vmem:[#allocation2 + $0xf] sm:$0x1] %vm19176_vm6, %v4839_v19  ;;  %v4842_v59 = vrot.slane %v15978_v20, 4  ;;  %v4885_v31 = vrot.slane %v15472_v15, 7  ;;  %v4946_v9 = vrot.slane %v15472_v15, 4  ;;  %vm19179_vm7 = vmmov %vm19175_vm0  ;;  %v4843_v55 = vrot.slane %v15978_v20, 5 }
 0x737   : > { %4855 = vst.msk [vmem:[#allocation2 + $0x10] sm:$0x1] %vm19178_vm13, %v4840_v58  ;;  %v4870_v19 = vsel %vm778_vm1, %v15444_v34, %v4869_v7  ;;  %v4931_v44 = vsel %vm778_vm1, %v4930_v25, %v4929_v63  ;;  %v4884_v5 = vsel %vm778_vm1, %v15453_v12, %v4883_v14  ;;  %v4945_v33 = vsel %vm778_vm1, %v4944_v22, %v4943_v24  ;;  %vm19180_vm8 = vmmov %vm19176_vm6 }
 0x738   : > { %4856 = vst.msk [vmem:[#allocation2 + $0x18] sm:$0x1] %vm19179_vm7, %v4841_v17  ;;  %v4873_v15 = vrot.slane %v19181_v21, 6  ;;  %v4934_v46 = vrot.slane %v19181_v21, 3  ;;  %v4911_v16 = vrot.slane %v15459_v30, 1  ;;  %vm19182_vm15 = vmmov %vm19176_vm6  ;;  %v4872_v34 = vsel %vm781_vm2, %v4871_v52, %v4870_v19 }
 0x739   : > { %4863 = vst.msk [vmem:[#allocation2 + $0x17] sm:$0x1] %vm19180_vm8, %v4840_v58  ;;  %v4933_v25 = vsel %vm781_vm2, %v4932_v57, %v4931_v44  ;;  %v4887_v12 = vrot.slane %v15509_v2, 6  ;;  %vm19183_vm12 = vmmov %vm19175_vm0  ;;  %v4844_v58 = vrot.slane %v15978_v20, 6  ;;  %v4886_v22 = vsel %vm781_vm2, %v4885_v31, %v4884_v5  ;;  %v19186_v31 = vld [vmem:[#allocation3_spill] sm:$0xff] }
 0x73a   : > { %4864 = vst.msk [vmem:[#allocation2 + $0x1f] sm:$0x1] %vm19182_vm15, %v4841_v17  ;;  %v4947_v21 = vsel %vm781_vm2, %v4946_v9, %v4945_v33  ;;  %v4948_v7 = vrot.slane %v15509_v2, 3  ;;  %vm19184_vm14 = vmmov %vm19175_vm0  ;;  %v4845_v17 = vrot.slane %v15978_v20, 7  ;;  %v4875_v63 = vrot.slane %v15526_v42, 5 }
 0x73b   : > { %4857 = vst.msk [vmem:[#allocation2 + $0x20] sm:$0x1] %vm19183_vm12, %v4842_v59  ;;  %v4936_v14 = vrot.slane %v15526_v42, 2  ;;  %v4889_v24 = vrot.slane %v15534_v48, 5  ;;  %v4913_v52 = vrot.slane %v15488_v38, 7  ;;  %vm19185_vm0 = vmmov %vm19176_vm6  ;;  %v4874_v5 = vsel %vm784_vm3, %v4873_v15, %v4872_v34 }
 0x73c   : > { %4858 = vst.msk [vmem:[#allocation2 + $0x28] sm:$0x1] %vm19184_vm14, %v4843_v55  ;;  %v4877_v33 = vrot.slane %v19186_v31, 4  ;;  %v4935_v2 = vsel %vm784_vm3, %v4934_v46, %v4933_v25  ;;  %v4938_v57 = vrot.slane %v19186_v31, 1  ;;  %vm19187_vm6 = vmmov %vm19185_vm0  ;;  %v4879_v20 = vrot.slane %v15556_v41, 3 }
 0x73d   : > { %4865 = vst.msk [vmem:[#allocation2 + $0x27] sm:$0x1] %vm19185_vm0, %v4842_v59  ;;  %v4888_v42 = vsel %vm784_vm3, %v4887_v12, %v4886_v22  ;;  %v4891_v9 = vrot.slane %v15550_v54, 4  ;;  %v4950_v19 = vrot.slane %v15534_v48, 2  ;;  %vm19188_vm13 = vmmov %vm19179_vm7  ;;  %v19189_v59 = vld [vmem:[#allocation5_spill] sm:$0xff]  ;;  %v4949_v46 = vsel %vm784_vm3, %v4948_v7, %v4947_v21  ;;  %v19190_v22 = vld [vmem:[#allocation7_spill] sm:$0xff] }
 0x73e   : > { %4866 = vst.msk [vmem:[#allocation2 + $0x2f] sm:$0x1] %vm19187_vm6, %v4843_v55  ;;  %v4881_v44 = vrot.slane %v19189_v59, 2  ;;  %v4941_v15 = vrot.slane %v19189_v59, 7  ;;  %v4952_v34 = vrot.slane %v15550_v54, 1  ;;  %v4876_v55 = vsel %vm18793_vm4, %v4875_v63, %v4874_v5  ;;  %vm19191_vm8 = vmmov %vm19185_vm0 }
 0x73f   : > { %4859 = vst.msk [vmem:[#allocation2 + $0x30] sm:$0x1] %vm19188_vm13, %v4844_v58  ;;  %v4937_v25 = vsel %vm18793_vm4, %v4936_v14, %v4935_v2  ;;  %v4890_v12 = vsel %vm18793_vm4, %v4889_v24, %v4888_v42  ;;  %v4893_v48 = vrot.slane %v19190_v22, 3  ;;  %v4878_v31 = vsel %vm18792_vm5, %v4877_v33, %v4876_v55  ;;  %vm19193_vm15 = vmmov %vm19185_vm0 }
 0x740   : > { %4860 = vst.msk [vmem:[#allocation2 + $0x38] sm:$0x1] %vm19179_vm7, %v4845_v17  ;;  %v4939_v59 = vsel %vm18792_vm5, %v4938_v57, %v4937_v25  ;;  %v4895_v21 = vrot.slane %v19192_v39, 2  ;;  %v4955_v54 = vrot.slane %v19192_v39, 7  ;;  %vm19194_vm12 = vcmask 1046534   ;;  %v19198_v39 = vld [vmem:[#allocation16_spill] sm:$0xff] }
 0x741   : > { %4867 = vst.msk [vmem:[#allocation2 + $0x37] sm:$0x1] %vm19191_vm8, %v4844_v58  ;;  %v4880_v7 = vsel %vm19194_vm12, %v4879_v20, %v4878_v31  ;;  %vm19195_vm14 = vmmov %vm19194_vm12  ;;  %v4892_v14 = vsel %vm18792_vm5, %v4891_v9, %v4890_v12  ;;  %v4951_v24 = vsel %vm18793_vm4, %v4950_v19, %v4949_v46  ;;  %vm19196_vm0 = vcmask 1047559  }
 0x742   : > { %4868 = vst.msk [vmem:[#allocation2 + $0x3f] sm:$0x1] %vm19193_vm15, %v4845_v17  ;;  %v4940_v63 = vsel %vm19195_vm14, %v15556_v41, %v4939_v59  ;;  %v16383_v58 = vsel %vm19196_vm0, %v4881_v44, %v4880_v7  ;;  %vm19197_vm6 = vmmov %vm19196_vm0  ;;  %v4953_v33 = vsel %vm18792_vm5, %v4952_v34, %v4951_v24  ;;  %v4972_v2 = vrot.slane %v19198_v39, 5  ;;  %v19204_v7 = vld [vmem:[#allocation20_spill] sm:$0xff] }
 0x743   : > { %v16386_v5 = vsel %vm19197_vm6, %v4941_v15, %v4940_v63  ;;  %vm19199_vm13 = vmmov %vm19194_vm12  ;;  %v4915_v41 = vrot.slane %v15519_v1, 6  ;;  %v4974_v20 = vrot.slane %v15488_v38, 4  ;;  %v4971_v19 = vrot.slane %v15459_v30, 6 }
 0x744   : > { %v4894_v17 = vsel %vm19199_vm13, %v4893_v48, %v4892_v14  ;;  %vm19200_vm7 = vmmov %vm19194_vm12  ;;  %v4976_v44 = vrot.slane %v15519_v1, 3  ;;  %vm19203_vm12 = vcmp.lt.s32.totalorder %v12164_v40, 64  ;;  %v4912_v46 = vsel %vm778_vm1, %v19198_v39, %v4911_v16 }
 0x745   : > { %v4954_v57 = vsel %vm19200_vm7, %v19190_v22, %v4953_v33  ;;  %vm19201_vm8 = vmmov %vm19196_vm0  ;;  %v4989_v15 = vsel %vm19203_vm12, %v16383_v58, %v16386_v5  ;;  %v4917_v38 = vrot.slane %v15580_v51, 5  ;;  %v4978_v34 = vrot.slane %v15580_v51, 2 }
 0x746   : > { %v16396_v42 = vsel %vm19201_vm8, %v4895_v21, %v4894_v17  ;;  %vm19202_vm15 = vmmov %vm19196_vm0  ;;  %v4914_v55 = vsel %vm781_vm2, %v4913_v52, %v4912_v46  ;;  %v4919_v25 = vrot.slane %v15594_v37, 4  ;;  %v4973_v30 = vsel %vm778_vm1, %v4972_v2, %v4971_v19 }
 0x747   : > { %v16399_v9 = vsel %vm19202_vm15, %v4955_v54, %v4954_v57  ;;  %v4980_v1 = vrot.slane %v15594_v37, 1  ;;  %v4916_v16 = vsel %vm784_vm3, %v4915_v41, %v4914_v55  ;;  %v4921_v48 = vrot.slane %v15600_v26, 3  ;;  %v19205_v41 = vld [vmem:[#allocation8_spill] sm:$0xff]  ;;  %vm19206_vm14 = vmmov %vm19200_vm7 }
 0x748   : > { %v4990_v22 = vsel %vm12301_vm9, %v16396_v42, %v16399_v9  ;;  %v4975_v51 = vsel %vm781_vm2, %v4974_v20, %v4973_v30  ;;  %v4923_v59 = vrot.slane %v15635_v45, 2  ;;  %v4983_v37 = vrot.slane %v15635_v45, 7  ;;  %vm19207_vm0 = vmmov %vm19200_vm7 }
 0x749   : > { %v4977_v21 = vsel %vm784_vm3, %v4976_v44, %v4975_v51  ;;  %v4899_v63 = vrot.slane %v19204_v7, 7  ;;  %v4918_v14 = vsel %vm18793_vm4, %v4917_v38, %v4916_v16  ;;  %v4960_v39 = vrot.slane %v19204_v7, 4  ;;  %vm19208_vm13 = vmmov %vm19197_vm6 }
 0x74a   : > { %v4979_v24 = vsel %vm18793_vm4, %v4978_v34, %v4977_v21  ;;  %v4920_v2 = vsel %vm18792_vm5, %v4919_v25, %v4918_v14  ;;  %v4901_v20 = vrot.slane %v19205_v41, 6  ;;  %v4962_v44 = vrot.slane %v19205_v41, 3  ;;  %vm19212_vm7 = vmmov %vm19207_vm0 }
 0x74b   : > { %v4981_v17 = vsel %vm18792_vm5, %v4980_v1, %v4979_v24  ;;  %v4922_v19 = vsel %vm19206_vm14, %v4921_v48, %v4920_v2  ;;  %v19209_v38 = vrot.slane %v15456_v29, 1  ;;  %v4903_v55 = vrot.slane %v15623_v32, 5  ;;  %vm19213_vm8 = vmmov %vm19207_vm0 }
 0x74c   : > { %v4982_v45 = vsel %vm19207_vm0, %v15600_v26, %v4981_v17  ;;  %v4964_v25 = vrot.slane %v15623_v32, 2  ;;  %v4905_v30 = vrot.slane %v15650_v35, 4  ;;  %v19210_v1 = vrot.slane %v15456_v29, 6  ;;  %vm19214_vm15 = vmmov %vm19197_vm6 }
 0x74d   : > { %v16440_v46 = vsel %vm19208_vm13, %v4983_v37, %v4982_v45  ;;  %v4898_v34 = vsel %vm778_vm1, %v15462_v10, %v19209_v38  ;;  %v4966_v16 = vrot.slane %v15650_v35, 1  ;;  %v4969_v35 = vrot.slane %v15660_v62, 7  ;;  %vm19215_vm12 = vmmov %vm19197_vm6  ;;  %v10063_v45 = vld [vmem:[%s18722_s5 + $0xe0] sm:$0xf] }
 0x74e   : > { %v4900_v26 = vsel %vm781_vm2, %v4899_v63, %v4898_v34 }
 0x74f   : > { %v4902_v51 = vsel %vm784_vm3, %v4901_v20, %v4900_v26  ;;  %v11225_v26 = vld [vmem:[%s18722_s5 + $0xe4] sm:$0xf] }
 0x750   : > { %v4904_v7 = vsel %vm18793_vm4, %v4903_v55, %v4902_v51  ;;  %v11228_v51 = vld [vmem:[%s18722_s5 + $0xf4] sm:$0xf0] }
 0x751   : > { %v4906_v24 = vsel %vm18792_vm5, %v4905_v30, %v4904_v7  ;;  %v10065_v30 = vld [vmem:[%s18722_s5 + $0xf0] sm:$0xf0] }
 0x780   : > { %v5195_v12 = vpop.f32.mrf.mxu0  ;;  %v5208_v52 = vpop.f32.mrf.mxu1 }
 0x781   : > { %v5238_v31 = vadd.f32 %v5195_v12, %v4989_v15  ;;  %v5239_v54 = vadd.f32 %v5208_v52, %v4990_v22  ;;  %v16437_v15 = vsel %vm19197_vm6, %v4923_v59, %v4922_v19  ;;  %v19211_v12 = vrot.slane %v15462_v10, 5 }
 0x782   : > { %v4992_v32 = vsel %vm12403_vm10, %v16437_v15, %v16440_v46  ;;  %v4909_v10 = vrot.slane %v15660_v62, 2 }
 0x783   : > { %v9946_v33 = vmul.f32 -1.442695, %v5238_v31  ;;  %v9947_v57 = vmul.f32 -1.442695, %v5239_v54  ;;  %v4959_v22 = vsel %vm778_vm1, %v19211_v12, %v19210_v1  ;;  %v4907_v31 = vrot.slane %v15656_v18, 3 }
 0x784   : > { %v4961_v52 = vsel %vm781_vm2, %v4960_v39, %v4959_v22  ;;  %v10068_v22 = vor.u32 %v11225_v26, %v10065_v30 }
 0x785   : > { %11571 = vpow2.f32 %v9946_v33  ;;  %v4963_v21 = vsel %vm784_vm3, %v4962_v44, %v4961_v52  ;;  %v11226_v52 = vld [vmem:[%s18722_s5 + $0xec] sm:$0xf] }
 0x786   : > { %11573 = vpow2.f32 %v9947_v57  ;;  %v4965_v63 = vsel %vm18793_vm4, %v4964_v25, %v4963_v21  ;;  %v4908_v57 = vsel %vm19212_vm7, %v4907_v31, %v4906_v24  ;;  %5666 = vmatpush.bf16.msra.mxu1 %v10068_v22  ;;  %v11221_v21 = vld [vmem:[%s18722_s5 + $0xc4] sm:$0xf]  ;;  %v10055_v24 = vld [vmem:[%s18722_s5 + $0xc8] sm:$0xf] }
 0x787   : > { %v5221_v48 = vpop.f32.mrf.mxu2  ;;  %v5234_v59 = vpop.f32.mrf.mxu3  ;;  %v4967_v33 = vsel %vm18792_vm5, %v4966_v16, %v4965_v63  ;;  %v16478_v20 = vsel %vm19214_vm15, %v4909_v10, %v4908_v57  ;;  %v10071_v16 = vld [vmem:[%s18722_s5 + $0xe8] sm:$0xf]  ;;  %v11223_v10 = vld [vmem:[%s18722_s5 + $0xcc] sm:$0xf0] }
 0x788   : > { %v5197_v29 = vpop.f32.mrf.mxu0  ;;  %v5241_v37 = vadd.f32 %v5234_v59, %v4992_v32  ;;  %v5210_v54 = vpop.f32.mrf.mxu1  ;;  %v4968_v62 = vsel %vm19213_vm8, %v15656_v18, %v4967_v33  ;;  %v11227_v18 = vld [vmem:[%s18722_s5 + $0xec] sm:$0xf0]  ;;  %v10072_v31 = vor.u32 %v11228_v51, %v10071_v16  ;;  %v10047_v32 = vld [vmem:[%s18722_s5 + $0xc0] sm:$0xf]  ;;  %v11224_v33 = vld [vmem:[%s18722_s5 + $0xd4] sm:$0xf0] }
 0x789   : > { %v16481_v19 = vsel %vm19215_vm12, %v4969_v35, %v4968_v62  ;;  %v10064_v25 = vor.u32 %v11227_v18, %v10063_v45  ;;  %v10049_v35 = vld [vmem:[%s18722_s5 + $0xd0] sm:$0xf0]  ;;  %v10048_v63 = vor.u32 %v11223_v10, %v10047_v32  ;;  %v10056_v57 = vor.u32 %v11224_v33, %v10055_v24  ;;  %v11222_v62 = vld [vmem:[%s18722_s5 + $0xcc] sm:$0xf]  ;;  %v10057_v45 = vld [vmem:[%s18722_s5 + $0xd8] sm:$0xf0] }
 0x78a   : > { %v9948_v39 = vmul.f32 -1.442695, %v5241_v37  ;;  %v4991_v38 = vsel %vm12631_vm11, %v16478_v20, %v16481_v19  ;;  %5679 = vmatpush.bf16.msra.mxu2 %v10072_v31  ;;  %v10060_v30 = vor.u32 %v11222_v62, %v10057_v45  ;;  %v10039_v31 = vld [vmem:[%s18722_s5 + $0xa8] sm:$0xf]  ;;  %v11218_v10 = vld [vmem:[%s18722_s5 + $0xac] sm:$0xf] }
 0x78b   : > { %v11572_v14 = vpop.eup %11571  ;;  %v5240_v1 = vadd.f32 %v5221_v48, %v4991_v38  ;;  %5653 = vmatpush.bf16.msra.mxu0 %v10064_v25  ;;  %v10073_v48 = vld [vmem:[%s18722_s5 + $0xf8] sm:$0xf0]  ;;  %v11219_v38 = vld [vmem:[%s18722_s5 + $0xac] sm:$0xf0]  ;;  %v10023_v62 = vld [vmem:[%s18722_s5 + $0x88] sm:$0xf] }
 0x78c   : > { %v11574_v2 = vpop.eup %11573  ;;  %v16470_v17 = vadd.f32 1.0, %v11572_v14  ;;  %11575 = vpow2.f32 %v9948_v39  ;;  %v10076_v29 = vor.u32 %v11226_v52, %v10073_v48  ;;  %v10052_v14 = vor.u32 %v11221_v21, %v10049_v35  ;;  %v11220_v52 = vld [vmem:[%s18722_s5 + $0xb4] sm:$0xf0]  ;;  %v10041_v21 = vld [vmem:[%s18722_s5 + $0xb8] sm:$0xf0] }
 0x78d   : > { %v16475_v41 = vadd.f32 1.0, %v11574_v2  ;;  %v11216_v45 = vld [vmem:[%s18722_s5 + $0x94] sm:$0xf0] }
 0x78e   : > { %11577 = vrcp.f32 %v16470_v17  ;;  %v5255_v34 = vand.u32 2147483647, %v16470_v17  ;;  %v5257_v12 = vand.u32 2147483648, %v16470_v17  ;;  %5692 = vmatpush.bf16.msra.mxu3 %v10076_v29  ;;  %vm5251_vm6 = vweird.f32 %v16470_v17  ;;  %5667 = vmatpush.bf16.msra.mxu1 %v10052_v14  ;;  %v11213_v14 = vld [vmem:[%s18722_s5 + $0x84] sm:$0xf]  ;;  %v19222_v48 = vld [vmem:[#allocation18_spill] sm:$0xff] }
 0x78f   : > { %11579 = vrcp.f32 %v16475_v41  ;;  %v5223_v44 = vpop.f32.mrf.mxu2  ;;  %v5236_v55 = vpop.f32.mrf.mxu3  ;;  %v5276_v54 = vand.u32 2147483648, %v16475_v41  ;;  %5654 = vmatpush.bf16.msra.mxu0 %v10048_v63  ;;  %vm5270_vm13 = vweird.f32 %v16475_v41  ;;  %v5274_v26 = vand.u32 2147483647, %v16475_v41  ;;  %5680 = vmatpush.bf16.msra.mxu2 %v10056_v57  ;;  %v10017_v57 = vld [vmem:[%s18722_s5 + $0x90] sm:$0xf0] }
 0x790   : > { %11581 = vtanh.f32 %v5240_v1  ;;  %v10031_v44 = vld [vmem:[%s18722_s5 + $0xa0] sm:$0xf]  ;;  %v11217_v55 = vld [vmem:[%s18722_s5 + $0xa4] sm:$0xf]  ;;  %vm16574_vm8 = vcmp.eq.f32.partialorder %v5255_v34, 8.507059e+37  ;;  %v10040_v29 = vor.u32 %v11220_v52, %v10039_v31  ;;  %v10044_v63 = vor.u32 %v11218_v10, %v10041_v21 }
 0x791   : > { %v10032_v51 = vor.u32 %v11219_v38, %v10031_v44  ;;  %v5277_v34 = vor.u32 1.1754944e-38, %v5276_v54  ;;  %v10015_v54 = vld [vmem:[%s18722_s5 + $0x80] sm:$0xf]  ;;  %v10020_v38 = vor.u32 %v11213_v14, %v10017_v57  ;;  %v11211_v31 = vld [vmem:[%s18722_s5 + $0x6c] sm:$0xf0]  ;;  %vm5275_vm12 = vcmp.eq.f32.partialorder %v5274_v26, 8.507059e+37 }
 0x792   : > { %v11576_v59 = vpop.eup %11575  ;;  %5693 = vmatpush.bf16.msra.mxu3 %v10060_v30  ;;  %v10025_v30 = vld [vmem:[%s18722_s5 + $0x98] sm:$0xf0]  ;;  %v11209_v52 = vld [vmem:[%s18722_s5 + $0x64] sm:$0xf]  ;;  %v10007_v10 = vld [vmem:[%s18722_s5 + $0x68] sm:$0xf] }
 0x793   : > { %v16530_v7 = vadd.f32 1.0, %v11576_v59  ;;  %v5258_v59 = vor.u32 1.1754944e-38, %v5257_v12  ;;  %5655 = vmatpush.bf16.msra.mxu0 %v10032_v51  ;;  %v11215_v12 = vld [vmem:[%s18722_s5 + $0x8c] sm:$0xf0]  ;;  %5681 = vmatpush.bf16.msra.mxu2 %v10040_v29  ;;  %v11212_v21 = vld [vmem:[%s18722_s5 + $0x74] sm:$0xf0] }
 0x794   : > { %v16527_v37 = vpop.eup %11577  ;;  %v10009_v26 = vld [vmem:[%s18722_s5 + $0x78] sm:$0xf0]  ;;  %v11207_v14 = vld [vmem:[%s18722_s5 + $0x4c] sm:$0xf0]  ;;  %v9985_v57 = vld [vmem:[%s18722_s5 + $0x50] sm:$0xf0] }
 0x795   : > { %v16538_v39 = vpop.eup %11579  ;;  %v5247_v2 = vmul.f32 %v16527_v37, %v16470_v17  ;;  %vm5252_vm14 = vweird.f32 %v16527_v37  ;;  %11583 = vrcp.f32 %v16530_v7  ;;  %v10033_v17 = vld [vmem:[%s18722_s5 + $0xb0] sm:$0xf0] }
 0x796   : > { %v5266_v18 = vmul.f32 %v16538_v39, %v16475_v41  ;;  %vm5271_vm0 = vweird.f32 %v16538_v39  ;;  %vm16570_vm7 = vmor %vm5251_vm6, %vm5252_vm14  ;;  %v10036_v41 = vor.u32 %v11217_v55, %v10033_v17  ;;  %v11582_v24 = vpop.eup %11581  ;;  %v10024_v55 = vor.u32 %v11216_v45, %v10023_v62  ;;  %v9999_v17 = vld [vmem:[%s18722_s5 + $0x60] sm:$0xf]  ;;  %5694 = vmatpush.bf16.msra.mxu3 %v10044_v63  ;;  %v9991_v62 = vld [vmem:[%s18722_s5 + $0x48] sm:$0xf] }
 0x797   : > { %v5248_v25 = vsub.f32 1.0, %v5247_v2  ;;  %vm16586_vm15 = vmor %vm5270_vm13, %vm5271_vm0  ;;  %v10016_v2 = vor.u32 %v11215_v12, %v10015_v54  ;;  %v10000_v29 = vor.u32 %v11211_v31, %v9999_v17  ;;  %v10008_v12 = vor.u32 %v11212_v21, %v10007_v10  ;;  %v11208_v45 = vld [vmem:[%s18722_s5 + $0x54] sm:$0xf0] }
 0x798   : > { %v5267_v1 = vsub.f32 1.0, %v5266_v18  ;;  %5668 = vmatpush.bf16.msra.mxu1 %v10036_v41  ;;  %5682 = vmatpush.bf16.msra.mxu2 %v10024_v55  ;;  %v11206_v55 = vld [vmem:[%s18722_s5 + $0x4c] sm:$0xf]  ;;  %v9992_v31 = vor.u32 %v11208_v45, %v9991_v62  ;;  %vm5290_vm0 = vweird.f32 %v16530_v7  ;;  %v11204_v10 = vld [vmem:[%s18722_s5 + $0x34] sm:$0xf0]  ;;  %v5457_v21 = vsel %vm12301_vm9, %v16116_v28, %v16123_v49 }
 0x799   : > { %v5249_v32 = vmul.f32 %v16527_v37, %v5248_v25  ;;  %v11214_v25 = vld [vmem:[%s18722_s5 + $0x8c] sm:$0xf]  ;;  %5656 = vmatpush.bf16.msra.mxu0 %v10016_v2  ;;  %v9961_v45 = vld [vmem:[%s18722_s5 + $0x18] sm:$0xf0] }
 0x79a   : > { %v5268_v35 = vmul.f32 %v16538_v39, %v5267_v1  ;;  %v10028_v41 = vor.u32 %v11214_v25, %v10025_v30  ;;  %v9993_v25 = vld [vmem:[%s18722_s5 + $0x58] sm:$0xf0]  ;;  %v11198_v62 = vld [vmem:[%s18722_s5 + $0xc] sm:$0xf] }
 0x79b   : > { %v5250_v33 = vadd.f32 %v16527_v37, %v5249_v32  ;;  %v16617_v44 = vpop.eup %11583  ;;  %v10001_v32 = vld [vmem:[%s18722_s5 + $0x70] sm:$0xf0] }
 0x79c   : > { %v5269_v18 = vadd.f32 %v16538_v39, %v5268_v35  ;;  %v5286_v51 = vmul.f32 %v16617_v44, %v16530_v7  ;;  %5669 = vmatpush.bf16.msra.mxu1 %v10020_v38  ;;  %v10004_v16 = vor.u32 %v11209_v52, %v10001_v32  ;;  %5695 = vmatpush.bf16.msra.mxu3 %v10028_v41  ;;  %vm5291_vm14 = vweird.f32 %v16617_v44  ;;  %v11201_v52 = vld [vmem:[%s18722_s5 + $0x24] sm:$0xf]  ;;  %v9969_v32 = vld [vmem:[%s18722_s5 + $0x30] sm:$0xf0] }
 0x79d   : > { %v5254_v1 = vsel %vm16570_vm7, %v16527_v37, %v5250_v33  ;;  %5657 = vmatpush.bf16.msra.mxu0 %v10000_v29  ;;  %v5296_v41 = vand.u32 2147483648, %v16530_v7  ;;  %5683 = vmatpush.bf16.msra.mxu2 %v10008_v12  ;;  %v9975_v29 = vld [vmem:[%s18722_s5 + $0x28] sm:$0xf]  ;;  %vm16714_vm6 = vmor %vm5290_vm0, %vm5291_vm14  ;;  %v11197_v12 = vld [vmem:[%s18722_s5 + $0x4] sm:$0xf]  ;;  %vm19225_vm7 = vcmask 516096  }
 0x79e   : > { %v5259_v37 = vsel %vm16574_vm8, %v5258_v59, %v5254_v1  ;;  %v5273_v22 = vsel %vm16586_vm15, %v16538_v39, %v5269_v18  ;;  %v5287_v54 = vsub.f32 1.0, %v5286_v51  ;;  %v11210_v39 = vld [vmem:[%s18722_s5 + $0x6c] sm:$0xf]  ;;  %v9967_v1 = vld [vmem:[%s18722_s5 + $0x20] sm:$0xf]  ;;  %vm19226_vm8 = vcmask 1040896   ;;  %vm19227_vm15 = vmmov %vm19225_vm7 }
 0x79f   : > { %v5278_v35 = vsel %vm5275_vm12, %v5277_v34, %v5273_v22  ;;  %v5301_v63 = vmul.f32 %v11582_v24, %v5259_v37  ;;  %v9983_v34 = vld [vmem:[%s18722_s5 + $0x40] sm:$0xf]  ;;  %v11205_v24 = vld [vmem:[%s18722_s5 + $0x44] sm:$0xf]  ;;  %v10012_v2 = vor.u32 %v11210_v39, %v10009_v26  ;;  %v11203_v51 = vld [vmem:[%s18722_s5 + $0x2c] sm:$0xf0]  ;;  %v9996_v22 = vor.u32 %v11206_v55, %v9993_v25 }
 0x7a0   : > { %v5300_v59 = vmul.f32 %v5278_v35, %v19222_v48  ;;  %v5288_v33 = vmul.f32 %v16617_v44, %v5287_v54  ;;  %v9984_v38 = vor.u32 %v11207_v14, %v9983_v34  ;;  %5670 = vmatpush.bf16.msra.mxu1 %v10004_v16  ;;  %v9988_v17 = vor.u32 %v11205_v24, %v9985_v57  ;;  %v9951_v39 = vld [vmem:[%s18722_s5] sm:$0xf]  ;;  %v11199_v26 = vld [vmem:[%s18722_s5 + $0xc] sm:$0xf0]  ;;  %v9959_v14 = vld [vmem:[%s18722_s5 + $0x8] sm:$0xf] }
 0x7a1   : > { %v5294_v37 = vand.u32 2147483647, %v16530_v7  ;;  %5696 = vmatpush.bf16.msra.mxu3 %v10012_v2  ;;  %v9968_v35 = vor.u32 %v11203_v51, %v9967_v1  ;;  %v11202_v7 = vld [vmem:[%s18722_s5 + $0x2c] sm:$0xf]  ;;  %v9972_v16 = vor.u32 %v11201_v52, %v9969_v32  ;;  %v5297_v48 = vor.u32 1.1754944e-38, %v5296_v41  ;;  %5684 = vmatpush.bf16.msra.mxu2 %v9992_v31  ;;  %vm19228_vm12 = vmmov %vm19226_vm8 }
 0x7a2   : > { %v16680_v18 = vadd.f32 %v5301_v63, %v5300_v59  ;;  %v5289_v30 = vadd.f32 %v16617_v44, %v5288_v33  ;;  %5658 = vmatpush.bf16.msra.mxu0 %v9984_v38  ;;  %v9977_v63 = vld [vmem:[%s18722_s5 + $0x38] sm:$0xf0]  ;;  %v9976_v59 = vor.u32 %v11204_v10, %v9975_v29  ;;  %v11200_v24 = vld [vmem:[%s18722_s5 + $0x14] sm:$0xf0]  ;;  %v9952_v57 = vor.u32 %v11199_v26, %v9951_v39  ;;  %vm19229_vm14 = vmmov %vm19225_vm7 }
 0x7a3   : > { %vm5295_vm13 = vcmp.eq.f32.partialorder %v5294_v37, 8.507059e+37  ;;  %v9980_v34 = vor.u32 %v11202_v7, %v9977_v63  ;;  %v9960_v25 = vor.u32 %v11200_v24, %v9959_v14  ;;  %vm19230_vm0 = vmmov %vm19225_vm7  ;;  %v10194_v24 = vld [vmem:[%s18722_s5 + $0xe0] sm:$0xf] }
 0x7a4   : > { %11585 = vtanh.f32 %v16680_v18  ;;  %v5293_v54 = vsel %vm16714_vm6, %v16617_v44, %v5289_v30  ;;  %5671 = vmatpush.bf16.msra.mxu1 %v9988_v17  ;;  %v9953_v44 = vld [vmem:[%s18722_s5 + $0x10] sm:$0xf0]  ;;  %v9964_v30 = vor.u32 %v11198_v62, %v9961_v45  ;;  %vm19231_vm6 = vmmov %vm19226_vm8  ;;  %v11257_v45 = vld [vmem:[%s18722_s5 + $0xe4] sm:$0xf] }
 0x7a5   : > { %5697 = vmatpush.bf16.msra.mxu3 %v9996_v22  ;;  %v5298_v2 = vsel %vm5295_vm13, %v5297_v48, %v5293_v54  ;;  %v9956_v55 = vor.u32 %v11197_v12, %v9953_v44  ;;  %5685 = vmatpush.bf16.msra.mxu2 %v9976_v59  ;;  %vm19232_vm13 = vmmov %vm19231_vm6 }
 0x7a6   : > { %5659 = vmatpush.bf16.msra.mxu0 %v9968_v35  ;;  %vm19235_vm5 = vmmov %vm19231_vm6 }
 0x7a8   : > { %5672 = vmatpush.bf16.msra.mxu1 %v9972_v16 }
 0x7a9   : > { %5698 = vmatpush.bf16.msra.mxu3 %v9980_v34  ;;  %5686 = vmatpush.bf16.msra.mxu2 %v9960_v25 }
 0x7aa   : > { %v11586_v33 = vpop.eup %11585  ;;  %5660 = vmatpush.bf16.msra.mxu0 %v9952_v57 }
 0x7ab   : > { %v5304_v38 = vmul.f32 %v11586_v33, %v5298_v2  ;;  %v11259_v33 = vld [vmem:[%s18722_s5 + $0xec] sm:$0xf0] }
 0x7ac   : > { %5673 = vmatpush.bf16.msra.mxu1 %v9956_v55  ;;  %v10195_v62 = vor.u32 %v11259_v33, %v10194_v24 }
 0x7ad   : > { %5320 = vst.msk [vmem:[#allocation2 + $0x1] sm:$0x1] %vm19225_vm7, %v5304_v38  ;;  %v5460_v17 = vpack.c.bf16 %v5304_v38, %v5304_v38  ;;  %5699 = vmatpush.bf16.msra.mxu3 %v9964_v30  ;;  %v5306_v1 = vrot.slane %v5304_v38, 1  ;;  %v5307_v51 = vrot.slane %v5304_v38, 2  ;;  %v5308_v41 = vrot.slane %v5304_v38, 3  ;;  %vm19233_vm7 = vmmov %vm19230_vm0 }
 0x7ae   : > { %5328 = vst.msk [vmem:[#allocation2 + $0x6] sm:$0x1] %vm19226_vm8, %v5304_v38  ;;  %v5309_v31 = vrot.slane %v5304_v38, 4  ;;  %v5310_v52 = vrot.slane %v5304_v38, 5  ;;  %v5311_v32 = vrot.slane %v5304_v38, 6  ;;  %vm19234_vm8 = vmmov %vm19230_vm0  ;;  %v5312_v37 = vrot.slane %v5304_v38, 7  ;;  %6120 = vmatpush.bf16.msrb.mxu0 %v10195_v62 }
 0x7af   : > { %5661 = vmatmul.bf16.vlgmr.msra.gmra.mxu0 %v5460_v17  ;;  %5674 = vmatmul.bf16.vlgmr.msra.gmra.mxu1 %v5460_v17  ;;  %5321 = vst.msk [vmem:[#allocation2 + $0x9] sm:$0x1] %vm19227_vm15, %v5306_v1  ;;  %vm19236_vm15 = vmmov %vm19235_vm5  ;;  %v10196_v38 = vld [vmem:[%s18722_s5 + $0xf0] sm:$0xf0] }
 0x7b0   : > { %5687 = vmatmul.bf16.vlgmr.msra.gmra.mxu2 %v5460_v17  ;;  %5700 = vmatmul.bf16.vlgmr.msra.gmra.mxu3 %v5460_v17  ;;  %5329 = vst.msk [vmem:[#allocation2 + $0xe] sm:$0x1] %vm19228_vm12, %v5306_v1  ;;  %vm19237_vm12 = vmmov %vm19230_vm0  ;;  %v10199_v30 = vor.u32 %v11257_v45, %v10196_v38  ;;  %v10202_v17 = vld [vmem:[%s18722_s5 + $0xe8] sm:$0xf]  ;;  %v11260_v1 = vld [vmem:[%s18722_s5 + $0xf4] sm:$0xf0] }
 0x7b1   : > { %5322 = vst.msk [vmem:[#allocation2 + $0x11] sm:$0x1] %vm19229_vm14, %v5307_v51  ;;  %vm19238_vm14 = vmmov %vm19230_vm0  ;;  %v11249_v45 = vld [vmem:[%s18722_s5 + $0xa4] sm:$0xf]  ;;  %v10164_v38 = vld [vmem:[%s18722_s5 + $0xb0] sm:$0xf0] }
 0x7b2   : > { %5323 = vst.msk [vmem:[#allocation2 + $0x19] sm:$0x1] %vm19230_vm0, %v5308_v41  ;;  %vm19239_vm0 = vmmov %vm19235_vm5  ;;  %6133 = vmatpush.bf16.msrb.mxu1 %v10199_v30 }
 0x7b3   : > { %5330 = vst.msk [vmem:[#allocation2 + $0x16] sm:$0x1] %vm19231_vm6, %v5307_v51  ;;  %vm19240_vm4 = vmmov %vm19239_vm0  ;;  %vm19241_vm6 = vcmp.lt.s32.totalorder %v12164_v40, 64  ;;  %v5458_v51 = vsel %vm12631_vm11, %v16154_v43, %v16157_v13 }
 0x7b4   : > { %5331 = vst.msk [vmem:[#allocation2 + $0x1e] sm:$0x1] %vm19232_vm13, %v5308_v41  ;;  %v5456_v22 = vsel %vm19241_vm6, %v16065_v53, %v16110_v11  ;;  %v5459_v11 = vsel %vm12403_vm10, %v16276_v27, %v16282_v50  ;;  %v10203_v41 = vor.u32 %v11260_v1, %v10202_v17  ;;  %v10167_v17 = vor.u32 %v11249_v45, %v10164_v38  ;;  %v10170_v1 = vld [vmem:[%s18722_s5 + $0xa8] sm:$0xf] }
 0x7b5   : > { %5324 = vst.msk [vmem:[#allocation2 + $0x21] sm:$0x1] %vm19233_vm7, %v5309_v31 }
 0x7b6   : > { %5325 = vst.msk [vmem:[#allocation2 + $0x29] sm:$0x1] %vm19234_vm8, %v5310_v52  ;;  %6146 = vmatpush.bf16.msrb.mxu2 %v10203_v41 }
 0x7b7   : > { %5332 = vst.msk [vmem:[#allocation2 + $0x26] sm:$0x1] %vm19235_vm5, %v5309_v31  ;;  %v11258_v31 = vld [vmem:[%s18722_s5 + $0xec] sm:$0xf] }
 0x7b8   : > { %5333 = vst.msk [vmem:[#allocation2 + $0x2e] sm:$0x1] %vm19236_vm15, %v5310_v52  ;;  %v10204_v52 = vld [vmem:[%s18722_s5 + $0xf8] sm:$0xf0] }
 0x7b9   : > { %5326 = vst.msk [vmem:[#allocation2 + $0x31] sm:$0x1] %vm19237_vm12, %v5311_v32 }
 0x7ba   : > { %5327 = vst.msk [vmem:[#allocation2 + $0x39] sm:$0x1] %vm19238_vm14, %v5312_v37 }
 0x7bb   : > { %5334 = vst.msk [vmem:[#allocation2 + $0x36] sm:$0x1] %vm19239_vm0, %v5311_v32  ;;  %v10178_v32 = vld [vmem:[%s18722_s5 + $0xc0] sm:$0xf] }
 0x7bc   : > { %5335 = vst.msk [vmem:[#allocation2 + $0x3e] sm:$0x1] %vm19240_vm4, %v5312_v37 }
 0x82c   : > { %v5662_v29 = vpop.f32.mrf.mxu0  ;;  %v5675_v35 = vpop.f32.mrf.mxu1 }
 0x82d   : > { %v5705_v10 = vadd.f32 %v5662_v29, %v5456_v22  ;;  %v5706_v7 = vadd.f32 %v5675_v35, %v5457_v21  ;;  %v10207_v22 = vor.u32 %v11258_v31, %v10204_v52  ;;  %v11255_v29 = vld [vmem:[%s18722_s5 + $0xcc] sm:$0xf0]  ;;  %v10180_v21 = vld [vmem:[%s18722_s5 + $0xd0] sm:$0xf0] }
 0x82f   : > { %v10077_v63 = vmul.f32 -1.442695, %v5705_v10  ;;  %v10078_v54 = vmul.f32 -1.442695, %v5706_v7  ;;  %v11253_v10 = vld [vmem:[%s18722_s5 + $0xc4] sm:$0xf]  ;;  %v10179_v7 = vor.u32 %v11255_v29, %v10178_v32  ;;  %6159 = vmatpush.bf16.msrb.mxu3 %v10207_v22 }
 0x830   : > { %v11250_v32 = vld [vmem:[%s18722_s5 + $0xac] sm:$0xf]  ;;  %v10146_v29 = vld [vmem:[%s18722_s5 + $0x80] sm:$0xf] }
 0x831   : > { %11587 = vpow2.f32 %v10077_v63  ;;  %v10183_v63 = vor.u32 %v11253_v10, %v10180_v21  ;;  %6121 = vmatpush.bf16.msrb.mxu0 %v10179_v7  ;;  %v11247_v10 = vld [vmem:[%s18722_s5 + $0x8c] sm:$0xf0] }
 0x832   : > { %11589 = vpow2.f32 %v10078_v54  ;;  %v10186_v54 = vld [vmem:[%s18722_s5 + $0xc8] sm:$0xf] }
 0x833   : > { %v5688_v16 = vpop.f32.mrf.mxu2  ;;  %v5701_v53 = vpop.f32.mrf.mxu3  ;;  %6134 = vmatpush.bf16.msrb.mxu1 %v10183_v63  ;;  %v10147_v63 = vor.u32 %v11247_v10, %v10146_v29  ;;  %v11242_v10 = vld [vmem:[%s18722_s5 + $0x6c] sm:$0xf] }
 0x834   : > { %v5664_v39 = vpop.f32.mrf.mxu0  ;;  %v5677_v26 = vpop.f32.mrf.mxu1  ;;  %v5708_v48 = vadd.f32 %v5701_v53, %v5459_v11  ;;  %v5707_v37 = vadd.f32 %v5688_v16, %v5458_v51  ;;  %v11256_v16 = vld [vmem:[%s18722_s5 + $0xd4] sm:$0xf0] }
 0x835   : > { %v11254_v39 = vld [vmem:[%s18722_s5 + $0xcc] sm:$0xf]  ;;  %v10187_v26 = vor.u32 %v11256_v16, %v10186_v54  ;;  %v11252_v51 = vld [vmem:[%s18722_s5 + $0xb4] sm:$0xf0]  ;;  %v11245_v54 = vld [vmem:[%s18722_s5 + $0x84] sm:$0xf] }
 0x836   : > { %v10079_v34 = vmul.f32 -1.442695, %v5708_v48  ;;  %v10188_v48 = vld [vmem:[%s18722_s5 + $0xd8] sm:$0xf0]  ;;  %v10171_v52 = vor.u32 %v11252_v51, %v10170_v1  ;;  %v10148_v16 = vld [vmem:[%s18722_s5 + $0x90] sm:$0xf0] }
 0x837   : > { %v11588_v59 = vpop.eup %11587  ;;  %6147 = vmatpush.bf16.msrb.mxu2 %v10187_v26  ;;  %6135 = vmatpush.bf16.msrb.mxu1 %v10167_v17  ;;  %v11243_v17 = vld [vmem:[%s18722_s5 + $0x6c] sm:$0xf0]  ;;  %v11241_v1 = vld [vmem:[%s18722_s5 + $0x64] sm:$0xf] }
 0x838   : > { %v11590_v12 = vpop.eup %11589  ;;  %v16779_v44 = vadd.f32 1.0, %v11588_v59  ;;  %v10162_v59 = vld [vmem:[%s18722_s5 + $0xa0] sm:$0xf] }
 0x839   : > { %v16781_v14 = vadd.f32 1.0, %v11590_v12  ;;  %v11251_v12 = vld [vmem:[%s18722_s5 + $0xac] sm:$0xf0] }
 0x83a   : > { %11591 = vrcp.f32 %v16779_v44  ;;  %v5722_v2 = vand.u32 2147483647, %v16779_v44  ;;  %v5724_v55 = vand.u32 2147483648, %v16779_v44  ;;  %v10163_v62 = vor.u32 %v11251_v12, %v10162_v59  ;;  %v10154_v59 = vld [vmem:[%s18722_s5 + $0x88] sm:$0xf] }
 0x83b   : > { %11593 = vrcp.f32 %v16781_v14  ;;  %v5690_v57 = vpop.f32.mrf.mxu2  ;;  %v5703_v25 = vpop.f32.mrf.mxu3  ;;  %v5741_v33 = vand.u32 2147483647, %v16781_v14  ;;  %v5743_v31 = vand.u32 2147483648, %v16781_v14  ;;  %vm5718_vm13 = vweird.f32 %v16779_v44  ;;  %v11248_v12 = vld [vmem:[%s18722_s5 + $0x94] sm:$0xf0]  ;;  %6148 = vmatpush.bf16.msrb.mxu2 %v10171_v52 }
 0x83c   : > { %11595 = vpow2.f32 %v10079_v34  ;;  %v10191_v57 = vor.u32 %v11254_v39, %v10188_v48  ;;  %vm5737_vm7 = vweird.f32 %v16781_v14  ;;  %6122 = vmatpush.bf16.msrb.mxu0 %v10163_v62  ;;  %vm16903_vm15 = vcmp.eq.f32.partialorder %v5722_v2, 8.507059e+37  ;;  %v10156_v62 = vld [vmem:[%s18722_s5 + $0x98] sm:$0xf0]  ;;  %v10138_v52 = vld [vmem:[%s18722_s5 + $0x68] sm:$0xf] }
 0x83d   : > { %11597 = vtanh.f32 %v5707_v37  ;;  %v10172_v37 = vld [vmem:[%s18722_s5 + $0xb8] sm:$0xf0]  ;;  %v5725_v26 = vor.u32 1.1754944e-38, %v5724_v55  ;;  %v10151_v48 = vor.u32 %v11245_v54, %v10148_v16  ;;  %vm16922_vm14 = vcmp.eq.f32.partialorder %v5741_v33, 8.507059e+37 }
 0x83e   : > { %6160 = vmatpush.bf16.msrb.mxu3 %v10191_v57  ;;  %v10175_v7 = vor.u32 %v11250_v32, %v10172_v37  ;;  %v11246_v57 = vld [vmem:[%s18722_s5 + $0x8c] sm:$0xf]  ;;  %v11244_v32 = vld [vmem:[%s18722_s5 + $0x74] sm:$0xf0] }
 0x83f   : > { %v10159_v33 = vor.u32 %v11246_v57, %v10156_v62  ;;  %6136 = vmatpush.bf16.msrb.mxu1 %v10151_v48  ;;  %v10139_v16 = vor.u32 %v11244_v32, %v10138_v52  ;;  %v11240_v48 = vld [vmem:[%s18722_s5 + $0x54] sm:$0xf0]  ;;  %v10098_v57 = vld [vmem:[%s18722_s5 + $0x20] sm:$0xf]  ;;  %v11235_v62 = vld [vmem:[%s18722_s5 + $0x2c] sm:$0xf0] }
 0x840   : > { %v16827_v35 = vpop.eup %11591  ;;  %6123 = vmatpush.bf16.msrb.mxu0 %v10147_v63  ;;  %v11234_v52 = vld [vmem:[%s18722_s5 + $0x2c] sm:$0xf]  ;;  %v10108_v32 = vld [vmem:[%s18722_s5 + $0x38] sm:$0xf0] }
 0x841   : > { %v16838_v11 = vpop.eup %11593  ;;  %v5714_v53 = vmul.f32 %v16827_v35, %v16779_v44  ;;  %vm5719_vm4 = vweird.f32 %v16827_v35 }
 0x842   : > { %v11596_v34 = vpop.eup %11595  ;;  %v5733_v24 = vmul.f32 %v16838_v11, %v16781_v14  ;;  %vm5738_vm5 = vweird.f32 %v16838_v11  ;;  %vm16897_vm8 = vmor %vm5718_vm13, %vm5719_vm4  ;;  %6161 = vmatpush.bf16.msrb.mxu3 %v10175_v7  ;;  %v10114_v7 = vld [vmem:[%s18722_s5 + $0x40] sm:$0xf]  ;;  %v10116_v14 = vld [vmem:[%s18722_s5 + $0x50] sm:$0xf0]  ;;  %vm19252_vm13 = vcmask 516096  }
 0x843   : > { %v5715_v25 = vsub.f32 1.0, %v5714_v53  ;;  %v16860_v30 = vadd.f32 1.0, %v11596_v34  ;;  %vm16917_vm12 = vmor %vm5737_vm7, %vm5738_vm5  ;;  %v5744_v34 = vor.u32 1.1754944e-38, %v5743_v31  ;;  %v11598_v45 = vpop.eup %11597  ;;  %v10132_v31 = vld [vmem:[%s18722_s5 + $0x70] sm:$0xf0]  ;;  %vm19253_vm7 = vcmask 1040896  }
 0x844   : > { %v5734_v41 = vsub.f32 1.0, %v5733_v24  ;;  %v10155_v24 = vor.u32 %v11248_v12, %v10154_v59  ;;  %v10135_v29 = vor.u32 %v11241_v1, %v10132_v31  ;;  %v11237_v53 = vld [vmem:[%s18722_s5 + $0x44] sm:$0xf]  ;;  %v10099_v31 = vor.u32 %v11235_v62, %v10098_v57 }
 0x845   : > { %v5716_v22 = vmul.f32 %v16827_v35, %v5715_v25  ;;  %11599 = vrcp.f32 %v16860_v30  ;;  %v10130_v25 = vld [vmem:[%s18722_s5 + $0x60] sm:$0xf]  ;;  %v5763_v55 = vand.u32 2147483648, %v16860_v30  ;;  %vm5757_vm6 = vweird.f32 %v16860_v30 }
 0x846   : > { %v5735_v21 = vmul.f32 %v16838_v11, %v5734_v41  ;;  %v10131_v41 = vor.u32 %v11243_v17, %v10130_v25  ;;  %6149 = vmatpush.bf16.msrb.mxu2 %v10155_v24  ;;  %6162 = vmatpush.bf16.msrb.mxu3 %v10159_v33  ;;  %v10119_v24 = vor.u32 %v11237_v53, %v10116_v14  ;;  %v11233_v33 = vld [vmem:[%s18722_s5 + $0x24] sm:$0xf]  ;;  %v10100_v25 = vld [vmem:[%s18722_s5 + $0x30] sm:$0xf0]  ;;  %v5761_v17 = vand.u32 2147483647, %v16860_v30 }
 0x847   : > { %v5717_v39 = vadd.f32 %v16827_v35, %v5716_v22  ;;  %6137 = vmatpush.bf16.msrb.mxu1 %v10135_v29  ;;  %v11231_v29 = vld [vmem:[%s18722_s5 + $0xc] sm:$0xf0] }
 0x848   : > { %v5736_v44 = vadd.f32 %v16838_v11, %v5735_v21  ;;  %v10140_v21 = vld [vmem:[%s18722_s5 + $0x78] sm:$0xf0]  ;;  %6124 = vmatpush.bf16.msrb.mxu0 %v10131_v41  ;;  %vm5762_vm5 = vcmp.eq.f32.partialorder %v5761_v17, 8.507059e+37 }
 0x849   : > { %v5721_v38 = vsel %vm16897_vm8, %v16827_v35, %v5717_v39  ;;  %v11239_v39 = vld [vmem:[%s18722_s5 + $0x4c] sm:$0xf0]  ;;  %vm19254_vm8 = vmmov %vm19252_vm13 }
 0x84a   : > { %v5726_v51 = vsel %vm16903_vm15, %v5725_v26, %v5721_v38  ;;  %v5740_v35 = vsel %vm16917_vm12, %v16838_v11, %v5736_v44  ;;  %v10143_v26 = vor.u32 %v11242_v10, %v10140_v21  ;;  %v10115_v2 = vor.u32 %v11239_v39, %v10114_v7  ;;  %v10124_v44 = vld [vmem:[%s18722_s5 + $0x58] sm:$0xf0]  ;;  %6150 = vmatpush.bf16.msrb.mxu2 %v10139_v16  ;;  %v10090_v39 = vld [vmem:[%s18722_s5 + $0x8] sm:$0xf]  ;;  %vm19255_vm15 = vmmov %vm19253_vm7 }
 0x84b   : > { %v16958_v37 = vpop.eup %11599  ;;  %v5745_v22 = vsel %vm16922_vm14, %v5744_v34, %v5740_v35  ;;  %v5768_v11 = vmul.f32 %v11598_v45, %v5726_v51  ;;  %v11238_v34 = vld [vmem:[%s18722_s5 + $0x4c] sm:$0xf]  ;;  %v10106_v51 = vld [vmem:[%s18722_s5 + $0x28] sm:$0xf]  ;;  %v11236_v35 = vld [vmem:[%s18722_s5 + $0x34] sm:$0xf0]  ;;  %6138 = vmatpush.bf16.msrb.mxu1 %v10119_v24  ;;  %v10111_v16 = vor.u32 %v11234_v52, %v10108_v32 }
 0x84c   : > { %v5767_v63 = vmul.f32 %v5745_v22, %v16680_v18  ;;  %v5753_v54 = vmul.f32 %v16958_v37, %v16860_v30  ;;  %v10122_v18 = vld [vmem:[%s18722_s5 + $0x48] sm:$0xf]  ;;  %vm5758_vm0 = vweird.f32 %v16958_v37  ;;  %6163 = vmatpush.bf16.msrb.mxu3 %v10143_v26  ;;  %v10127_v1 = vor.u32 %v11238_v34, %v10124_v44  ;;  %6125 = vmatpush.bf16.msrb.mxu0 %v10115_v2  ;;  %v10082_v30 = vld [vmem:[%s18722_s5] sm:$0xf]  ;;  %vm19256_vm12 = vmmov %vm19254_vm8 }
 0x84d   : > { %v10123_v38 = vor.u32 %v11240_v48, %v10122_v18  ;;  %vm17030_vm4 = vmor %vm5757_vm6, %vm5758_vm0  ;;  %v5764_v21 = vor.u32 1.1754944e-38, %v5763_v55  ;;  %v10107_v7 = vor.u32 %v11236_v35, %v10106_v51  ;;  %v10083_v26 = vor.u32 %v11231_v29, %v10082_v30  ;;  %v11230_v18 = vld [vmem:[%s18722_s5 + $0xc] sm:$0xf]  ;;  %v10092_v48 = vld [vmem:[%s18722_s5 + $0x18] sm:$0xf0] }
 0x84e   : > { %v16989_v59 = vadd.f32 %v5768_v11, %v5767_v63  ;;  %v5754_v12 = vsub.f32 1.0, %v5753_v54  ;;  %v10103_v11 = vor.u32 %v11233_v33, %v10100_v25  ;;  %v11229_v63 = vld [vmem:[%s18722_s5 + $0x4] sm:$0xf]  ;;  %v10084_v54 = vld [vmem:[%s18722_s5 + $0x10] sm:$0xf0]  ;;  %v10095_v44 = vor.u32 %v11230_v18, %v10092_v48  ;;  %vm19257_vm14 = vmmov %vm19254_vm8 }
 0x84f   : > { %6151 = vmatpush.bf16.msrb.mxu2 %v10123_v38  ;;  %v10087_v2 = vor.u32 %v11229_v63, %v10084_v54  ;;  %vm19258_vm0 = vmmov %vm19253_vm7  ;;  %v5924_v35 = vsel %vm12301_vm9, %v16218_v23, %v16221_v8  ;;  %v10327_v18 = vld [vmem:[%s18722_s5 + $0xf0] sm:$0xf0] }
 0x850   : > { %11601 = vtanh.f32 %v16989_v59  ;;  %v5755_v45 = vmul.f32 %v16958_v37, %v5754_v12  ;;  %6164 = vmatpush.bf16.msrb.mxu3 %v10127_v1  ;;  %6126 = vmatpush.bf16.msrb.mxu0 %v10099_v31  ;;  %vm19259_vm6 = vmmov %vm19258_vm0 }
 0x851   : > { %6139 = vmatpush.bf16.msrb.mxu1 %v10103_v11 }
 0x852   : > { %v5756_v41 = vadd.f32 %v16958_v37, %v5755_v45 }
 0x853   : > { %6152 = vmatpush.bf16.msrb.mxu2 %v10107_v7 }
 0x854   : > { %v5760_v10 = vsel %vm17030_vm4, %v16958_v37, %v5756_v41  ;;  %v11232_v37 = vld [vmem:[%s18722_s5 + $0x14] sm:$0xf0]  ;;  %6165 = vmatpush.bf16.msrb.mxu3 %v10111_v16  ;;  %6127 = vmatpush.bf16.msrb.mxu0 %v10083_v26  ;;  %vm19260_vm4 = vmmov %vm19254_vm8  ;;  %v10325_v16 = vld [vmem:[%s18722_s5 + $0xe0] sm:$0xf] }
 0x855   : > { %v5765_v14 = vsel %vm5762_vm5, %v5764_v21, %v5760_v10  ;;  %v10091_v34 = vor.u32 %v11232_v37, %v10090_v39  ;;  %6140 = vmatpush.bf16.msrb.mxu1 %v10087_v2  ;;  %vm19261_vm5 = vmmov %vm19260_vm4  ;;  %v11291_v39 = vld [vmem:[%s18722_s5 + $0xec] sm:$0xf0]  ;;  %v11289_v26 = vld [vmem:[%s18722_s5 + $0xe4] sm:$0xf] }
 0x856   : > { %v11602_v53 = vpop.eup %11601  ;;  %v10330_v2 = vor.u32 %v11289_v26, %v10327_v18 }
 0x857   : > { %v5771_v12 = vmul.f32 %v11602_v53, %v5765_v14  ;;  %6153 = vmatpush.bf16.msrb.mxu2 %v10091_v34  ;;  %v10326_v14 = vor.u32 %v11291_v39, %v10325_v16  ;;  %v10333_v34 = vld [vmem:[%s18722_s5 + $0xe8] sm:$0xf] }
 0x858   : > { %6166 = vmatpush.bf16.msrb.mxu3 %v10095_v44  ;;  %v11292_v44 = vld [vmem:[%s18722_s5 + $0xf4] sm:$0xf0] }
 0x859   : > { %5787 = vst.msk [vmem:[#allocation2 + $0x2] sm:$0x1] %vm19252_vm13, %v5771_v12  ;;  %v5927_v55 = vpack.c.bf16 %v5771_v12, %v5771_v12  ;;  %v5773_v24 = vrot.slane %v5771_v12, 1  ;;  %v5774_v57 = vrot.slane %v5771_v12, 2  ;;  %v5775_v62 = vrot.slane %v5771_v12, 3  ;;  %vm19262_vm13 = vmmov %vm19258_vm0  ;;  %6467 = vmatpush.bf16.msra.mxu0 %v10326_v14  ;;  %6480 = vmatpush.bf16.msra.mxu1 %v10330_v2 }
 0x85a   : > { %5795 = vst.msk [vmem:[#allocation2 + $0x5] sm:$0x1] %vm19253_vm7, %v5771_v12  ;;  %v5776_v45 = vrot.slane %v5771_v12, 4  ;;  %v5777_v38 = vrot.slane %v5771_v12, 5  ;;  %v5778_v33 = vrot.slane %v5771_v12, 6  ;;  %v5779_v25 = vrot.slane %v5771_v12, 7  ;;  %vm19263_vm7 = vmmov %vm19258_vm0 }
 0x85b   : > { %6128 = vmatmul.bf16.vlgmr.msrb.gmra.mxu0 %v5927_v55  ;;  %6141 = vmatmul.bf16.vlgmr.msrb.gmra.mxu1 %v5927_v55  ;;  %5788 = vst.msk [vmem:[#allocation2 + $0xa] sm:$0x1] %vm19254_vm8, %v5773_v24  ;;  %vm19264_vm8 = vmmov %vm19260_vm4  ;;  %v10295_v14 = vld [vmem:[%s18722_s5 + $0xb0] sm:$0xf0]  ;;  %v10301_v2 = vld [vmem:[%s18722_s5 + $0xa8] sm:$0xf] }
 0x85c   : > { %6154 = vmatmul.bf16.vlgmr.msrb.gmra.mxu2 %v5927_v55  ;;  %6167 = vmatmul.bf16.vlgmr.msrb.gmra.mxu3 %v5927_v55  ;;  %5796 = vst.msk [vmem:[#allocation2 + $0xd] sm:$0x1] %vm19255_vm15, %v5773_v24  ;;  %vm19265_vm15 = vmmov %vm19260_vm4  ;;  %v5925_v55 = vsel %vm12631_vm11, %v16263_v36, %v16266_v60  ;;  %v10334_v24 = vor.u32 %v11292_v44, %v10333_v34  ;;  %v11284_v34 = vld [vmem:[%s18722_s5 + $0xb4] sm:$0xf0] }
 0x85d   : > { %5789 = vst.msk [vmem:[#allocation2 + $0x12] sm:$0x1] %vm19256_vm12, %v5774_v57  ;;  %vm19266_vm12 = vmmov %vm19258_vm0 }
 0x85e   : > { %5790 = vst.msk [vmem:[#allocation2 + $0x1a] sm:$0x1] %vm19257_vm14, %v5775_v62  ;;  %vm19267_vm14 = vmmov %vm19258_vm0  ;;  %6493 = vmatpush.bf16.msra.mxu2 %v10334_v24  ;;  %v10302_v24 = vor.u32 %v11284_v34, %v10301_v2  ;;  %v10263_v34 = vld [vmem:[%s18722_s5 + $0x70] sm:$0xf0] }
 0x85f   : > { %5797 = vst.msk [vmem:[#allocation2 + $0x15] sm:$0x1] %vm19258_vm0, %v5774_v57  ;;  %vm19268_vm0 = vcmp.lt.s32.totalorder %v12164_v40, 64  ;;  %v11290_v57 = vld [vmem:[%s18722_s5 + $0xec] sm:$0xf] }
 0x860   : > { %5798 = vst.msk [vmem:[#allocation2 + $0x1d] sm:$0x1] %vm19259_vm6, %v5775_v62  ;;  %v5923_v17 = vsel %vm19268_vm0, %v16200_v56, %v16212_v4  ;;  %v5926_v56 = vsel %vm12403_vm10, %v16269_v47, %v16286_v0  ;;  %v10335_v62 = vld [vmem:[%s18722_s5 + $0xf8] sm:$0xf0] }
 0x861   : > { %5791 = vst.msk [vmem:[#allocation2 + $0x22] sm:$0x1] %vm19260_vm4, %v5776_v45 }
 0x862   : > { %5792 = vst.msk [vmem:[#allocation2 + $0x2a] sm:$0x1] %vm19261_vm5, %v5777_v38 }
 0x863   : > { %5799 = vst.msk [vmem:[#allocation2 + $0x25] sm:$0x1] %vm19262_vm13, %v5776_v45  ;;  %v10309_v45 = vld [vmem:[%s18722_s5 + $0xc0] sm:$0xf] }
 0x864   : > { %5800 = vst.msk [vmem:[#allocation2 + $0x2d] sm:$0x1] %vm19263_vm7, %v5777_v38 }
 0x865   : > { %5793 = vst.msk [vmem:[#allocation2 + $0x32] sm:$0x1] %vm19264_vm8, %v5778_v33 }
 0x866   : > { %5794 = vst.msk [vmem:[#allocation2 + $0x3a] sm:$0x1] %vm19265_vm15, %v5779_v25 }
 0x867   : > { %5801 = vst.msk [vmem:[#allocation2 + $0x35] sm:$0x1] %vm19266_vm12, %v5778_v33  ;;  %v10338_v33 = vor.u32 %v11290_v57, %v10335_v62  ;;  %v11282_v57 = vld [vmem:[%s18722_s5 + $0xac] sm:$0xf]  ;;  %v10303_v62 = vld [vmem:[%s18722_s5 + $0xb8] sm:$0xf0] }
 0x868   : > { %5802 = vst.msk [vmem:[#allocation2 + $0x3d] sm:$0x1] %vm19267_vm14, %v5779_v25  ;;  %v11287_v25 = vld [vmem:[%s18722_s5 + $0xcc] sm:$0xf0] }
 0x869   : > { %6506 = vmatpush.bf16.msra.mxu3 %v10338_v33  ;;  %v11279_v33 = vld [vmem:[%s18722_s5 + $0x8c] sm:$0xf0] }
 0x8d8   : > { %v6129_v1 = vpop.f32.mrf.mxu0  ;;  %v6142_v41 = vpop.f32.mrf.mxu1 }
 0x8d9   : > { %v6172_v51 = vadd.f32 %v6129_v1, %v5923_v17  ;;  %v6173_v31 = vadd.f32 %v6142_v41, %v5924_v35  ;;  %v11285_v17 = vld [vmem:[%s18722_s5 + $0xc4] sm:$0xf]  ;;  %v10311_v1 = vld [vmem:[%s18722_s5 + $0xd0] sm:$0xf0]  ;;  %v10310_v35 = vor.u32 %v11287_v25, %v10309_v45 }
 0x8da   : > { %v10314_v41 = vor.u32 %v11285_v17, %v10311_v1  ;;  %v10306_v17 = vor.u32 %v11282_v57, %v10303_v62 }
 0x8db   : > { %v10208_v52 = vmul.f32 -1.442695, %v6172_v51  ;;  %v10209_v32 = vmul.f32 -1.442695, %v6173_v31  ;;  %v10317_v31 = vld [vmem:[%s18722_s5 + $0xc8] sm:$0xf]  ;;  %6468 = vmatpush.bf16.msra.mxu0 %v10310_v35 }
 0x8dc   : > { %6481 = vmatpush.bf16.msra.mxu1 %v10314_v41  ;;  %v11277_v35 = vld [vmem:[%s18722_s5 + $0x84] sm:$0xf]  ;;  %v10279_v41 = vld [vmem:[%s18722_s5 + $0x90] sm:$0xf0] }
 0x8dd   : > { %11603 = vpow2.f32 %v10208_v52  ;;  %v11288_v52 = vld [vmem:[%s18722_s5 + $0xd4] sm:$0xf0] }
 0x8de   : > { %11605 = vpow2.f32 %v10209_v32  ;;  %v11286_v32 = vld [vmem:[%s18722_s5 + $0xcc] sm:$0xf] }
 0x8df   : > { %v6155_v22 = vpop.f32.mrf.mxu2  ;;  %v6168_v4 = vpop.f32.mrf.mxu3 }
 0x8e0   : > { %v6131_v11 = vpop.f32.mrf.mxu0  ;;  %v6144_v30 = vpop.f32.mrf.mxu1  ;;  %v6175_v29 = vadd.f32 %v6168_v4, %v5926_v56  ;;  %v6174_v38 = vadd.f32 %v6155_v22, %v5925_v55  ;;  %v10318_v56 = vor.u32 %v11288_v52, %v10317_v31  ;;  %v10319_v4 = vld [vmem:[%s18722_s5 + $0xd8] sm:$0xf0] }
 0x8e1   : > { %v10293_v30 = vld [vmem:[%s18722_s5 + $0xa0] sm:$0xf]  ;;  %v10322_v16 = vor.u32 %v11286_v32, %v10319_v4  ;;  %v11280_v4 = vld [vmem:[%s18722_s5 + $0x94] sm:$0xf0] }
 0x8e2   : > { %v10210_v63 = vmul.f32 -1.442695, %v6175_v29  ;;  %v11283_v29 = vld [vmem:[%s18722_s5 + $0xac] sm:$0xf0]  ;;  %6494 = vmatpush.bf16.msra.mxu2 %v10318_v56  ;;  %v10285_v56 = vld [vmem:[%s18722_s5 + $0x88] sm:$0xf] }
 0x8e3   : > { %v11604_v10 = vpop.eup %11603  ;;  %v10294_v39 = vor.u32 %v11283_v29, %v10293_v30  ;;  %6507 = vmatpush.bf16.msra.mxu3 %v10322_v16  ;;  %v10286_v29 = vor.u32 %v11280_v4, %v10285_v56  ;;  %v11270_v4 = vld [vmem:[%s18722_s5 + $0x4c] sm:$0xf] }
 0x8e4   : > { %v11606_v21 = vpop.eup %11605  ;;  %v17089_v7 = vadd.f32 1.0, %v11604_v10 }
 0x8e5   : > { %v17091_v54 = vadd.f32 1.0, %v11606_v21  ;;  %6469 = vmatpush.bf16.msra.mxu0 %v10294_v39 }
 0x8e6   : > { %11607 = vrcp.f32 %v17089_v7  ;;  %v6189_v37 = vand.u32 2147483647, %v17089_v7  ;;  %v6191_v48 = vand.u32 2147483648, %v17089_v7  ;;  %vm6185_vm5 = vweird.f32 %v17089_v7  ;;  %6495 = vmatpush.bf16.msra.mxu2 %v10302_v24 }
 0x8e7   : > { %11609 = vrcp.f32 %v17091_v54  ;;  %v6157_v53 = vpop.f32.mrf.mxu2  ;;  %v6170_v12 = vpop.f32.mrf.mxu3  ;;  %v6210_v55 = vand.u32 2147483648, %v17091_v54  ;;  %vm6204_vm13 = vweird.f32 %v17091_v54  ;;  %6508 = vmatpush.bf16.msra.mxu3 %v10306_v17 }
 0x8e8   : > { %11611 = vpow2.f32 %v10210_v63  ;;  %v6208_v63 = vand.u32 2147483647, %v17091_v54  ;;  %v11281_v53 = vld [vmem:[%s18722_s5 + $0xa4] sm:$0xf]  ;;  %vm17213_vm8 = vcmp.eq.f32.partialorder %v6189_v37, 8.507059e+37  ;;  %v6192_v32 = vor.u32 1.1754944e-38, %v6191_v48 }
 0x8e9   : > { %11613 = vtanh.f32 %v6174_v38  ;;  %v10298_v12 = vor.u32 %v11281_v53, %v10295_v14  ;;  %v10277_v38 = vld [vmem:[%s18722_s5 + $0x80] sm:$0xf]  ;;  %v6211_v30 = vor.u32 1.1754944e-38, %v6210_v55  ;;  %v11275_v14 = vld [vmem:[%s18722_s5 + $0x6c] sm:$0xf0] }
 0x8ea   : > { %v10278_v1 = vor.u32 %v11279_v33, %v10277_v38  ;;  %vm17232_vm12 = vcmp.eq.f32.partialorder %v6208_v63, 8.507059e+37  ;;  %v10261_v53 = vld [vmem:[%s18722_s5 + $0x60] sm:$0xf]  ;;  %v11276_v55 = vld [vmem:[%s18722_s5 + $0x74] sm:$0xf0]  ;;  %6496 = vmatpush.bf16.msra.mxu2 %v10286_v29 }
 0x8eb   : > { %6482 = vmatpush.bf16.msra.mxu1 %v10298_v12  ;;  %v10262_v2 = vor.u32 %v11275_v14, %v10261_v53  ;;  %v10271_v38 = vld [vmem:[%s18722_s5 + $0x78] sm:$0xf0]  ;;  %v10245_v33 = vld [vmem:[%s18722_s5 + $0x40] sm:$0xf]  ;;  %v11267_v29 = vld [vmem:[%s18722_s5 + $0x2c] sm:$0xf0] }
 0x8ec   : > { %v17137_v51 = vpop.eup %11607  ;;  %6470 = vmatpush.bf16.msra.mxu0 %v10278_v1  ;;  %v10255_v37 = vld [vmem:[%s18722_s5 + $0x58] sm:$0xf0]  ;;  %v10229_v48 = vld [vmem:[%s18722_s5 + $0x20] sm:$0xf]  ;;  %v10237_v14 = vld [vmem:[%s18722_s5 + $0x28] sm:$0xf] }
 0x8ed   : > { %v17148_v22 = vpop.eup %11609  ;;  %v6181_v11 = vmul.f32 %v17137_v51, %v17089_v7  ;;  %vm6186_vm6 = vweird.f32 %v17137_v51  ;;  %v10258_v53 = vor.u32 %v11270_v4, %v10255_v37 }
 0x8ee   : > { %v11612_v10 = vpop.eup %11611  ;;  %v6200_v21 = vmul.f32 %v17148_v22, %v17091_v54  ;;  %vm6205_vm4 = vweird.f32 %v17148_v22  ;;  %vm17207_vm7 = vmor %vm6185_vm5, %vm6186_vm6  ;;  %v11272_v54 = vld [vmem:[%s18722_s5 + $0x54] sm:$0xf0]  ;;  %vm19279_vm5 = vcmask 516096  }
 0x8ef   : > { %v6182_v26 = vsub.f32 1.0, %v6181_v11  ;;  %v17170_v18 = vadd.f32 1.0, %v11612_v10  ;;  %v10282_v11 = vor.u32 %v11277_v35, %v10279_v41  ;;  %vm17227_vm15 = vmor %vm6204_vm13, %vm6205_vm4  ;;  %v11278_v10 = vld [vmem:[%s18722_s5 + $0x8c] sm:$0xf]  ;;  %v11614_v16 = vpop.eup %11613  ;;  %v11271_v35 = vld [vmem:[%s18722_s5 + $0x4c] sm:$0xf0] }
 0x8f0   : > { %v6201_v44 = vsub.f32 1.0, %v6200_v21  ;;  %v10287_v21 = vld [vmem:[%s18722_s5 + $0x98] sm:$0xf0]  ;;  %v11269_v41 = vld [vmem:[%s18722_s5 + $0x44] sm:$0xf]  ;;  %6471 = vmatpush.bf16.msra.mxu0 %v10262_v2  ;;  %v10246_v56 = vor.u32 %v11271_v35, %v10245_v33  ;;  %vm19280_vm13 = vcmask 1040896  }
 0x8f1   : > { %v6183_v45 = vmul.f32 %v17137_v51, %v6182_v26  ;;  %11615 = vrcp.f32 %v17170_v18  ;;  %v10290_v63 = vor.u32 %v11278_v10, %v10287_v21  ;;  %v11273_v26 = vld [vmem:[%s18722_s5 + $0x64] sm:$0xf]  ;;  %6483 = vmatpush.bf16.msra.mxu1 %v10282_v11  ;;  %vm6224_vm0 = vweird.f32 %v17170_v18  ;;  %v11266_v2 = vld [vmem:[%s18722_s5 + $0x2c] sm:$0xf]  ;;  %v10215_v33 = vld [vmem:[%s18722_s5 + $0x10] sm:$0xf0] }
 0x8f2   : > { %v6202_v25 = vmul.f32 %v17148_v22, %v6201_v44  ;;  %v10269_v44 = vld [vmem:[%s18722_s5 + $0x68] sm:$0xf]  ;;  %v10266_v62 = vor.u32 %v11273_v26, %v10263_v34  ;;  %v11268_v26 = vld [vmem:[%s18722_s5 + $0x34] sm:$0xf0]  ;;  %v10239_v34 = vld [vmem:[%s18722_s5 + $0x38] sm:$0xf0] }
 0x8f3   : > { %v6184_v31 = vadd.f32 %v17137_v51, %v6183_v45  ;;  %v11274_v45 = vld [vmem:[%s18722_s5 + $0x6c] sm:$0xf]  ;;  %v10270_v1 = vor.u32 %v11276_v55, %v10269_v44  ;;  %6509 = vmatpush.bf16.msra.mxu3 %v10290_v63  ;;  %v6228_v63 = vand.u32 2147483647, %v17170_v18 }
 0x8f4   : > { %v6203_v7 = vadd.f32 %v17148_v22, %v6202_v25  ;;  %v10274_v52 = vor.u32 %v11274_v45, %v10271_v38  ;;  %6472 = vmatpush.bf16.msra.mxu0 %v10246_v56  ;;  %v10238_v45 = vor.u32 %v11268_v26, %v10237_v14  ;;  %v11261_v38 = vld [vmem:[%s18722_s5 + $0x4] sm:$0xf]  ;;  %v19296_v14 = vsel %vm12301_vm9, %v16221_v8, %v16218_v23 }
 0x8f5   : > { %v6188_v39 = vsel %vm17207_vm7, %v17137_v51, %v6184_v31  ;;  %v10247_v31 = vld [vmem:[%s18722_s5 + $0x50] sm:$0xf0]  ;;  %6484 = vmatpush.bf16.msra.mxu1 %v10266_v62  ;;  %6497 = vmatpush.bf16.msra.mxu2 %v10270_v1  ;;  %vm6229_vm4 = vcmp.eq.f32.partialorder %v6228_v63, 8.507059e+37  ;;  %vm19281_vm7 = vmmov %vm19279_vm5 }
 0x8f6   : > { %v6193_v12 = vsel %vm17213_vm8, %v6192_v32, %v6188_v39  ;;  %v6207_v51 = vsel %vm17227_vm15, %v17148_v22, %v6203_v7  ;;  %v10250_v7 = vor.u32 %v11269_v41, %v10247_v31  ;;  %v10231_v39 = vld [vmem:[%s18722_s5 + $0x30] sm:$0xf0]  ;;  %v11262_v31 = vld [vmem:[%s18722_s5 + $0xc] sm:$0xf]  ;;  %vm19282_vm8 = vmmov %vm19280_vm13 }
 0x8f7   : > { %v17268_v24 = vpop.eup %11615  ;;  %v6212_v57 = vsel %vm17232_vm12, %v6211_v30, %v6207_v51  ;;  %v6235_v22 = vmul.f32 %v11614_v16, %v6193_v12  ;;  %v6230_v30 = vand.u32 2147483648, %v17170_v18  ;;  %v11265_v16 = vld [vmem:[%s18722_s5 + $0x24] sm:$0xf]  ;;  %6510 = vmatpush.bf16.msra.mxu3 %v10274_v52  ;;  %v10230_v51 = vor.u32 %v11267_v29, %v10229_v48  ;;  %v10223_v52 = vld [vmem:[%s18722_s5 + $0x18] sm:$0xf0]  ;;  %vm19283_vm15 = vmmov %vm19279_vm5 }
 0x8f8   : > { %v6234_v25 = vmul.f32 %v6212_v57, %v16989_v59  ;;  %v6220_v17 = vmul.f32 %v17268_v24, %v17170_v18  ;;  %v10253_v59 = vld [vmem:[%s18722_s5 + $0x48] sm:$0xf]  ;;  %vm6225_vm14 = vweird.f32 %v17268_v24  ;;  %v10234_v55 = vor.u32 %v11265_v16, %v10231_v39  ;;  %v10213_v18 = vld [vmem:[%s18722_s5] sm:$0xf]  ;;  %v11263_v57 = vld [vmem:[%s18722_s5 + $0xc] sm:$0xf0] }
 0x8f9   : > { %v10254_v21 = vor.u32 %v11272_v54, %v10253_v59  ;;  %vm17340_vm6 = vmor %vm6224_vm0, %vm6225_vm14  ;;  %6485 = vmatpush.bf16.msra.mxu1 %v10250_v7  ;;  %v6231_v62 = vor.u32 1.1754944e-38, %v6230_v30  ;;  %6473 = vmatpush.bf16.msra.mxu0 %v10230_v51  ;;  %v10214_v41 = vor.u32 %v11263_v57, %v10213_v18  ;;  %v10218_v54 = vor.u32 %v11261_v38, %v10215_v33  ;;  %v19295_v39 = vld [vmem:[#allocation21_spill] sm:$0xff]  ;;  %v10456_v38 = vld [vmem:[%s18722_s5 + $0xe0] sm:$0xf] }
 0x8fa   : > { %v17299_v32 = vadd.f32 %v6235_v22, %v6234_v25  ;;  %v6221_v11 = vsub.f32 1.0, %v6220_v17  ;;  %v10242_v25 = vor.u32 %v11266_v2, %v10239_v34  ;;  %v10221_v17 = vld [vmem:[%s18722_s5 + $0x8] sm:$0xf]  ;;  %v10226_v56 = vor.u32 %v11262_v31, %v10223_v52  ;;  %vm19284_vm12 = vmmov %vm19279_vm5  ;;  %v11324_v52 = vld [vmem:[%s18722_s5 + $0xf4] sm:$0xf0] }
 0x8fb   : > { %6498 = vmatpush.bf16.msra.mxu2 %v10254_v21  ;;  %6511 = vmatpush.bf16.msra.mxu3 %v10258_v53  ;;  %vm19285_vm14 = vmmov %vm19282_vm8  ;;  %v19297_v18 = vsel %vm12403_vm10, %v16286_v0, %v16269_v47  ;;  %v11323_v47 = vld [vmem:[%s18722_s5 + $0xec] sm:$0xf0]  ;;  %v10464_v31 = vld [vmem:[%s18722_s5 + $0xe8] sm:$0xf] }
 0x8fc   : > { %11617 = vtanh.f32 %v17299_v32  ;;  %v6222_v10 = vmul.f32 %v17268_v24, %v6221_v11  ;;  %vm19286_vm0 = vmmov %vm19282_vm8 }
 0x8fd   : > { %6486 = vmatpush.bf16.msra.mxu1 %v10234_v55  ;;  %6474 = vmatpush.bf16.msra.mxu0 %v10214_v41 }
 0x8fe   : > { %v6223_v12 = vadd.f32 %v17268_v24, %v6222_v10 }
 0x8ff   : > { %6499 = vmatpush.bf16.msra.mxu2 %v10238_v45  ;;  %6512 = vmatpush.bf16.msra.mxu3 %v10242_v25  ;;  %v10457_v25 = vor.u32 %v11323_v47, %v10456_v38  ;;  %v10432_v47 = vld [vmem:[%s18722_s5 + $0xa8] sm:$0xf] }
 0x900   : > { %v6227_v22 = vsel %vm17340_vm6, %v17268_v24, %v6223_v12  ;;  %v11264_v24 = vld [vmem:[%s18722_s5 + $0x14] sm:$0xf0]  ;;  %vm19287_vm6 = vmmov %vm19279_vm5 }
 0x901   : > { %v6232_v35 = vsel %vm6229_vm4, %v6231_v62, %v6227_v22  ;;  %v10222_v11 = vor.u32 %v11264_v24, %v10221_v17  ;;  %6487 = vmatpush.bf16.msra.mxu1 %v10218_v54  ;;  %vm19288_vm4 = vmmov %vm19279_vm5  ;;  %v11321_v17 = vld [vmem:[%s18722_s5 + $0xe4] sm:$0xf]  ;;  %v10458_v24 = vld [vmem:[%s18722_s5 + $0xf0] sm:$0xf0]  ;;  %6814 = vmatpush.bf16.msrb.mxu0 %v10457_v25 }
 0x902   : > { %v11618_v1 = vpop.eup %11617  ;;  %v10461_v41 = vor.u32 %v11321_v17, %v10458_v24  ;;  %v11322_v54 = vld [vmem:[%s18722_s5 + $0xec] sm:$0xf] }
 0x903   : > { %v6238_v59 = vmul.f32 %v11618_v1, %v6232_v35  ;;  %6500 = vmatpush.bf16.msra.mxu2 %v10222_v11  ;;  %6513 = vmatpush.bf16.msra.mxu3 %v10226_v56  ;;  %v10466_v11 = vld [vmem:[%s18722_s5 + $0xf8] sm:$0xf0]  ;;  %v10440_v56 = vld [vmem:[%s18722_s5 + $0xc0] sm:$0xf] }
 0x905   : > { %6254 = vst.msk [vmem:[#allocation2 + $0x3] sm:$0x1] %vm19279_vm5, %v6238_v59  ;;  %v6274_v4 = vpack.c.bf16 %v6238_v59, %v6238_v59  ;;  %v6240_v37 = vrot.slane %v6238_v59, 1  ;;  %v6241_v30 = vrot.slane %v6238_v59, 2  ;;  %v6242_v7 = vrot.slane %v6238_v59, 3  ;;  %vm19289_vm5 = vmmov %vm19286_vm0  ;;  %6827 = vmatpush.bf16.msrb.mxu1 %v10461_v41 }
 0x906   : > { %6262 = vst.msk [vmem:[#allocation2 + $0x4] sm:$0x1] %vm19280_vm13, %v6238_v59  ;;  %v6243_v48 = vrot.slane %v6238_v59, 4  ;;  %v6244_v29 = vrot.slane %v6238_v59, 5  ;;  %v6245_v10 = vrot.slane %v6238_v59, 6  ;;  %v6246_v21 = vrot.slane %v6238_v59, 7  ;;  %vm19290_vm13 = vmmov %vm19286_vm0 }
 0x907   : > { %6475 = vmatmul.bf16.vlgmr.msra.gmra.mxu0 %v6274_v4  ;;  %6488 = vmatmul.bf16.vlgmr.msra.gmra.mxu1 %v6274_v4  ;;  %6255 = vst.msk [vmem:[#allocation2 + $0xb] sm:$0x1] %vm19281_vm7, %v6240_v37  ;;  %vm19291_vm7 = vmmov %vm19288_vm4  ;;  %v10465_v59 = vor.u32 %v11324_v52, %v10464_v31  ;;  %v10434_v41 = vld [vmem:[%s18722_s5 + $0xb8] sm:$0xf0]  ;;  %v10408_v52 = vld [vmem:[%s18722_s5 + $0x80] sm:$0xf] }
 0x908   : > { %6501 = vmatmul.bf16.vlgmr.msra.gmra.mxu2 %v6274_v4  ;;  %6514 = vmatmul.bf16.vlgmr.msra.gmra.mxu3 %v6274_v4  ;;  %6263 = vst.msk [vmem:[#allocation2 + $0xc] sm:$0x1] %vm19282_vm8, %v6240_v37  ;;  %vm19292_vm8 = vmmov %vm19288_vm4  ;;  %v19298_v4 = vsel %vm12631_vm11, %v16266_v60, %v16263_v36  ;;  %v10448_v60 = vld [vmem:[%s18722_s5 + $0xc8] sm:$0xf] }
 0x909   : > { %6256 = vst.msk [vmem:[#allocation2 + $0x13] sm:$0x1] %vm19283_vm15, %v6241_v30  ;;  %vm19293_vm15 = vmmov %vm19286_vm0  ;;  %6840 = vmatpush.bf16.msrb.mxu2 %v10465_v59  ;;  %v11311_v59 = vld [vmem:[%s18722_s5 + $0x8c] sm:$0xf0] }
 0x90a   : > { %6257 = vst.msk [vmem:[#allocation2 + $0x1b] sm:$0x1] %vm19284_vm12, %v6242_v7  ;;  %vm19294_vm12 = vmmov %vm19286_vm0 }
 0x90b   : > { %6264 = vst.msk [vmem:[#allocation2 + $0x14] sm:$0x1] %vm19285_vm14, %v6241_v30  ;;  %v10469_v30 = vor.u32 %v11322_v54, %v10466_v11 }
 0x90c   : > { %6265 = vst.msk [vmem:[#allocation2 + $0x1c] sm:$0x1] %vm19286_vm0, %v6242_v7  ;;  %v11319_v7 = vld [vmem:[%s18722_s5 + $0xcc] sm:$0xf0] }
 0x90d   : > { %6258 = vst.msk [vmem:[#allocation2 + $0x23] sm:$0x1] %vm19287_vm6, %v6243_v48  ;;  %6853 = vmatpush.bf16.msrb.mxu3 %v10469_v30 }
 0x90e   : > { %6259 = vst.msk [vmem:[#allocation2 + $0x2b] sm:$0x1] %vm19288_vm4, %v6244_v29 }
 0x90f   : > { %6266 = vst.msk [vmem:[#allocation2 + $0x24] sm:$0x1] %vm19289_vm5, %v6243_v48  ;;  %v11317_v48 = vld [vmem:[%s18722_s5 + $0xc4] sm:$0xf] }
 0x910   : > { %6267 = vst.msk [vmem:[#allocation2 + $0x2c] sm:$0x1] %vm19290_vm13, %v6244_v29  ;;  %v10442_v29 = vld [vmem:[%s18722_s5 + $0xd0] sm:$0xf0] }
 0x911   : > { %6260 = vst.msk [vmem:[#allocation2 + $0x33] sm:$0x1] %vm19291_vm7, %v6245_v10  ;;  %v10445_v36 = vor.u32 %v11317_v48, %v10442_v29 }
 0x912   : > { %6261 = vst.msk [vmem:[#allocation2 + $0x3b] sm:$0x1] %vm19292_vm8, %v6246_v21 }
 0x913   : > { %6268 = vst.msk [vmem:[#allocation2 + $0x34] sm:$0x1] %vm19293_vm15, %v6245_v10  ;;  %6828 = vmatpush.bf16.msrb.mxu1 %v10445_v36  ;;  %v11312_v36 = vld [vmem:[%s18722_s5 + $0x94] sm:$0xf0] }
 0x914   : > { %6269 = vst.msk [vmem:[#allocation2 + $0x3c] sm:$0x1] %vm19294_vm12, %v6246_v21  ;;  %v10441_v21 = vor.u32 %v11319_v7, %v10440_v56  ;;  %v10409_v56 = vor.u32 %v11311_v59, %v10408_v52  ;;  %v11301_v52 = vld [vmem:[%s18722_s5 + $0x44] sm:$0xf]  ;;  %v10378_v59 = vld [vmem:[%s18722_s5 + $0x50] sm:$0xf0] }
 0x915   : > { %v10386_v7 = vld [vmem:[%s18722_s5 + $0x58] sm:$0xf0] }
 0x916   : > { %6815 = vmatpush.bf16.msrb.mxu0 %v10441_v21  ;;  %v10416_v21 = vld [vmem:[%s18722_s5 + $0x88] sm:$0xf] }
 0x984   : > { %v6476_v16 = vpop.f32.mrf.mxu0  ;;  %v6489_v53 = vpop.f32.mrf.mxu1 }
 0x985   : > { %v6519_v63 = vadd.f32 %v6476_v16, %v19295_v39  ;;  %v6520_v26 = vadd.f32 %v6489_v53, %v19296_v14  ;;  %v11320_v16 = vld [vmem:[%s18722_s5 + $0xd4] sm:$0xf0]  ;;  %v11318_v39 = vld [vmem:[%s18722_s5 + $0xcc] sm:$0xf] }
 0x986   : > { %v10449_v14 = vor.u32 %v11320_v16, %v10448_v60  ;;  %v10417_v16 = vor.u32 %v11312_v36, %v10416_v21  ;;  %v11299_v21 = vld [vmem:[%s18722_s5 + $0x2c] sm:$0xf0] }
 0x987   : > { %v10339_v12 = vmul.f32 -1.442695, %v6519_v63  ;;  %v10340_v51 = vmul.f32 -1.442695, %v6520_v26  ;;  %v10450_v26 = vld [vmem:[%s18722_s5 + $0xd8] sm:$0xf0] }
 0x988   : > { %6841 = vmatpush.bf16.msrb.mxu2 %v10449_v14 }
 0x989   : > { %11619 = vpow2.f32 %v10339_v12  ;;  %v10424_v12 = vld [vmem:[%s18722_s5 + $0xa0] sm:$0xf] }
 0x98a   : > { %11621 = vpow2.f32 %v10340_v51  ;;  %v11315_v51 = vld [vmem:[%s18722_s5 + $0xac] sm:$0xf0] }
 0x98b   : > { %v6502_v2 = vpop.f32.mrf.mxu2  ;;  %v6515_v44 = vpop.f32.mrf.mxu3 }
 0x98c   : > { %v6478_v34 = vpop.f32.mrf.mxu0  ;;  %v6491_v55 = vpop.f32.mrf.mxu1  ;;  %v6522_v57 = vadd.f32 %v6515_v44, %v19297_v18  ;;  %v6521_v37 = vadd.f32 %v6502_v2, %v19298_v4  ;;  %v10425_v18 = vor.u32 %v11315_v51, %v10424_v12  ;;  %v11309_v4 = vld [vmem:[%s18722_s5 + $0x84] sm:$0xf]  ;;  %v10392_v51 = vld [vmem:[%s18722_s5 + $0x60] sm:$0xf] }
 0x98d   : > { %v10453_v55 = vor.u32 %v11318_v39, %v10450_v26  ;;  %v11310_v39 = vld [vmem:[%s18722_s5 + $0x8c] sm:$0xf] }
 0x98e   : > { %v10341_v23 = vmul.f32 -1.442695, %v6522_v57  ;;  %v11313_v57 = vld [vmem:[%s18722_s5 + $0xa4] sm:$0xf]  ;;  %6816 = vmatpush.bf16.msrb.mxu0 %v10425_v18  ;;  %v10394_v18 = vld [vmem:[%s18722_s5 + $0x70] sm:$0xf0] }
 0x98f   : > { %v11620_v22 = vpop.eup %11619  ;;  %6854 = vmatpush.bf16.msrb.mxu3 %v10453_v55 }
 0x990   : > { %v11622_v62 = vpop.eup %11621  ;;  %v17398_v45 = vadd.f32 1.0, %v11620_v22  ;;  %v10426_v22 = vld [vmem:[%s18722_s5 + $0xb0] sm:$0xf0] }
 0x991   : > { %v17400_v8 = vadd.f32 1.0, %v11622_v62  ;;  %v10429_v38 = vor.u32 %v11313_v57, %v10426_v22  ;;  %v10400_v57 = vld [vmem:[%s18722_s5 + $0x68] sm:$0xf]  ;;  %v11308_v22 = vld [vmem:[%s18722_s5 + $0x74] sm:$0xf0] }
 0x992   : > { %11623 = vrcp.f32 %v17398_v45  ;;  %v6536_v0 = vand.u32 2147483647, %v17398_v45  ;;  %v6538_v1 = vand.u32 2147483648, %v17398_v45  ;;  %vm6532_vm6 = vweird.f32 %v17398_v45  ;;  %6817 = vmatpush.bf16.msrb.mxu0 %v10409_v56 }
 0x993   : > { %11625 = vrcp.f32 %v17400_v8  ;;  %v6504_v33 = vpop.f32.mrf.mxu2  ;;  %v6517_v35 = vpop.f32.mrf.mxu3  ;;  %v6555_v44 = vand.u32 2147483647, %v17400_v8  ;;  %v6557_v17 = vand.u32 2147483648, %v17400_v8  ;;  %vm6551_vm4 = vweird.f32 %v17400_v8  ;;  %6829 = vmatpush.bf16.msrb.mxu1 %v10429_v38 }
 0x994   : > { %11627 = vpow2.f32 %v10341_v23  ;;  %v11316_v33 = vld [vmem:[%s18722_s5 + $0xb4] sm:$0xf0]  ;;  %v11314_v35 = vld [vmem:[%s18722_s5 + $0xac] sm:$0xf]  ;;  %vm17523_vm13 = vcmp.eq.f32.partialorder %v6536_v0, 8.507059e+37  ;;  %v6539_v48 = vor.u32 1.1754944e-38, %v6538_v1 }
 0x995   : > { %11629 = vtanh.f32 %v6521_v37  ;;  %v10433_v24 = vor.u32 %v11316_v33, %v10432_v47  ;;  %v10437_v11 = vor.u32 %v11314_v35, %v10434_v41  ;;  %v10410_v37 = vld [vmem:[%s18722_s5 + $0x90] sm:$0xf0]  ;;  %v6558_v60 = vor.u32 1.1754944e-38, %v6557_v17  ;;  %v11306_v33 = vld [vmem:[%s18722_s5 + $0x6c] sm:$0xf] }
 0x996   : > { %v10413_v29 = vor.u32 %v11309_v4, %v10410_v37  ;;  %vm17542_vm8 = vcmp.eq.f32.partialorder %v6555_v44, 8.507059e+37  ;;  %v10376_v17 = vld [vmem:[%s18722_s5 + $0x40] sm:$0xf]  ;;  %v10401_v41 = vor.u32 %v11308_v22, %v10400_v57  ;;  %v11293_v57 = vld [vmem:[%s18722_s5 + $0x4] sm:$0xf] }
 0x997   : > { %6842 = vmatpush.bf16.msrb.mxu2 %v10433_v24  ;;  %6855 = vmatpush.bf16.msrb.mxu3 %v10437_v11  ;;  %v11304_v11 = vld [vmem:[%s18722_s5 + $0x54] sm:$0xf0]  ;;  %v10346_v22 = vld [vmem:[%s18722_s5 + $0x10] sm:$0xf0] }
 0x998   : > { %v17447_v10 = vpop.eup %11623  ;;  %6830 = vmatpush.bf16.msrb.mxu1 %v10413_v29  ;;  %v10360_v29 = vld [vmem:[%s18722_s5 + $0x20] sm:$0xf] }
 0x999   : > { %v17458_v63 = vpop.eup %11625  ;;  %v6528_v53 = vmul.f32 %v17447_v10, %v17398_v45  ;;  %vm6533_vm14 = vweird.f32 %v17447_v10 }
 0x99a   : > { %v11628_v2 = vpop.eup %11627  ;;  %v6547_v34 = vmul.f32 %v17458_v63, %v17400_v8  ;;  %vm6552_vm0 = vweird.f32 %v17458_v63  ;;  %vm17517_vm5 = vmor %vm6532_vm6, %vm6533_vm14  ;;  %vm19309_vm6 = vcmask 516096  }
 0x99b   : > { %v6529_v62 = vsub.f32 1.0, %v6528_v53  ;;  %v17480_v23 = vadd.f32 1.0, %v11628_v2  ;;  %vm17537_vm7 = vmor %vm6551_vm4, %vm6552_vm0  ;;  %v10418_v53 = vld [vmem:[%s18722_s5 + $0x98] sm:$0xf0]  ;;  %v11630_v14 = vpop.eup %11629  ;;  %v11307_v2 = vld [vmem:[%s18722_s5 + $0x6c] sm:$0xf0]  ;;  %6843 = vmatpush.bf16.msrb.mxu2 %v10417_v16 }
 0x99c   : > { %v6548_v25 = vsub.f32 1.0, %v6547_v34  ;;  %v10421_v12 = vor.u32 %v11310_v39, %v10418_v53  ;;  %v11305_v34 = vld [vmem:[%s18722_s5 + $0x64] sm:$0xf]  ;;  %v10393_v55 = vor.u32 %v11307_v2, %v10392_v51  ;;  %v10368_v39 = vld [vmem:[%s18722_s5 + $0x28] sm:$0xf]  ;;  %vm19310_vm4 = vcmask 1040896  }
 0x99d   : > { %v6530_v31 = vmul.f32 %v17447_v10, %v6529_v62  ;;  %11631 = vrcp.f32 %v17480_v23  ;;  %v10397_v47 = vor.u32 %v11305_v34, %v10394_v18  ;;  %v6577_v8 = vand.u32 2147483648, %v17480_v23  ;;  %v11300_v53 = vld [vmem:[%s18722_s5 + $0x34] sm:$0xf0]  ;;  %v10370_v51 = vld [vmem:[%s18722_s5 + $0x38] sm:$0xf0] }
 0x99e   : > { %v6549_v54 = vmul.f32 %v17458_v63, %v6548_v25  ;;  %v10402_v25 = vld [vmem:[%s18722_s5 + $0x78] sm:$0xf0]  ;;  %6856 = vmatpush.bf16.msrb.mxu3 %v10421_v12  ;;  %6818 = vmatpush.bf16.msrb.mxu0 %v10393_v55  ;;  %v6575_v1 = vand.u32 2147483647, %v17480_v23  ;;  %vm6571_vm12 = vweird.f32 %v17480_v23  ;;  %v11298_v12 = vld [vmem:[%s18722_s5 + $0x2c] sm:$0xf]  ;;  %v10369_v18 = vor.u32 %v11300_v53, %v10368_v39 }
 0x99f   : > { %v6531_v30 = vadd.f32 %v17447_v10, %v6530_v31  ;;  %v11303_v31 = vld [vmem:[%s18722_s5 + $0x4c] sm:$0xf0]  ;;  %6831 = vmatpush.bf16.msrb.mxu1 %v10397_v47  ;;  %6844 = vmatpush.bf16.msrb.mxu2 %v10401_v41  ;;  %v6578_v55 = vor.u32 1.1754944e-38, %v6577_v8  ;;  %v10349_v41 = vor.u32 %v11293_v57, %v10346_v22 }
 0x9a0   : > { %v6550_v45 = vadd.f32 %v17458_v63, %v6549_v54  ;;  %v10405_v54 = vor.u32 %v11306_v33, %v10402_v25  ;;  %v10377_v37 = vor.u32 %v11303_v31, %v10376_v17  ;;  %vm6576_vm0 = vcmp.eq.f32.partialorder %v6575_v1, 8.507059e+37  ;;  %v11294_v17 = vld [vmem:[%s18722_s5 + $0xc] sm:$0xf] }
 0x9a1   : > { %v6535_v26 = vsel %vm17517_vm5, %v17447_v10, %v6531_v30  ;;  %v11302_v30 = vld [vmem:[%s18722_s5 + $0x4c] sm:$0xf]  ;;  %vm19311_vm5 = vmmov %vm19309_vm6 }
 0x9a2   : > { %v6540_v44 = vsel %vm17523_vm13, %v6539_v48, %v6535_v26  ;;  %v6554_v10 = vsel %vm17537_vm7, %v17458_v63, %v6550_v45  ;;  %v10381_v48 = vor.u32 %v11301_v52, %v10378_v59  ;;  %v10362_v45 = vld [vmem:[%s18722_s5 + $0x30] sm:$0xf0]  ;;  %6857 = vmatpush.bf16.msrb.mxu3 %v10405_v54  ;;  %v10389_v16 = vor.u32 %v11302_v30, %v10386_v7  ;;  %vm19312_vm13 = vmmov %vm19310_vm4 }
 0x9a3   : > { %v17578_v62 = vpop.eup %11631  ;;  %v6559_v38 = vsel %vm17542_vm8, %v6558_v60, %v6554_v10  ;;  %v6582_v63 = vmul.f32 %v11630_v14, %v6540_v44  ;;  %v11297_v60 = vld [vmem:[%s18722_s5 + $0x24] sm:$0xf]  ;;  %6819 = vmatpush.bf16.msrb.mxu0 %v10377_v37  ;;  %v10361_v26 = vor.u32 %v11299_v21, %v10360_v29  ;;  %v11295_v44 = vld [vmem:[%s18722_s5 + $0xc] sm:$0xf0]  ;;  %vm19313_vm7 = vmmov %vm19311_vm5 }
 0x9a4   : > { %v6581_v24 = vmul.f32 %v6559_v38, %v17299_v32  ;;  %v6567_v35 = vmul.f32 %v17578_v62, %v17480_v23  ;;  %v10384_v32 = vld [vmem:[%s18722_s5 + $0x48] sm:$0xf]  ;;  %vm6572_vm15 = vweird.f32 %v17578_v62  ;;  %6832 = vmatpush.bf16.msrb.mxu1 %v10381_v48  ;;  %v10365_v34 = vor.u32 %v11297_v60, %v10362_v45  ;;  %v10344_v23 = vld [vmem:[%s18722_s5] sm:$0xf]  ;;  %vm19314_vm8 = vmmov %vm19311_vm5 }
 0x9a5   : > { %v10385_v0 = vor.u32 %v11304_v11, %v10384_v32  ;;  %vm17650_vm14 = vmor %vm6571_vm12, %vm6572_vm15  ;;  %v10373_v38 = vor.u32 %v11298_v12, %v10370_v51  ;;  %v10345_v25 = vor.u32 %v11295_v44, %v10344_v23  ;;  %v19324_v48 = vld [vmem:[#allocation22_spill] sm:$0xff] }
 0x9a6   : > { %v17609_v56 = vadd.f32 %v6582_v63, %v6581_v24  ;;  %v6568_v4 = vsub.f32 1.0, %v6567_v35  ;;  %6858 = vmatpush.bf16.msrb.mxu3 %v10389_v16  ;;  %v10352_v63 = vld [vmem:[%s18722_s5 + $0x8] sm:$0xf]  ;;  %v10354_v24 = vld [vmem:[%s18722_s5 + $0x18] sm:$0xf0]  ;;  %vm19315_vm15 = vmmov %vm19310_vm4 }
 0x9a7   : > { %6845 = vmatpush.bf16.msrb.mxu2 %v10385_v0  ;;  %6820 = vmatpush.bf16.msrb.mxu0 %v10361_v26  ;;  %v10357_v52 = vor.u32 %v11294_v17, %v10354_v24  ;;  %vm19316_vm12 = vmmov %vm19310_vm4  ;;  %v19327_v17 = vsel %vm12631_vm11, %v16157_v13, %v16154_v43  ;;  %v10579_v13 = vld [vmem:[%s18722_s5 + $0xc8] sm:$0xf] }
 0x9a8   : > { %11633 = vtanh.f32 %v17609_v56  ;;  %v6569_v36 = vmul.f32 %v17578_v62, %v6568_v4  ;;  %6833 = vmatpush.bf16.msrb.mxu1 %v10365_v34  ;;  %v10587_v34 = vld [vmem:[%s18722_s5 + $0xe0] sm:$0xf] }
 0x9aa   : > { %v6570_v14 = vadd.f32 %v17578_v62, %v6569_v36  ;;  %6859 = vmatpush.bf16.msrb.mxu3 %v10373_v38  ;;  %v19325_v36 = vsel %vm12301_vm9, %v16123_v49, %v16116_v28  ;;  %v10595_v38 = vld [vmem:[%s18722_s5 + $0xe8] sm:$0xf] }
 0x9ab   : > { %6846 = vmatpush.bf16.msrb.mxu2 %v10369_v18  ;;  %6821 = vmatpush.bf16.msrb.mxu0 %v10345_v25  ;;  %v10571_v25 = vld [vmem:[%s18722_s5 + $0xc0] sm:$0xf] }
 0x9ac   : > { %v6574_v10 = vsel %vm17650_vm14, %v17578_v62, %v6570_v14  ;;  %v11296_v62 = vld [vmem:[%s18722_s5 + $0x14] sm:$0xf0]  ;;  %6834 = vmatpush.bf16.msrb.mxu1 %v10349_v41  ;;  %vm19317_vm14 = vmmov %vm19311_vm5  ;;  %v19326_v14 = vsel %vm12403_vm10, %v16282_v50, %v16276_v27  ;;  %v11355_v27 = vld [vmem:[%s18722_s5 + $0xec] sm:$0xf0] }
 0x9ad   : > { %v6579_v33 = vsel %vm6576_vm0, %v6578_v55, %v6574_v10  ;;  %v10353_v31 = vor.u32 %v11296_v62, %v10352_v63  ;;  %vm19318_vm0 = vmmov %vm19311_vm5  ;;  %v10588_v44 = vor.u32 %v11355_v27, %v10587_v34  ;;  %v11353_v10 = vld [vmem:[%s18722_s5 + $0xe4] sm:$0xf]  ;;  %v10589_v55 = vld [vmem:[%s18722_s5 + $0xf0] sm:$0xf0] }
 0x9ae   : > { %v11634_v47 = vpop.eup %11633  ;;  %6860 = vmatpush.bf16.msrb.mxu3 %v10357_v52  ;;  %v10592_v22 = vor.u32 %v11353_v10, %v10589_v55  ;;  %v11356_v63 = vld [vmem:[%s18722_s5 + $0xf4] sm:$0xf0]  ;;  %v11351_v41 = vld [vmem:[%s18722_s5 + $0xcc] sm:$0xf0]  ;;  %v10573_v52 = vld [vmem:[%s18722_s5 + $0xd0] sm:$0xf0] }
 0x9af   : > { %v6585_v35 = vmul.f32 %v11634_v47, %v6579_v33  ;;  %6847 = vmatpush.bf16.msrb.mxu2 %v10353_v31  ;;  %7161 = vmatpush.bf16.msra.mxu0 %v10588_v44  ;;  %v10596_v62 = vor.u32 %v11356_v63, %v10595_v38  ;;  %v11354_v47 = vld [vmem:[%s18722_s5 + $0xec] sm:$0xf]  ;;  %v10597_v33 = vld [vmem:[%s18722_s5 + $0xf8] sm:$0xf0]  ;;  %v11349_v31 = vld [vmem:[%s18722_s5 + $0xc4] sm:$0xf] }
 0x9b0   : > { %7174 = vmatpush.bf16.msra.mxu1 %v10592_v22  ;;  %v10576_v43 = vor.u32 %v11349_v31, %v10573_v52  ;;  %v11346_v34 = vld [vmem:[%s18722_s5 + $0xac] sm:$0xf]  ;;  %v10565_v27 = vld [vmem:[%s18722_s5 + $0xb8] sm:$0xf0]  ;;  %v10539_v44 = vld [vmem:[%s18722_s5 + $0x80] sm:$0xf] }
 0x9b1   : > { %6601 = vst.msk [vmem:[#allocation2 + $0x4] sm:$0x1] %vm19309_vm6, %v6585_v35  ;;  %v6621_v59 = vpack.c.bf16 %v6585_v35, %v6585_v35  ;;  %v6587_v54 = vrot.slane %v6585_v35, 1  ;;  %v6588_v32 = vrot.slane %v6585_v35, 2  ;;  %v6589_v11 = vrot.slane %v6585_v35, 3  ;;  %vm19319_vm6 = vmmov %vm19310_vm4 }
 0x9b2   : > { %6609 = vst.msk [vmem:[#allocation2 + $0x3] sm:$0x1] %vm19310_vm4, %v6585_v35  ;;  %v6590_v4 = vrot.slane %v6585_v35, 4  ;;  %v6591_v37 = vrot.slane %v6585_v35, 5  ;;  %v6592_v30 = vrot.slane %v6585_v35, 6  ;;  %v6593_v7 = vrot.slane %v6585_v35, 7 }
 0x9b3   : > { %6822 = vmatmul.bf16.vlgmr.msrb.gmra.mxu0 %v6621_v59  ;;  %6835 = vmatmul.bf16.vlgmr.msrb.gmra.mxu1 %v6621_v59  ;;  %6602 = vst.msk [vmem:[#allocation2 + $0xc] sm:$0x1] %vm19311_vm5, %v6587_v54  ;;  %vm19320_vm5 = vmmov %vm19318_vm0  ;;  %v10600_v35 = vor.u32 %v11354_v47, %v10597_v33  ;;  %v11343_v10 = vld [vmem:[%s18722_s5 + $0x8c] sm:$0xf0]  ;;  %v11341_v38 = vld [vmem:[%s18722_s5 + $0x84] sm:$0xf] }
 0x9b4   : > { %6848 = vmatmul.bf16.vlgmr.msrb.gmra.mxu2 %v6621_v59  ;;  %6861 = vmatmul.bf16.vlgmr.msrb.gmra.mxu3 %v6621_v59  ;;  %6610 = vst.msk [vmem:[#allocation2 + $0xb] sm:$0x1] %vm19312_vm13, %v6587_v54  ;;  %vm19321_vm13 = vmmov %vm19318_vm0  ;;  %v10572_v54 = vor.u32 %v11351_v41, %v10571_v25  ;;  %v10540_v22 = vor.u32 %v11343_v10, %v10539_v44  ;;  %v10541_v63 = vld [vmem:[%s18722_s5 + $0x90] sm:$0xf0]  ;;  %v11342_v31 = vld [vmem:[%s18722_s5 + $0x8c] sm:$0xf] }
 0x9b5   : > { %6603 = vst.msk [vmem:[#allocation2 + $0x14] sm:$0x1] %vm19313_vm7, %v6588_v32  ;;  %vm19322_vm7 = vmmov %vm19310_vm4  ;;  %7187 = vmatpush.bf16.msra.mxu2 %v10596_v62  ;;  %7200 = vmatpush.bf16.msra.mxu3 %v10600_v35  ;;  %v10544_v25 = vor.u32 %v11341_v38, %v10541_v63  ;;  %v10549_v52 = vld [vmem:[%s18722_s5 + $0x98] sm:$0xf0]  ;;  %v11334_v10 = vld [vmem:[%s18722_s5 + $0x4c] sm:$0xf] }
 0x9b6   : > { %6604 = vst.msk [vmem:[#allocation2 + $0x1c] sm:$0x1] %vm19314_vm8, %v6589_v11  ;;  %vm19323_vm8 = vmmov %vm19310_vm4  ;;  %7162 = vmatpush.bf16.msra.mxu0 %v10572_v54  ;;  %7175 = vmatpush.bf16.msra.mxu1 %v10576_v43  ;;  %v10491_v38 = vld [vmem:[%s18722_s5 + $0x20] sm:$0xf]  ;;  %v11331_v63 = vld [vmem:[%s18722_s5 + $0x2c] sm:$0xf0] }
 0x9b7   : > { %6611 = vst.msk [vmem:[#allocation2 + $0x13] sm:$0x1] %vm19315_vm15, %v6588_v32  ;;  %v11352_v32 = vld [vmem:[%s18722_s5 + $0xd4] sm:$0xf0] }
 0x9b8   : > { %6612 = vst.msk [vmem:[#allocation2 + $0x1b] sm:$0x1] %vm19316_vm12, %v6589_v11  ;;  %v11350_v11 = vld [vmem:[%s18722_s5 + $0xcc] sm:$0xf] }
 0x9b9   : > { %6605 = vst.msk [vmem:[#allocation2 + $0x24] sm:$0x1] %vm19317_vm14, %v6590_v4 }
 0x9ba   : > { %6606 = vst.msk [vmem:[#allocation2 + $0x2c] sm:$0x1] %vm19318_vm0, %v6591_v37 }
 0x9bb   : > { %6613 = vst.msk [vmem:[#allocation2 + $0x23] sm:$0x1] %vm19319_vm6, %v6590_v4 }
 0x9bc   : > { %6614 = vst.msk [vmem:[#allocation2 + $0x2b] sm:$0x1] %vm19310_vm4, %v6591_v37 }
 0x9bd   : > { %6607 = vst.msk [vmem:[#allocation2 + $0x34] sm:$0x1] %vm19320_vm5, %v6592_v30 }
 0x9be   : > { %6608 = vst.msk [vmem:[#allocation2 + $0x3c] sm:$0x1] %vm19321_vm13, %v6593_v7 }
 0x9bf   : > { %6615 = vst.msk [vmem:[#allocation2 + $0x33] sm:$0x1] %vm19322_vm7, %v6592_v30  ;;  %v10580_v30 = vor.u32 %v11352_v32, %v10579_v13  ;;  %v10552_v13 = vor.u32 %v11342_v31, %v10549_v52  ;;  %v10523_v32 = vld [vmem:[%s18722_s5 + $0x60] sm:$0xf] }
 0x9c0   : > { %6616 = vst.msk [vmem:[#allocation2 + $0x3b] sm:$0x1] %vm19323_vm8, %v6593_v7  ;;  %v10581_v7 = vld [vmem:[%s18722_s5 + $0xd8] sm:$0xf0] }
 0x9c1   : > { %7188 = vmatpush.bf16.msra.mxu2 %v10580_v30 }
 0xa30   : > { %v6823_v8 = vpop.f32.mrf.mxu0  ;;  %v6836_v21 = vpop.f32.mrf.mxu1 }
 0xa31   : > { %v6866_v29 = vadd.f32 %v6823_v8, %v19324_v48  ;;  %v6867_v0 = vadd.f32 %v6836_v21, %v19325_v36  ;;  %v10555_v8 = vld [vmem:[%s18722_s5 + $0xa0] sm:$0xf]  ;;  %v11347_v48 = vld [vmem:[%s18722_s5 + $0xac] sm:$0xf0] }
 0xa33   : > { %v10470_v60 = vmul.f32 -1.442695, %v6866_v29  ;;  %v10471_v45 = vmul.f32 -1.442695, %v6867_v0  ;;  %v10584_v0 = vor.u32 %v11350_v11, %v10581_v7  ;;  %v11339_v11 = vld [vmem:[%s18722_s5 + $0x6c] sm:$0xf0] }
 0xa34   : > { %v10524_v7 = vor.u32 %v11339_v11, %v10523_v32  ;;  %v11325_v11 = vld [vmem:[%s18722_s5 + $0x4] sm:$0xf] }
 0xa35   : > { %11635 = vpow2.f32 %v10470_v60  ;;  %v10556_v60 = vor.u32 %v11347_v48, %v10555_v8  ;;  %7201 = vmatpush.bf16.msra.mxu3 %v10584_v0  ;;  %v10525_v8 = vld [vmem:[%s18722_s5 + $0x70] sm:$0xf0]  ;;  %v10531_v48 = vld [vmem:[%s18722_s5 + $0x68] sm:$0xf] }
 0xa36   : > { %11637 = vpow2.f32 %v10471_v45  ;;  %v11345_v45 = vld [vmem:[%s18722_s5 + $0xa4] sm:$0xf] }
 0xa37   : > { %v6849_v1 = vpop.f32.mrf.mxu2  ;;  %v6862_v39 = vpop.f32.mrf.mxu3  ;;  %7163 = vmatpush.bf16.msra.mxu0 %v10556_v60  ;;  %v11338_v60 = vld [vmem:[%s18722_s5 + $0x6c] sm:$0xf] }
 0xa38   : > { %v6825_v16 = vpop.f32.mrf.mxu0  ;;  %v6838_v53 = vpop.f32.mrf.mxu1  ;;  %v6869_v26 = vadd.f32 %v6862_v39, %v19326_v14  ;;  %v6868_v24 = vadd.f32 %v6849_v1, %v19327_v17  ;;  %v10557_v1 = vld [vmem:[%s18722_s5 + $0xb0] sm:$0xf0]  ;;  %v10563_v14 = vld [vmem:[%s18722_s5 + $0xa8] sm:$0xf] }
 0xa39   : > { %v10560_v53 = vor.u32 %v11345_v45, %v10557_v1  ;;  %v10547_v17 = vld [vmem:[%s18722_s5 + $0x88] sm:$0xf]  ;;  %v10533_v45 = vld [vmem:[%s18722_s5 + $0x78] sm:$0xf0]  ;;  %v10507_v1 = vld [vmem:[%s18722_s5 + $0x40] sm:$0xf] }
 0xa3a   : > { %v10472_v28 = vmul.f32 -1.442695, %v6869_v26  ;;  %v11348_v26 = vld [vmem:[%s18722_s5 + $0xb4] sm:$0xf0] }
 0xa3b   : > { %v11636_v12 = vpop.eup %11635  ;;  %7176 = vmatpush.bf16.msra.mxu1 %v10560_v53  ;;  %7164 = vmatpush.bf16.msra.mxu0 %v10540_v22 }
 0xa3c   : > { %v11638_v51 = vpop.eup %11637  ;;  %v17708_v2 = vadd.f32 1.0, %v11636_v12 }
 0xa3d   : > { %v17710_v49 = vadd.f32 1.0, %v11638_v51 }
 0xa3e   : > { %11639 = vrcp.f32 %v17708_v2  ;;  %v6883_v50 = vand.u32 2147483647, %v17708_v2  ;;  %v6885_v18 = vand.u32 2147483648, %v17708_v2  ;;  %vm6879_vm14 = vweird.f32 %v17708_v2 }
 0xa3f   : > { %11641 = vrcp.f32 %v17710_v49  ;;  %v6851_v23 = vpop.f32.mrf.mxu2  ;;  %v6864_v57 = vpop.f32.mrf.mxu3  ;;  %v6902_v36 = vand.u32 2147483647, %v17710_v49  ;;  %v6904_v51 = vand.u32 2147483648, %v17710_v49  ;;  %vm6898_vm0 = vweird.f32 %v17710_v49  ;;  %7177 = vmatpush.bf16.msra.mxu1 %v10544_v25  ;;  %7165 = vmatpush.bf16.msra.mxu0 %v10524_v7  ;;  %v11328_v7 = vld [vmem:[%s18722_s5 + $0x14] sm:$0xf0] }
 0xa40   : > { %11643 = vpow2.f32 %v10472_v28  ;;  %v10564_v28 = vor.u32 %v11348_v26, %v10563_v14  ;;  %v10568_v57 = vor.u32 %v11346_v34, %v10565_v27  ;;  %vm17833_vm4 = vcmp.eq.f32.partialorder %v6883_v50, 8.507059e+37  ;;  %v11335_v26 = vld [vmem:[%s18722_s5 + $0x4c] sm:$0xf0]  ;;  %v11336_v34 = vld [vmem:[%s18722_s5 + $0x54] sm:$0xf0] }
 0xa41   : > { %11645 = vtanh.f32 %v6868_v24  ;;  %v6886_v33 = vor.u32 1.1754944e-38, %v6885_v18  ;;  %v11344_v24 = vld [vmem:[%s18722_s5 + $0x94] sm:$0xf0]  ;;  %v6905_v35 = vor.u32 1.1754944e-38, %v6904_v51  ;;  %vm17852_vm13 = vcmp.eq.f32.partialorder %v6902_v36, 8.507059e+37 }
 0xa42   : > { %7189 = vmatpush.bf16.msra.mxu2 %v10564_v28  ;;  %v10548_v41 = vor.u32 %v11344_v24, %v10547_v17  ;;  %7202 = vmatpush.bf16.msra.mxu3 %v10568_v57  ;;  %v10509_v51 = vld [vmem:[%s18722_s5 + $0x50] sm:$0xf0]  ;;  %v10536_v28 = vor.u32 %v11338_v60, %v10533_v45  ;;  %v10508_v44 = vor.u32 %v11335_v26, %v10507_v1  ;;  %v10499_v24 = vld [vmem:[%s18722_s5 + $0x28] sm:$0xf]  ;;  %v11332_v50 = vld [vmem:[%s18722_s5 + $0x34] sm:$0xf0] }
 0xa43   : > { %v11330_v18 = vld [vmem:[%s18722_s5 + $0x2c] sm:$0xf]  ;;  %v10500_v32 = vor.u32 %v11332_v50, %v10499_v24 }
 0xa44   : > { %v17757_v59 = vpop.eup %11639  ;;  %7166 = vmatpush.bf16.msra.mxu0 %v10508_v44  ;;  %v6965_v44 = vsel %vm12301_vm9, %v16399_v9, %v16396_v42 }
 0xa45   : > { %v17768_v4 = vpop.eup %11641  ;;  %v6875_v37 = vmul.f32 %v17757_v59, %v17708_v2  ;;  %vm6880_vm15 = vweird.f32 %v17757_v59 }
 0xa46   : > { %v11644_v29 = vpop.eup %11643  ;;  %v6894_v21 = vmul.f32 %v17768_v4, %v17710_v49  ;;  %vm6899_vm12 = vweird.f32 %v17768_v4  ;;  %vm17827_vm6 = vmor %vm6879_vm14, %vm6880_vm15  ;;  %7190 = vmatpush.bf16.msra.mxu2 %v10548_v41  ;;  %7203 = vmatpush.bf16.msra.mxu3 %v10552_v13  ;;  %v11329_v49 = vld [vmem:[%s18722_s5 + $0x24] sm:$0xf]  ;;  %v10501_v41 = vld [vmem:[%s18722_s5 + $0x38] sm:$0xf0]  ;;  %vm19338_vm14 = vcmask 516096  }
 0xa47   : > { %v6876_v16 = vsub.f32 1.0, %v6875_v37  ;;  %v17790_v39 = vadd.f32 1.0, %v11644_v29  ;;  %vm17847_vm5 = vmor %vm6898_vm0, %vm6899_vm12  ;;  %v11646_v54 = vpop.eup %11645  ;;  %v11337_v37 = vld [vmem:[%s18722_s5 + $0x64] sm:$0xf]  ;;  %v11340_v29 = vld [vmem:[%s18722_s5 + $0x74] sm:$0xf0] }
 0xa48   : > { %v6895_v12 = vsub.f32 1.0, %v6894_v21  ;;  %v10528_v0 = vor.u32 %v11337_v37, %v10525_v8  ;;  %v10532_v14 = vor.u32 %v11340_v29, %v10531_v48  ;;  %v10477_v37 = vld [vmem:[%s18722_s5 + $0x10] sm:$0xf0]  ;;  %vm19339_vm0 = vcmask 1040896  }
 0xa49   : > { %v6877_v23 = vmul.f32 %v17757_v59, %v6876_v16  ;;  %11647 = vrcp.f32 %v17790_v39  ;;  %v6924_v57 = vand.u32 2147483648, %v17790_v39  ;;  %v6922_v25 = vand.u32 2147483647, %v17790_v39 }
 0xa4a   : > { %v6896_v55 = vmul.f32 %v17768_v4, %v6895_v12  ;;  %v11333_v12 = vld [vmem:[%s18722_s5 + $0x44] sm:$0xf]  ;;  %7178 = vmatpush.bf16.msra.mxu1 %v10528_v0  ;;  %7191 = vmatpush.bf16.msra.mxu2 %v10532_v14  ;;  %vm6918_vm8 = vweird.f32 %v17790_v39  ;;  %v10480_v0 = vor.u32 %v11325_v11, %v10477_v37  ;;  %v10702_v11 = vld [vmem:[%s18722_s5 + $0xc0] sm:$0xf] }
 0xa4b   : > { %v6878_v62 = vadd.f32 %v17757_v59, %v6877_v23  ;;  %v10512_v22 = vor.u32 %v11333_v12, %v10509_v51  ;;  %7204 = vmatpush.bf16.msra.mxu3 %v10536_v28  ;;  %v6925_v13 = vor.u32 1.1754944e-38, %v6924_v57  ;;  %vm6923_vm12 = vcmp.eq.f32.partialorder %v6922_v25, 8.507059e+37 }
 0xa4c   : > { %v6897_v2 = vadd.f32 %v17768_v4, %v6896_v55  ;;  %v10517_v55 = vld [vmem:[%s18722_s5 + $0x58] sm:$0xf0] }
 0xa4d   : > { %v6882_v43 = vsel %vm17827_vm6, %v17757_v59, %v6878_v62  ;;  %v10520_v17 = vor.u32 %v11334_v10, %v10517_v55  ;;  %vm19340_vm6 = vmmov %vm19338_vm14 }
 0xa4e   : > { %v6887_v30 = vsel %vm17833_vm4, %v6886_v33, %v6882_v43  ;;  %v6901_v59 = vsel %vm17847_vm5, %v17768_v4, %v6897_v2  ;;  %v10493_v33 = vld [vmem:[%s18722_s5 + $0x30] sm:$0xf0]  ;;  %v10492_v2 = vor.u32 %v11331_v63, %v10491_v38  ;;  %7179 = vmatpush.bf16.msra.mxu1 %v10512_v22  ;;  %vm19341_vm4 = vmmov %vm19339_vm0 }
 0xa4f   : > { %v17888_v21 = vpop.eup %11647  ;;  %v6906_v36 = vsel %vm17852_vm13, %v6905_v35, %v6901_v59  ;;  %v6929_v4 = vmul.f32 %v11646_v54, %v6887_v30  ;;  %v10496_v52 = vor.u32 %v11329_v49, %v10493_v33  ;;  %v11327_v54 = vld [vmem:[%s18722_s5 + $0xc] sm:$0xf0]  ;;  %7205 = vmatpush.bf16.msra.mxu3 %v10520_v17  ;;  %v10504_v30 = vor.u32 %v11330_v18, %v10501_v41  ;;  %v10483_v59 = vld [vmem:[%s18722_s5 + $0x8] sm:$0xf]  ;;  %vm19342_vm5 = vmmov %vm19340_vm6 }
 0xa50   : > { %v6928_v16 = vmul.f32 %v6906_v36, %v17609_v56  ;;  %v6914_v53 = vmul.f32 %v17888_v21, %v17790_v39  ;;  %v10515_v56 = vld [vmem:[%s18722_s5 + $0x48] sm:$0xf]  ;;  %vm6919_vm7 = vweird.f32 %v17888_v21  ;;  %v10475_v39 = vld [vmem:[%s18722_s5] sm:$0xf]  ;;  %7167 = vmatpush.bf16.msra.mxu0 %v10492_v2  ;;  %v10485_v36 = vld [vmem:[%s18722_s5 + $0x18] sm:$0xf0]  ;;  %v10484_v60 = vor.u32 %v11328_v7, %v10483_v59 }
 0xa51   : > { %v10516_v47 = vor.u32 %v11336_v34, %v10515_v56  ;;  %vm17960_vm15 = vmor %vm6918_vm8, %vm6919_vm7  ;;  %v10476_v29 = vor.u32 %v11327_v54, %v10475_v39  ;;  %v10718_v17 = vld [vmem:[%s18722_s5 + $0xe0] sm:$0xf]  ;;  %v10720_v2 = vld [vmem:[%s18722_s5 + $0xf0] sm:$0xf0]  ;;  %v6966_v54 = vsel %vm12631_vm11, %v16481_v19, %v16478_v20 }
 0xa52   : > { %v17919_v27 = vadd.f32 %v6929_v4, %v6928_v16  ;;  %v6915_v23 = vsub.f32 1.0, %v6914_v53  ;;  %7180 = vmatpush.bf16.msra.mxu1 %v10496_v52  ;;  %vm19343_vm13 = vmmov %vm19342_vm5  ;;  %v10726_v52 = vld [vmem:[%s18722_s5 + $0xe8] sm:$0xf]  ;;  %v11388_v39 = vld [vmem:[%s18722_s5 + $0xf4] sm:$0xf0] }
 0xa53   : > { %7192 = vmatpush.bf16.msra.mxu2 %v10516_v47  ;;  %7206 = vmatpush.bf16.msra.mxu3 %v10504_v30  ;;  %vm19344_vm7 = vmmov %vm19339_vm0  ;;  %v11383_v20 = vld [vmem:[%s18722_s5 + $0xcc] sm:$0xf0]  ;;  %v11381_v19 = vld [vmem:[%s18722_s5 + $0xc4] sm:$0xf] }
 0xa54   : > { %11649 = vtanh.f32 %v17919_v27  ;;  %v6916_v62 = vmul.f32 %v17888_v21, %v6915_v23  ;;  %7168 = vmatpush.bf16.msra.mxu0 %v10476_v29  ;;  %vm19345_vm8 = vmmov %vm19339_vm0  ;;  %v10704_v59 = vld [vmem:[%s18722_s5 + $0xd0] sm:$0xf0]  ;;  %v10710_v29 = vld [vmem:[%s18722_s5 + $0xc8] sm:$0xf] }
 0xa56   : > { %v6917_v35 = vadd.f32 %v17888_v21, %v6916_v62  ;;  %7181 = vmatpush.bf16.msra.mxu1 %v10480_v0 }
 0xa57   : > { %7193 = vmatpush.bf16.msra.mxu2 %v10500_v32  ;;  %v10728_v32 = vld [vmem:[%s18722_s5 + $0xf8] sm:$0xf0] }
 0xa58   : > { %v6921_v43 = vsel %vm17960_vm15, %v17888_v21, %v6917_v35  ;;  %v11326_v21 = vld [vmem:[%s18722_s5 + $0xc] sm:$0xf]  ;;  %vm19346_vm15 = vmmov %vm19342_vm5  ;;  %v11385_v35 = vld [vmem:[%s18722_s5 + $0xe4] sm:$0xf] }
 0xa59   : > { %v6926_v48 = vsel %vm6923_vm12, %v6925_v13, %v6921_v43  ;;  %v10488_v45 = vor.u32 %v11326_v21, %v10485_v36  ;;  %vm19347_vm12 = vmmov %vm19342_vm5  ;;  %v10723_v31 = vor.u32 %v11385_v35, %v10720_v2  ;;  %v10727_v43 = vor.u32 %v11388_v39, %v10726_v52  ;;  %v11386_v13 = vld [vmem:[%s18722_s5 + $0xec] sm:$0xf]  ;;  %v11384_v21 = vld [vmem:[%s18722_s5 + $0xd4] sm:$0xf0] }
 0xa5a   : > { %v11650_v8 = vpop.eup %11649  ;;  %v10731_v30 = vor.u32 %v11386_v13, %v10728_v32  ;;  %v11382_v36 = vld [vmem:[%s18722_s5 + $0xcc] sm:$0xf] }
 0xa5b   : > { %v6932_v4 = vmul.f32 %v11650_v8, %v6926_v48  ;;  %7194 = vmatpush.bf16.msra.mxu2 %v10484_v60  ;;  %7207 = vmatpush.bf16.msra.mxu3 %v10488_v45  ;;  %v10703_v8 = vor.u32 %v11383_v20, %v10702_v11  ;;  %v10707_v48 = vor.u32 %v11381_v19, %v10704_v59  ;;  %v10712_v45 = vld [vmem:[%s18722_s5 + $0xd8] sm:$0xf0]  ;;  %v11369_v20 = vld [vmem:[%s18722_s5 + $0x64] sm:$0xf] }
 0xa5c   : > { %7521 = vmatpush.bf16.msrb.mxu1 %v10723_v31  ;;  %v10711_v60 = vor.u32 %v11384_v21, %v10710_v29  ;;  %v11376_v31 = vld [vmem:[%s18722_s5 + $0x94] sm:$0xf0] }
 0xa5d   : > { %6948 = vst.msk [vmem:[#allocation2 + $0x5] sm:$0x1] %vm19338_vm14, %v6932_v4  ;;  %v6968_v1 = vpack.c.bf16 %v6932_v4, %v6932_v4  ;;  %v6934_v16 = vrot.slane %v6932_v4, 1  ;;  %v6935_v53 = vrot.slane %v6932_v4, 2  ;;  %v6936_v14 = vrot.slane %v6932_v4, 3  ;;  %vm19348_vm14 = vmmov %vm19339_vm0 }
 0xa5e   : > { %6956 = vst.msk [vmem:[#allocation2 + $0x2] sm:$0x1] %vm19339_vm0, %v6932_v4  ;;  %v6937_v26 = vrot.slane %v6932_v4, 4  ;;  %v6938_v12 = vrot.slane %v6932_v4, 5  ;;  %v6939_v51 = vrot.slane %v6932_v4, 6  ;;  %v6940_v28 = vrot.slane %v6932_v4, 7 }
 0xa5f   : > { %7169 = vmatmul.bf16.vlgmr.msra.gmra.mxu0 %v6968_v1  ;;  %7182 = vmatmul.bf16.vlgmr.msra.gmra.mxu1 %v6968_v1  ;;  %6949 = vst.msk [vmem:[#allocation2 + $0xd] sm:$0x1] %vm19340_vm6, %v6934_v16  ;;  %vm19349_vm6 = vmmov %vm19342_vm5  ;;  %v11372_v29 = vld [vmem:[%s18722_s5 + $0x74] sm:$0xf0] }
 0xa60   : > { %7195 = vmatmul.bf16.vlgmr.msra.gmra.mxu2 %v6968_v1  ;;  %7208 = vmatmul.bf16.vlgmr.msra.gmra.mxu3 %v6968_v1  ;;  %6957 = vst.msk [vmem:[#allocation2 + $0xa] sm:$0x1] %vm19341_vm4, %v6934_v16  ;;  %vm19350_vm4 = vmmov %vm19342_vm5  ;;  %v10686_v1 = vld [vmem:[%s18722_s5 + $0xa0] sm:$0xf]  ;;  %v11379_v16 = vld [vmem:[%s18722_s5 + $0xac] sm:$0xf0] }
 0xa61   : > { %6950 = vst.msk [vmem:[#allocation2 + $0x15] sm:$0x1] %vm19342_vm5, %v6935_v53  ;;  %vm19351_vm5 = vmmov %vm19339_vm0  ;;  %7534 = vmatpush.bf16.msrb.mxu2 %v10727_v43  ;;  %7547 = vmatpush.bf16.msrb.mxu3 %v10731_v30  ;;  %v10680_v43 = vld [vmem:[%s18722_s5 + $0x98] sm:$0xf0]  ;;  %v11371_v30 = vld [vmem:[%s18722_s5 + $0x6c] sm:$0xf0] }
 0xa62   : > { %6951 = vst.msk [vmem:[#allocation2 + $0x1d] sm:$0x1] %vm19343_vm13, %v6936_v14  ;;  %vm19352_vm13 = vmmov %vm19339_vm0  ;;  %7522 = vmatpush.bf16.msrb.mxu1 %v10707_v48  ;;  %v10662_v48 = vld [vmem:[%s18722_s5 + $0x68] sm:$0xf] }
 0xa63   : > { %6958 = vst.msk [vmem:[#allocation2 + $0x12] sm:$0x1] %vm19344_vm7, %v6935_v53  ;;  %vm19353_vm7 = vcmp.lt.s32.totalorder %v12164_v40, 64 }
 0xa64   : > { %6959 = vst.msk [vmem:[#allocation2 + $0x1a] sm:$0x1] %vm19345_vm8, %v6936_v14  ;;  %v6964_v56 = vsel %vm19353_vm7, %v16386_v5, %v16383_v58  ;;  %v6967_v58 = vsel %vm12403_vm10, %v16440_v46, %v16437_v15  ;;  %v11387_v15 = vld [vmem:[%s18722_s5 + $0xec] sm:$0xf0] }
 0xa65   : > { %6952 = vst.msk [vmem:[#allocation2 + $0x25] sm:$0x1] %vm19346_vm15, %v6937_v26  ;;  %v10719_v50 = vor.u32 %v11387_v15, %v10718_v17  ;;  %7535 = vmatpush.bf16.msrb.mxu2 %v10711_v60  ;;  %v11373_v17 = vld [vmem:[%s18722_s5 + $0x84] sm:$0xf]  ;;  %v10672_v15 = vld [vmem:[%s18722_s5 + $0x90] sm:$0xf0] }
 0xa66   : > { %6953 = vst.msk [vmem:[#allocation2 + $0x2d] sm:$0x1] %vm19347_vm12, %v6938_v12  ;;  %v10675_v2 = vor.u32 %v11373_v17, %v10672_v15  ;;  %v11370_v60 = vld [vmem:[%s18722_s5 + $0x6c] sm:$0xf]  ;;  %v10630_v17 = vld [vmem:[%s18722_s5 + $0x28] sm:$0xf] }
 0xa67   : > { %6960 = vst.msk [vmem:[#allocation2 + $0x22] sm:$0x1] %vm19348_vm14, %v6937_v26  ;;  %7508 = vmatpush.bf16.msrb.mxu0 %v10719_v50  ;;  %v11364_v15 = vld [vmem:[%s18722_s5 + $0x34] sm:$0xf0] }
 0xa68   : > { %6961 = vst.msk [vmem:[#allocation2 + $0x2a] sm:$0x1] %vm19339_vm0, %v6938_v12  ;;  %v10715_v12 = vor.u32 %v11382_v36, %v10712_v45  ;;  %v10664_v45 = vld [vmem:[%s18722_s5 + $0x78] sm:$0xf0] }
 0xa69   : > { %6954 = vst.msk [vmem:[#allocation2 + $0x35] sm:$0x1] %vm19349_vm6, %v6939_v51 }
 0xa6a   : > { %6955 = vst.msk [vmem:[#allocation2 + $0x3d] sm:$0x1] %vm19350_vm4, %v6940_v28  ;;  %7548 = vmatpush.bf16.msrb.mxu3 %v10715_v12  ;;  %v11365_v12 = vld [vmem:[%s18722_s5 + $0x44] sm:$0xf] }
 0xa6b   : > { %6962 = vst.msk [vmem:[#allocation2 + $0x32] sm:$0x1] %vm19351_vm5, %v6939_v51  ;;  %7509 = vmatpush.bf16.msrb.mxu0 %v10703_v8  ;;  %v10687_v51 = vor.u32 %v11379_v16, %v10686_v1  ;;  %v10656_v8 = vld [vmem:[%s18722_s5 + $0x70] sm:$0xf0]  ;;  %v10638_v1 = vld [vmem:[%s18722_s5 + $0x40] sm:$0xf] }
 0xa6c   : > { %6963 = vst.msk [vmem:[#allocation2 + $0x3a] sm:$0x1] %vm19352_vm13, %v6940_v28  ;;  %v11377_v28 = vld [vmem:[%s18722_s5 + $0xa4] sm:$0xf] }
 0xa6f   : > { %7510 = vmatpush.bf16.msrb.mxu0 %v10687_v51  ;;  %v10640_v51 = vld [vmem:[%s18722_s5 + $0x50] sm:$0xf0] }
 0xadc   : > { %v7170_v34 = vpop.f32.mrf.mxu0  ;;  %v7183_v10 = vpop.f32.mrf.mxu1 }
 0xadd   : > { %v7213_v23 = vadd.f32 %v7170_v34, %v6964_v56  ;;  %v7214_v55 = vadd.f32 %v7183_v10, %v6965_v44  ;;  %v10688_v56 = vld [vmem:[%s18722_s5 + $0xb0] sm:$0xf0]  ;;  %v10694_v10 = vld [vmem:[%s18722_s5 + $0xa8] sm:$0xf] }
 0xade   : > { %v10691_v44 = vor.u32 %v11377_v28, %v10688_v56  ;;  %v10667_v28 = vor.u32 %v11370_v60, %v10664_v45  ;;  %v11368_v56 = vld [vmem:[%s18722_s5 + $0x54] sm:$0xf0] }
 0xadf   : > { %v10601_v57 = vmul.f32 -1.442695, %v7213_v23  ;;  %v10602_v22 = vmul.f32 -1.442695, %v7214_v55  ;;  %v11380_v55 = vld [vmem:[%s18722_s5 + $0xb4] sm:$0xf0] }
 0xae0   : > { %7523 = vmatpush.bf16.msrb.mxu1 %v10691_v44 }
 0xae1   : > { %11651 = vpow2.f32 %v10601_v57 }
 0xae2   : > { %11653 = vpow2.f32 %v10602_v22 }
 0xae3   : > { %v7196_v38 = vpop.f32.mrf.mxu2  ;;  %v7209_v5 = vpop.f32.mrf.mxu3 }
 0xae4   : > { %v7172_v63 = vpop.f32.mrf.mxu0  ;;  %v7185_v62 = vpop.f32.mrf.mxu1  ;;  %v7216_v47 = vadd.f32 %v7209_v5, %v6967_v58  ;;  %v7215_v37 = vadd.f32 %v7196_v38, %v6966_v54  ;;  %v10695_v38 = vor.u32 %v11380_v55, %v10694_v10  ;;  %v10696_v58 = vld [vmem:[%s18722_s5 + $0xb8] sm:$0xf0]  ;;  %v11374_v54 = vld [vmem:[%s18722_s5 + $0x8c] sm:$0xf]  ;;  %7524 = vmatpush.bf16.msrb.mxu1 %v10675_v2 }
 0xae5   : > { %v11378_v63 = vld [vmem:[%s18722_s5 + $0xac] sm:$0xf]  ;;  %v10670_v62 = vld [vmem:[%s18722_s5 + $0x80] sm:$0xf]  ;;  %v10683_v11 = vor.u32 %v11374_v54, %v10680_v43  ;;  %v10614_v43 = vld [vmem:[%s18722_s5 + $0x8] sm:$0xf] }
 0xae6   : > { %v10603_v42 = vmul.f32 -1.442695, %v7216_v47  ;;  %v11375_v47 = vld [vmem:[%s18722_s5 + $0x8c] sm:$0xf0]  ;;  %7536 = vmatpush.bf16.msrb.mxu2 %v10695_v38  ;;  %v11366_v55 = vld [vmem:[%s18722_s5 + $0x4c] sm:$0xf]  ;;  %v10643_v38 = vor.u32 %v11365_v12, %v10640_v51 }
 0xae7   : > { %v11652_v49 = vpop.eup %11651  ;;  %v19382_v12 = vld [vmem:[#allocation10_spill] sm:$0xff]  ;;  %v19383_v51 = vld [vmem:[#allocation11_spill] sm:$0xff] }
 0xae8   : > { %v11654_v33 = vpop.eup %11653  ;;  %v18019_v25 = vadd.f32 1.0, %v11652_v49 }
 0xae9   : > { %v18021_v9 = vadd.f32 1.0, %v11654_v33  ;;  %v10699_v33 = vor.u32 %v11378_v63, %v10696_v58  ;;  %v10622_v63 = vld [vmem:[%s18722_s5 + $0x20] sm:$0xf]  ;;  %v11363_v58 = vld [vmem:[%s18722_s5 + $0x2c] sm:$0xf0] }
 0xaea   : > { %11655 = vrcp.f32 %v18019_v25  ;;  %v7230_v46 = vand.u32 2147483647, %v18019_v25  ;;  %v7232_v18 = vand.u32 2147483648, %v18019_v25  ;;  %vm7226_vm12 = vweird.f32 %v18019_v25 }
 0xaeb   : > { %11657 = vrcp.f32 %v18021_v9  ;;  %v7198_v24 = vpop.f32.mrf.mxu2  ;;  %v7211_v41 = vpop.f32.mrf.mxu3  ;;  %v7249_v26 = vand.u32 2147483647, %v18021_v9  ;;  %v7251_v22 = vand.u32 2147483648, %v18021_v9  ;;  %vm7245_vm14 = vweird.f32 %v18021_v9  ;;  %7549 = vmatpush.bf16.msrb.mxu3 %v10699_v33 }
 0xaec   : > { %11659 = vpow2.f32 %v10603_v42  ;;  %v10671_v42 = vor.u32 %v11375_v47, %v10670_v62  ;;  %vm18143_vm6 = vcmp.eq.f32.partialorder %v7230_v46, 8.507059e+37  ;;  %v7233_v35 = vor.u32 1.1754944e-38, %v7232_v18  ;;  %v10678_v41 = vld [vmem:[%s18722_s5 + $0x88] sm:$0xf]  ;;  %v11361_v47 = vld [vmem:[%s18722_s5 + $0x24] sm:$0xf] }
 0xaed   : > { %11661 = vtanh.f32 %v7215_v37  ;;  %v7252_v52 = vor.u32 1.1754944e-38, %v7251_v22  ;;  %vm18162_vm5 = vcmp.eq.f32.partialorder %v7249_v26, 8.507059e+37  ;;  %v10679_v39 = vor.u32 %v11376_v31, %v10678_v41  ;;  %v10654_v37 = vld [vmem:[%s18722_s5 + $0x60] sm:$0xf]  ;;  %v11367_v26 = vld [vmem:[%s18722_s5 + $0x4c] sm:$0xf0] }
 0xaee   : > { %7511 = vmatpush.bf16.msrb.mxu0 %v10671_v42  ;;  %v10639_v10 = vor.u32 %v11367_v26, %v10638_v1  ;;  %v10623_v50 = vor.u32 %v11363_v58, %v10622_v63  ;;  %v11359_v31 = vld [vmem:[%s18722_s5 + $0xc] sm:$0xf0]  ;;  %v11357_v18 = vld [vmem:[%s18722_s5 + $0x4] sm:$0xf] }
 0xaef   : > { %7537 = vmatpush.bf16.msrb.mxu2 %v10679_v39  ;;  %7550 = vmatpush.bf16.msrb.mxu3 %v10683_v11  ;;  %v10608_v39 = vld [vmem:[%s18722_s5 + $0x10] sm:$0xf0]  ;;  %v19379_v1 = vld [vmem:[#allocation19_spill] sm:$0xff] }
 0xaf0   : > { %v18067_v7 = vpop.eup %11655 }
 0xaf1   : > { %v18078_v4 = vpop.eup %11657  ;;  %v7222_v0 = vmul.f32 %v18067_v7, %v18019_v25  ;;  %vm7227_vm8 = vweird.f32 %v18067_v7 }
 0xaf2   : > { %v11660_v53 = vpop.eup %11659  ;;  %v7241_v14 = vmul.f32 %v18078_v4, %v18021_v9  ;;  %vm7246_vm15 = vweird.f32 %v18078_v4  ;;  %vm18137_vm0 = vmor %vm7226_vm12, %vm7227_vm8  ;;  %v11362_v9 = vld [vmem:[%s18722_s5 + $0x2c] sm:$0xf]  ;;  %vm19364_vm12 = vcmask 516096  }
 0xaf3   : > { %v7223_v34 = vsub.f32 1.0, %v7222_v0  ;;  %v18100_v23 = vadd.f32 1.0, %v11660_v53  ;;  %vm18157_vm4 = vmor %vm7245_vm14, %vm7246_vm15  ;;  %v11662_v13 = vpop.eup %11661  ;;  %v10659_v0 = vor.u32 %v11369_v20, %v10656_v8  ;;  %7551 = vmatpush.bf16.msrb.mxu3 %v10667_v28  ;;  %v10616_v20 = vld [vmem:[%s18722_s5 + $0x18] sm:$0xf0]  ;;  %vm19365_vm14 = vcmask 1040896  }
 0xaf4   : > { %v7242_v57 = vsub.f32 1.0, %v7241_v14  ;;  %v10663_v14 = vor.u32 %v11372_v29, %v10662_v48  ;;  %v7312_v28 = vsel %vm12301_vm9, %v19383_v51, %v19382_v12 }
 0xaf5   : > { %v7224_v5 = vmul.f32 %v18067_v7, %v7223_v34  ;;  %11663 = vrcp.f32 %v18100_v23  ;;  %v7271_v22 = vand.u32 2147483648, %v18100_v23  ;;  %7525 = vmatpush.bf16.msrb.mxu1 %v10659_v0  ;;  %v7269_v33 = vand.u32 2147483647, %v18100_v23 }
 0xaf6   : > { %v7243_v49 = vmul.f32 %v18078_v4, %v7242_v57  ;;  %v10648_v57 = vld [vmem:[%s18722_s5 + $0x58] sm:$0xf0]  ;;  %7538 = vmatpush.bf16.msrb.mxu2 %v10663_v14  ;;  %vm7265_vm7 = vweird.f32 %v18100_v23 }
 0xaf7   : > { %v7225_v24 = vadd.f32 %v18067_v7, %v7224_v5  ;;  %v10651_v42 = vor.u32 %v11366_v55, %v10648_v57  ;;  %vm7270_vm15 = vcmp.eq.f32.partialorder %v7269_v33, 8.507059e+37 }
 0xaf8   : > { %v7244_v25 = vadd.f32 %v18078_v4, %v7243_v49  ;;  %v10624_v49 = vld [vmem:[%s18722_s5 + $0x30] sm:$0xf0] }
 0xaf9   : > { %v7229_v32 = vsel %vm18137_vm0, %v18067_v7, %v7225_v24  ;;  %v10655_v7 = vor.u32 %v11371_v30, %v10654_v37  ;;  %7526 = vmatpush.bf16.msrb.mxu1 %v10643_v38  ;;  %v10627_v41 = vor.u32 %v11361_v47, %v10624_v49  ;;  %7552 = vmatpush.bf16.msrb.mxu3 %v10651_v42  ;;  %v11358_v30 = vld [vmem:[%s18722_s5 + $0xc] sm:$0xf]  ;;  %vm19366_vm0 = vmmov %vm19364_vm12  ;;  %v19385_v38 = vld [vmem:[#allocation14_spill] sm:$0xff] }
 0xafa   : > { %v7234_v19 = vsel %vm18143_vm6, %v7233_v35, %v7229_v32  ;;  %v7248_v59 = vsel %vm18157_vm4, %v18078_v4, %v7244_v25  ;;  %v10632_v35 = vld [vmem:[%s18722_s5 + $0x38] sm:$0xf0]  ;;  %v10631_v25 = vor.u32 %v11364_v15, %v10630_v17  ;;  %v10619_v8 = vor.u32 %v11358_v30, %v10616_v20  ;;  %vm19367_vm6 = vmmov %vm19365_vm14  ;;  %v10793_v17 = vld [vmem:[%s18724_s7 + $0x70] sm:$0xf] }
 0xafb   : > { %v18198_v21 = vpop.eup %11663  ;;  %v7253_v36 = vsel %vm18162_vm5, %v7252_v52, %v7248_v59  ;;  %v7276_v4 = vmul.f32 %v11662_v13, %v7234_v19  ;;  %7512 = vmatpush.bf16.msrb.mxu0 %v10655_v7  ;;  %v7272_v52 = vor.u32 1.1754944e-38, %v7271_v22  ;;  %v10635_v54 = vor.u32 %v11362_v9, %v10632_v35  ;;  %v11360_v13 = vld [vmem:[%s18722_s5 + $0x14] sm:$0xf0]  ;;  %vm19368_vm4 = vmmov %vm19366_vm0  ;;  %v19384_v22 = vld [vmem:[#allocation13_spill] sm:$0xff] }
 0xafc   : > { %v7275_v16 = vmul.f32 %v7253_v36, %v17919_v27  ;;  %v7261_v53 = vmul.f32 %v18198_v21, %v18100_v23  ;;  %v10646_v27 = vld [vmem:[%s18722_s5 + $0x48] sm:$0xf]  ;;  %vm7266_vm13 = vweird.f32 %v18198_v21  ;;  %v10606_v23 = vld [vmem:[%s18722_s5] sm:$0xf]  ;;  %v10611_v59 = vor.u32 %v11357_v18, %v10608_v39  ;;  %vm19369_vm5 = vmmov %vm19366_vm0 }
 0xafd   : > { %v10647_v62 = vor.u32 %v11368_v56, %v10646_v27  ;;  %vm18270_vm8 = vmor %vm7265_vm7, %vm7266_vm13  ;;  %v10607_v37 = vor.u32 %v11359_v31, %v10606_v23  ;;  %7527 = vmatpush.bf16.msrb.mxu1 %v10627_v41  ;;  %v10615_v7 = vor.u32 %v11360_v13, %v10614_v43  ;;  %7553 = vmatpush.bf16.msrb.mxu3 %v10635_v54  ;;  %v10795_v9 = vld [vmem:[%s18724_s7 + $0x78] sm:$0xf0]  ;;  %v10785_v41 = vld [vmem:[%s18724_s7 + $0x60] sm:$0xf] }
 0xafe   : > { %v18229_v34 = vadd.f32 %v7276_v4, %v7275_v16  ;;  %v7262_v44 = vsub.f32 1.0, %v7261_v53  ;;  %vm19370_vm13 = vmmov %vm19367_vm6  ;;  %v19380_v16 = vld [vmem:[#allocation12_spill] sm:$0xff]  ;;  %v7314_v63 = vsel %vm12403_vm10, %v19385_v38, %v19384_v22  ;;  %v19387_v18 = vld [vmem:[#allocation17_spill] sm:$0xff] }
 0xaff   : > { %7513 = vmatpush.bf16.msrb.mxu0 %v10639_v10  ;;  %7539 = vmatpush.bf16.msrb.mxu2 %v10647_v62  ;;  %vm19371_vm7 = vmmov %vm19367_vm6  ;;  %v11402_v23 = vld [vmem:[%s18724_s7 + $0x64] sm:$0xf0]  ;;  %v10777_v43 = vld [vmem:[%s18724_s7 + $0x50] sm:$0xf] }
 0xb00   : > { %11665 = vtanh.f32 %v18229_v34  ;;  %v7263_v5 = vmul.f32 %v18198_v21, %v7262_v44  ;;  %v10786_v31 = vor.u32 %v11402_v23, %v10785_v41  ;;  %v11400_v13 = vld [vmem:[%s18724_s7 + $0x54] sm:$0xf0] }
 0xb01   : > { %7528 = vmatpush.bf16.msrb.mxu1 %v10611_v59  ;;  %7554 = vmatpush.bf16.msrb.mxu3 %v10619_v8  ;;  %v10778_v8 = vor.u32 %v11400_v13, %v10777_v43  ;;  %v11392_v23 = vld [vmem:[%s18724_s7 + $0x14] sm:$0xf0]  ;;  %v10737_v13 = vld [vmem:[%s18724_s7] sm:$0xf] }
 0xb02   : > { %v7264_v24 = vadd.f32 %v18198_v21, %v7263_v5 }
 0xb03   : > { %7514 = vmatpush.bf16.msrb.mxu0 %v10623_v50  ;;  %7540 = vmatpush.bf16.msrb.mxu2 %v10631_v25  ;;  %v11403_v50 = vld [vmem:[%s18724_s7 + $0x74] sm:$0xf]  ;;  %v19386_v25 = vld [vmem:[#allocation15_spill] sm:$0xff] }
 0xb04   : > { %v7268_v46 = vsel %vm18270_vm8, %v18198_v21, %v7264_v24  ;;  %vm19372_vm8 = vmmov %vm19366_vm0  ;;  %v10794_v24 = vor.u32 %v11404_v3, %v10793_v17  ;;  %v10798_v2 = vor.u32 %v11403_v50, %v10795_v9  ;;  %v7313_v39 = vsel %vm12631_vm11, %v19387_v18, %v19386_v25  ;;  %v11394_v17 = vld [vmem:[%s18724_s7 + $0x24] sm:$0xf0]  ;;  %v10755_v50 = vld [vmem:[%s18724_s7 + $0x28] sm:$0xf0] }
 0xb05   : > { %v7273_v11 = vsel %vm7270_vm15, %v7272_v52, %v7268_v46  ;;  %vm19373_vm15 = vmmov %vm19366_vm0  ;;  %v11401_v46 = vld [vmem:[%s18724_s7 + $0x64] sm:$0xf]  ;;  %v10787_v52 = vld [vmem:[%s18724_s7 + $0x68] sm:$0xf0] }
 0xb06   : > { %v11666_v32 = vpop.eup %11665  ;;  %7801 = vmatpush.bf16.msra.mxu1 %v10798_v2  ;;  %v10790_v54 = vor.u32 %v11401_v46, %v10787_v52  ;;  %v11391_v52 = vld [vmem:[%s18724_s7 + $0x14] sm:$0xf]  ;;  %v10747_v25 = vld [vmem:[%s18724_s7 + $0x18] sm:$0xf0] }
 0xb07   : > { %v7279_v19 = vmul.f32 %v11666_v32, %v7273_v11  ;;  %7515 = vmatpush.bf16.msrb.mxu0 %v10607_v37  ;;  %7541 = vmatpush.bf16.msrb.mxu2 %v10615_v7  ;;  %v11399_v37 = vld [vmem:[%s18724_s7 + $0x54] sm:$0xf]  ;;  %v10750_v43 = vor.u32 %v11391_v52, %v10747_v25 }
 0xb09   : > { %7295 = vst.msk [vmem:[#allocation2 + $0x6] sm:$0x1] %vm19364_vm12, %v7279_v19  ;;  %v7315_v48 = vpack.c.bf16 %v7279_v19, %v7279_v19  ;;  %v7281_v29 = vrot.slane %v7279_v19, 1  ;;  %v7282_v21 = vrot.slane %v7279_v19, 2  ;;  %v7283_v36 = vrot.slane %v7279_v19, 3  ;;  %vm19374_vm12 = vmmov %vm19367_vm6 }
 0xb0a   : > { %7303 = vst.msk [vmem:[#allocation2 + $0x1] sm:$0x1] %vm19365_vm14, %v7279_v19  ;;  %v7284_v4 = vrot.slane %v7279_v19, 4  ;;  %v7285_v0 = vrot.slane %v7279_v19, 5  ;;  %v7286_v60 = vrot.slane %v7279_v19, 6  ;;  %v7287_v45 = vrot.slane %v7279_v19, 7  ;;  %vm19375_vm14 = vmmov %vm19367_vm6  ;;  %7802 = vmatpush.bf16.msra.mxu1 %v10790_v54 }
 0xb0b   : > { %7516 = vmatmul.bf16.vlgmr.msrb.gmra.mxu0 %v7315_v48  ;;  %7529 = vmatmul.bf16.vlgmr.msrb.gmra.mxu1 %v7315_v48  ;;  %7296 = vst.msk [vmem:[#allocation2 + $0xe] sm:$0x1] %vm19366_vm0, %v7281_v29 }
 0xb0c   : > { %7542 = vmatmul.bf16.vlgmr.msrb.gmra.mxu2 %v7315_v48  ;;  %7555 = vmatmul.bf16.vlgmr.msrb.gmra.mxu3 %v7315_v48  ;;  %7304 = vst.msk [vmem:[#allocation2 + $0x9] sm:$0x1] %vm19367_vm6, %v7281_v29  ;;  %vm19376_vm6 = vmmov %vm19366_vm0 }
 0xb0d   : > { %7297 = vst.msk [vmem:[#allocation2 + $0x16] sm:$0x1] %vm19368_vm4, %v7282_v21  ;;  %vm19377_vm4 = vmmov %vm19371_vm7  ;;  %7772 = vmatpush.bf16.msra.mxu0 %v10794_v24  ;;  %v11393_v24 = vld [vmem:[%s18724_s7 + $0x24] sm:$0xf] }
 0xb0e   : > { %7298 = vst.msk [vmem:[#allocation2 + $0x1e] sm:$0x1] %vm19369_vm5, %v7283_v36  ;;  %vm19378_vm5 = vmmov %vm19377_vm4  ;;  %v10758_v41 = vor.u32 %v11393_v24, %v10755_v50 }
 0xb0f   : > { %7305 = vst.msk [vmem:[#allocation2 + $0x11] sm:$0x1] %vm19370_vm13, %v7282_v21  ;;  %vm19381_vm13 = vcmp.lt.s32.totalorder %v12164_v40, 64  ;;  %v10782_v21 = vor.u32 %v11399_v37, %v10779_v6  ;;  %v11389_v6 = vld [vmem:[%s18724_s7 + $0x4] sm:$0xf] }
 0xb10   : > { %7306 = vst.msk [vmem:[#allocation2 + $0x19] sm:$0x1] %vm19371_vm7, %v7283_v36  ;;  %v7311_v53 = vsel %vm19381_vm13, %v19380_v16, %v19379_v1  ;;  %v10769_v36 = vld [vmem:[%s18724_s7 + $0x40] sm:$0xf]  ;;  %v10771_v1 = vld [vmem:[%s18724_s7 + $0x48] sm:$0xf0] }
 0xb11   : > { %7299 = vst.msk [vmem:[#allocation2 + $0x26] sm:$0x1] %vm19372_vm8, %v7284_v4  ;;  %7773 = vmatpush.bf16.msra.mxu0 %v10786_v31  ;;  %7803 = vmatpush.bf16.msra.mxu1 %v10782_v21  ;;  %vm19388_vm13 = vcmask 516096  }
 0xb12   : > { %7300 = vst.msk [vmem:[#allocation2 + $0x2e] sm:$0x1] %vm19373_vm15, %v7285_v0 }
 0xb13   : > { %7307 = vst.msk [vmem:[#allocation2 + $0x21] sm:$0x1] %vm19374_vm12, %v7284_v4  ;;  %v11398_v4 = vld [vmem:[%s18724_s7 + $0x44] sm:$0xf0] }
 0xb14   : > { %7308 = vst.msk [vmem:[#allocation2 + $0x29] sm:$0x1] %vm19375_vm14, %v7285_v0  ;;  %v10770_v12 = vor.u32 %v11398_v4, %v10769_v36 }
 0xb15   : > { %7301 = vst.msk [vmem:[#allocation2 + $0x36] sm:$0x1] %vm19366_vm0, %v7286_v60  ;;  %7774 = vmatpush.bf16.msra.mxu0 %v10778_v8 }
 0xb16   : > { %7302 = vst.msk [vmem:[#allocation2 + $0x3e] sm:$0x1] %vm19376_vm6, %v7287_v45 }
 0xb17   : > { %7309 = vst.msk [vmem:[#allocation2 + $0x31] sm:$0x1] %vm19377_vm4, %v7286_v60 }
 0xb18   : > { %7310 = vst.msk [vmem:[#allocation2 + $0x39] sm:$0x1] %vm19378_vm5, %v7287_v45  ;;  %v11397_v45 = vld [vmem:[%s18724_s7 + $0x44] sm:$0xf] }
 0xb19   : > { %7775 = vmatpush.bf16.msra.mxu0 %v10770_v12  ;;  %v11412_v12 = vld [vmem:[%s18726_s9 + $0x38] sm:$0xff] }
 0xb1a   : > { %7918 = vmatpush.bf16.msra.mxu2 %v11412_v12 }
 0xb88   : > { %v7517_v14 = vpop.f32.mrf.mxu0  ;;  %v7530_v27 = vpop.f32.mrf.mxu1 }
 0xb89   : > { %v7560_v26 = vadd.f32 %v7517_v14, %v7311_v53  ;;  %v7561_v56 = vadd.f32 %v7530_v27, %v7312_v28  ;;  %v10774_v28 = vor.u32 %v11397_v45, %v10771_v1  ;;  %v10761_v27 = vld [vmem:[%s18724_s7 + $0x30] sm:$0xf] }
 0xb8b   : > { %v10732_v44 = vmul.f32 -1.442695, %v7560_v26  ;;  %v10733_v10 = vmul.f32 -1.442695, %v7561_v56  ;;  %v11396_v56 = vld [vmem:[%s18724_s7 + $0x34] sm:$0xf0]  ;;  %7804 = vmatpush.bf16.msra.mxu1 %v10774_v28 }
 0xb8c   : > { %v11410_v28 = vld [vmem:[%s18726_s9 + $0x28] sm:$0xff] }
 0xb8d   : > { %11667 = vpow2.f32 %v10732_v44 }
 0xb8e   : > { %11669 = vpow2.f32 %v10733_v10 }
 0xb8f   : > { %v7543_v55 = vpop.f32.mrf.mxu2  ;;  %v7556_v58 = vpop.f32.mrf.mxu3 }
 0xb90   : > { %v7519_v57 = vpop.f32.mrf.mxu0  ;;  %v7532_v5 = vpop.f32.mrf.mxu1  ;;  %v7563_v62 = vadd.f32 %v7556_v58, %v7314_v63  ;;  %v7562_v11 = vadd.f32 %v7543_v55, %v7313_v39  ;;  %v11395_v55 = vld [vmem:[%s18724_s7 + $0x34] sm:$0xf] }
 0xb91   : > { %v10763_v57 = vld [vmem:[%s18724_s7 + $0x38] sm:$0xf0] }
 0xb92   : > { %v10734_v33 = vmul.f32 -1.442695, %v7563_v62  ;;  %v10762_v62 = vor.u32 %v11396_v56, %v10761_v27 }
 0xb93   : > { %v11668_v47 = vpop.eup %11667 }
 0xb94   : > { %v11670_v49 = vpop.eup %11669  ;;  %v18329_v61 = vadd.f32 1.0, %v11668_v47  ;;  %7776 = vmatpush.bf16.msra.mxu0 %v10762_v62  ;;  %v11405_v62 = vld [vmem:[%s18726_s9] sm:$0xff] }
 0xb95   : > { %v18331_v42 = vadd.f32 1.0, %v11670_v49 }
 0xb96   : > { %11671 = vrcp.f32 %v18329_v61  ;;  %v7577_v7 = vand.u32 2147483647, %v18329_v61  ;;  %v7579_v60 = vand.u32 2147483648, %v18329_v61  ;;  %vm7573_vm11 = vweird.f32 %v18329_v61 }
 0xb97   : > { %11673 = vrcp.f32 %v18331_v42  ;;  %v7545_v15 = vpop.f32.mrf.mxu2  ;;  %v7558_v35 = vpop.f32.mrf.mxu3  ;;  %v7598_v16 = vand.u32 2147483648, %v18331_v42  ;;  %v7596_v26 = vand.u32 2147483647, %v18331_v42  ;;  %vm7592_vm7 = vweird.f32 %v18331_v42 }
 0xb98   : > { %11675 = vpow2.f32 %v10734_v33  ;;  %v7580_v44 = vor.u32 1.1754944e-38, %v7579_v60  ;;  %vm7578_vm12 = vcmp.eq.f32.partialorder %v7577_v7, 8.507059e+37  ;;  %v10766_v33 = vor.u32 %v11395_v55, %v10763_v57 }
 0xb99   : > { %11677 = vtanh.f32 %v7562_v11  ;;  %v7599_v22 = vor.u32 1.1754944e-38, %v7598_v16  ;;  %vm7597_vm14 = vcmp.eq.f32.partialorder %v7596_v26, 8.507059e+37 }
 0xb9a   : > { %7805 = vmatpush.bf16.msra.mxu1 %v10766_v33 }
 0xb9c   : > { %v11672_v32 = vpop.eup %11671 }
 0xb9d   : > { %v11674_v30 = vpop.eup %11673  ;;  %v7569_v20 = vmul.f32 %v11672_v32, %v18329_v61  ;;  %vm7574_vm9 = vweird.f32 %v11672_v32 }
 0xb9e   : > { %v11676_v19 = vpop.eup %11675  ;;  %v7588_v59 = vmul.f32 %v11674_v30, %v18331_v42  ;;  %vm7593_vm10 = vweird.f32 %v11674_v30  ;;  %vm7575_vm8 = vmor %vm7573_vm11, %vm7574_vm9  ;;  %v10753_v42 = vld [vmem:[%s18724_s7 + $0x20] sm:$0xf]  ;;  %7806 = vmatpush.bf16.msra.mxu1 %v10758_v41  ;;  %vm19389_vm9 = vcmask 1040896  }
 0xb9f   : > { %v7570_v48 = vsub.f32 1.0, %v7569_v20  ;;  %v18378_v29 = vadd.f32 1.0, %v11676_v19  ;;  %vm7594_vm15 = vmor %vm7592_vm7, %vm7593_vm10  ;;  %v11678_v63 = vpop.eup %11677  ;;  %v10754_v2 = vor.u32 %v11394_v17, %v10753_v42 }
 0xba0   : > { %v7589_v0 = vsub.f32 1.0, %v7588_v59  ;;  %vm19390_vm10 = vmmov %vm19388_vm13 }
 0xba1   : > { %v7571_v53 = vmul.f32 %v11672_v32, %v7570_v48  ;;  %11679 = vrcp.f32 %v18378_v29  ;;  %v7618_v46 = vand.u32 2147483648, %v18378_v29  ;;  %v7616_v18 = vand.u32 2147483647, %v18378_v29  ;;  %7777 = vmatpush.bf16.msra.mxu0 %v10754_v2  ;;  %vm19391_vm11 = vmmov %vm19389_vm9 }
 0xba2   : > { %v7590_v14 = vmul.f32 %v11674_v30, %v7589_v0  ;;  %vm7612_vm6 = vweird.f32 %v18378_v29  ;;  %7807 = vmatpush.bf16.msra.mxu1 %v10750_v43  ;;  %vm19392_vm7 = vmmov %vm19390_vm10 }
 0xba3   : > { %v7572_v51 = vadd.f32 %v11672_v32, %v7571_v53  ;;  %v7619_v37 = vor.u32 1.1754944e-38, %v7618_v46  ;;  %vm7617_vm5 = vcmp.eq.f32.partialorder %v7616_v18, 8.507059e+37 }
 0xba4   : > { %v7591_v10 = vadd.f32 %v11674_v30, %v7590_v14 }
 0xba5   : > { %v7576_v38 = vsel %vm7575_vm8, %v11672_v32, %v7572_v51  ;;  %v11390_v32 = vld [vmem:[%s18724_s7 + $0x4] sm:$0xf0]  ;;  %vm19393_vm8 = vmmov %vm19392_vm7  ;;  %v11411_v51 = vld [vmem:[%s18726_s9 + $0x30] sm:$0xff] }
 0xba6   : > { %v7581_v58 = vsel %vm7578_vm12, %v7580_v44, %v7576_v38  ;;  %v7595_v5 = vsel %vm7594_vm15, %v11674_v30, %v7591_v10  ;;  %v10739_v30 = vld [vmem:[%s18724_s7 + $0x8] sm:$0xf0]  ;;  %v10738_v59 = vor.u32 %v11390_v32, %v10737_v13  ;;  %vm19394_vm15 = vmmov %vm19389_vm9  ;;  %7919 = vmatpush.bf16.msra.mxu2 %v11411_v51  ;;  %v11408_v38 = vld [vmem:[%s18726_s9 + $0x18] sm:$0xff] }
 0xba7   : > { %v11680_v47 = vpop.eup %11679  ;;  %v7600_v49 = vsel %vm7597_vm14, %v7599_v22, %v7595_v5  ;;  %v7623_v61 = vmul.f32 %v11678_v63, %v7581_v58  ;;  %v10742_v8 = vor.u32 %v11389_v6, %v10739_v30  ;;  %vm19395_vm12 = vmmov %vm19389_vm9  ;;  %v11409_v22 = vld [vmem:[%s18726_s9 + $0x20] sm:$0xff]  ;;  %v11407_v63 = vld [vmem:[%s18726_s9 + $0x10] sm:$0xff] }
 0xba8   : > { %v7622_v3 = vmul.f32 %v7600_v49, %v18229_v34  ;;  %v7608_v15 = vmul.f32 %v11680_v47, %v18378_v29  ;;  %v10745_v34 = vld [vmem:[%s18724_s7 + $0x10] sm:$0xf]  ;;  %vm7613_vm0 = vweird.f32 %v11680_v47  ;;  %vm19396_vm14 = vmmov %vm19392_vm7  ;;  %v11406_v58 = vld [vmem:[%s18726_s9 + $0x8] sm:$0xff] }
 0xba9   : > { %v10746_v54 = vor.u32 %v11392_v23, %v10745_v34  ;;  %vm7614_vm4 = vmor %vm7612_vm6, %vm7613_vm0  ;;  %7808 = vmatpush.bf16.msra.mxu1 %v10742_v8  ;;  %v7686_v5 = vld [vmem:[%s18725_s8] sm:$0x3] }
 0xbaa   : > { %v7624_v9 = vadd.f32 %v7623_v61, %v7622_v3  ;;  %v7609_v35 = vsub.f32 1.0, %v7608_v15  ;;  %vm19397_vm0 = vmmov %vm19392_vm7  ;;  %7920 = vmatpush.bf16.msra.mxu2 %v11410_v28  ;;  %v18498_v42 = vperm.slane %v7686_v5, 1 }
 0xbab   : > { %7778 = vmatpush.bf16.msra.mxu0 %v10746_v54  ;;  %vm19398_vm6 = vmmov %vm19389_vm9 }
 0xbac   : > { %11681 = vtanh.f32 %v7624_v9  ;;  %v7610_v31 = vmul.f32 %v11680_v47, %v7609_v35 }
 0xbae   : > { %v7611_v39 = vadd.f32 %v11680_v47, %v7610_v31  ;;  %7921 = vmatpush.bf16.msra.mxu2 %v11409_v22 }
 0xbaf   : > { %7779 = vmatpush.bf16.msra.mxu0 %v10738_v59 }
 0xbb0   : > { %v7615_v11 = vsel %vm7614_vm4, %v11680_v47, %v7611_v39  ;;  %vm19399_vm4 = vmmov %vm19398_vm6  ;;  %v18495_v47 = vperm.slane %v7686_v5, 0  ;;  %v11426_v5 = vld [vmem:[%s18727_s10] ss:$0 sm:$0xff] }
 0xbb1   : > { %v7620_v19 = vsel %vm7617_vm5, %v7619_v37, %v7615_v11  ;;  %vm19400_vm5 = vmmov %vm19397_vm0 }
 0xbb2   : > { %v11682_v20 = vpop.eup %11681  ;;  %7922 = vmatpush.bf16.msra.mxu2 %v11408_v38 }
 0xbb3   : > { %v7626_v7 = vmul.f32 %v11682_v20, %v7620_v19 }
 0xbb5   : > { %7642 = vst.msk [vmem:[#allocation2 + $0x7] sm:$0x1] %vm19388_vm13, %v7626_v7  ;;  %v7628_v48 = vrot.slane %v7626_v7, 1  ;;  %v7629_v29 = vrot.slane %v7626_v7, 2  ;;  %v7630_v21 = vrot.slane %v7626_v7, 3  ;;  %v7631_v36 = vrot.slane %v7626_v7, 4  ;;  %vm19401_vm13 = vmmov %vm19397_vm0 }
 0xbb6   : > { %7650 = vst.msk [vmem:[#allocation2] sm:$0x1] %vm19389_vm9, %v7626_v7  ;;  %v7632_v4 = vrot.slane %v7626_v7, 5  ;;  %v7633_v1 = vrot.slane %v7626_v7, 6  ;;  %v7634_v16 = vrot.slane %v7626_v7, 7  ;;  %vm19402_vm9 = vmmov %vm19399_vm4  ;;  %7923 = vmatpush.bf16.msra.mxu2 %v11407_v63 }
 0xbb7   : > { %7643 = vst.msk [vmem:[#allocation2 + $0xf] sm:$0x1] %vm19390_vm10, %v7628_v48  ;;  %vm19403_vm10 = vmmov %vm19399_vm4 }
 0xbb8   : > { %7651 = vst.msk [vmem:[#allocation2 + $0x8] sm:$0x1] %vm19391_vm11, %v7628_v48  ;;  %vm7963_vm11 = vcmask 1043456  }
 0xbb9   : > { %7644 = vst.msk [vmem:[#allocation2 + $0x17] sm:$0x1] %vm19392_vm7, %v7629_v29  ;;  %vm8095_vm7 = vcmp.lt.s32.totalorder %v12164_v40, 8 }
 0xbba   : > { %7645 = vst.msk [vmem:[#allocation2 + $0x1f] sm:$0x1] %vm19393_vm8, %v7630_v21  ;;  %7924 = vmatpush.bf16.msra.mxu2 %v11406_v58 }
 0xbbb   : > { %7652 = vst.msk [vmem:[#allocation2 + $0x10] sm:$0x1] %vm19394_vm15, %v7629_v29 }
 0xbbc   : > { %7653 = vst.msk [vmem:[#allocation2 + $0x18] sm:$0x1] %vm19395_vm12, %v7630_v21 }
 0xbbd   : > { %7646 = vst.msk [vmem:[#allocation2 + $0x27] sm:$0x1] %vm19396_vm14, %v7631_v36  ;;  %v7658_v0 = vld [vmem:[#allocation2] sm:$0xff] }
 0xbbe   : > { %7647 = vst.msk [vmem:[#allocation2 + $0x2f] sm:$0x1] %vm19397_vm0, %v7632_v4  ;;  %7925 = vmatpush.bf16.msra.mxu2 %v11405_v62 }
 0xbbf   : > { %v7659_v60 = vld [vmem:[#allocation2 + $0x8] sm:$0xff]  ;;  %7654 = vst.msk [vmem:[#allocation2 + $0x20] sm:$0x1] %vm19398_vm6, %v7631_v36 }
 0xbc0   : > { %v7666_v45 = vpack.c.bf16 %v7659_v60, %v7658_v0  ;;  %7655 = vst.msk [vmem:[#allocation2 + $0x28] sm:$0x1] %vm19399_vm4, %v7632_v4 }
 0xbc1   : > { %7648 = vst.msk [vmem:[#allocation2 + $0x37] sm:$0x1] %vm19400_vm5, %v7633_v1 }
 0xbc2   : > { %7780 = vmatmul.bf16.vlgmr.msra.gmra.mxu0 %v7666_v45  ;;  %7809 = vmatmul.bf16.vlgmr.msra.gmra.mxu1 %v7666_v45  ;;  %7649 = vst.msk [vmem:[#allocation2 + $0x3f] sm:$0x1] %vm19401_vm13, %v7634_v16  ;;  %v7660_v53 = vld [vmem:[#allocation2 + $0x10] sm:$0xff] }
 0xbc3   : > { %7656 = vst.msk [vmem:[#allocation2 + $0x30] sm:$0x1] %vm19402_vm9, %v7633_v1  ;;  %v7661_v14 = vld [vmem:[#allocation2 + $0x18] sm:$0xff] }
 0xbc4   : > { %7657 = vst.msk [vmem:[#allocation2 + $0x38] sm:$0x1] %vm19403_vm10, %v7634_v16  ;;  %v7667_v26 = vpack.c.bf16 %v7661_v14, %v7660_v53 }
 0xbc6   : > { %v7662_v27 = vld [vmem:[#allocation2 + $0x20] sm:$0xff] }
 0xbc7   : > { %v7663_v56 = vld [vmem:[#allocation2 + $0x28] sm:$0xff] }
 0xbc8   : > { %v7668_v44 = vpack.c.bf16 %v7663_v56, %v7662_v27 }
 0xbca   : > { %v7664_v10 = vld [vmem:[#allocation2 + $0x30] sm:$0xff] }
 0xbcb   : > { %v7665_v55 = vld [vmem:[#allocation2 + $0x38] sm:$0xff] }
 0xbcc   : > { %v7669_v57 = vpack.c.bf16 %v7665_v55, %v7664_v10 }
 0xbd2   : > { %7785 = vmatmul.bf16.gmra.mxu0 %v7667_v26  ;;  %7814 = vmatmul.bf16.gmra.mxu1 %v7667_v26 }
 0xbe2   : > { %7790 = vmatmul.bf16.gmra.mxu0 %v7668_v44  ;;  %7819 = vmatmul.bf16.gmra.mxu1 %v7668_v44 }
 0xbf2   : > { %7795 = vmatmul.bf16.gmra.mxu0 %v7669_v57  ;;  %7824 = vmatmul.bf16.gmra.mxu1 %v7669_v57 }
 0xc3f   : > { %v7781_v49 = vpop.f32.mrf.mxu0  ;;  %v7810_v61 = vpop.f32.mrf.mxu1 }
 0xc40   : > { %v7782_v33 = vadd.f32 %v7781_v49, %v18495_v47  ;;  %v7811_v17 = vadd.f32 %v7810_v61, %v18498_v42 }
 0xc42   : > { %11683 = vtanh.f32 %v7782_v33 }
 0xc43   : > { %11685 = vtanh.f32 %v7811_v17 }
 0xc47   : > { %v7783_v3 = vpop.f32.mrf.mxu0  ;;  %v7812_v15 = vpop.f32.mrf.mxu1 }
 0xc48   : > { %v11684_v24 = vpop.eup %11683  ;;  %v7784_v50 = vadd.f32 %v7783_v3, %v18495_v47  ;;  %v7813_v9 = vadd.f32 %v7812_v15, %v18498_v42 }
 0xc49   : > { %v7955_v35 = vpack.c.bf16 %v11684_v24, %v11684_v24  ;;  %v11686_v41 = vpop.eup %11685 }
 0xc4a   : > { %11687 = vtanh.f32 %v7784_v50 }
 0xc4b   : > { %11689 = vtanh.f32 %v7813_v9  ;;  %v7966_v2 = vsel %vm7963_vm11, %v7955_v35, 0 }
 0xc4c   : > { %7996 = vmatpush.bf16.xpose.msra.mxu3 %v7966_v2 }
 0xc4f   : > { %v7786_v34 = vpop.f32.mrf.mxu0  ;;  %v7815_v23 = vpop.f32.mrf.mxu1 }
 0xc50   : > { %v11688_v31 = vpop.eup %11687  ;;  %v7787_v46 = vadd.f32 %v7786_v34, %v18495_v47  ;;  %v7816_v54 = vadd.f32 %v7815_v23, %v18498_v42 }
 0xc51   : > { %v11690_v52 = vpop.eup %11689  ;;  %v7956_v25 = vpack.c.bf16 %v11688_v31, %v11688_v31 }
 0xc52   : > { %v7846_v18 = vpack.c.bf16 %v11690_v52, %v11686_v41  ;;  %11691 = vtanh.f32 %v7816_v54  ;;  %v18544_v54 = vld [vmem:[%s461_s21] sm:$0xff] }
 0xc53   : > { %v7969_v39 = vsel %vm7963_vm11, %v7956_v25, 0  ;;  %v19404_v25 = vlaneseq }
 0xc54   : > { %7926 = vmatmul.bf16.vlgmr.msra.gmra.mxu2 %v7846_v18  ;;  %8009 = vmatpush.bf16.xpose.msrb.mxu3 %v7969_v39 }
 0xc55   : > { %v18535_v18 = vshrl.u32 %v19404_v25, 7 }
 0xc57   : > { %v7788_v43 = vpop.f32.mrf.mxu0  ;;  %v7817_v13 = vpop.f32.mrf.mxu1  ;;  %11423 = vset.pattern.permute.xlu1 %v18535_v18  ;;  %11424 = vset.pattern.permute.xlu2 %v18535_v18  ;;  %vm8265_vm15 = vcmp.ge.s32.totalorder %v18535_v18, 1 }
 0xc58   : > { %v7789_v32 = vadd.f32 %v7788_v43, %v18495_v47  ;;  %v7818_v11 = vadd.f32 %v7817_v13, %v18498_v42  ;;  %v11692_v30 = vpop.eup %11691  ;;  %11425 = vset.pattern.permute.xlu0 %v18535_v18 }
 0xc5a   : > { %11693 = vtanh.f32 %v7818_v11  ;;  %v8208_v11 = vperm.slane %v18544_v54, 1 }
 0xc5f   : > { %v7791_v37 = vpop.f32.mrf.mxu0  ;;  %v7820_v6 = vpop.f32.mrf.mxu1  ;;  %8213 = vperm.xlu2 %11424, %v8208_v11  }
 0xc60   : > { %v18510_v20 = vadd.f32 %v7791_v37, %v18495_v47  ;;  %v11694_v19 = vpop.eup %11693  ;;  %v7821_v7 = vadd.f32 %v7820_v6, %v18498_v42 }
 0xc61   : > { %v7847_v59 = vpack.c.bf16 %v11694_v19, %v11692_v30 }
 0xc62   : > { %11695 = vtanh.f32 %v7821_v7 }
 0xc64   : > { %7931 = vmatmul.bf16.gmra.mxu2 %v7847_v59 }
 0xc67   : > { %v7793_v8 = vpop.f32.mrf.mxu0  ;;  %v7822_v48 = vpop.f32.mrf.mxu1 }
 0xc68   : > { %v7794_v29 = vadd.f32 %v7793_v8, %v18495_v47  ;;  %v7823_v21 = vadd.f32 %v7822_v48, %v18498_v42  ;;  %v11696_v36 = vpop.eup %11695 }
 0xc6a   : > { %11697 = vtanh.f32 %v7794_v29 }
 0xc6b   : > { %11699 = vtanh.f32 %v7823_v21 }
 0xc6f   : > { %v7796_v4 = vpop.f32.mrf.mxu0  ;;  %v7825_v0 = vpop.f32.mrf.mxu1 }
 0xc70   : > { %v11698_v60 = vpop.eup %11697  ;;  %v7797_v45 = vadd.f32 %v7796_v4, %v18495_v47  ;;  %v7826_v26 = vadd.f32 %v7825_v0, %v18498_v42 }
 0xc71   : > { %v11700_v1 = vpop.eup %11699  ;;  %v7960_v16 = vpack.c.bf16 %v11698_v60, %v11698_v60 }
 0xc72   : > { %11701 = vtanh.f32 %v7797_v45  ;;  %v7848_v53 = vpack.c.bf16 %v11700_v1, %v11696_v36 }
 0xc73   : > { %v7981_v14 = vsel %vm7963_vm11, %v7960_v16, 0  ;;  %11703 = vtanh.f32 %v7826_v26 }
 0xc74   : > { %7936 = vmatmul.bf16.gmra.mxu2 %v7848_v53  ;;  %8061 = vmatpush.bf16.xpose.msrb.mxu0 %v7981_v14 }
 0xc77   : > { %v7798_v12 = vpop.f32.mrf.mxu0  ;;  %v7827_v51 = vpop.f32.mrf.mxu1 }
 0xc78   : > { %v11702_v28 = vpop.eup %11701  ;;  %v7799_v27 = vadd.f32 %v7798_v12, %v18495_v47  ;;  %v7828_v56 = vadd.f32 %v7827_v51, %v18498_v42 }
 0xc79   : > { %v7961_v44 = vpack.c.bf16 %v11702_v28, %v11702_v28  ;;  %v11704_v55 = vpop.eup %11703 }
 0xc7a   : > { %11705 = vtanh.f32 %v7799_v27 }
 0xc7b   : > { %11707 = vtanh.f32 %v7828_v56  ;;  %v7984_v10 = vsel %vm7963_vm11, %v7961_v44, 0 }
 0xc7c   : > { %8074 = vmatpush.bf16.xpose.msrb.mxu1 %v7984_v10  ;;  %11709 = vtanh.f32 %v7787_v46 }
 0xc7d   : > { %11711 = vtanh.f32 %v7789_v32  ;;  %v8201_v32 = vperm.slane %v18544_v54, 0 }
 0xc7e   : > { %11713 = vtanh.f32 %v18510_v20 }
 0xc7f   : > { %8206 = vperm.xlu1 %11423, %v8201_v32  }
 0xc80   : > { %v11706_v57 = vpop.eup %11705 }
 0xc81   : > { %v11708_v22 = vpop.eup %11707  ;;  %v7962_v38 = vpack.c.bf16 %v11706_v57, %v11706_v57 }
 0xc82   : > { %v7849_v63 = vpack.c.bf16 %v11708_v22, %v11704_v55  ;;  %v11710_v62 = vpop.eup %11709 }
 0xc83   : > { %v7987_v58 = vsel %vm7963_vm11, %v7962_v38, 0  ;;  %v7957_v49 = vpack.c.bf16 %v11710_v62, %v11710_v62  ;;  %v11712_v3 = vpop.eup %11711 }
 0xc84   : > { %7941 = vmatmul.bf16.gmra.mxu2 %v7849_v63  ;;  %v7958_v50 = vpack.c.bf16 %v11712_v3, %v11712_v3  ;;  %v11714_v41 = vpop.eup %11713 }
 0xc85   : > { %8087 = vmatpush.bf16.xpose.msrb.mxu2 %v7987_v58  ;;  %v7972_v42 = vsel %vm7963_vm11, %v7957_v49, 0  ;;  %v7959_v31 = vpack.c.bf16 %v11714_v41, %v11714_v41 }
 0xc86   : > { %v7975_v35 = vsel %vm7963_vm11, %v7958_v50, 0 }
 0xc87   : > { %v7978_v52 = vsel %vm7963_vm11, %v7959_v31, 0 }
 0xcb9   : > { %v18620_v3 = vpop.permute.xlu2 %8213 }
 0xcba   : > { %vm8258_vm14 = vcmp.eq.s32.totalorder %v12164_v40, %v18620_v3 }
 0xcbb   : > { %vm8267_vm0 = vmand %vm8258_vm14, %vm8265_vm15 }
 0xcd7   : > { %v7927_v47 = vpop.f32.mrf.mxu2 }
 0xcd8   : > { %v7928_v61 = vadd.f32 %v11426_v5, %v7927_v47 }
 0xcda   : > { %v7947_v33 = vpack.c.bf16 %v7928_v61, %v7928_v61 }
 0xcdc   : > { %7997 = vmatmul.bf16.vlgmr.msra.gmra.mxu3 %v7947_v33 }
 0xcdd   : > { %8022 = vmatpush.bf16.xpose.msra.mxu3 %v7972_v42 }
 0xcdf   : > { %v7929_v17 = vpop.f32.mrf.mxu2 }
 0xce0   : > { %v7930_v15 = vadd.f32 %v11426_v5, %v7929_v17 }
 0xce2   : > { %v7948_v9 = vpack.c.bf16 %v7930_v15, %v7930_v15 }
 0xce7   : > { %v7932_v24 = vpop.f32.mrf.mxu2 }
 0xce8   : > { %v7933_v34 = vadd.f32 %v11426_v5, %v7932_v24 }
 0xcea   : > { %v7949_v46 = vpack.c.bf16 %v7933_v34, %v7933_v34 }
 0xcec   : > { %8010 = vmatmul.bf16.vlgmr.msrb.gmra.mxu3 %v7948_v9 }
 0xced   : > { %8035 = vmatpush.bf16.xpose.msrb.mxu3 %v7975_v35 }
 0xcef   : > { %v7934_v2 = vpop.f32.mrf.mxu2 }
 0xcf0   : > { %v7935_v37 = vadd.f32 %v11426_v5, %v7934_v2 }
 0xcf1   : > { %v8207_v17 = vpop.permute.xlu1 %8206 }
 0xcf2   : > { %v7950_v20 = vpack.c.bf16 %v7935_v37, %v7935_v37  ;;  %vm8257_vm8 = vcmp.eq.s32.totalorder %v12164_v40, %v8207_v17 }
 0xcf3   : > { %vm8266_vm12 = vmand %vm8257_vm8, %vm8265_vm15 }
 0xcf7   : > { %v7937_v23 = vpop.f32.mrf.mxu2 }
 0xcf8   : > { %v7938_v48 = vadd.f32 %v11426_v5, %v7937_v23 }
 0xcfa   : > { %v7951_v29 = vpack.c.bf16 %v7938_v48, %v7938_v48  ;;  %v8243_v48 = vperm.slane %v18544_v54, 6 }
 0xcfc   : > { %8023 = vmatmul.bf16.vlgmr.msra.gmra.mxu3 %v7949_v46 }
 0xcfd   : > { %8048 = vmatpush.bf16.xpose.msra.mxu3 %v7978_v52 }
 0xcff   : > { %v7939_v39 = vpop.f32.mrf.mxu2 }
 0xd00   : > { %v7940_v43 = vadd.f32 %v11426_v5, %v7939_v39 }
 0xd02   : > { %v7952_v13 = vpack.c.bf16 %v7940_v43, %v7940_v43 }
 0xd04   : > { %8062 = vmatmul.bf16.vlgmr.msrb.gmra.mxu0 %v7952_v13 }
 0xd07   : > { %v7942_v6 = vpop.f32.mrf.mxu2 }
 0xd08   : > { %v7943_v30 = vadd.f32 %v11426_v5, %v7942_v6 }
 0xd0a   : > { %v7953_v19 = vpack.c.bf16 %v7943_v30, %v7943_v30 }
 0xd0c   : > { %8036 = vmatmul.bf16.vlgmr.msrb.gmra.mxu3 %v7950_v20  ;;  %8075 = vmatmul.bf16.vlgmr.msrb.gmra.mxu1 %v7953_v19 }
 0xd0f   : > { %v7944_v59 = vpop.f32.mrf.mxu2 }
 0xd10   : > { %v7945_v7 = vadd.f32 %v11426_v5, %v7944_v59 }
 0xd12   : > { %v7954_v8 = vpack.c.bf16 %v7945_v7, %v7945_v7  ;;  %v8229_v7 = vperm.slane %v18544_v54, 4 }
 0xd14   : > { %8088 = vmatmul.bf16.vlgmr.msrb.gmra.mxu2 %v7954_v8 }
 0xd1c   : > { %8049 = vmatmul.bf16.vlgmr.msra.gmra.mxu3 %v7951_v29  ;;  %v8222_v29 = vperm.slane %v18544_v54, 3 }
 0xd5f   : > { %v7998_v21 = vpop.f32.mrf.mxu3 }
 0xd60   : > { %v18558_v36 = vsel %vm8095_vm7, %v7998_v21, -1e+30  ;;  %v8236_v21 = vperm.slane %v18544_v54, 5 }
 0xd61   : > { %8104 = vst [vmem:[%s18554_s28] sm:$0xff] %v18558_v36  ;;  %8112 = vmax.xlane.f32.xlu0 %v18558_v36 }
 0xd67   : > { %v8000_v4 = vpop.f32.mrf.mxu3 }
 0xd68   : > { %v8215_v4 = vperm.slane %v18544_v54, 2 }
 0xd6f   : > { %v8011_v0 = vpop.f32.mrf.mxu3 }
 0xd70   : > { %v18565_v60 = vsel %vm8095_vm7, %v8011_v0, -1e+30  ;;  %v8250_v0 = vperm.slane %v18544_v54, 7 }
 0xd71   : > { %8105 = vst [vmem:[%s18554_s28 + $0x8] sm:$0xff] %v18565_v60  ;;  %8114 = vmax.xlane.f32.xlu0 %v18565_v60 }
 0xd77   : > { %v8013_v45 = vpop.f32.mrf.mxu3 }
 0xd7f   : > { %v8024_v1 = vpop.f32.mrf.mxu3 }
 0xd80   : > { %v18572_v16 = vsel %vm8095_vm7, %v8024_v1, -1e+30 }
 0xd81   : > { %8106 = vst [vmem:[%s18554_s28 + $0x10] sm:$0xff] %v18572_v16  ;;  %v8063_v53 = vpop.f32.mrf.mxu0  ;;  %8116 = vmax.xlane.f32.xlu1 %v18572_v16 }
 0xd82   : > { %v18579_v14 = vsel %vm8095_vm7, %v8063_v53, -1e+30 }
 0xd83   : > { %8109 = vst [vmem:[%s18554_s28 + $0x28] sm:$0xff] %v18579_v14  ;;  %8122 = vmax.xlane.f32.xlu2 %v18579_v14 }
 0xd87   : > { %v8026_v26 = vpop.f32.mrf.mxu3 }
 0xd89   : > { %v8065_v12 = vpop.f32.mrf.mxu0  ;;  %v8076_v51 = vpop.f32.mrf.mxu1 }
 0xd8a   : > { %v18586_v28 = vsel %vm8095_vm7, %v8076_v51, -1e+30 }
 0xd8b   : > { %8110 = vst [vmem:[%s18554_s28 + $0x30] sm:$0xff] %v18586_v28  ;;  %8124 = vmax.xlane.f32.xlu0 %v18586_v28 }
 0xd8f   : > { %v8037_v27 = vpop.f32.mrf.mxu3 }
 0xd90   : > { %v18593_v56 = vsel %vm8095_vm7, %v8037_v27, -1e+30 }
 0xd91   : > { %8107 = vst [vmem:[%s18554_s28 + $0x18] sm:$0xff] %v18593_v56  ;;  %v8078_v44 = vpop.f32.mrf.mxu1  ;;  %8118 = vmax.xlane.f32.xlu1 %v18593_v56 }
 0xd97   : > { %v8039_v10 = vpop.f32.mrf.mxu3  ;;  %v8089_v55 = vpop.f32.mrf.mxu2 }
 0xd98   : > { %v18600_v57 = vsel %vm8095_vm7, %v8089_v55, -1e+30 }
 0xd99   : > { %8111 = vst [vmem:[%s18554_s28 + $0x38] sm:$0xff] %v18600_v57  ;;  %8126 = vmax.xlane.f32.xlu1 %v18600_v57 }
 0xd9f   : > { %v8050_v22 = vpop.f32.mrf.mxu3  ;;  %v8091_v38 = vpop.f32.mrf.mxu2 }
 0xda0   : > { %v18607_v63 = vsel %vm8095_vm7, %v8050_v22, -1e+30 }
 0xda1   : > { %8108 = vst [vmem:[%s18554_s28 + $0x20] sm:$0xff] %v18607_v63  ;;  %8120 = vmax.xlane.f32.xlu2 %v18607_v63 }
 0xda7   : > { %v8052_v58 = vpop.f32.mrf.mxu3 }
 0xdd4   : > { %v18612_v5 = vpop.xlane.xlu0 %8112 }
 0xdd5   : > { %v8128_v62 = vsub.f32 %v18558_v36, %v18612_v5 }
 0xdd7   : > { %v8136_v47 = vmul.f32 1.442695, %v8128_v62 }
 0xdd9   : > { %11715 = vpow2.f32 %v8136_v47 }
 0xddf   : > { %v11716_v49 = vpop.eup %11715 }
 0xde0   : > { %8152 = vadd.xlane.f32.xlu2 %v11716_v49 }
 0xde4   : > { %v18616_v61 = vpop.xlane.xlu0 %8114 }
 0xde5   : > { %v8129_v33 = vsub.f32 %v18565_v60, %v18616_v61 }
 0xde7   : > { %v8138_v42 = vmul.f32 1.442695, %v8129_v33 }
 0xde9   : > { %11717 = vpow2.f32 %v8138_v42 }
 0xdef   : > { %v11718_v15 = vpop.eup %11717 }
 0xdf0   : > { %8154 = vadd.xlane.f32.xlu0 %v11718_v15 }
 0xdf4   : > { %v18622_v24 = vpop.xlane.xlu1 %8116 }
 0xdf5   : > { %v8130_v50 = vsub.f32 %v18572_v16, %v18622_v24 }
 0xdf6   : > { %v18626_v9 = vpop.xlane.xlu2 %8122 }
 0xdf7   : > { %v8140_v35 = vmul.f32 1.442695, %v8130_v50  ;;  %v8133_v2 = vsub.f32 %v18579_v14, %v18626_v9 }
 0xdf9   : > { %11719 = vpow2.f32 %v8140_v35  ;;  %v8146_v41 = vmul.f32 1.442695, %v8133_v2 }
 0xdfb   : > { %11721 = vpow2.f32 %v8146_v41 }
 0xdfe   : > { %v18630_v34 = vpop.xlane.xlu0 %8124 }
 0xdff   : > { %v11720_v23 = vpop.eup %11719  ;;  %v8134_v31 = vsub.f32 %v18586_v28, %v18630_v34 }
 0xe00   : > { %8156 = vadd.xlane.f32.xlu1 %v11720_v23 }
 0xe01   : > { %v8148_v46 = vmul.f32 1.442695, %v8134_v31  ;;  %v11722_v39 = vpop.eup %11721 }
 0xe03   : > { %11723 = vpow2.f32 %v8148_v46 }
 0xe04   : > { %v18634_v52 = vpop.xlane.xlu1 %8118 }
 0xe05   : > { %v8131_v25 = vsub.f32 %v18593_v56, %v18634_v52 }
 0xe07   : > { %v8142_v43 = vmul.f32 1.442695, %v8131_v25 }
 0xe08   : > { %8162 = vadd.xlane.f32.xlu1 %v11722_v39 }
 0xe09   : > { %v11724_v13 = vpop.eup %11723  ;;  %11725 = vpow2.f32 %v8142_v43 }
 0xe0a   : > { %8164 = vadd.xlane.f32.xlu2 %v11724_v13 }
 0xe0c   : > { %v18638_v32 = vpop.xlane.xlu1 %8126 }
 0xe0d   : > { %v8135_v11 = vsub.f32 %v18600_v57, %v18638_v32 }
 0xe0f   : > { %v8150_v37 = vmul.f32 1.442695, %v8135_v11  ;;  %v11726_v6 = vpop.eup %11725 }
 0xe11   : > { %11727 = vpow2.f32 %v8150_v37 }
 0xe12   : > { %8158 = vadd.xlane.f32.xlu2 %v11726_v6 }
 0xe14   : > { %v18642_v30 = vpop.xlane.xlu2 %8120 }
 0xe15   : > { %v8132_v20 = vsub.f32 %v18607_v63, %v18642_v30 }
 0xe17   : > { %v11728_v19 = vpop.eup %11727  ;;  %v8144_v59 = vmul.f32 1.442695, %v8132_v20 }
 0xe18   : > { %8166 = vadd.xlane.f32.xlu0 %v11728_v19 }
 0xe19   : > { %11729 = vpow2.f32 %v8144_v59 }
 0xe1f   : > { %v11730_v8 = vpop.eup %11729 }
 0xe20   : > { %8160 = vadd.xlane.f32.xlu0 %v11730_v8 }
 0xe21   : > { %8234 = vperm.xlu1 %11423, %v8229_v7  }
 0xe29   : > { %8248 = vperm.xlu1 %11423, %v8243_v48  }
 0xe2a   : > { %8227 = vperm.xlu2 %11424, %v8222_v29  }
 0xe32   : > { %8241 = vperm.xlu2 %11424, %v8236_v21  }
 0xe34   : > { %8220 = vperm.xlu0 %11425, %v8215_v4  }
 0xe3a   : > { %8255 = vperm.xlu2 %11424, %v8250_v0  }
 0xe53   : > { %v8153_v45 = vpop.xlane.xlu2 %8152 }
 0xe54   : > { %11731 = vlog2.f32 %v8153_v45 }
 0xe5a   : > { %v11732_v1 = vpop.eup %11731 }
 0xe5b   : > { %v8169_v53 = vmul.f32 0.6931472, %v11732_v1 }
 0xe5d   : > { %v8184_v26 = vadd.f32 %v8169_v53, %v18612_v5 }
 0xe5f   : > { %v8192_v12 = vsub.f32 %v18558_v36, %v8184_v26 }
 0xe61   : > { %v8274_v51 = vsel %vm8266_vm12, %v8192_v12, 0.0 }
 0xe62   : > { %8282 = vadd.xlane.f32.xlu1 %v8274_v51 }
 0xe63   : > { %v8155_v27 = vpop.xlane.xlu0 %8154 }
 0xe64   : > { %11733 = vlog2.f32 %v8155_v27 }
 0xe6a   : > { %v11734_v54 = vpop.eup %11733 }
 0xe6b   : > { %v8171_v44 = vmul.f32 0.6931472, %v11734_v54 }
 0xe6d   : > { %v8185_v10 = vadd.f32 %v8171_v44, %v18616_v61 }
 0xe6f   : > { %v8193_v55 = vsub.f32 %v18565_v60, %v8185_v10 }
 0xe71   : > { %v8275_v36 = vsel %vm8267_vm0, %v8193_v55, 0.0 }
 0xe72   : > { %8284 = vadd.xlane.f32.xlu0 %v8275_v36 }
 0xe73   : > { %v8157_v22 = vpop.xlane.xlu1 %8156 }
 0xe7b   : > { %v8163_v58 = vpop.xlane.xlu1 %8162 }
 0xe7c   : > { %11735 = vlog2.f32 %v8163_v58 }
 0xe7d   : > { %v8165_v38 = vpop.xlane.xlu2 %8164 }
 0xe82   : > { %v11736_v62 = vpop.eup %11735 }
 0xe83   : > { %v8179_v42 = vmul.f32 0.6931472, %v11736_v62 }
 0xe85   : > { %v8159_v5 = vpop.xlane.xlu2 %8158  ;;  %v8189_v15 = vadd.f32 %v8179_v42, %v18626_v9 }
 0xe86   : > { %11737 = vlog2.f32 %v8159_v5  ;;  %v11758_v5 = vmov 7.0  }
 0xe87   : > { %11739 = vlog2.f32 %v8165_v38  ;;  %v8197_v23 = vsub.f32 %v18579_v14, %v8189_v15 }
 0xe88   : > { %11741 = vlog2.f32 %v8157_v22 }
 0xe8b   : > { %v8167_v60 = vpop.xlane.xlu0 %8166 }
 0xe8c   : > { %v11738_v47 = vpop.eup %11737 }
 0xe8d   : > { %v8175_v49 = vmul.f32 0.6931472, %v11738_v47  ;;  %v8228_v33 = vpop.permute.xlu2 %8227  ;;  %v11740_v17 = vpop.eup %11739 }
 0xe8e   : > { %vm8260_vm6 = vcmp.eq.s32.totalorder %v12164_v40, %v8228_v33  ;;  %v8181_v2 = vmul.f32 0.6931472, %v11740_v17 }
 0xe8f   : > { %v8187_v61 = vadd.f32 %v8175_v49, %v18634_v52  ;;  %vm8269_vm4 = vmand %vm8260_vm6, %vm8265_vm15  ;;  %v11742_v52 = vpop.eup %11741  ;;  %vm19406_vm6 = vcmask 1045509  }
 0xe90   : > { %v8173_v14 = vmul.f32 0.6931472, %v11742_v52 }
 0xe91   : > { %v8195_v3 = vsub.f32 %v18593_v56, %v8187_v61  ;;  %v8190_v56 = vadd.f32 %v8181_v2, %v18630_v34 }
 0xe92   : > { %v8186_v13 = vadd.f32 %v8173_v14, %v18622_v24 }
 0xe93   : > { %v8235_v50 = vpop.permute.xlu1 %8234  ;;  %v8277_v35 = vsel %vm8269_vm4, %v8195_v3, 0.0  ;;  %v8161_v9 = vpop.xlane.xlu0 %8160  ;;  %v8198_v25 = vsub.f32 %v18586_v28, %v8190_v56  ;;  %vm19408_vm4 = vcmask 1047559  }
 0xe94   : > { %8288 = vadd.xlane.f32.xlu1 %v8277_v35  ;;  %11743 = vlog2.f32 %v8161_v9  ;;  %v8194_v37 = vsub.f32 %v18572_v16, %v8186_v13  ;;  %vm8261_vm8 = vcmp.eq.s32.totalorder %v12164_v40, %v8235_v50 }
 0xe95   : > { %v8242_v41 = vpop.permute.xlu2 %8241  ;;  %11745 = vlog2.f32 %v8167_v60  ;;  %vm8270_vm12 = vmand %vm8261_vm8, %vm8265_vm15 }
 0xe96   : > { %vm8262_vm5 = vcmp.eq.s32.totalorder %v12164_v40, %v8242_v41  ;;  %11747 = vrcp.f32 %v11758_v5 }
 0xe97   : > { %vm8271_vm13 = vmand %vm8262_vm5, %vm8265_vm15  ;;  %vm8335_vm5 = vcmask 7168  }
 0xe98   : > { %v8279_v31 = vsel %vm8271_vm13, %v8197_v23, 0.0 }
 0xe99   : > { %8292 = vadd.xlane.f32.xlu0 %v8279_v31 }
 0xe9a   : > { %v11744_v43 = vpop.eup %11743 }
 0xe9b   : > { %v8249_v46 = vpop.permute.xlu1 %8248  ;;  %v8177_v34 = vmul.f32 0.6931472, %v11744_v43  ;;  %v11746_v20 = vpop.eup %11745 }
 0xe9c   : > { %vm8263_vm9 = vcmp.eq.s32.totalorder %v12164_v40, %v8249_v46  ;;  %v8183_v24 = vmul.f32 0.6931472, %v11746_v20  ;;  %v11748_v62 = vpop.eup %11747 }
 0xe9d   : > { %vm8272_vm10 = vmand %vm8263_vm9, %vm8265_vm15  ;;  %v8188_v28 = vadd.f32 %v8177_v34, %v18642_v30  ;;  %v8256_v59 = vpop.permute.xlu2 %8255  ;;  %v8328_v47 = vmul.f32 7.0, %v11748_v62 }
 0xe9e   : > { %v8280_v39 = vsel %vm8272_vm10, %v8198_v25, 0.0  ;;  %v8191_v16 = vadd.f32 %v8183_v24, %v18638_v32  ;;  %vm8264_vm14 = vcmp.eq.s32.totalorder %v12164_v40, %v8256_v59 }
 0xe9f   : > { %8294 = vadd.xlane.f32.xlu1 %v8280_v39  ;;  %v8196_v19 = vsub.f32 %v18607_v63, %v8188_v28  ;;  %vm8273_vm0 = vmand %vm8264_vm14, %vm8265_vm15  ;;  %v8329_v49 = vsub.f32 1.0, %v8328_v47 }
 0xea0   : > { %v8199_v30 = vsub.f32 %v18600_v57, %v8191_v16 }
 0xea1   : > { %v8278_v7 = vsel %vm8270_vm12, %v8196_v19, 0.0  ;;  %v8330_v33 = vmul.f32 %v11748_v62, %v8329_v49 }
 0xea2   : > { %v8281_v8 = vsel %vm8273_vm0, %v8199_v30, 0.0 }
 0xea3   : > { %v8331_v42 = vadd.f32 %v11748_v62, %v8330_v33 }
 0xea6   : > { %v8221_v11 = vpop.permute.xlu0 %8220 }
 0xea7   : > { %vm8259_vm11 = vcmp.eq.s32.totalorder %v12164_v40, %v8221_v11 }
 0xea8   : > { %vm8268_vm7 = vmand %vm8259_vm11, %vm8265_vm15  ;;  %vm19405_vm15 = vcmask 1044484  }
 0xea9   : > { %v8276_v6 = vsel %vm8268_vm7, %v8194_v37, 0.0 }
 0xeaa   : > { %8286 = vadd.xlane.f32.xlu2 %v8276_v6 }
 0xeb2   : > { %8290 = vadd.xlane.f32.xlu2 %v8278_v7 }
 0xeba   : > { %8296 = vadd.xlane.f32.xlu2 %v8281_v8 }
 0xed5   : > { %v8283_v48 = vpop.xlane.xlu1 %8282 }
 0xed6   : > { %v8306_v0 = vperm.slane %v8283_v48, %v12164_v40 }
 0xee5   : > { %v8285_v63 = vpop.xlane.xlu0 %8284 }
 0xee6   : > { %v8307_v21 = vperm.slane %v8285_v63, %v12164_v40 }
 0xee8   : > { %v8314_v32 = vsel %vm778_vm1, %v8307_v21, %v8306_v0  ;;  %vm8322_vm1 = vcmask 64512  }
 0xf07   : > { %v8289_v45 = vpop.xlane.xlu1 %8288 }
 0xf08   : > { %v8309_v53 = vperm.slane %v8289_v45, %v12164_v40 }
 0xf0c   : > { %v8293_v26 = vpop.xlane.xlu0 %8292 }
 0xf0d   : > { %v8311_v27 = vperm.slane %v8293_v26, %v12164_v40 }
 0xf12   : > { %v8295_v54 = vpop.xlane.xlu1 %8294 }
 0xf13   : > { %v8312_v10 = vperm.slane %v8295_v54, %v12164_v40 }
 0xf1d   : > { %v8287_v29 = vpop.xlane.xlu2 %8286 }
 0xf1e   : > { %v8308_v4 = vperm.slane %v8287_v29, %v12164_v40 }
 0xf20   : > { %v8315_v1 = vsel %vm781_vm2, %v8308_v4, %v8314_v32  ;;  %vm19407_vm2 = vcmask 1046534  }
 0xf21   : > { %v8316_v12 = vsel %vm784_vm3, %v8309_v53, %v8315_v1  ;;  %vm8332_vm3 = vweird.f32 %v11748_v62 }
 0xf22   : > { %v8333_v61 = vsel %vm8332_vm3, %v11748_v62, %v8331_v42 }
 0xf25   : > { %v8291_v18 = vpop.xlane.xlu2 %8290 }
 0xf26   : > { %v8310_v57 = vperm.slane %v8291_v18, %v12164_v40 }
 0xf28   : > { %v8317_v51 = vsel %vm19405_vm15, %v8310_v57, %v8316_v12 }
 0xf29   : > { %v8318_v44 = vsel %vm19406_vm6, %v8311_v27, %v8317_v51 }
 0xf2a   : > { %v8319_v22 = vsel %vm19407_vm2, %v8312_v10, %v8318_v44 }
 0xf2d   : > { %v8297_v55 = vpop.xlane.xlu2 %8296 }
 0xf2e   : > { %v8313_v36 = vperm.slane %v8297_v55, %v12164_v40 }
 0xf30   : > { %v8320_v38 = vsel %vm19408_vm4, %v8313_v36, %v8319_v22 }
 0xf31   : > { %v8323_v58 = vsel %vm8322_vm1, %v8320_v38, 0.0 }
 0xf32   : > { %8324 = vadd.xlane.f32.xlu0 %v8323_v58 }
 0xfa5   : > { %v8325_v60 = vpop.xlane.xlu0 %8324 }
 0xfa6   : > { %v8326_v17 = vsub.f32 0.0, %v8325_v60 }
 0xfa8   : > { %v8334_v40 = vmul.f32 %v8333_v61, %v8326_v17 }
 0xfaa   : > { %8336 = vst.msk [vmem:[%s471_s15] sm:$0xff] %vm8335_vm5, %v8334_v40 }
 0xfab PF: > { %s24_s25 = sadd.s32 1, %s11755_s25  }
 0xfac   : > { %p21_p5 = scmp.ge.s32.totalorder %s24_s25, 4  }
 0xfae   :  { %23 = sbr.rel (!%p21_p5) target bundleno = 1 (0x1), region = 113 }

</bundles_post_ra>
